<compile_context>
chip_gen: v6e
topology: v6e:2x2x1
jax: 0.10.0
libtpu: 0.0.40
codegen_flags: <defaults>
</compile_context>

<pallas_src>
import functools

import jax
import jax.numpy as jnp
from jax import lax
from jax.experimental import pallas as pl
from jax.experimental.pallas import tpu as pltpu

# ----- hyperparameters of the synthetic module instance -------------------
KS = 3                    # kernel_size (odd -> conv preserves length)
PAD = KS // 2             # padding = int(kernel_size / 2)
MAXPOOL = 4               # max_pool
BN_EPS = 1e-5
MAX_CHANNELS = 256


# ---------------------------------------------------------------------------
# Fused kernel factory
# ---------------------------------------------------------------------------
def _make_fused_kernel(plan, bt, hidden):
    """plan: static per-block description: dict(layers=[(c_in,c_out),...], c_out, l_in, l_out)."""
    l_last = plan[-1]["l_out"]

    def kernel(*refs):
        it = iter(refs)
        x_ref = next(it)
        blk_refs = []
        for blk in plan:
            convs = [(next(it), next(it)) for _ in blk["layers"]]
            blk_refs.append((convs, next(it), next(it), next(it), next(it)))
        sel_ref = next(it)      # (L3, bt*L3, bt)   f32 0/1
        w1_ref = next(it)       # (L3, c3, hidden)  f32
        b1_ref = next(it)       # (1, hidden)       f32
        w2_ref = next(it)       # (hidden, out_pad) f32
        b2_ref = next(it)       # (1, out_pad)      f32
        out_ref = next(it)      # (1, bt, out_pad)

        h = x_ref[0].astype(jnp.float32)                         # (1, bt*L0)

        for bi, blk in enumerate(plan):
            convs, mask_ref, dec_ref, scale_ref, shift_ref = blk_refs[bi]
            n = bt * blk["l_in"]

            # ---- [Conv1d('same') + ReLU] * num_layers: KS per-tap MXU matmuls ----
            for li, (c_in, c_out) in enumerate(blk["layers"]):
                wk_ref, b_ref = convs[li]
                acc = None
                for k in range(KS):
                    d = k - PAD
                    if d == 0:
                        t = h
                    else:
                        # shifted view t[:, j] = h[:, j + d]; boundary mask zeros the
                        # positions that would read across sample edges / wrap-around.
                        t = pltpu.roll(h, shift=(-d) % n, axis=1) * mask_ref[k]
                    term = jnp.dot(wk_ref[k], t.astype(jnp.bfloat16),
                                   preferred_element_type=jnp.float32)
                    acc = term if acc is None else acc + term
                h = jnp.maximum(acc + b_ref[...], 0.0)           # (c_out, n) f32

            # ---- MaxPool1d(MAXPOOL): roll-max + 0/1 decimation matmul ----
            m = h
            for p in range(1, MAXPOOL):
                m = jnp.maximum(m, pltpu.roll(h, shift=(-p) % n, axis=1))
            pooled = jnp.dot(m.astype(jnp.bfloat16), dec_ref[...],
                             preferred_element_type=jnp.float32)  # (c_out, bt*l_out)

            # ---- eval-mode BatchNorm1d folded to per-channel affine (post-pool) ----
            h = pooled * scale_ref[...] + shift_ref[...]

        # ---- flatten + Linear(F,256): per-position select + transposed-LHS contraction ----
        hid = jnp.zeros((bt, hidden), jnp.float32)
        for l in range(l_last):
            col = jnp.dot(h, sel_ref[l],
                          preferred_element_type=jnp.float32)     # (c3, bt) = h[:, b*L3+l]
            hid = hid + lax.dot_general(
                col, w1_ref[l],
                dimension_numbers=(((0,), (0,)), ((), ())),
                preferred_element_type=jnp.float32)               # (bt, hidden)
        hid = jnp.maximum(hid + b1_ref[...], 0.0)

        # ---- Linear(256, OUT_PAD): lane-dense unmasked store ----
        y = jnp.dot(hid, w2_ref[...], preferred_element_type=jnp.float32) + b2_ref[...]
        out_ref[0] = y.astype(out_ref.dtype)                      # (bt, out_pad)

    return kernel


# ---------------------------------------------------------------------------
# Wrapper: parameter prep (per-tap weights, masks, decimation/selection matrices,
#          BN fold, output padding) + pallas_call
# ---------------------------------------------------------------------------
def _const_spec(arr):
    zeros = (0,) * arr.ndim
    return pl.BlockSpec(arr.shape, lambda i, _z=zeros: _z)


def vgg_masked_forward(params, x, bt=4):
    B, L0 = x.shape
    assert B % bt == 0, (B, bt)
    assert KS % 2 == 1, "odd kernel_size required for length-preserving conv"

    plan = []
    kernel_inputs = [x.reshape(B // bt, 1, bt * L0).astype(jnp.float32)]
    L = L0
    for blk in params["blocks"]:
        layers = []
        for (w, b) in blk["convs"]:
            c_out, c_in, ks = w.shape
            assert ks == KS
            layers.append((c_in, c_out))
            # per-tap weights: wk[k, co, ci] = w[co, ci, k]  (bf16 for the MXU)
            wk = jnp.transpose(w, (2, 0, 1)).astype(jnp.bfloat16)
            kernel_inputs += [wk, b.reshape(c_out, 1).astype(jnp.float32)]
        c_out = layers[-1][1]
        n = bt * L
        l_out = L // MAXPOOL                                      # MaxPool1d floor semantics
        assert l_out >= 1, "signal shorter than max_pool window"

        # per-tap boundary masks (1 where the shifted read stays inside the sample)
        pos = jnp.arange(n) % L
        mask = jnp.stack(
            [((pos + (k - PAD) >= 0) & (pos + (k - PAD) < L)).astype(jnp.float32)
             for k in range(KS)])[:, None, :]                     # (KS, 1, n)

        # 0/1 decimation matrix: column b*L + MAXPOOL*l'  ->  output b*l_out + l'
        rows = jnp.arange(n)
        cols = jnp.arange(bt * l_out)
        dec = ((rows[:, None] // L == cols[None, :] // l_out) &
               (rows[:, None] % L == MAXPOOL * (cols[None, :] % l_out))
               ).astype(jnp.bfloat16)                             # (n, bt*l_out)

        scale = blk["gamma"] * jax.lax.rsqrt(blk["var"] + BN_EPS)  # BN folded to affine
        shift = blk["beta"] - blk["mean"] * scale
        kernel_inputs += [mask, dec,
                          scale.reshape(c_out, 1).astype(jnp.float32),
                          shift.reshape(c_out, 1).astype(jnp.float32)]
        plan.append(dict(layers=layers, c_out=c_out, l_in=L, l_out=l_out))
        L = l_out

    c3 = plan[-1]["c_out"]
    l3 = plan[-1]["l_out"]
    feat_dim = c3 * l3
    assert params["w1"].shape[0] == feat_dim, (params["w1"].shape, feat_dim)
    hidden = params["w1"].shape[1]
    out_dim = params["w2"].shape[1]
    out_pad = -(-out_dim // 128) * 128                            # lane-dense output slab

    # selection matrices sel[l, b*l3 + l, b] = 1 and reordered Linear1 weights
    l_idx = jnp.arange(l3)[:, None, None]
    j_idx = jnp.arange(bt * l3)[None, :, None]
    b_idx = jnp.arange(bt)[None, None, :]
    sel = (j_idx == b_idx * l3 + l_idx).astype(jnp.float32)       # (l3, bt*l3, bt)
    w1r = jnp.transpose(params["w1"].reshape(c3, l3, hidden), (1, 0, 2))  # (l3, c3, hidden)
    w2p = jnp.zeros((hidden, out_pad), jnp.float32).at[:, :out_dim].set(params["w2"])
    b2p = jnp.zeros((1, out_pad), jnp.float32).at[:, :out_dim].set(
        params["b2"].reshape(1, -1))
    kernel_inputs += [sel, w1r.astype(jnp.float32),
                      params["b1"].reshape(1, hidden).astype(jnp.float32), w2p, b2p]

    in_specs = [pl.BlockSpec((1, 1, bt * L0), lambda i: (i, 0, 0))]
    in_specs += [_const_spec(a) for a in kernel_inputs[1:]]

    y = pl.pallas_call(
        _make_fused_kernel(plan, bt, hidden),
        out_shape=jax.ShapeDtypeStruct((B // bt, bt, out_pad), jnp.float32),
        grid=(B // bt,),
        in_specs=in_specs,
        out_specs=pl.BlockSpec((1, bt, out_pad), lambda i: (i, 0, 0)),
        compiler_params=pltpu.CompilerParams(
            dimension_semantics=("parallel",),
            vmem_limit_bytes=32 * 1024 * 1024),
    )(*kernel_inputs)
    return y.reshape(B, out_pad)[:, :out_dim]


# ---------------------------------------------------------------------------
# Parameter construction (deterministic, mirrors VGGMasked.__init__ shapes)
# ---------------------------------------------------------------------------
def build_params(key, input_shape, out_shape, num_layers, kernel_size,
                 channel_size, max_pool):
    pad = kernel_size // 2
    keys = iter(jax.random.split(key, 3 * num_layers * 2 + 8))

    def uni(shape, fan_in):
        bound = 1.0 / float(fan_in) ** 0.5
        return jax.random.uniform(next(keys), shape, jnp.float32, -bound, bound)

    # block1 (1 -> C), block2 (C -> 2C), block3 (2C -> 4C), capped at 256
    out1 = min(channel_size, MAX_CHANNELS)
    out2 = min(2 * channel_size, MAX_CHANNELS)
    out3 = min(2 * out2, MAX_CHANNELS)
    chan_plan = [(1, out1), (out1, out2), (out2, out3)]

    blocks = []
    num_features = input_shape
    for in_ch, out_ch in chan_plan:
        convs = []
        ic = in_ch
        for _ in range(num_layers):
            w = uni((out_ch, ic, kernel_size), ic * kernel_size)
            b = uni((out_ch,), ic * kernel_size)
            convs.append((w, b))
            ic = out_ch
        blocks.append(dict(
            convs=convs,
            gamma=jnp.ones((out_ch,), jnp.float32),
            beta=jnp.zeros((out_ch,), jnp.float32),
            mean=jnp.zeros((out_ch,), jnp.float32),
            var=jnp.ones((out_ch,), jnp.float32),
        ))
        for _ in range(num_layers):                               # calc_num_features
            num_features = num_features + 2 * pad - (kernel_size - 1)
        num_features = int(num_features / max_pool)

    flat = int(chan_plan[-1][1] * num_features)
    return dict(
        blocks=blocks,
        w1=uni((flat, 256), flat), b1=uni((256,), flat),
        w2=uni((256, out_shape), 256), b2=uni((out_shape,), 256),
    )


# ---------------------------------------------------------------------------
# Pure-JAX reference for validation
# ---------------------------------------------------------------------------
def reference_forward(params, x):
    B = x.shape[0]
    h = x.reshape(B, 1, -1).astype(jnp.float32)
    for blk in params["blocks"]:
        for w, b in blk["convs"]:
            L = h.shape[-1]
            hp = jnp.pad(h, ((0, 0), (0, 0), (PAD, PAD)))
            acc = sum(jnp.einsum("oc,bcl->bol", w[:, :, k], hp[:, :, k:k + L],
                                 precision=jax.lax.Precision.HIGHEST)
                      for k in range(KS))
            h = jnp.maximum(acc + b[None, :, None], 0.0)
        L = h.shape[-1]
        l_out = L // MAXPOOL
        h = h[:, :, :l_out * MAXPOOL].reshape(B, h.shape[1], l_out, MAXPOOL).max(axis=-1)
        scale = blk["gamma"] * jax.lax.rsqrt(blk["var"] + BN_EPS)
        shift = blk["beta"] - blk["mean"] * scale
        h = h * scale[None, :, None] + shift[None, :, None]
    h = h.reshape(B, -1)
    h = jnp.maximum(jnp.dot(h, params["w1"],
                            precision=jax.lax.Precision.HIGHEST) + params["b1"], 0.0)
    return jnp.dot(h, params["w2"],
                   precision=jax.lax.Precision.HIGHEST) + params["b2"]


# ---------------------------------------------------------------------------
if __name__ == "__main__":
    B = 8
    BT = 4                     # samples per grid step (grid=(2,) keeps both v7x TCs busy)
    INPUT_SHAPE = 512          # 1-D signal length; divisible by max_pool**3
    OUT_SHAPE = 8
    NUM_LAYERS = 2
    CHANNEL_SIZE = 4

    key = jax.random.PRNGKey(0)
    pkey, xkey = jax.random.split(key)
    params = build_params(pkey, INPUT_SHAPE, OUT_SHAPE, NUM_LAYERS, KS,
                          CHANNEL_SIZE, MAXPOOL)
    x = jax.random.normal(xkey, (B, INPUT_SHAPE), jnp.float32)

    fwd = jax.jit(functools.partial(vgg_masked_forward, bt=BT))
    y = jax.block_until_ready(fwd(params, x))
    assert y.shape == (B, OUT_SHAPE), y.shape
    assert bool(jnp.all(jnp.isfinite(y)))

    y_ref = reference_forward(params, x)
    err = float(jnp.max(jnp.abs(y - y_ref)))
    # bf16 matmul operands with f32 accumulation -> slightly looser tolerance than pure f32
    assert err < 4e-2, f"kernel/reference mismatch: max abs err = {err}"
    print("KERNEL_OK")
</pallas_src>

<mosaic_0001>
module attributes {stable_mosaic.version = 11 : i64} {
  func.func @kernel(%arg0: i32, %arg1: memref<1x1x2048xf32, #tpu.memory_space<vmem>>, %arg2: memref<3x4x1xbf16, #tpu.memory_space<vmem>>, %arg3: memref<4x1xf32, #tpu.memory_space<vmem>>, %arg4: memref<3x4x4xbf16, #tpu.memory_space<vmem>>, %arg5: memref<4x1xf32, #tpu.memory_space<vmem>>, %arg6: memref<3x1x2048xf32, #tpu.memory_space<vmem>>, %arg7: memref<2048x512xbf16, #tpu.memory_space<vmem>>, %arg8: memref<4x1xf32, #tpu.memory_space<vmem>>, %arg9: memref<4x1xf32, #tpu.memory_space<vmem>>, %arg10: memref<3x8x4xbf16, #tpu.memory_space<vmem>>, %arg11: memref<8x1xf32, #tpu.memory_space<vmem>>, %arg12: memref<3x8x8xbf16, #tpu.memory_space<vmem>>, %arg13: memref<8x1xf32, #tpu.memory_space<vmem>>, %arg14: memref<3x1x512xf32, #tpu.memory_space<vmem>>, %arg15: memref<512x128xbf16, #tpu.memory_space<vmem>>, %arg16: memref<8x1xf32, #tpu.memory_space<vmem>>, %arg17: memref<8x1xf32, #tpu.memory_space<vmem>>, %arg18: memref<3x16x8xbf16, #tpu.memory_space<vmem>>, %arg19: memref<16x1xf32, #tpu.memory_space<vmem>>, %arg20: memref<3x16x16xbf16, #tpu.memory_space<vmem>>, %arg21: memref<16x1xf32, #tpu.memory_space<vmem>>, %arg22: memref<3x1x128xf32, #tpu.memory_space<vmem>>, %arg23: memref<128x32xbf16, #tpu.memory_space<vmem>>, %arg24: memref<16x1xf32, #tpu.memory_space<vmem>>, %arg25: memref<16x1xf32, #tpu.memory_space<vmem>>, %arg26: memref<8x32x4xf32, #tpu.memory_space<vmem>>, %arg27: memref<8x16x256xf32, #tpu.memory_space<vmem>>, %arg28: memref<1x256xf32, #tpu.memory_space<vmem>>, %arg29: memref<256x128xf32, #tpu.memory_space<vmem>>, %arg30: memref<1x128xf32, #tpu.memory_space<vmem>>, %arg31: memref<1x4x128xf32, #tpu.memory_space<vmem>>) attributes {dimension_semantics = [#tpu.dimension_semantics<parallel>], iteration_bounds = array<i64: 2>, scalar_prefetch = 0 : i64, scratch_operands = 0 : i64, tpu.core_type = #tpu.core_type<tc>, window_params = [{transform_indices = @transform_0, window_bounds = array<i64: 1, 1, 2048>}, {pipeline_mode = #tpu.pipeline_mode<synchronous>, transform_indices = @transform_1, window_bounds = array<i64: 3, 4, 1>}, {pipeline_mode = #tpu.pipeline_mode<synchronous>, transform_indices = @transform_2, window_bounds = array<i64: 4, 1>}, {pipeline_mode = #tpu.pipeline_mode<synchronous>, transform_indices = @transform_3, window_bounds = array<i64: 3, 4, 4>}, {pipeline_mode = #tpu.pipeline_mode<synchronous>, transform_indices = @transform_4, window_bounds = array<i64: 4, 1>}, {pipeline_mode = #tpu.pipeline_mode<synchronous>, transform_indices = @transform_5, window_bounds = array<i64: 3, 1, 2048>}, {pipeline_mode = #tpu.pipeline_mode<synchronous>, transform_indices = @transform_6, window_bounds = array<i64: 2048, 512>}, {pipeline_mode = #tpu.pipeline_mode<synchronous>, transform_indices = @transform_7, window_bounds = array<i64: 4, 1>}, {pipeline_mode = #tpu.pipeline_mode<synchronous>, transform_indices = @transform_8, window_bounds = array<i64: 4, 1>}, {pipeline_mode = #tpu.pipeline_mode<synchronous>, transform_indices = @transform_9, window_bounds = array<i64: 3, 8, 4>}, {pipeline_mode = #tpu.pipeline_mode<synchronous>, transform_indices = @transform_10, window_bounds = array<i64: 8, 1>}, {pipeline_mode = #tpu.pipeline_mode<synchronous>, transform_indices = @transform_11, window_bounds = array<i64: 3, 8, 8>}, {pipeline_mode = #tpu.pipeline_mode<synchronous>, transform_indices = @transform_12, window_bounds = array<i64: 8, 1>}, {pipeline_mode = #tpu.pipeline_mode<synchronous>, transform_indices = @transform_13, window_bounds = array<i64: 3, 1, 512>}, {pipeline_mode = #tpu.pipeline_mode<synchronous>, transform_indices = @transform_14, window_bounds = array<i64: 512, 128>}, {pipeline_mode = #tpu.pipeline_mode<synchronous>, transform_indices = @transform_15, window_bounds = array<i64: 8, 1>}, {pipeline_mode = #tpu.pipeline_mode<synchronous>, transform_indices = @transform_16, window_bounds = array<i64: 8, 1>}, {pipeline_mode = #tpu.pipeline_mode<synchronous>, transform_indices = @transform_17, window_bounds = array<i64: 3, 16, 8>}, {pipeline_mode = #tpu.pipeline_mode<synchronous>, transform_indices = @transform_18, window_bounds = array<i64: 16, 1>}, {pipeline_mode = #tpu.pipeline_mode<synchronous>, transform_indices = @transform_19, window_bounds = array<i64: 3, 16, 16>}, {pipeline_mode = #tpu.pipeline_mode<synchronous>, transform_indices = @transform_20, window_bounds = array<i64: 16, 1>}, {pipeline_mode = #tpu.pipeline_mode<synchronous>, transform_indices = @transform_21, window_bounds = array<i64: 3, 1, 128>}, {pipeline_mode = #tpu.pipeline_mode<synchronous>, transform_indices = @transform_22, window_bounds = array<i64: 128, 32>}, {pipeline_mode = #tpu.pipeline_mode<synchronous>, transform_indices = @transform_23, window_bounds = array<i64: 16, 1>}, {pipeline_mode = #tpu.pipeline_mode<synchronous>, transform_indices = @transform_24, window_bounds = array<i64: 16, 1>}, {pipeline_mode = #tpu.pipeline_mode<synchronous>, transform_indices = @transform_25, window_bounds = array<i64: 8, 32, 4>}, {pipeline_mode = #tpu.pipeline_mode<synchronous>, transform_indices = @transform_26, window_bounds = array<i64: 8, 16, 256>}, {pipeline_mode = #tpu.pipeline_mode<synchronous>, transform_indices = @transform_27, window_bounds = array<i64: 1, 256>}, {pipeline_mode = #tpu.pipeline_mode<synchronous>, transform_indices = @transform_28, window_bounds = array<i64: 256, 128>}, {pipeline_mode = #tpu.pipeline_mode<synchronous>, transform_indices = @transform_29, window_bounds = array<i64: 1, 128>}, {transform_indices = @transform_30, window_bounds = array<i64: 1, 4, 128>}]} {
    %c0 = arith.constant 0 : index
    %c0_0 = arith.constant 0 : index
    %c0_1 = arith.constant 0 : index
    %0 = vector.load %arg1[%c0, %c0_0, %c0_1] : memref<1x1x2048xf32, #tpu.memory_space<vmem>>, vector<1x1x2048xf32>
    %1 = vector.shape_cast %0 : vector<1x1x2048xf32> to vector<1x2048xf32>
    %c1_i32 = arith.constant 1 : i32
    %2 = tpu.dynamic_rotate %1 by %c1_i32 dim 1 : vector<1x2048xf32>, i32 -> vector<1x2048xf32>
    %c0_2 = arith.constant 0 : index
    %c0_3 = arith.constant 0 : index
    %c0_4 = arith.constant 0 : index
    %3 = vector.load %arg6[%c0_2, %c0_3, %c0_4] : memref<3x1x2048xf32, #tpu.memory_space<vmem>>, vector<1x1x2048xf32>
    %4 = vector.shape_cast %3 : vector<1x1x2048xf32> to vector<1x2048xf32>
    %5 = arith.mulf %2, %4 : vector<1x2048xf32>
    %c0_5 = arith.constant 0 : index
    %c0_6 = arith.constant 0 : index
    %c0_7 = arith.constant 0 : index
    %6 = vector.load %arg2[%c0_5, %c0_6, %c0_7] : memref<3x4x1xbf16, #tpu.memory_space<vmem>>, vector<1x4x1xbf16>
    %7 = vector.shape_cast %6 : vector<1x4x1xbf16> to vector<4x1xbf16>
    %8 = arith.truncf %5 : vector<1x2048xf32> to vector<1x2048xbf16>
    %cst = arith.constant dense<0.000000e+00> : vector<4x2048xf32>
    %9 = tpu.matmul %7, %8, %cst {dimension_numbers = #tpu.dot_dimension_numbers<[1], [0], [0], [1], [0, 0, 1, 1], [], []>} : vector<4x1xbf16>, vector<1x2048xbf16>, vector<4x2048xf32> -> vector<4x2048xf32>
    %c1 = arith.constant 1 : index
    %c0_8 = arith.constant 0 : index
    %c0_9 = arith.constant 0 : index
    %10 = vector.load %arg2[%c1, %c0_8, %c0_9] : memref<3x4x1xbf16, #tpu.memory_space<vmem>>, vector<1x4x1xbf16>
    %11 = vector.shape_cast %10 : vector<1x4x1xbf16> to vector<4x1xbf16>
    %12 = arith.truncf %1 : vector<1x2048xf32> to vector<1x2048xbf16>
    %cst_10 = arith.constant dense<0.000000e+00> : vector<4x2048xf32>
    %13 = tpu.matmul %11, %12, %cst_10 {dimension_numbers = #tpu.dot_dimension_numbers<[1], [0], [0], [1], [0, 0, 1, 1], [], []>} : vector<4x1xbf16>, vector<1x2048xbf16>, vector<4x2048xf32> -> vector<4x2048xf32>
    %14 = arith.addf %9, %13 : vector<4x2048xf32>
    %c2047_i32 = arith.constant 2047 : i32
    %15 = tpu.dynamic_rotate %1 by %c2047_i32 dim 1 : vector<1x2048xf32>, i32 -> vector<1x2048xf32>
    %c2 = arith.constant 2 : index
    %c0_11 = arith.constant 0 : index
    %c0_12 = arith.constant 0 : index
    %16 = vector.load %arg6[%c2, %c0_11, %c0_12] : memref<3x1x2048xf32, #tpu.memory_space<vmem>>, vector<1x1x2048xf32>
    %17 = vector.shape_cast %16 : vector<1x1x2048xf32> to vector<1x2048xf32>
    %18 = arith.mulf %15, %17 : vector<1x2048xf32>
    %c2_13 = arith.constant 2 : index
    %c0_14 = arith.constant 0 : index
    %c0_15 = arith.constant 0 : index
    %19 = vector.load %arg2[%c2_13, %c0_14, %c0_15] : memref<3x4x1xbf16, #tpu.memory_space<vmem>>, vector<1x4x1xbf16>
    %20 = vector.shape_cast %19 : vector<1x4x1xbf16> to vector<4x1xbf16>
    %21 = arith.truncf %18 : vector<1x2048xf32> to vector<1x2048xbf16>
    %cst_16 = arith.constant dense<0.000000e+00> : vector<4x2048xf32>
    %22 = tpu.matmul %20, %21, %cst_16 {dimension_numbers = #tpu.dot_dimension_numbers<[1], [0], [0], [1], [0, 0, 1, 1], [], []>} : vector<4x1xbf16>, vector<1x2048xbf16>, vector<4x2048xf32> -> vector<4x2048xf32>
    %23 = arith.addf %14, %22 : vector<4x2048xf32>
    %c0_17 = arith.constant 0 : index
    %c0_18 = arith.constant 0 : index
    %24 = vector.load %arg3[%c0_17, %c0_18] : memref<4x1xf32, #tpu.memory_space<vmem>>, vector<4x1xf32>
    %25 = vector.broadcast %24 : vector<4x1xf32> to vector<4x2048xf32>
    %26 = arith.addf %23, %25 : vector<4x2048xf32>
    %cst_19 = arith.constant 0.000000e+00 : f32
    %27 = vector.broadcast %cst_19 : f32 to vector<4x2048xf32>
    %28 = arith.maximumf %26, %27 : vector<4x2048xf32>
    %c1_i32_20 = arith.constant 1 : i32
    %29 = tpu.dynamic_rotate %28 by %c1_i32_20 dim 1 : vector<4x2048xf32>, i32 -> vector<4x2048xf32>
    %c0_21 = arith.constant 0 : index
    %c0_22 = arith.constant 0 : index
    %c0_23 = arith.constant 0 : index
    %30 = vector.load %arg6[%c0_21, %c0_22, %c0_23] : memref<3x1x2048xf32, #tpu.memory_space<vmem>>, vector<1x1x2048xf32>
    %31 = vector.shape_cast %30 : vector<1x1x2048xf32> to vector<1x2048xf32>
    %32 = vector.broadcast %31 : vector<1x2048xf32> to vector<4x2048xf32>
    %33 = arith.mulf %29, %32 : vector<4x2048xf32>
    %c0_24 = arith.constant 0 : index
    %c0_25 = arith.constant 0 : index
    %c0_26 = arith.constant 0 : index
    %34 = vector.load %arg4[%c0_24, %c0_25, %c0_26] : memref<3x4x4xbf16, #tpu.memory_space<vmem>>, vector<1x4x4xbf16>
    %35 = vector.shape_cast %34 : vector<1x4x4xbf16> to vector<4x4xbf16>
    %36 = arith.truncf %33 : vector<4x2048xf32> to vector<4x2048xbf16>
    %cst_27 = arith.constant dense<0.000000e+00> : vector<4x2048xf32>
    %37 = tpu.matmul %35, %36, %cst_27 {dimension_numbers = #tpu.dot_dimension_numbers<[1], [0], [0], [1], [0, 0, 1, 1], [], []>} : vector<4x4xbf16>, vector<4x2048xbf16>, vector<4x2048xf32> -> vector<4x2048xf32>
    %c1_28 = arith.constant 1 : index
    %c0_29 = arith.constant 0 : index
    %c0_30 = arith.constant 0 : index
    %38 = vector.load %arg4[%c1_28, %c0_29, %c0_30] : memref<3x4x4xbf16, #tpu.memory_space<vmem>>, vector<1x4x4xbf16>
    %39 = vector.shape_cast %38 : vector<1x4x4xbf16> to vector<4x4xbf16>
    %40 = arith.truncf %28 : vector<4x2048xf32> to vector<4x2048xbf16>
    %cst_31 = arith.constant dense<0.000000e+00> : vector<4x2048xf32>
    %41 = tpu.matmul %39, %40, %cst_31 {dimension_numbers = #tpu.dot_dimension_numbers<[1], [0], [0], [1], [0, 0, 1, 1], [], []>} : vector<4x4xbf16>, vector<4x2048xbf16>, vector<4x2048xf32> -> vector<4x2048xf32>
    %42 = arith.addf %37, %41 : vector<4x2048xf32>
    %c2047_i32_32 = arith.constant 2047 : i32
    %43 = tpu.dynamic_rotate %28 by %c2047_i32_32 dim 1 : vector<4x2048xf32>, i32 -> vector<4x2048xf32>
    %c2_33 = arith.constant 2 : index
    %c0_34 = arith.constant 0 : index
    %c0_35 = arith.constant 0 : index
    %44 = vector.load %arg6[%c2_33, %c0_34, %c0_35] : memref<3x1x2048xf32, #tpu.memory_space<vmem>>, vector<1x1x2048xf32>
    %45 = vector.shape_cast %44 : vector<1x1x2048xf32> to vector<1x2048xf32>
    %46 = vector.broadcast %45 : vector<1x2048xf32> to vector<4x2048xf32>
    %47 = arith.mulf %43, %46 : vector<4x2048xf32>
    %c2_36 = arith.constant 2 : index
    %c0_37 = arith.constant 0 : index
    %c0_38 = arith.constant 0 : index
    %48 = vector.load %arg4[%c2_36, %c0_37, %c0_38] : memref<3x4x4xbf16, #tpu.memory_space<vmem>>, vector<1x4x4xbf16>
    %49 = vector.shape_cast %48 : vector<1x4x4xbf16> to vector<4x4xbf16>
    %50 = arith.truncf %47 : vector<4x2048xf32> to vector<4x2048xbf16>
    %cst_39 = arith.constant dense<0.000000e+00> : vector<4x2048xf32>
    %51 = tpu.matmul %49, %50, %cst_39 {dimension_numbers = #tpu.dot_dimension_numbers<[1], [0], [0], [1], [0, 0, 1, 1], [], []>} : vector<4x4xbf16>, vector<4x2048xbf16>, vector<4x2048xf32> -> vector<4x2048xf32>
    %52 = arith.addf %42, %51 : vector<4x2048xf32>
    %c0_40 = arith.constant 0 : index
    %c0_41 = arith.constant 0 : index
    %53 = vector.load %arg5[%c0_40, %c0_41] : memref<4x1xf32, #tpu.memory_space<vmem>>, vector<4x1xf32>
    %54 = vector.broadcast %53 : vector<4x1xf32> to vector<4x2048xf32>
    %55 = arith.addf %52, %54 : vector<4x2048xf32>
    %cst_42 = arith.constant 0.000000e+00 : f32
    %56 = vector.broadcast %cst_42 : f32 to vector<4x2048xf32>
    %57 = arith.maximumf %55, %56 : vector<4x2048xf32>
    %c2047_i32_43 = arith.constant 2047 : i32
    %58 = tpu.dynamic_rotate %57 by %c2047_i32_43 dim 1 : vector<4x2048xf32>, i32 -> vector<4x2048xf32>
    %59 = arith.maximumf %57, %58 : vector<4x2048xf32>
    %c2046_i32 = arith.constant 2046 : i32
    %60 = tpu.dynamic_rotate %57 by %c2046_i32 dim 1 : vector<4x2048xf32>, i32 -> vector<4x2048xf32>
    %61 = arith.maximumf %59, %60 : vector<4x2048xf32>
    %c2045_i32 = arith.constant 2045 : i32
    %62 = tpu.dynamic_rotate %57 by %c2045_i32 dim 1 : vector<4x2048xf32>, i32 -> vector<4x2048xf32>
    %63 = arith.maximumf %61, %62 : vector<4x2048xf32>
    %64 = arith.truncf %63 : vector<4x2048xf32> to vector<4x2048xbf16>
    %c0_44 = arith.constant 0 : index
    %c0_45 = arith.constant 0 : index
    %65 = vector.load %arg7[%c0_44, %c0_45] : memref<2048x512xbf16, #tpu.memory_space<vmem>>, vector<2048x512xbf16>
    %cst_46 = arith.constant dense<0.000000e+00> : vector<4x512xf32>
    %66 = tpu.matmul %64, %65, %cst_46 {dimension_numbers = #tpu.dot_dimension_numbers<[1], [0], [0], [1], [0, 0, 1, 1], [], []>} : vector<4x2048xbf16>, vector<2048x512xbf16>, vector<4x512xf32> -> vector<4x512xf32>
    %c0_47 = arith.constant 0 : index
    %c0_48 = arith.constant 0 : index
    %67 = vector.load %arg8[%c0_47, %c0_48] : memref<4x1xf32, #tpu.memory_space<vmem>>, vector<4x1xf32>
    %68 = vector.broadcast %67 : vector<4x1xf32> to vector<4x512xf32>
    %69 = arith.mulf %66, %68 : vector<4x512xf32>
    %c0_49 = arith.constant 0 : index
    %c0_50 = arith.constant 0 : index
    %70 = vector.load %arg9[%c0_49, %c0_50] : memref<4x1xf32, #tpu.memory_space<vmem>>, vector<4x1xf32>
    %71 = vector.broadcast %70 : vector<4x1xf32> to vector<4x512xf32>
    %72 = arith.addf %69, %71 : vector<4x512xf32>
    %c1_i32_51 = arith.constant 1 : i32
    %73 = tpu.dynamic_rotate %72 by %c1_i32_51 dim 1 : vector<4x512xf32>, i32 -> vector<4x512xf32>
    %c0_52 = arith.constant 0 : index
    %c0_53 = arith.constant 0 : index
    %c0_54 = arith.constant 0 : index
    %74 = vector.load %arg14[%c0_52, %c0_53, %c0_54] : memref<3x1x512xf32, #tpu.memory_space<vmem>>, vector<1x1x512xf32>
    %75 = vector.shape_cast %74 : vector<1x1x512xf32> to vector<1x512xf32>
    %76 = vector.broadcast %75 : vector<1x512xf32> to vector<4x512xf32>
    %77 = arith.mulf %73, %76 : vector<4x512xf32>
    %c0_55 = arith.constant 0 : index
    %c0_56 = arith.constant 0 : index
    %c0_57 = arith.constant 0 : index
    %78 = vector.load %arg10[%c0_55, %c0_56, %c0_57] : memref<3x8x4xbf16, #tpu.memory_space<vmem>>, vector<1x8x4xbf16>
    %79 = vector.shape_cast %78 : vector<1x8x4xbf16> to vector<8x4xbf16>
    %80 = arith.truncf %77 : vector<4x512xf32> to vector<4x512xbf16>
    %cst_58 = arith.constant dense<0.000000e+00> : vector<8x512xf32>
    %81 = tpu.matmul %79, %80, %cst_58 {dimension_numbers = #tpu.dot_dimension_numbers<[1], [0], [0], [1], [0, 0, 1, 1], [], []>} : vector<8x4xbf16>, vector<4x512xbf16>, vector<8x512xf32> -> vector<8x512xf32>
    %c1_59 = arith.constant 1 : index
    %c0_60 = arith.constant 0 : index
    %c0_61 = arith.constant 0 : index
    %82 = vector.load %arg10[%c1_59, %c0_60, %c0_61] : memref<3x8x4xbf16, #tpu.memory_space<vmem>>, vector<1x8x4xbf16>
    %83 = vector.shape_cast %82 : vector<1x8x4xbf16> to vector<8x4xbf16>
    %84 = arith.truncf %72 : vector<4x512xf32> to vector<4x512xbf16>
    %cst_62 = arith.constant dense<0.000000e+00> : vector<8x512xf32>
    %85 = tpu.matmul %83, %84, %cst_62 {dimension_numbers = #tpu.dot_dimension_numbers<[1], [0], [0], [1], [0, 0, 1, 1], [], []>} : vector<8x4xbf16>, vector<4x512xbf16>, vector<8x512xf32> -> vector<8x512xf32>
    %86 = arith.addf %81, %85 : vector<8x512xf32>
    %c511_i32 = arith.constant 511 : i32
    %87 = tpu.dynamic_rotate %72 by %c511_i32 dim 1 : vector<4x512xf32>, i32 -> vector<4x512xf32>
    %c2_63 = arith.constant 2 : index
    %c0_64 = arith.constant 0 : index
    %c0_65 = arith.constant 0 : index
    %88 = vector.load %arg14[%c2_63, %c0_64, %c0_65] : memref<3x1x512xf32, #tpu.memory_space<vmem>>, vector<1x1x512xf32>
    %89 = vector.shape_cast %88 : vector<1x1x512xf32> to vector<1x512xf32>
    %90 = vector.broadcast %89 : vector<1x512xf32> to vector<4x512xf32>
    %91 = arith.mulf %87, %90 : vector<4x512xf32>
    %c2_66 = arith.constant 2 : index
    %c0_67 = arith.constant 0 : index
    %c0_68 = arith.constant 0 : index
    %92 = vector.load %arg10[%c2_66, %c0_67, %c0_68] : memref<3x8x4xbf16, #tpu.memory_space<vmem>>, vector<1x8x4xbf16>
    %93 = vector.shape_cast %92 : vector<1x8x4xbf16> to vector<8x4xbf16>
    %94 = arith.truncf %91 : vector<4x512xf32> to vector<4x512xbf16>
    %cst_69 = arith.constant dense<0.000000e+00> : vector<8x512xf32>
    %95 = tpu.matmul %93, %94, %cst_69 {dimension_numbers = #tpu.dot_dimension_numbers<[1], [0], [0], [1], [0, 0, 1, 1], [], []>} : vector<8x4xbf16>, vector<4x512xbf16>, vector<8x512xf32> -> vector<8x512xf32>
    %96 = arith.addf %86, %95 : vector<8x512xf32>
    %c0_70 = arith.constant 0 : index
    %c0_71 = arith.constant 0 : index
    %97 = vector.load %arg11[%c0_70, %c0_71] : memref<8x1xf32, #tpu.memory_space<vmem>>, vector<8x1xf32>
    %98 = vector.broadcast %97 : vector<8x1xf32> to vector<8x512xf32>
    %99 = arith.addf %96, %98 : vector<8x512xf32>
    %cst_72 = arith.constant 0.000000e+00 : f32
    %100 = vector.broadcast %cst_72 : f32 to vector<8x512xf32>
    %101 = arith.maximumf %99, %100 : vector<8x512xf32>
    %c1_i32_73 = arith.constant 1 : i32
    %102 = tpu.dynamic_rotate %101 by %c1_i32_73 dim 1 : vector<8x512xf32>, i32 -> vector<8x512xf32>
    %c0_74 = arith.constant 0 : index
    %c0_75 = arith.constant 0 : index
    %c0_76 = arith.constant 0 : index
    %103 = vector.load %arg14[%c0_74, %c0_75, %c0_76] : memref<3x1x512xf32, #tpu.memory_space<vmem>>, vector<1x1x512xf32>
    %104 = vector.shape_cast %103 : vector<1x1x512xf32> to vector<1x512xf32>
    %105 = vector.broadcast %104 : vector<1x512xf32> to vector<8x512xf32>
    %106 = arith.mulf %102, %105 : vector<8x512xf32>
    %c0_77 = arith.constant 0 : index
    %c0_78 = arith.constant 0 : index
    %c0_79 = arith.constant 0 : index
    %107 = vector.load %arg12[%c0_77, %c0_78, %c0_79] : memref<3x8x8xbf16, #tpu.memory_space<vmem>>, vector<1x8x8xbf16>
    %108 = vector.shape_cast %107 : vector<1x8x8xbf16> to vector<8x8xbf16>
    %109 = arith.truncf %106 : vector<8x512xf32> to vector<8x512xbf16>
    %cst_80 = arith.constant dense<0.000000e+00> : vector<8x512xf32>
    %110 = tpu.matmul %108, %109, %cst_80 {dimension_numbers = #tpu.dot_dimension_numbers<[1], [0], [0], [1], [0, 0, 1, 1], [], []>} : vector<8x8xbf16>, vector<8x512xbf16>, vector<8x512xf32> -> vector<8x512xf32>
    %c1_81 = arith.constant 1 : index
    %c0_82 = arith.constant 0 : index
    %c0_83 = arith.constant 0 : index
    %111 = vector.load %arg12[%c1_81, %c0_82, %c0_83] : memref<3x8x8xbf16, #tpu.memory_space<vmem>>, vector<1x8x8xbf16>
    %112 = vector.shape_cast %111 : vector<1x8x8xbf16> to vector<8x8xbf16>
    %113 = arith.truncf %101 : vector<8x512xf32> to vector<8x512xbf16>
    %cst_84 = arith.constant dense<0.000000e+00> : vector<8x512xf32>
    %114 = tpu.matmul %112, %113, %cst_84 {dimension_numbers = #tpu.dot_dimension_numbers<[1], [0], [0], [1], [0, 0, 1, 1], [], []>} : vector<8x8xbf16>, vector<8x512xbf16>, vector<8x512xf32> -> vector<8x512xf32>
    %115 = arith.addf %110, %114 : vector<8x512xf32>
    %c511_i32_85 = arith.constant 511 : i32
    %116 = tpu.dynamic_rotate %101 by %c511_i32_85 dim 1 : vector<8x512xf32>, i32 -> vector<8x512xf32>
    %c2_86 = arith.constant 2 : index
    %c0_87 = arith.constant 0 : index
    %c0_88 = arith.constant 0 : index
    %117 = vector.load %arg14[%c2_86, %c0_87, %c0_88] : memref<3x1x512xf32, #tpu.memory_space<vmem>>, vector<1x1x512xf32>
    %118 = vector.shape_cast %117 : vector<1x1x512xf32> to vector<1x512xf32>
    %119 = vector.broadcast %118 : vector<1x512xf32> to vector<8x512xf32>
    %120 = arith.mulf %116, %119 : vector<8x512xf32>
    %c2_89 = arith.constant 2 : index
    %c0_90 = arith.constant 0 : index
    %c0_91 = arith.constant 0 : index
    %121 = vector.load %arg12[%c2_89, %c0_90, %c0_91] : memref<3x8x8xbf16, #tpu.memory_space<vmem>>, vector<1x8x8xbf16>
    %122 = vector.shape_cast %121 : vector<1x8x8xbf16> to vector<8x8xbf16>
    %123 = arith.truncf %120 : vector<8x512xf32> to vector<8x512xbf16>
    %cst_92 = arith.constant dense<0.000000e+00> : vector<8x512xf32>
    %124 = tpu.matmul %122, %123, %cst_92 {dimension_numbers = #tpu.dot_dimension_numbers<[1], [0], [0], [1], [0, 0, 1, 1], [], []>} : vector<8x8xbf16>, vector<8x512xbf16>, vector<8x512xf32> -> vector<8x512xf32>
    %125 = arith.addf %115, %124 : vector<8x512xf32>
    %c0_93 = arith.constant 0 : index
    %c0_94 = arith.constant 0 : index
    %126 = vector.load %arg13[%c0_93, %c0_94] : memref<8x1xf32, #tpu.memory_space<vmem>>, vector<8x1xf32>
    %127 = vector.broadcast %126 : vector<8x1xf32> to vector<8x512xf32>
    %128 = arith.addf %125, %127 : vector<8x512xf32>
    %cst_95 = arith.constant 0.000000e+00 : f32
    %129 = vector.broadcast %cst_95 : f32 to vector<8x512xf32>
    %130 = arith.maximumf %128, %129 : vector<8x512xf32>
    %c511_i32_96 = arith.constant 511 : i32
    %131 = tpu.dynamic_rotate %130 by %c511_i32_96 dim 1 : vector<8x512xf32>, i32 -> vector<8x512xf32>
    %132 = arith.maximumf %130, %131 : vector<8x512xf32>
    %c510_i32 = arith.constant 510 : i32
    %133 = tpu.dynamic_rotate %130 by %c510_i32 dim 1 : vector<8x512xf32>, i32 -> vector<8x512xf32>
    %134 = arith.maximumf %132, %133 : vector<8x512xf32>
    %c509_i32 = arith.constant 509 : i32
    %135 = tpu.dynamic_rotate %130 by %c509_i32 dim 1 : vector<8x512xf32>, i32 -> vector<8x512xf32>
    %136 = arith.maximumf %134, %135 : vector<8x512xf32>
    %137 = arith.truncf %136 : vector<8x512xf32> to vector<8x512xbf16>
    %c0_97 = arith.constant 0 : index
    %c0_98 = arith.constant 0 : index
    %138 = vector.load %arg15[%c0_97, %c0_98] : memref<512x128xbf16, #tpu.memory_space<vmem>>, vector<512x128xbf16>
    %cst_99 = arith.constant dense<0.000000e+00> : vector<8x128xf32>
    %139 = tpu.matmul %137, %138, %cst_99 {dimension_numbers = #tpu.dot_dimension_numbers<[1], [0], [0], [1], [0, 0, 1, 1], [], []>} : vector<8x512xbf16>, vector<512x128xbf16>, vector<8x128xf32> -> vector<8x128xf32>
    %c0_100 = arith.constant 0 : index
    %c0_101 = arith.constant 0 : index
    %140 = vector.load %arg16[%c0_100, %c0_101] : memref<8x1xf32, #tpu.memory_space<vmem>>, vector<8x1xf32>
    %141 = vector.broadcast %140 : vector<8x1xf32> to vector<8x128xf32>
    %142 = arith.mulf %139, %141 : vector<8x128xf32>
    %c0_102 = arith.constant 0 : index
    %c0_103 = arith.constant 0 : index
    %143 = vector.load %arg17[%c0_102, %c0_103] : memref<8x1xf32, #tpu.memory_space<vmem>>, vector<8x1xf32>
    %144 = vector.broadcast %143 : vector<8x1xf32> to vector<8x128xf32>
    %145 = arith.addf %142, %144 : vector<8x128xf32>
    %c1_i32_104 = arith.constant 1 : i32
    %146 = tpu.dynamic_rotate %145 by %c1_i32_104 dim 1 : vector<8x128xf32>, i32 -> vector<8x128xf32>
    %c0_105 = arith.constant 0 : index
    %c0_106 = arith.constant 0 : index
    %c0_107 = arith.constant 0 : index
    %147 = vector.load %arg22[%c0_105, %c0_106, %c0_107] : memref<3x1x128xf32, #tpu.memory_space<vmem>>, vector<1x1x128xf32>
    %148 = vector.shape_cast %147 : vector<1x1x128xf32> to vector<1x128xf32>
    %149 = vector.broadcast %148 : vector<1x128xf32> to vector<8x128xf32>
    %150 = arith.mulf %146, %149 : vector<8x128xf32>
    %c0_108 = arith.constant 0 : index
    %c0_109 = arith.constant 0 : index
    %c0_110 = arith.constant 0 : index
    %151 = vector.load %arg18[%c0_108, %c0_109, %c0_110] : memref<3x16x8xbf16, #tpu.memory_space<vmem>>, vector<1x16x8xbf16>
    %152 = vector.shape_cast %151 : vector<1x16x8xbf16> to vector<16x8xbf16>
    %153 = arith.truncf %150 : vector<8x128xf32> to vector<8x128xbf16>
    %cst_111 = arith.constant dense<0.000000e+00> : vector<16x128xf32>
    %154 = tpu.matmul %152, %153, %cst_111 {dimension_numbers = #tpu.dot_dimension_numbers<[1], [0], [0], [1], [0, 0, 1, 1], [], []>} : vector<16x8xbf16>, vector<8x128xbf16>, vector<16x128xf32> -> vector<16x128xf32>
    %c1_112 = arith.constant 1 : index
    %c0_113 = arith.constant 0 : index
    %c0_114 = arith.constant 0 : index
    %155 = vector.load %arg18[%c1_112, %c0_113, %c0_114] : memref<3x16x8xbf16, #tpu.memory_space<vmem>>, vector<1x16x8xbf16>
    %156 = vector.shape_cast %155 : vector<1x16x8xbf16> to vector<16x8xbf16>
    %157 = arith.truncf %145 : vector<8x128xf32> to vector<8x128xbf16>
    %cst_115 = arith.constant dense<0.000000e+00> : vector<16x128xf32>
    %158 = tpu.matmul %156, %157, %cst_115 {dimension_numbers = #tpu.dot_dimension_numbers<[1], [0], [0], [1], [0, 0, 1, 1], [], []>} : vector<16x8xbf16>, vector<8x128xbf16>, vector<16x128xf32> -> vector<16x128xf32>
    %159 = arith.addf %154, %158 : vector<16x128xf32>
    %c127_i32 = arith.constant 127 : i32
    %160 = tpu.dynamic_rotate %145 by %c127_i32 dim 1 : vector<8x128xf32>, i32 -> vector<8x128xf32>
    %c2_116 = arith.constant 2 : index
    %c0_117 = arith.constant 0 : index
    %c0_118 = arith.constant 0 : index
    %161 = vector.load %arg22[%c2_116, %c0_117, %c0_118] : memref<3x1x128xf32, #tpu.memory_space<vmem>>, vector<1x1x128xf32>
    %162 = vector.shape_cast %161 : vector<1x1x128xf32> to vector<1x128xf32>
    %163 = vector.broadcast %162 : vector<1x128xf32> to vector<8x128xf32>
    %164 = arith.mulf %160, %163 : vector<8x128xf32>
    %c2_119 = arith.constant 2 : index
    %c0_120 = arith.constant 0 : index
    %c0_121 = arith.constant 0 : index
    %165 = vector.load %arg18[%c2_119, %c0_120, %c0_121] : memref<3x16x8xbf16, #tpu.memory_space<vmem>>, vector<1x16x8xbf16>
    %166 = vector.shape_cast %165 : vector<1x16x8xbf16> to vector<16x8xbf16>
    %167 = arith.truncf %164 : vector<8x128xf32> to vector<8x128xbf16>
    %cst_122 = arith.constant dense<0.000000e+00> : vector<16x128xf32>
    %168 = tpu.matmul %166, %167, %cst_122 {dimension_numbers = #tpu.dot_dimension_numbers<[1], [0], [0], [1], [0, 0, 1, 1], [], []>} : vector<16x8xbf16>, vector<8x128xbf16>, vector<16x128xf32> -> vector<16x128xf32>
    %169 = arith.addf %159, %168 : vector<16x128xf32>
    %c0_123 = arith.constant 0 : index
    %c0_124 = arith.constant 0 : index
    %170 = vector.load %arg19[%c0_123, %c0_124] : memref<16x1xf32, #tpu.memory_space<vmem>>, vector<16x1xf32>
    %171 = vector.broadcast %170 : vector<16x1xf32> to vector<16x128xf32>
    %172 = arith.addf %169, %171 : vector<16x128xf32>
    %cst_125 = arith.constant 0.000000e+00 : f32
    %173 = vector.broadcast %cst_125 : f32 to vector<16x128xf32>
    %174 = arith.maximumf %172, %173 : vector<16x128xf32>
    %c1_i32_126 = arith.constant 1 : i32
    %175 = tpu.dynamic_rotate %174 by %c1_i32_126 dim 1 : vector<16x128xf32>, i32 -> vector<16x128xf32>
    %c0_127 = arith.constant 0 : index
    %c0_128 = arith.constant 0 : index
    %c0_129 = arith.constant 0 : index
    %176 = vector.load %arg22[%c0_127, %c0_128, %c0_129] : memref<3x1x128xf32, #tpu.memory_space<vmem>>, vector<1x1x128xf32>
    %177 = vector.shape_cast %176 : vector<1x1x128xf32> to vector<1x128xf32>
    %178 = vector.broadcast %177 : vector<1x128xf32> to vector<16x128xf32>
    %179 = arith.mulf %175, %178 : vector<16x128xf32>
    %c0_130 = arith.constant 0 : index
    %c0_131 = arith.constant 0 : index
    %c0_132 = arith.constant 0 : index
    %180 = vector.load %arg20[%c0_130, %c0_131, %c0_132] : memref<3x16x16xbf16, #tpu.memory_space<vmem>>, vector<1x16x16xbf16>
    %181 = vector.shape_cast %180 : vector<1x16x16xbf16> to vector<16x16xbf16>
    %182 = arith.truncf %179 : vector<16x128xf32> to vector<16x128xbf16>
    %cst_133 = arith.constant dense<0.000000e+00> : vector<16x128xf32>
    %183 = tpu.matmul %181, %182, %cst_133 {dimension_numbers = #tpu.dot_dimension_numbers<[1], [0], [0], [1], [0, 0, 1, 1], [], []>} : vector<16x16xbf16>, vector<16x128xbf16>, vector<16x128xf32> -> vector<16x128xf32>
    %c1_134 = arith.constant 1 : index
    %c0_135 = arith.constant 0 : index
    %c0_136 = arith.constant 0 : index
    %184 = vector.load %arg20[%c1_134, %c0_135, %c0_136] : memref<3x16x16xbf16, #tpu.memory_space<vmem>>, vector<1x16x16xbf16>
    %185 = vector.shape_cast %184 : vector<1x16x16xbf16> to vector<16x16xbf16>
    %186 = arith.truncf %174 : vector<16x128xf32> to vector<16x128xbf16>
    %cst_137 = arith.constant dense<0.000000e+00> : vector<16x128xf32>
    %187 = tpu.matmul %185, %186, %cst_137 {dimension_numbers = #tpu.dot_dimension_numbers<[1], [0], [0], [1], [0, 0, 1, 1], [], []>} : vector<16x16xbf16>, vector<16x128xbf16>, vector<16x128xf32> -> vector<16x128xf32>
    %188 = arith.addf %183, %187 : vector<16x128xf32>
    %c127_i32_138 = arith.constant 127 : i32
    %189 = tpu.dynamic_rotate %174 by %c127_i32_138 dim 1 : vector<16x128xf32>, i32 -> vector<16x128xf32>
    %c2_139 = arith.constant 2 : index
    %c0_140 = arith.constant 0 : index
    %c0_141 = arith.constant 0 : index
    %190 = vector.load %arg22[%c2_139, %c0_140, %c0_141] : memref<3x1x128xf32, #tpu.memory_space<vmem>>, vector<1x1x128xf32>
    %191 = vector.shape_cast %190 : vector<1x1x128xf32> to vector<1x128xf32>
    %192 = vector.broadcast %191 : vector<1x128xf32> to vector<16x128xf32>
    %193 = arith.mulf %189, %192 : vector<16x128xf32>
    %c2_142 = arith.constant 2 : index
    %c0_143 = arith.constant 0 : index
    %c0_144 = arith.constant 0 : index
    %194 = vector.load %arg20[%c2_142, %c0_143, %c0_144] : memref<3x16x16xbf16, #tpu.memory_space<vmem>>, vector<1x16x16xbf16>
    %195 = vector.shape_cast %194 : vector<1x16x16xbf16> to vector<16x16xbf16>
    %196 = arith.truncf %193 : vector<16x128xf32> to vector<16x128xbf16>
    %cst_145 = arith.constant dense<0.000000e+00> : vector<16x128xf32>
    %197 = tpu.matmul %195, %196, %cst_145 {dimension_numbers = #tpu.dot_dimension_numbers<[1], [0], [0], [1], [0, 0, 1, 1], [], []>} : vector<16x16xbf16>, vector<16x128xbf16>, vector<16x128xf32> -> vector<16x128xf32>
    %198 = arith.addf %188, %197 : vector<16x128xf32>
    %c0_146 = arith.constant 0 : index
    %c0_147 = arith.constant 0 : index
    %199 = vector.load %arg21[%c0_146, %c0_147] : memref<16x1xf32, #tpu.memory_space<vmem>>, vector<16x1xf32>
    %200 = vector.broadcast %199 : vector<16x1xf32> to vector<16x128xf32>
    %201 = arith.addf %198, %200 : vector<16x128xf32>
    %cst_148 = arith.constant 0.000000e+00 : f32
    %202 = vector.broadcast %cst_148 : f32 to vector<16x128xf32>
    %203 = arith.maximumf %201, %202 : vector<16x128xf32>
    %c127_i32_149 = arith.constant 127 : i32
    %204 = tpu.dynamic_rotate %203 by %c127_i32_149 dim 1 : vector<16x128xf32>, i32 -> vector<16x128xf32>
    %205 = arith.maximumf %203, %204 : vector<16x128xf32>
    %c126_i32 = arith.constant 126 : i32
    %206 = tpu.dynamic_rotate %203 by %c126_i32 dim 1 : vector<16x128xf32>, i32 -> vector<16x128xf32>
    %207 = arith.maximumf %205, %206 : vector<16x128xf32>
    %c125_i32 = arith.constant 125 : i32
    %208 = tpu.dynamic_rotate %203 by %c125_i32 dim 1 : vector<16x128xf32>, i32 -> vector<16x128xf32>
    %209 = arith.maximumf %207, %208 : vector<16x128xf32>
    %210 = arith.truncf %209 : vector<16x128xf32> to vector<16x128xbf16>
    %c0_150 = arith.constant 0 : index
    %c0_151 = arith.constant 0 : index
    %211 = vector.load %arg23[%c0_150, %c0_151] : memref<128x32xbf16, #tpu.memory_space<vmem>>, vector<128x32xbf16>
    %cst_152 = arith.constant dense<0.000000e+00> : vector<16x32xf32>
    %212 = tpu.matmul %210, %211, %cst_152 {dimension_numbers = #tpu.dot_dimension_numbers<[1], [0], [0], [1], [0, 0, 1, 1], [], []>} : vector<16x128xbf16>, vector<128x32xbf16>, vector<16x32xf32> -> vector<16x32xf32>
    %c0_153 = arith.constant 0 : index
    %c0_154 = arith.constant 0 : index
    %213 = vector.load %arg24[%c0_153, %c0_154] : memref<16x1xf32, #tpu.memory_space<vmem>>, vector<16x1xf32>
    %214 = vector.broadcast %213 : vector<16x1xf32> to vector<16x32xf32>
    %215 = arith.mulf %212, %214 : vector<16x32xf32>
    %c0_155 = arith.constant 0 : index
    %c0_156 = arith.constant 0 : index
    %216 = vector.load %arg25[%c0_155, %c0_156] : memref<16x1xf32, #tpu.memory_space<vmem>>, vector<16x1xf32>
    %217 = vector.broadcast %216 : vector<16x1xf32> to vector<16x32xf32>
    %218 = arith.addf %215, %217 : vector<16x32xf32>
    %cst_157 = arith.constant 0.000000e+00 : f32
    %219 = vector.broadcast %cst_157 : f32 to vector<4x256xf32>
    %c0_158 = arith.constant 0 : index
    %c0_159 = arith.constant 0 : index
    %c0_160 = arith.constant 0 : index
    %220 = vector.load %arg26[%c0_158, %c0_159, %c0_160] : memref<8x32x4xf32, #tpu.memory_space<vmem>>, vector<1x32x4xf32>
    %221 = vector.shape_cast %220 : vector<1x32x4xf32> to vector<32x4xf32>
    %cst_161 = arith.constant dense<0.000000e+00> : vector<16x4xf32>
    %222 = tpu.matmul %218, %221, %cst_161 {dimension_numbers = #tpu.dot_dimension_numbers<[1], [0], [0], [1], [0, 0, 1, 1], [], []>} : vector<16x32xf32>, vector<32x4xf32>, vector<16x4xf32> -> vector<16x4xf32>
    %c0_162 = arith.constant 0 : index
    %c0_163 = arith.constant 0 : index
    %c0_164 = arith.constant 0 : index
    %223 = vector.load %arg27[%c0_162, %c0_163, %c0_164] : memref<8x16x256xf32, #tpu.memory_space<vmem>>, vector<1x16x256xf32>
    %224 = vector.shape_cast %223 : vector<1x16x256xf32> to vector<16x256xf32>
    %cst_165 = arith.constant dense<0.000000e+00> : vector<4x256xf32>
    %225 = tpu.matmul %222, %224, %cst_165 {dimension_numbers = #tpu.dot_dimension_numbers<[0], [0], [1], [1], [0, 1, 1, 1], [], []>} : vector<16x4xf32>, vector<16x256xf32>, vector<4x256xf32> -> vector<4x256xf32>
    %226 = arith.addf %219, %225 : vector<4x256xf32>
    %c1_166 = arith.constant 1 : index
    %c0_167 = arith.constant 0 : index
    %c0_168 = arith.constant 0 : index
    %227 = vector.load %arg26[%c1_166, %c0_167, %c0_168] : memref<8x32x4xf32, #tpu.memory_space<vmem>>, vector<1x32x4xf32>
    %228 = vector.shape_cast %227 : vector<1x32x4xf32> to vector<32x4xf32>
    %cst_169 = arith.constant dense<0.000000e+00> : vector<16x4xf32>
    %229 = tpu.matmul %218, %228, %cst_169 {dimension_numbers = #tpu.dot_dimension_numbers<[1], [0], [0], [1], [0, 0, 1, 1], [], []>} : vector<16x32xf32>, vector<32x4xf32>, vector<16x4xf32> -> vector<16x4xf32>
    %c1_170 = arith.constant 1 : index
    %c0_171 = arith.constant 0 : index
    %c0_172 = arith.constant 0 : index
    %230 = vector.load %arg27[%c1_170, %c0_171, %c0_172] : memref<8x16x256xf32, #tpu.memory_space<vmem>>, vector<1x16x256xf32>
    %231 = vector.shape_cast %230 : vector<1x16x256xf32> to vector<16x256xf32>
    %cst_173 = arith.constant dense<0.000000e+00> : vector<4x256xf32>
    %232 = tpu.matmul %229, %231, %cst_173 {dimension_numbers = #tpu.dot_dimension_numbers<[0], [0], [1], [1], [0, 1, 1, 1], [], []>} : vector<16x4xf32>, vector<16x256xf32>, vector<4x256xf32> -> vector<4x256xf32>
    %233 = arith.addf %226, %232 : vector<4x256xf32>
    %c2_174 = arith.constant 2 : index
    %c0_175 = arith.constant 0 : index
    %c0_176 = arith.constant 0 : index
    %234 = vector.load %arg26[%c2_174, %c0_175, %c0_176] : memref<8x32x4xf32, #tpu.memory_space<vmem>>, vector<1x32x4xf32>
    %235 = vector.shape_cast %234 : vector<1x32x4xf32> to vector<32x4xf32>
    %cst_177 = arith.constant dense<0.000000e+00> : vector<16x4xf32>
    %236 = tpu.matmul %218, %235, %cst_177 {dimension_numbers = #tpu.dot_dimension_numbers<[1], [0], [0], [1], [0, 0, 1, 1], [], []>} : vector<16x32xf32>, vector<32x4xf32>, vector<16x4xf32> -> vector<16x4xf32>
    %c2_178 = arith.constant 2 : index
    %c0_179 = arith.constant 0 : index
    %c0_180 = arith.constant 0 : index
    %237 = vector.load %arg27[%c2_178, %c0_179, %c0_180] : memref<8x16x256xf32, #tpu.memory_space<vmem>>, vector<1x16x256xf32>
    %238 = vector.shape_cast %237 : vector<1x16x256xf32> to vector<16x256xf32>
    %cst_181 = arith.constant dense<0.000000e+00> : vector<4x256xf32>
    %239 = tpu.matmul %236, %238, %cst_181 {dimension_numbers = #tpu.dot_dimension_numbers<[0], [0], [1], [1], [0, 1, 1, 1], [], []>} : vector<16x4xf32>, vector<16x256xf32>, vector<4x256xf32> -> vector<4x256xf32>
    %240 = arith.addf %233, %239 : vector<4x256xf32>
    %c3 = arith.constant 3 : index
    %c0_182 = arith.constant 0 : index
    %c0_183 = arith.constant 0 : index
    %241 = vector.load %arg26[%c3, %c0_182, %c0_183] : memref<8x32x4xf32, #tpu.memory_space<vmem>>, vector<1x32x4xf32>
    %242 = vector.shape_cast %241 : vector<1x32x4xf32> to vector<32x4xf32>
    %cst_184 = arith.constant dense<0.000000e+00> : vector<16x4xf32>
    %243 = tpu.matmul %218, %242, %cst_184 {dimension_numbers = #tpu.dot_dimension_numbers<[1], [0], [0], [1], [0, 0, 1, 1], [], []>} : vector<16x32xf32>, vector<32x4xf32>, vector<16x4xf32> -> vector<16x4xf32>
    %c3_185 = arith.constant 3 : index
    %c0_186 = arith.constant 0 : index
    %c0_187 = arith.constant 0 : index
    %244 = vector.load %arg27[%c3_185, %c0_186, %c0_187] : memref<8x16x256xf32, #tpu.memory_space<vmem>>, vector<1x16x256xf32>
    %245 = vector.shape_cast %244 : vector<1x16x256xf32> to vector<16x256xf32>
    %cst_188 = arith.constant dense<0.000000e+00> : vector<4x256xf32>
    %246 = tpu.matmul %243, %245, %cst_188 {dimension_numbers = #tpu.dot_dimension_numbers<[0], [0], [1], [1], [0, 1, 1, 1], [], []>} : vector<16x4xf32>, vector<16x256xf32>, vector<4x256xf32> -> vector<4x256xf32>
    %247 = arith.addf %240, %246 : vector<4x256xf32>
    %c4 = arith.constant 4 : index
    %c0_189 = arith.constant 0 : index
    %c0_190 = arith.constant 0 : index
    %248 = vector.load %arg26[%c4, %c0_189, %c0_190] : memref<8x32x4xf32, #tpu.memory_space<vmem>>, vector<1x32x4xf32>
    %249 = vector.shape_cast %248 : vector<1x32x4xf32> to vector<32x4xf32>
    %cst_191 = arith.constant dense<0.000000e+00> : vector<16x4xf32>
    %250 = tpu.matmul %218, %249, %cst_191 {dimension_numbers = #tpu.dot_dimension_numbers<[1], [0], [0], [1], [0, 0, 1, 1], [], []>} : vector<16x32xf32>, vector<32x4xf32>, vector<16x4xf32> -> vector<16x4xf32>
    %c4_192 = arith.constant 4 : index
    %c0_193 = arith.constant 0 : index
    %c0_194 = arith.constant 0 : index
    %251 = vector.load %arg27[%c4_192, %c0_193, %c0_194] : memref<8x16x256xf32, #tpu.memory_space<vmem>>, vector<1x16x256xf32>
    %252 = vector.shape_cast %251 : vector<1x16x256xf32> to vector<16x256xf32>
    %cst_195 = arith.constant dense<0.000000e+00> : vector<4x256xf32>
    %253 = tpu.matmul %250, %252, %cst_195 {dimension_numbers = #tpu.dot_dimension_numbers<[0], [0], [1], [1], [0, 1, 1, 1], [], []>} : vector<16x4xf32>, vector<16x256xf32>, vector<4x256xf32> -> vector<4x256xf32>
    %254 = arith.addf %247, %253 : vector<4x256xf32>
    %c5 = arith.constant 5 : index
    %c0_196 = arith.constant 0 : index
    %c0_197 = arith.constant 0 : index
    %255 = vector.load %arg26[%c5, %c0_196, %c0_197] : memref<8x32x4xf32, #tpu.memory_space<vmem>>, vector<1x32x4xf32>
    %256 = vector.shape_cast %255 : vector<1x32x4xf32> to vector<32x4xf32>
    %cst_198 = arith.constant dense<0.000000e+00> : vector<16x4xf32>
    %257 = tpu.matmul %218, %256, %cst_198 {dimension_numbers = #tpu.dot_dimension_numbers<[1], [0], [0], [1], [0, 0, 1, 1], [], []>} : vector<16x32xf32>, vector<32x4xf32>, vector<16x4xf32> -> vector<16x4xf32>
    %c5_199 = arith.constant 5 : index
    %c0_200 = arith.constant 0 : index
    %c0_201 = arith.constant 0 : index
    %258 = vector.load %arg27[%c5_199, %c0_200, %c0_201] : memref<8x16x256xf32, #tpu.memory_space<vmem>>, vector<1x16x256xf32>
    %259 = vector.shape_cast %258 : vector<1x16x256xf32> to vector<16x256xf32>
    %cst_202 = arith.constant dense<0.000000e+00> : vector<4x256xf32>
    %260 = tpu.matmul %257, %259, %cst_202 {dimension_numbers = #tpu.dot_dimension_numbers<[0], [0], [1], [1], [0, 1, 1, 1], [], []>} : vector<16x4xf32>, vector<16x256xf32>, vector<4x256xf32> -> vector<4x256xf32>
    %261 = arith.addf %254, %260 : vector<4x256xf32>
    %c6 = arith.constant 6 : index
    %c0_203 = arith.constant 0 : index
    %c0_204 = arith.constant 0 : index
    %262 = vector.load %arg26[%c6, %c0_203, %c0_204] : memref<8x32x4xf32, #tpu.memory_space<vmem>>, vector<1x32x4xf32>
    %263 = vector.shape_cast %262 : vector<1x32x4xf32> to vector<32x4xf32>
    %cst_205 = arith.constant dense<0.000000e+00> : vector<16x4xf32>
    %264 = tpu.matmul %218, %263, %cst_205 {dimension_numbers = #tpu.dot_dimension_numbers<[1], [0], [0], [1], [0, 0, 1, 1], [], []>} : vector<16x32xf32>, vector<32x4xf32>, vector<16x4xf32> -> vector<16x4xf32>
    %c6_206 = arith.constant 6 : index
    %c0_207 = arith.constant 0 : index
    %c0_208 = arith.constant 0 : index
    %265 = vector.load %arg27[%c6_206, %c0_207, %c0_208] : memref<8x16x256xf32, #tpu.memory_space<vmem>>, vector<1x16x256xf32>
    %266 = vector.shape_cast %265 : vector<1x16x256xf32> to vector<16x256xf32>
    %cst_209 = arith.constant dense<0.000000e+00> : vector<4x256xf32>
    %267 = tpu.matmul %264, %266, %cst_209 {dimension_numbers = #tpu.dot_dimension_numbers<[0], [0], [1], [1], [0, 1, 1, 1], [], []>} : vector<16x4xf32>, vector<16x256xf32>, vector<4x256xf32> -> vector<4x256xf32>
    %268 = arith.addf %261, %267 : vector<4x256xf32>
    %c7 = arith.constant 7 : index
    %c0_210 = arith.constant 0 : index
    %c0_211 = arith.constant 0 : index
    %269 = vector.load %arg26[%c7, %c0_210, %c0_211] : memref<8x32x4xf32, #tpu.memory_space<vmem>>, vector<1x32x4xf32>
    %270 = vector.shape_cast %269 : vector<1x32x4xf32> to vector<32x4xf32>
    %cst_212 = arith.constant dense<0.000000e+00> : vector<16x4xf32>
    %271 = tpu.matmul %218, %270, %cst_212 {dimension_numbers = #tpu.dot_dimension_numbers<[1], [0], [0], [1], [0, 0, 1, 1], [], []>} : vector<16x32xf32>, vector<32x4xf32>, vector<16x4xf32> -> vector<16x4xf32>
    %c7_213 = arith.constant 7 : index
    %c0_214 = arith.constant 0 : index
    %c0_215 = arith.constant 0 : index
    %272 = vector.load %arg27[%c7_213, %c0_214, %c0_215] : memref<8x16x256xf32, #tpu.memory_space<vmem>>, vector<1x16x256xf32>
    %273 = vector.shape_cast %272 : vector<1x16x256xf32> to vector<16x256xf32>
    %cst_216 = arith.constant dense<0.000000e+00> : vector<4x256xf32>
    %274 = tpu.matmul %271, %273, %cst_216 {dimension_numbers = #tpu.dot_dimension_numbers<[0], [0], [1], [1], [0, 1, 1, 1], [], []>} : vector<16x4xf32>, vector<16x256xf32>, vector<4x256xf32> -> vector<4x256xf32>
    %275 = arith.addf %268, %274 : vector<4x256xf32>
    %c0_217 = arith.constant 0 : index
    %c0_218 = arith.constant 0 : index
    %276 = vector.load %arg28[%c0_217, %c0_218] : memref<1x256xf32, #tpu.memory_space<vmem>>, vector<1x256xf32>
    %277 = vector.broadcast %276 : vector<1x256xf32> to vector<4x256xf32>
    %278 = arith.addf %275, %277 : vector<4x256xf32>
    %cst_219 = arith.constant 0.000000e+00 : f32
    %279 = vector.broadcast %cst_219 : f32 to vector<4x256xf32>
    %280 = arith.maximumf %278, %279 : vector<4x256xf32>
    %c0_220 = arith.constant 0 : index
    %c0_221 = arith.constant 0 : index
    %281 = vector.load %arg29[%c0_220, %c0_221] : memref<256x128xf32, #tpu.memory_space<vmem>>, vector<256x128xf32>
    %cst_222 = arith.constant dense<0.000000e+00> : vector<4x128xf32>
    %282 = tpu.matmul %280, %281, %cst_222 {dimension_numbers = #tpu.dot_dimension_numbers<[1], [0], [0], [1], [0, 0, 1, 1], [], []>} : vector<4x256xf32>, vector<256x128xf32>, vector<4x128xf32> -> vector<4x128xf32>
    %c0_223 = arith.constant 0 : index
    %c0_224 = arith.constant 0 : index
    %283 = vector.load %arg30[%c0_223, %c0_224] : memref<1x128xf32, #tpu.memory_space<vmem>>, vector<1x128xf32>
    %284 = vector.broadcast %283 : vector<1x128xf32> to vector<4x128xf32>
    %285 = arith.addf %282, %284 : vector<4x128xf32>
    %c0_225 = arith.constant 0 : index
    %c0_226 = arith.constant 0 : index
    %c0_227 = arith.constant 0 : index
    %286 = vector.load %arg31[%c0_225, %c0_226, %c0_227] : memref<1x4x128xf32, #tpu.memory_space<vmem>>, vector<1x4x128xf32>
    %287 = vector.shape_cast %286 : vector<1x4x128xf32> to vector<4x128xf32>
    %288 = vector.shape_cast %285 : vector<4x128xf32> to vector<1x4x128xf32>
    tpu.vector_store %arg31[%c0_225, %c0_226, %c0_227], %288 {strides = array<i32>} : memref<1x4x128xf32, #tpu.memory_space<vmem>>, vector<1x4x128xf32>,
    return
  }
  func.func @transform_0(%arg0: i32) -> (i32, i32, i32) {
    %c0_i32 = arith.constant 0 : i32
    %c0_i32_0 = arith.constant 0 : i32
    %c0_i32_1 = arith.constant 0 : i32
    return %arg0, %c0_i32, %c0_i32_0 : i32, i32, i32
  }
  func.func @transform_1(%arg0: i32) -> (i32, i32, i32) {
    %c0_i32 = arith.constant 0 : i32
    %c0_i32_0 = arith.constant 0 : i32
    %c0_i32_1 = arith.constant 0 : i32
    %c0_i32_2 = arith.constant 0 : i32
    return %c0_i32, %c0_i32_0, %c0_i32_1 : i32, i32, i32
  }
  func.func @transform_2(%arg0: i32) -> (i32, i32) {
    %c0_i32 = arith.constant 0 : i32
    %c0_i32_0 = arith.constant 0 : i32
    %c0_i32_1 = arith.constant 0 : i32
    return %c0_i32, %c0_i32_0 : i32, i32
  }
  func.func @transform_3(%arg0: i32) -> (i32, i32, i32) {
    %c0_i32 = arith.constant 0 : i32
    %c0_i32_0 = arith.constant 0 : i32
    %c0_i32_1 = arith.constant 0 : i32
    %c0_i32_2 = arith.constant 0 : i32
    return %c0_i32, %c0_i32_0, %c0_i32_1 : i32, i32, i32
  }
  func.func @transform_4(%arg0: i32) -> (i32, i32) {
    %c0_i32 = arith.constant 0 : i32
    %c0_i32_0 = arith.constant 0 : i32
    %c0_i32_1 = arith.constant 0 : i32
    return %c0_i32, %c0_i32_0 : i32, i32
  }
  func.func @transform_5(%arg0: i32) -> (i32, i32, i32) {
    %c0_i32 = arith.constant 0 : i32
    %c0_i32_0 = arith.constant 0 : i32
    %c0_i32_1 = arith.constant 0 : i32
    %c0_i32_2 = arith.constant 0 : i32
    return %c0_i32, %c0_i32_0, %c0_i32_1 : i32, i32, i32
  }
  func.func @transform_6(%arg0: i32) -> (i32, i32) {
    %c0_i32 = arith.constant 0 : i32
    %c0_i32_0 = arith.constant 0 : i32
    %c0_i32_1 = arith.constant 0 : i32
    return %c0_i32, %c0_i32_0 : i32, i32
  }
  func.func @transform_7(%arg0: i32) -> (i32, i32) {
    %c0_i32 = arith.constant 0 : i32
    %c0_i32_0 = arith.constant 0 : i32
    %c0_i32_1 = arith.constant 0 : i32
    return %c0_i32, %c0_i32_0 : i32, i32
  }
  func.func @transform_8(%arg0: i32) -> (i32, i32) {
    %c0_i32 = arith.constant 0 : i32
    %c0_i32_0 = arith.constant 0 : i32
    %c0_i32_1 = arith.constant 0 : i32
    return %c0_i32, %c0_i32_0 : i32, i32
  }
  func.func @transform_9(%arg0: i32) -> (i32, i32, i32) {
    %c0_i32 = arith.constant 0 : i32
    %c0_i32_0 = arith.constant 0 : i32
    %c0_i32_1 = arith.constant 0 : i32
    %c0_i32_2 = arith.constant 0 : i32
    return %c0_i32, %c0_i32_0, %c0_i32_1 : i32, i32, i32
  }
  func.func @transform_10(%arg0: i32) -> (i32, i32) {
    %c0_i32 = arith.constant 0 : i32
    %c0_i32_0 = arith.constant 0 : i32
    %c0_i32_1 = arith.constant 0 : i32
    return %c0_i32, %c0_i32_0 : i32, i32
  }
  func.func @transform_11(%arg0: i32) -> (i32, i32, i32) {
    %c0_i32 = arith.constant 0 : i32
    %c0_i32_0 = arith.constant 0 : i32
    %c0_i32_1 = arith.constant 0 : i32
    %c0_i32_2 = arith.constant 0 : i32
    return %c0_i32, %c0_i32_0, %c0_i32_1 : i32, i32, i32
  }
  func.func @transform_12(%arg0: i32) -> (i32, i32) {
    %c0_i32 = arith.constant 0 : i32
    %c0_i32_0 = arith.constant 0 : i32
    %c0_i32_1 = arith.constant 0 : i32
    return %c0_i32, %c0_i32_0 : i32, i32
  }
  func.func @transform_13(%arg0: i32) -> (i32, i32, i32) {
    %c0_i32 = arith.constant 0 : i32
    %c0_i32_0 = arith.constant 0 : i32
    %c0_i32_1 = arith.constant 0 : i32
    %c0_i32_2 = arith.constant 0 : i32
    return %c0_i32, %c0_i32_0, %c0_i32_1 : i32, i32, i32
  }
  func.func @transform_14(%arg0: i32) -> (i32, i32) {
    %c0_i32 = arith.constant 0 : i32
    %c0_i32_0 = arith.constant 0 : i32
    %c0_i32_1 = arith.constant 0 : i32
    return %c0_i32, %c0_i32_0 : i32, i32
  }
  func.func @transform_15(%arg0: i32) -> (i32, i32) {
    %c0_i32 = arith.constant 0 : i32
    %c0_i32_0 = arith.constant 0 : i32
    %c0_i32_1 = arith.constant 0 : i32
    return %c0_i32, %c0_i32_0 : i32, i32
  }
  func.func @transform_16(%arg0: i32) -> (i32, i32) {
    %c0_i32 = arith.constant 0 : i32
    %c0_i32_0 = arith.constant 0 : i32
    %c0_i32_1 = arith.constant 0 : i32
    return %c0_i32, %c0_i32_0 : i32, i32
  }
  func.func @transform_17(%arg0: i32) -> (i32, i32, i32) {
    %c0_i32 = arith.constant 0 : i32
    %c0_i32_0 = arith.constant 0 : i32
    %c0_i32_1 = arith.constant 0 : i32
    %c0_i32_2 = arith.constant 0 : i32
    return %c0_i32, %c0_i32_0, %c0_i32_1 : i32, i32, i32
  }
  func.func @transform_18(%arg0: i32) -> (i32, i32) {
    %c0_i32 = arith.constant 0 : i32
    %c0_i32_0 = arith.constant 0 : i32
    %c0_i32_1 = arith.constant 0 : i32
    return %c0_i32, %c0_i32_0 : i32, i32
  }
  func.func @transform_19(%arg0: i32) -> (i32, i32, i32) {
    %c0_i32 = arith.constant 0 : i32
    %c0_i32_0 = arith.constant 0 : i32
    %c0_i32_1 = arith.constant 0 : i32
    %c0_i32_2 = arith.constant 0 : i32
    return %c0_i32, %c0_i32_0, %c0_i32_1 : i32, i32, i32
  }
  func.func @transform_20(%arg0: i32) -> (i32, i32) {
    %c0_i32 = arith.constant 0 : i32
    %c0_i32_0 = arith.constant 0 : i32
    %c0_i32_1 = arith.constant 0 : i32
    return %c0_i32, %c0_i32_0 : i32, i32
  }
  func.func @transform_21(%arg0: i32) -> (i32, i32, i32) {
    %c0_i32 = arith.constant 0 : i32
    %c0_i32_0 = arith.constant 0 : i32
    %c0_i32_1 = arith.constant 0 : i32
    %c0_i32_2 = arith.constant 0 : i32
    return %c0_i32, %c0_i32_0, %c0_i32_1 : i32, i32, i32
  }
  func.func @transform_22(%arg0: i32) -> (i32, i32) {
    %c0_i32 = arith.constant 0 : i32
    %c0_i32_0 = arith.constant 0 : i32
    %c0_i32_1 = arith.constant 0 : i32
    return %c0_i32, %c0_i32_0 : i32, i32
  }
  func.func @transform_23(%arg0: i32) -> (i32, i32) {
    %c0_i32 = arith.constant 0 : i32
    %c0_i32_0 = arith.constant 0 : i32
    %c0_i32_1 = arith.constant 0 : i32
    return %c0_i32, %c0_i32_0 : i32, i32
  }
  func.func @transform_24(%arg0: i32) -> (i32, i32) {
    %c0_i32 = arith.constant 0 : i32
    %c0_i32_0 = arith.constant 0 : i32
    %c0_i32_1 = arith.constant 0 : i32
    return %c0_i32, %c0_i32_0 : i32, i32
  }
  func.func @transform_25(%arg0: i32) -> (i32, i32, i32) {
    %c0_i32 = arith.constant 0 : i32
    %c0_i32_0 = arith.constant 0 : i32
    %c0_i32_1 = arith.constant 0 : i32
    %c0_i32_2 = arith.constant 0 : i32
    return %c0_i32, %c0_i32_0, %c0_i32_1 : i32, i32, i32
  }
  func.func @transform_26(%arg0: i32) -> (i32, i32, i32) {
    %c0_i32 = arith.constant 0 : i32
    %c0_i32_0 = arith.constant 0 : i32
    %c0_i32_1 = arith.constant 0 : i32
    %c0_i32_2 = arith.constant 0 : i32
    return %c0_i32, %c0_i32_0, %c0_i32_1 : i32, i32, i32
  }
  func.func @transform_27(%arg0: i32) -> (i32, i32) {
    %c0_i32 = arith.constant 0 : i32
    %c0_i32_0 = arith.constant 0 : i32
    %c0_i32_1 = arith.constant 0 : i32
    return %c0_i32, %c0_i32_0 : i32, i32
  }
  func.func @transform_28(%arg0: i32) -> (i32, i32) {
    %c0_i32 = arith.constant 0 : i32
    %c0_i32_0 = arith.constant 0 : i32
    %c0_i32_1 = arith.constant 0 : i32
    return %c0_i32, %c0_i32_0 : i32, i32
  }
  func.func @transform_29(%arg0: i32) -> (i32, i32) {
    %c0_i32 = arith.constant 0 : i32
    %c0_i32_0 = arith.constant 0 : i32
    %c0_i32_1 = arith.constant 0 : i32
    return %c0_i32, %c0_i32_0 : i32, i32
  }
  func.func @transform_30(%arg0: i32) -> (i32, i32, i32) {
    %c0_i32 = arith.constant 0 : i32
    %c0_i32_0 = arith.constant 0 : i32
    %c0_i32_1 = arith.constant 0 : i32
    return %arg0, %c0_i32, %c0_i32_0 : i32, i32, i32
  }
}

</mosaic_0001>

<bundles_post_ra>
// kernel: vgg_masked_forward.1
= control target key start
LH: loop header
LB: loop body
LE: loop exit
PB: predicated region body
PF: predicated region fallthrough
CT: control target
= control target key end

     0   :  { %s13547_s6 = smov 1   ;;  %s13548_s10 = smov 2   ;;  %s16458_s0 = inlined_call_operand.smem [shape: u32[31], index: -1, kind: input, shape index: {}] }
   0x1   :  { %s13593_s5 = sld [smem:[%s16458_s0]]   ;;  %s13549_s14 = smov 3  }
   0x2   :  { %s13598_s9 = sld [smem:[%s16458_s0 + %s13547_s6]]   ;;  %s13550_s18 = smov 4  }
   0x3   :  { %s13603_s13 = sld [smem:[%s16458_s0 + %s13548_s10]]   ;;  %s13551_s22 = smov 5  }
   0x4   :  { %s13608_s17 = sld [smem:[%s16458_s0 + %s13549_s14]]   ;;  %s13552_s26 = smov 6  }
   0x5   :  { %s13613_s21 = sld [smem:[%s16458_s0 + %s13550_s18]]   ;;  %s13553_s30 = smov 7  }
   0x6   :  { %s13618_s25 = sld [smem:[%s16458_s0 + %s13551_s22]]   ;;  %s13554_s4 = smov 8  }
   0x7   :  { %16533 = sst [smem:[#allocation5_spill]] %s13593_s5  ;;  %s13555_s10 = smov 9  }
   0x8   :  { %16534 = sst [smem:[#allocation6_spill]] %s13598_s9  ;;  %s13556_s15 = smov 10  }
   0x9   :  { %16535 = sst [smem:[#allocation7_spill]] %s13603_s13  ;;  %s13557_s20 = smov 11  }
   0xa   :  { %16536 = sst [smem:[#allocation8_spill]] %s13608_s17  ;;  %s13559_s1 = smov 13  }
   0xb   :  { %s13623_s29 = sld [smem:[%s16458_s0 + %s13552_s26]]   ;;  %s13558_s26 = smov 12  }
   0xc   :  { %s13628_s3 = sld [smem:[%s16458_s0 + %s13553_s30]]   ;;  %s13560_s7 = smov 14  }
   0xd   :  { %s13633_s8 = sld [smem:[%s16458_s0 + %s13554_s4]]   ;;  %s13562_s22 = smov 16  }
   0xe   :  { %s13638_s14 = sld [smem:[%s16458_s0 + %s13555_s10]]   ;;  %s13563_s28 = smov 17  }
   0xf   :  { %s13643_s19 = sld [smem:[%s16458_s0 + %s13556_s15]]   ;;  %s13561_s15 = smov 15  }
  0x10   :  { %s13648_s24 = sld [smem:[%s16458_s0 + %s13557_s20]]  }
  0x11   :  { %s13653_s30 = sld [smem:[%s16458_s0 + %s13558_s26]]  }
  0x12   :  { %16537 = sst [smem:[#allocation9_spill]] %s13628_s3 }
  0x13   :  { %16538 = sst [smem:[#allocation10_spill]] %s13633_s8 }
  0x14   :  { %16539 = sst [smem:[#allocation11_spill]] %s13638_s14 }
  0x15   :  { %16540 = sst [smem:[#allocation12_spill]] %s13643_s19 }
  0x16   :  { %s13658_s6 = sld [smem:[%s16458_s0 + %s13559_s1]]  }
  0x17   :  { %s13663_s12 = sld [smem:[%s16458_s0 + %s13560_s7]]   ;;  %s13564_s7 = smov 18  }
  0x18   :  { %s13668_s20 = sld [smem:[%s16458_s0 + %s13561_s15]]   ;;  %s13565_s15 = smov 19  }
  0x19   :  { %s13673_s27 = sld [smem:[%s16458_s0 + %s13562_s22]]   ;;  %s13566_s22 = smov 20  }
  0x1a   :  { %s13678_s4 = sld [smem:[%s16458_s0 + %s13563_s28]]   ;;  %s13567_s28 = smov 21  }
  0x1c   :  { %16541 = sst [smem:[#allocation13_spill]] %s13658_s6 }
  0x1d   :  { %16542 = sst [smem:[#allocation14_spill]] %s13663_s12 }
  0x1e   :  { %16543 = sst [smem:[#allocation15_spill]] %s13668_s20 }
  0x1f   :  { %16544 = sst [smem:[#allocation16_spill]] %s13673_s27 }
  0x20   :  { %16545 = sst [smem:[#allocation17_spill]] %s13678_s4 }
  0x21   :  { %s13683_s12 = sld [smem:[%s16458_s0 + %s13564_s7]]   ;;  %s13568_s7 = smov 22  }
  0x22   :  { %s13688_s20 = sld [smem:[%s16458_s0 + %s13565_s15]]   ;;  %s13569_s15 = smov 23  }
  0x23   :  { %s13693_s27 = sld [smem:[%s16458_s0 + %s13566_s22]]   ;;  %s13570_s22 = smov 24  }
  0x24   :  { %s13698_s4 = sld [smem:[%s16458_s0 + %s13567_s28]]   ;;  %s13571_s28 = smov 25  }
  0x27   :  { %16546 = sst [smem:[#allocation18_spill]] %s13683_s12 }
  0x28   :  { %16547 = sst [smem:[#allocation19_spill]] %s13688_s20 }
  0x29   :  { %16548 = sst [smem:[#allocation20_spill]] %s13693_s27 }
  0x2a   :  { %16549 = sst [smem:[#allocation21_spill]] %s13698_s4 }
  0x2b   :  { %s13703_s12 = sld [smem:[%s16458_s0 + %s13568_s7]]   ;;  %s13572_s7 = smov 26  }
  0x2c   :  { %s13708_s20 = sld [smem:[%s16458_s0 + %s13569_s15]]   ;;  %s13573_s15 = smov 27  }
  0x2d   :  { %s13713_s27 = sld [smem:[%s16458_s0 + %s13570_s22]]   ;;  %s13574_s22 = smov 28  }
  0x2e   :  { %s13718_s4 = sld [smem:[%s16458_s0 + %s13571_s28]]   ;;  %s13575_s28 = smov 29  }
  0x31   :  { %16550 = sst [smem:[#allocation22_spill]] %s13703_s12 }
  0x32   :  { %16551 = sst [smem:[#allocation23_spill]] %s13708_s20 }
  0x33   :  { %16552 = sst [smem:[#allocation24_spill]] %s13713_s27 }
  0x34   :  { %16553 = sst [smem:[#allocation25_spill]] %s13718_s4 }
  0x35   :  { %s13723_s12 = sld [smem:[%s16458_s0 + %s13572_s7]]   ;;  %s13576_s7 = smov 30  }
  0x36   :  { %s13728_s20 = sld [smem:[%s16458_s0 + %s13573_s15]]  }
  0x37   :  { %s13733_s27 = sld [smem:[%s16458_s0 + %s13574_s22]]  }
  0x38   :  { %s13738_s4 = sld [smem:[%s16458_s0 + %s13575_s28]]  }
  0x3b   :  { %16554 = sst [smem:[#allocation26_spill]] %s13723_s12 }
  0x3c   :  { %s13743_s12 = sld [smem:[%s16458_s0 + %s13576_s7]]  }
  0x3d   :  { %66 = vsyncpa [#allocation3], 0 }
  0x3e   :  { %68 = vsyncpa [#allocation3 + $0x1], 0  ;;  %s13745_s15 = smov 0   ;;  %s13747_s16 = smov 0  }
  0x3f   :  { %s13749_s18 = smov 0   ;;  %s13751_s22 = smov 0  }
  0x40 LB: > { %s16555_s17 = sld [smem:[#allocation8_spill]]  ;;  %s13766_s0 = sadd.s32 4294967295, %s13545_s22   ;;  %s13545_s22 = sphi %s13751_s22, %s16641_s22   ;;  %s13541_s18 = sphi %s13749_s18, %s16640_s18   ;;  %s13537_s16 = sphi %s13747_s16, %s16639_s16   ;;  %s13533_s15 = sphi %s13745_s15, %s16638_s15  }
  0x41   : > { %s16556_s14 = sld [smem:[#allocation11_spill]]  ;;  %s11378_s23 = sadd.s32 4294967294, %s13545_s22  }
  0x42   : > { %s16557_s9 = sld [smem:[#allocation6_spill]]  ;;  %s13770_s26 = sadd.s32 1, %s13545_s22  }
  0x43   : > { %s16558_s6 = sld [smem:[#allocation13_spill]]  ;;  %s716_s28 = sadd.s32 1, %s13541_s18 }
  0x44   : > { %s713_s1 = ssub.s32 %s13545_s22, %s13770_s26  ;;  %p726_p0 = scmp.ne.s32.totalorder %s13541_s18, %s13537_s16 }
  0x45   : > { %p714_p1 = scmp.eq.s32.totalorder %s713_s1, 0  ;;  %p727_p2 = scmp.eq.s32.totalorder %s13766_s0, 1 }
  0x46   : > { %p732_p3 = scmp.ne.s32.totalorder %s13537_s16, %s13533_s15  ;;  %p733_p4 = scmp.eq.s32.totalorder %s11378_s23, 1 }
  0x47   : > { %s13781_s2 = scalar_select %p714_p1, %s13541_s18, %s716_s28  }
  0x48   : > { %p13783_p5 = por %p727_p2, %p726_p0  ;;  %p13787_p6 = por %p733_p4, %p732_p3 }
  0x49   : > { %p11381_p7 = scmp.ge.s32.totalorder %s13545_s22, 1  ;;  %p845_p8 = scmp.lt.s32.totalorder %s13545_s22, 3 }
  0x4b   : > { %p846_p9 = pnand %p11381_p7, %p845_p8 }
  0x4d   : > { %849 = sbr.rel (%p846_p9) target bundleno = 5687 (0x1637), region = 140 }
  0x52   : > { %s16561_s5 = sld [smem:[#allocation5_spill]]  ;;  %p922_p10 = scmp.lt.s32.totalorder %s13766_s0, 1  ;;  %v931_v0 = vlaneseq  ;;  %v16470_v1 = vmov 0   ;;  %vm1201_vm0 = vcmask 1040384   ;;  %v13879_v33 = vld [vmem:[%s16557_s9 + $0x2] sm:$0x3] }
  0x53   : > { %1284 = vmatprep.mubr.bf16.mxu1 %v16470_v1  ;;  %1448 = vmatprep.mubr.bf16.mxu0 %v16470_v1  ;;  %s16512_s1 = smov 1   ;;  %v13835_v17 = vsel %vm1201_vm0, 65535, %v16470_v1  ;;  %vm1197_vm1 = vcmask 7168   ;;  %s16566_s13 = sld [smem:[#allocation7_spill]]  ;;  %vm2663_vm4 = vcmask 1041408   ;;  %vm2659_vm5 = vcmask 31744  }
  0x54   : > { %s923_s11 = scalar_select %p922_p10, %s13766_s0, 1  ;;  %v932_v2 = vshrl.u32 %v931_v0, 7  ;;  %12519 = vset.pattern.permute.xlu0 %v16470_v1  ;;  %12625 = vset.pattern.permute.xlu1 %v16470_v1  ;;  %vm8326_vm8 = vcmask 1043456   ;;  %vm8322_vm9 = vcmask 64512   ;;  %vm13583_vm10 = vmmov 0  }
  0x55   : > { %s16596_s3 = sld [smem:[#allocation9_spill]]  ;;  %vm9281_vm11 = vcmask 130048   ;;  %vm9608_vm12 = vcmask 261120  }
  0x56   : > { %s11383_s23 = sshll.u32 %s923_s11, 4  ;;  %v13800_v3 = vsub.s32 2, %v932_v2  ;;  %v13803_v4 = vsub.s32 1, %v932_v2  ;;  %v13805_v5 = vsub.s32 3, %v932_v2  ;;  %v13807_v6 = vsub.s32 6, %v932_v2  ;;  %s16518_s11 = smov 127  }
  0x57   : > { %v13809_v8 = vsub.s32 0, %v932_v2  ;;  %v13827_v13 = vsub.s32 7, %v932_v2  ;;  %v13829_v14 = vsub.s32 5, %v932_v2  ;;  %v13873_v31 = vsub.s32 4, %v932_v2  ;;  %s16615_s8 = sld [smem:[#allocation10_spill]] }
  0x58   : > { %16562 = vst [vmem:[#allocation27_spill] sm:$0xff] %v13800_v3  ;;  %s925_s28 = scalar_lea.vmem %s16561_s5, %s11383_s23  ;;  %16563 = vst [vmem:[#allocation28_spill] sm:$0xff] %v13803_v4  ;;  %v13985_v2 = vand.u32 127, %v931_v0  ;;  %s16516_s23 = smov 126  }
  0x59   : > { %16564 = vst [vmem:[#allocation29_spill] sm:$0xff] %v13805_v5  ;;  %v927_v7 = vld [vmem:[%s925_s28] sm:$0xff]  ;;  %16565 = vst [vmem:[#allocation30_spill] sm:$0xff] %v13809_v8  ;;  %v928_v16 = vld [vmem:[%s925_s28 + $0x8] sm:$0xff]  ;;  %s16514_s28 = smov 125   ;;  %s16617_s19 = sld [smem:[#allocation12_spill]] }
  0x5a   : > { %v13812_v9 = vrot.slane %v927_v7, %v13800_v3  ;;  %v13815_v10 = vrot.slane %v927_v7, %v13803_v4  ;;  %v13822_v11 = vrot.slane %v927_v7, %v13805_v5  ;;  %v13825_v12 = vrot.slane %v927_v7, %v13807_v6  ;;  %v2522_v63 = vld [vmem:[%s16566_s13] sm:$0xf]  ;;  %s16625_s5 = smov 125  }
  0x5b   : > { %v13832_v15 = vrot.slane %v927_v7, %v13809_v8  ;;  %v13848_v21 = vrot.slane %v927_v7, %v13827_v13  ;;  %v13851_v22 = vrot.slane %v927_v7, %v13829_v14  ;;  %v13859_v27 = vrot.slane %v928_v16, %v13800_v3 }
  0x5c   : > { %1015 = vrot.lane.b32.xlu0 %v13812_v9, %s16512_s1  ;;  %1013 = vrot.lane.b32.xlu1 %v13815_v10, %s16512_s1  ;;  %v1182_v18 = vpack.c.bf16 %v13815_v10, %v13815_v10  ;;  %v1184_v20 = vpack.c.bf16 %v13822_v11, %v13822_v11  ;;  %v1183_v25 = vpack.c.bf16 %v13812_v9, %v13812_v9  ;;  %vm1045_vm2 = vcmp.lt.s32.totalorder %v13985_v2, 1 }
  0x5d   : > { %v1181_v19 = vpack.c.bf16 %v13832_v15, %v13832_v15  ;;  %v1186_v28 = vpack.c.bf16 %v13851_v22, %v13851_v22  ;;  %v13868_v29 = vrot.slane %v928_v16, %v13805_v5  ;;  %v13871_v30 = vrot.slane %v928_v16, %v13803_v4 }
  0x5e   : > { %v1208_v23 = vand.u32 %v13835_v17, %v1182_v18  ;;  %v1214_v26 = vand.u32 %v13835_v17, %v1184_v20  ;;  %v13876_v32 = vrot.slane %v928_v16, %v13809_v8  ;;  %v13882_v34 = vrot.slane %v928_v16, %v13829_v14  ;;  %v14008_v20 = vld [vmem:[%s13618_s25 + $0x8] sm:$0xff] }
  0x5f   : > { %v1205_v24 = vand.u32 %v13835_v17, %v1181_v19  ;;  %v1211_v35 = vand.u32 %v13835_v17, %v1183_v25  ;;  %v1190_v36 = vpack.c.bf16 %v13871_v30, %v13871_v30  ;;  %v1220_v38 = vand.u32 %v13835_v17, %v1186_v28 }
  0x60   : > { %1017 = vrot.lane.b32.xlu0 %v13822_v11, %s16512_s1  ;;  %1023 = vrot.lane.b32.xlu1 %v13825_v12, %s16512_s1  ;;  %v1189_v37 = vpack.c.bf16 %v13876_v32, %v13876_v32  ;;  %v1194_v39 = vpack.c.bf16 %v13882_v34, %v13882_v34  ;;  %v950_v40 = vrot.slane %v927_v7, %v13873_v31  ;;  %v13988_v7 = vld [vmem:[%s13618_s25] sm:$0xff]  ;;  %vm1991_vm3 = vcmp.lt.s32.totalorder %v13985_v2, 127 }
  0x61   : > { %1266 = vmatprep.subr.bf16.mxu1 %v1208_v23  ;;  %v1232_v41 = vand.u32 %v13835_v17, %v1190_v36  ;;  %v982_v42 = vrot.slane %v928_v16, %v13873_v31  ;;  %v1188_v47 = vpack.c.bf16 %v13848_v21, %v13848_v21  ;;  %v990_v48 = vrot.slane %v928_v16, %v13807_v6  ;;  %v14035_v36 = vld [vmem:[%s16557_s9] sm:$0x3] }
  0x62   : > { %1267 = vmatpush1.bf16.msra.mxu1 %v1205_v24  ;;  %v1229_v43 = vand.u32 %v13835_v17, %v1189_v37  ;;  %v1185_v44 = vpack.c.bf16 %v950_v40, %v950_v40  ;;  %v1244_v45 = vand.u32 %v13835_v17, %v1194_v39  ;;  %v994_v49 = vrot.slane %v928_v16, %v13827_v13 }
  0x63   : > { %1307 = vmatprep.subr.bf16.mxu1 %v1214_v26  ;;  %v1193_v46 = vpack.c.bf16 %v982_v42, %v982_v42  ;;  %1430 = vmatprep.subr.bf16.mxu0 %v1232_v41  ;;  %v1226_v51 = vand.u32 %v13835_v17, %v1188_v47  ;;  %v1187_v53 = vpack.c.bf16 %v13825_v12, %v13825_v12  ;;  %vm4030_vm6 = vcmp.lt.s32.totalorder %v13985_v2, 126 }
  0x64   : > { %1025 = vrot.lane.b32.xlu0 %v13848_v21, %s16512_s1  ;;  %1021 = vrot.lane.b32.xlu1 %v13851_v22, %s16512_s1  ;;  %v1217_v50 = vand.u32 %v13835_v17, %v1185_v44  ;;  %v1192_v54 = vpack.c.bf16 %v13868_v29, %v13868_v29  ;;  %v1191_v57 = vpack.c.bf16 %v13859_v27, %v13859_v27  ;;  %vm4095_vm7 = vcmp.lt.s32.totalorder %v13985_v2, 125 }
  0x65   : > { %11385 = vmatmul.mubr.msk.bf16.vlgmr.msra.gmra.mxu1 %vm1197_vm1, %v13879_v33  ;;  %1431 = vmatpush1.bf16.msra.mxu0 %v1229_v43  ;;  %v1241_v52 = vand.u32 %v13835_v17, %v1193_v46  ;;  %v1223_v55 = vand.u32 %v13835_v17, %v1187_v53  ;;  %v1196_v58 = vpack.c.bf16 %v994_v49, %v994_v49 }
  0x66   : > { %1308 = vmatpush1.bf16.msra.mxu1 %v1211_v35  ;;  %1325 = vmatprep.mubr.bf16.mxu1 %v16470_v1  ;;  %v1238_v56 = vand.u32 %v13835_v17, %v1192_v54  ;;  %v1235_v59 = vand.u32 %v13835_v17, %v1191_v57  ;;  %v1195_v61 = vpack.c.bf16 %v990_v48, %v990_v48  ;;  %v14075_v57 = vld [vmem:[%s13618_s25 + $0x20] sm:$0xff] }
  0x67   : > { %1348 = vmatprep.subr.bf16.mxu1 %v1220_v38  ;;  %1512 = vmatprep.subr.bf16.mxu0 %v1244_v45  ;;  %v1250_v60 = vand.u32 %v13835_v17, %v1196_v58  ;;  %v14017_v23 = vrot.slane %v13988_v7, %v13807_v6  ;;  %v14050_v45 = vrot.slane %v13988_v7, %v13803_v4 }
  0x68   : > { %1031 = vrot.lane.b32.xlu0 %v13859_v27, %s16512_s1  ;;  %1033 = vrot.lane.b32.xlu1 %v13868_v29, %s16512_s1  ;;  %v1247_v62 = vand.u32 %v13835_v17, %v1195_v61 }
  0x69   : > { %11389 = vmatmul.mubr.msk.bf16.vlgmr.msra.gmra.mxu0 %vm1197_vm1, %v13879_v33 }
  0x6a   : > { %1513 = vmatpush1.bf16.msra.mxu0 %v1241_v52  ;;  %1530 = vmatprep.mubr.bf16.mxu0 %v16470_v1  ;;  %v14064_v52 = vrot.slane %v13988_v7, %v13809_v8 }
  0x6c   : > { %1029 = vrot.lane.b32.xlu0 %v13871_v30, %s16512_s1  ;;  %1011 = vrot.lane.b32.xlu1 %v13832_v15, %s16512_s1 }
  0x6d   : > { %11386 = vmatmul.mubr.msk.bf16.vlgmr.msra.gmra.mxu1 %vm1197_vm1, %v13879_v33 }
  0x6e   : > { %1349 = vmatpush1.bf16.msra.mxu1 %v1217_v50  ;;  %1366 = vmatprep.mubr.bf16.mxu1 %v16470_v1 }
  0x6f   : > { %1389 = vmatprep.subr.bf16.mxu1 %v1226_v51 }
  0x70   : > { %1039 = vrot.lane.b32.xlu0 %v990_v48, %s16512_s1  ;;  %1041 = vrot.lane.b32.xlu1 %v994_v49, %s16512_s1 }
  0x71   : > { %11391 = vmatmul.mubr.msk.bf16.vlgmr.msra.gmra.mxu0 %vm1197_vm1, %v13879_v33 }
  0x72   : > { %1663 = vmatprep.mubr.bf16.mxu0 %v16470_v1 }
  0x74   : > { %1037 = vrot.lane.b32.xlu0 %v13882_v34, %s16512_s1  ;;  %1019 = vrot.lane.b32.xlu1 %v950_v40, %s16512_s1 }
  0x75   : > { %11387 = vmatmul.mubr.msk.bf16.vlgmr.msra.gmra.mxu1 %vm1197_vm1, %v13879_v33 }
  0x76   : > { %1390 = vmatpush1.bf16.msra.mxu1 %v1223_v55  ;;  %1407 = vmatprep.mubr.bf16.mxu1 %v16470_v1  ;;  %v14071_v55 = vrot.slane %v14008_v20, %v13827_v13 }
  0x77   : > { %1471 = vmatprep.subr.bf16.mxu1 %v1238_v56 }
  0x78   : > { %1965 = vrot.lane.b32.xlu0 %v13822_v11, %s16518_s11  ;;  %1967 = vrot.lane.b32.xlu1 %v950_v40, %s16518_s11 }
  0x7c   : > { %1963 = vrot.lane.b32.xlu0 %v13812_v9, %s16518_s11  ;;  %1027 = vrot.lane.b32.xlu1 %v13876_v32, %s16512_s1  ;;  %v13993_v9 = vrot.slane %v13988_v7, %v13800_v3 }
  0x7d   : > { %11388 = vmatmul.mubr.msk.bf16.vlgmr.msra.gmra.mxu1 %vm1197_vm1, %v13879_v33 }
  0x7e   : > { %1472 = vmatpush1.bf16.msra.mxu1 %v1235_v59  ;;  %1489 = vmatprep.mubr.bf16.mxu1 %v16470_v1 }
  0x7f   : > { %1553 = vmatprep.subr.bf16.mxu1 %v1250_v60 }
  0x80   : > { %1973 = vrot.lane.b32.xlu0 %v13848_v21, %s16518_s11  ;;  %1975 = vrot.lane.b32.xlu1 %v13876_v32, %s16518_s11 }
  0x84   : > { %1971 = vrot.lane.b32.xlu0 %v13825_v12, %s16518_s11  ;;  %1035 = vrot.lane.b32.xlu1 %v982_v42, %s16512_s1 }
  0x85   : > { %11390 = vmatmul.mubr.msk.bf16.vlgmr.msra.gmra.mxu1 %vm1197_vm1, %v13879_v33 }
  0x86   : > { %1554 = vmatpush1.bf16.msra.mxu1 %v1247_v62  ;;  %1571 = vmatprep.mubr.bf16.mxu1 %v16470_v1  ;;  %v14079_v62 = vrot.slane %v14008_v20, %v13807_v6 }
  0x88   : > { %1981 = vrot.lane.b32.xlu0 %v13868_v29, %s16518_s11  ;;  %1983 = vrot.lane.b32.xlu1 %v982_v42, %s16518_s11  ;;  %v14044_v42 = vrot.slane %v14008_v20, %v13800_v3 }
  0x8c   : > { %1979 = vrot.lane.b32.xlu0 %v13859_v27, %s16518_s11  ;;  %1959 = vrot.lane.b32.xlu1 %v13832_v15, %s16518_s11  ;;  %v13999_v15 = vrot.slane %v13988_v7, %v13805_v5 }
  0x8d   : > { %11392 = vmatmul.mubr.msk.bf16.vlgmr.msra.gmra.mxu1 %vm1197_vm1, %v13879_v33  ;;  %v14030_v33 = vrot.slane %v14008_v20, %v13805_v5 }
  0x8e   : > { %1704 = vmatprep.mubr.bf16.mxu1 %v16470_v1 }
  0x90   : > { %1961 = vrot.lane.b32.xlu0 %v13815_v10, %s16518_s11  ;;  %1989 = vrot.lane.b32.xlu1 %v994_v49, %s16518_s11 }
  0x94   : > { %1987 = vrot.lane.b32.xlu0 %v990_v48, %s16518_s11  ;;  %1969 = vrot.lane.b32.xlu1 %v13851_v22, %s16518_s11  ;;  %v14013_v22 = vrot.slane %v13988_v7, %v13827_v13 }
  0x98   : > { %1977 = vrot.lane.b32.xlu0 %v13871_v30, %s16518_s11  ;;  %1985 = vrot.lane.b32.xlu1 %v13882_v34, %s16518_s11 }
  0x9c   : > { %2525 = vperm.xlu0 %12519, %v2522_v63  }
  0xce   : > { %v1016_v10 = vpop.permute.xlu0 %1015  ;;  %v1014_v11 = vpop.permute.xlu1 %1013 }
  0xcf   : > { %v1059_v12 = vsel %vm1045_vm2, %v1014_v11, %v1016_v10 }
  0xd0   : > { %v1148_v0 = vmul.f32 %v13993_v9, %v1059_v12  ;;  %v14091_v12 = vrot.slane %v13988_v7, %v13829_v14 }
  0xd2   : > { %v14002_v16 = vpop.permute.xlu0 %1017  ;;  %v1024_v18 = vpop.permute.xlu1 %1023  ;;  %v1165_v24 = vpack.c.bf16 %v1148_v0, %v1148_v0 }
  0xd3   : > { %v1058_v19 = vsel %vm1045_vm2, %v1016_v10, %v14002_v16 }
  0xd4   : > { %v1149_v21 = vmul.f32 %v13999_v15, %v1058_v19  ;;  %v1590_v35 = vand.u32 %v13835_v17, %v1165_v24 }
  0xd6   : > { %v1166_v25 = vpack.c.bf16 %v1149_v21, %v1149_v21  ;;  %v14019_v26 = vpop.permute.xlu0 %1025  ;;  %v1022_v27 = vpop.permute.xlu1 %1021 }
  0xd7   : > { %v1054_v28 = vsel %vm1045_vm2, %v1024_v18, %v14019_v26  ;;  %v1055_v29 = vsel %vm1045_vm2, %v1022_v27, %v1024_v18 }
  0xd8   : > { %v1153_v30 = vmul.f32 %v14013_v22, %v1054_v28  ;;  %v1152_v32 = vmul.f32 %v14017_v23, %v1055_v29  ;;  %v1593_v34 = vand.u32 %v13835_v17, %v1166_v25 }
  0xda   : > { %v1170_v37 = vpack.c.bf16 %v1153_v30, %v1153_v30  ;;  %v1169_v38 = vpack.c.bf16 %v1152_v32, %v1152_v32  ;;  %v1032_v39 = vpop.permute.xlu0 %1031  ;;  %v14037_v40 = vpop.permute.xlu1 %1033  ;;  %1686 = vmatprep.subr.bf16.mxu1 %v1593_v34 }
  0xdb   : > { %v1050_v41 = vsel %vm1045_vm2, %v1032_v39, %v14037_v40  ;;  %1687 = vmatpush1.bf16.msra.mxu1 %v1590_v35 }
  0xdc   : > { %v1602_v43 = vand.u32 %v13835_v17, %v1169_v38  ;;  %v1157_v44 = vmul.f32 %v14030_v33, %v1050_v41  ;;  %v1605_v46 = vand.u32 %v13835_v17, %v1170_v37 }
  0xde   : > { %v1174_v47 = vpack.c.bf16 %v1157_v44, %v1157_v44  ;;  %v14053_v48 = vpop.permute.xlu0 %1029  ;;  %v1012_v49 = vpop.permute.xlu1 %1011  ;;  %11394 = vmatmul.mubr.msk.bf16.vlgmr.msra.gmra.mxu1 %vm1197_vm1, %v14035_v36  ;;  %1768 = vmatprep.subr.bf16.mxu1 %v1605_v46 }
  0xdf   : > { %v1051_v50 = vsel %vm1045_vm2, %v14053_v48, %v1032_v39  ;;  %v1060_v51 = vsel %vm1045_vm2, %v1012_v49, %v1014_v11  ;;  %1769 = vmatpush1.bf16.msra.mxu1 %v1602_v43  ;;  %1786 = vmatprep.mubr.bf16.mxu1 %v16470_v1  ;;  %v14087_v11 = vrot.slane %v13988_v7, %v13873_v31 }
  0xe0   : > { %v1156_v53 = vmul.f32 %v14044_v42, %v1051_v50  ;;  %v1147_v54 = vmul.f32 %v14050_v45, %v1060_v51  ;;  %v1617_v56 = vand.u32 %v13835_v17, %v1174_v47  ;;  %v14103_v7 = vrot.slane %v14075_v57, %v13805_v5 }
  0xe1   : > { %v14131_v50 = vrot.slane %v14008_v20, %v13809_v8  ;;  %v14135_v51 = vrot.slane %v14008_v20, %v13803_v4 }
  0xe2   : > { %v1173_v58 = vpack.c.bf16 %v1156_v53, %v1156_v53  ;;  %v1164_v59 = vpack.c.bf16 %v1147_v54, %v1147_v54  ;;  %v1040_v60 = vpop.permute.xlu0 %1039  ;;  %v1042_v61 = vpop.permute.xlu1 %1041  ;;  %1850 = vmatprep.subr.bf16.mxu1 %v1617_v56  ;;  %16567 = vst [vmem:[#allocation31_spill] sm:$0xff] %v14103_v7 }
  0xe3   : > { %v1046_v63 = vsel %vm1045_vm2, %v1040_v60, %v1042_v61  ;;  %v1061_v10 = vsel %vm1045_vm2, %v1042_v61, %v1012_v49  ;;  %v14127_v49 = vrot.slane %v14075_v57, %v13800_v3 }
  0xe4   : > { %v1614_v0 = vand.u32 %v13835_v17, %v1173_v58  ;;  %v1146_v18 = vmul.f32 %v14064_v52, %v1061_v10  ;;  %v1161_v19 = vmul.f32 %v14071_v55, %v1046_v63  ;;  %v1587_v21 = vand.u32 %v13835_v17, %v1164_v59 }
  0xe5   : > { %16568 = vst [vmem:[#allocation32_spill] sm:$0xff] %v14127_v49  ;;  %v14149_v63 = vrot.slane %v14075_v57, %v13827_v13 }
  0xe6   : > { %v1163_v24 = vpack.c.bf16 %v1146_v18, %v1146_v18  ;;  %v1178_v25 = vpack.c.bf16 %v1161_v19, %v1161_v19  ;;  %v14097_v28 = vpop.permute.xlu0 %1037  ;;  %1645 = vmatprep.subr.bf16.mxu0 %v1587_v21  ;;  %v1020_v29 = vpop.permute.xlu1 %1019  ;;  %11396 = vmatmul.mubr.msk.bf16.vlgmr.msra.gmra.mxu1 %vm1197_vm1, %v14035_v36 }
  0xe7   : > { %v1047_v30 = vsel %vm1045_vm2, %v14097_v28, %v1040_v60  ;;  %v1056_v32 = vsel %vm1045_vm2, %v1020_v29, %v1022_v27  ;;  %v1057_v34 = vsel %vm1045_vm2, %v14002_v16, %v1020_v29  ;;  %1851 = vmatpush1.bf16.msra.mxu1 %v1614_v0  ;;  %1868 = vmatprep.mubr.bf16.mxu1 %v16470_v1  ;;  %v14167_v29 = vld [vmem:[%s13618_s25 + $0x28] sm:$0xff] }
  0xe8   : > { %v1584_v35 = vand.u32 %v13835_v17, %v1163_v24  ;;  %v1160_v37 = vmul.f32 %v14079_v62, %v1047_v30  ;;  %v1150_v38 = vmul.f32 %v14087_v11, %v1057_v34  ;;  %v1151_v39 = vmul.f32 %v14091_v12, %v1056_v32  ;;  %16569 = vst [vmem:[#allocation33_spill] sm:$0xff] %v14149_v63 }
  0xe9   : > { %v1629_v41 = vand.u32 %v13835_v17, %v1178_v25 }
  0xea   : > { %v1177_v43 = vpack.c.bf16 %v1160_v37, %v1160_v37  ;;  %v1167_v44 = vpack.c.bf16 %v1150_v38, %v1150_v38  ;;  %v1168_v27 = vpack.c.bf16 %v1151_v39, %v1151_v39  ;;  %v1966_v46 = vpop.permute.xlu0 %1965  ;;  %1646 = vmatpush1.bf16.msra.mxu0 %v1584_v35  ;;  %v14120_v47 = vpop.permute.xlu1 %1967  ;;  %v14176_v37 = vrot.slane %v14075_v57, %v13807_v6 }
  0xeb   : > { %v2003_v16 = vsel %vm1991_vm3, %v1966_v46, %v14120_v47  ;;  %1932 = vmatprep.subr.bf16.mxu1 %v1629_v41  ;;  %v14180_v38 = vrot.slane %v14008_v20, %v13873_v31  ;;  %v14184_v39 = vrot.slane %v14008_v20, %v13829_v14  ;;  %v14198_v20 = vrot.slane %v14167_v29, %v13805_v5 }
  0xec   : > { %v1626_v53 = vand.u32 %v13835_v17, %v1177_v43  ;;  %v1596_v54 = vand.u32 %v13835_v17, %v1167_v44  ;;  %v2096_v56 = vmul.f32 %v14103_v7, %v2003_v16  ;;  %v1599_v58 = vand.u32 %v13835_v17, %v1168_v27  ;;  %16570 = vst [vmem:[#allocation34_spill] sm:$0xff] %v14176_v37 }
  0xed   : > { %11393 = vmatmul.mubr.msk.bf16.vlgmr.msra.gmra.mxu0 %vm1197_vm1, %v14035_v36  ;;  %16571 = vst [vmem:[#allocation35_spill] sm:$0xff] %v14198_v20 }
  0xee   : > { %v2114_v59 = vpack.c.bf16 %v2096_v56, %v2096_v56  ;;  %v14143_v60 = vpop.permute.xlu0 %1963  ;;  %1727 = vmatprep.subr.bf16.mxu0 %v1599_v58  ;;  %v1028_v61 = vpop.permute.xlu1 %1027  ;;  %11398 = vmatmul.mubr.msk.bf16.vlgmr.msra.gmra.mxu1 %vm1197_vm1, %v14035_v36 }
  0xef   : > { %v2004_v10 = vsel %vm1991_vm3, %v14143_v60, %v1966_v46  ;;  %v1052_v0 = vsel %vm1045_vm2, %v1028_v61, %v14053_v48  ;;  %v1053_v18 = vsel %vm1045_vm2, %v14019_v26, %v1028_v61  ;;  %1728 = vmatpush1.bf16.msra.mxu0 %v1596_v54  ;;  %1933 = vmatpush1.bf16.msra.mxu1 %v1626_v53 }
  0xf0   : > { %v2095_v19 = vmul.f32 %v14127_v49, %v2004_v10  ;;  %v1154_v21 = vmul.f32 %v14131_v50, %v1053_v18  ;;  %v1155_v24 = vmul.f32 %v14135_v51, %v1052_v0  ;;  %1745 = vmatprep.mubr.bf16.mxu0 %v16470_v1  ;;  %1950 = vmatprep.mubr.bf16.mxu1 %v16470_v1  ;;  %v14215_v0 = vld [vmem:[%s16557_s9 + $0x4] sm:$0x3]  ;;  %s16632_s9 = sld [smem:[#allocation19_spill]] }
  0xf1   : > { %v2140_v25 = vand.u32 %v2114_v59, %v13835_v17 }
  0xf2   : > { %v2113_v48 = vpack.c.bf16 %v2095_v19, %v2095_v19  ;;  %v1171_v30 = vpack.c.bf16 %v1154_v21, %v1154_v21  ;;  %v1172_v32 = vpack.c.bf16 %v1155_v24, %v1155_v24  ;;  %v1974_v26 = vpop.permute.xlu0 %1973  ;;  %v14169_v34 = vpop.permute.xlu1 %1975 }
  0xf3   : > { %v1999_v35 = vsel %vm1991_vm3, %v1974_v26, %v14169_v34  ;;  %2233 = vmatprep.subr.bf16.mxu1 %v2140_v25 }
  0xf4   : > { %v2137_v41 = vand.u32 %v2113_v48, %v13835_v17  ;;  %v1608_v43 = vand.u32 %v13835_v17, %v1171_v30  ;;  %v2100_v44 = vmul.f32 %v14149_v63, %v1999_v35  ;;  %v1611_v27 = vand.u32 %v13835_v17, %v1172_v32 }
  0xf5   : > { %11395 = vmatmul.mubr.msk.bf16.vlgmr.msra.gmra.mxu0 %vm1197_vm1, %v14035_v36  ;;  %v14225_v48 = vrot.slane %v14167_v29, %v13800_v3 }
  0xf6   : > { %v2118_v46 = vpack.c.bf16 %v2100_v44, %v2100_v44  ;;  %v14192_v16 = vpop.permute.xlu0 %1971  ;;  %1809 = vmatprep.subr.bf16.mxu0 %v1611_v27  ;;  %v1036_v53 = vpop.permute.xlu1 %1035  ;;  %11400 = vmatmul.mubr.msk.bf16.vlgmr.msra.gmra.mxu1 %vm1197_vm1, %v14035_v36 }
  0xf7   : > { %v2000_v54 = vsel %vm1991_vm3, %v14192_v16, %v1974_v26  ;;  %v1048_v56 = vsel %vm1045_vm2, %v1036_v53, %v14097_v28  ;;  %v1049_v58 = vsel %vm1045_vm2, %v14037_v40, %v1036_v53  ;;  %1810 = vmatpush1.bf16.msra.mxu0 %v1608_v43  ;;  %2234 = vmatpush1.bf16.msra.mxu1 %v2137_v41 }
  0xf8   : > { %v2099_v59 = vmul.f32 %v14176_v37, %v2000_v54  ;;  %v1158_v61 = vmul.f32 %v14180_v38, %v1049_v58  ;;  %v1159_v10 = vmul.f32 %v14184_v39, %v1048_v56  ;;  %1827 = vmatprep.mubr.bf16.mxu0 %v16470_v1  ;;  %2251 = vmatprep.mubr.bf16.mxu1 %v16470_v1 }
  0xf9   : > { %v2152_v28 = vand.u32 %v2118_v46, %v13835_v17  ;;  %16572 = vst [vmem:[#allocation36_spill] sm:$0xff] %v14225_v48  ;;  %v14239_v46 = vrot.slane %v14075_v57, %v13809_v8  ;;  %v14243_v53 = vrot.slane %v14075_v57, %v13803_v4  ;;  %v14248_v56 = vrot.slane %v14167_v29, %v13827_v13 }
  0xfa   : > { %v2117_v18 = vpack.c.bf16 %v2099_v59, %v2099_v59  ;;  %v1175_v19 = vpack.c.bf16 %v1158_v61, %v1158_v61  ;;  %v1176_v21 = vpack.c.bf16 %v1159_v10, %v1159_v10  ;;  %v1982_v40 = vpop.permute.xlu0 %1981  ;;  %v14218_v24 = vpop.permute.xlu1 %1983 }
  0xfb   : > { %v1995_v25 = vsel %vm1991_vm3, %v1982_v40, %v14218_v24  ;;  %2315 = vmatprep.subr.bf16.mxu1 %v2152_v28  ;;  %16573 = vst [vmem:[#allocation37_spill] sm:$0xff] %v14248_v56  ;;  %v14255_v28 = vrot.slane %v14075_v57, %v13873_v31 }
  0xfc   : > { %v2149_v30 = vand.u32 %v2117_v18, %v13835_v17  ;;  %v1620_v32 = vand.u32 %v13835_v17, %v1175_v19  ;;  %v2104_v26 = vmul.f32 %v14198_v20, %v1995_v25  ;;  %v1623_v35 = vand.u32 %v13835_v17, %v1176_v21 }
  0xfd   : > { %11397 = vmatmul.mubr.msk.bf16.vlgmr.msra.gmra.mxu0 %vm1197_vm1, %v14035_v36  ;;  %16574 = vst [vmem:[#allocation38_spill] sm:$0xff] %v14255_v28  ;;  %v14259_v18 = vrot.slane %v14075_v57, %v13829_v14 }
  0xfe   : > { %v2122_v41 = vpack.c.bf16 %v2104_v26, %v2104_v26  ;;  %v1980_v43 = vpop.permute.xlu0 %1979  ;;  %1891 = vmatprep.subr.bf16.mxu0 %v1623_v35  ;;  %v1960_v44 = vpop.permute.xlu1 %1959  ;;  %11405 = vmatmul.mubr.msk.bf16.vlgmr.msra.gmra.mxu1 %vm1197_vm1, %v14215_v0 }
  0xff   : > { %v1996_v27 = vsel %vm1991_vm3, %v1980_v43, %v1982_v40  ;;  %1892 = vmatpush1.bf16.msra.mxu0 %v1620_v32  ;;  %2316 = vmatpush1.bf16.msra.mxu1 %v2149_v30  ;;  %16575 = vst [vmem:[#allocation39_spill] sm:$0xff] %v14259_v18  ;;  %v14270_v40 = vrot.slane %v14167_v29, %v13807_v6 }
 0x100   : > { %v2103_v54 = vmul.f32 %v14225_v48, %v1996_v27  ;;  %1909 = vmatprep.mubr.bf16.mxu0 %v16470_v1  ;;  %2333 = vmatprep.mubr.bf16.mxu1 %v16470_v1  ;;  %v2164_v58 = vand.u32 %v2122_v41, %v13835_v17 }
 0x101   : > { %16576 = vst [vmem:[#allocation40_spill] sm:$0xff] %v14270_v40 }
 0x102   : > { %v2121_v59 = vpack.c.bf16 %v2103_v54, %v2103_v54  ;;  %v1962_v61 = vpop.permute.xlu0 %1961  ;;  %v1990_v10 = vpop.permute.xlu1 %1989  ;;  %2397 = vmatprep.subr.bf16.mxu1 %v2164_v58 }
 0x103   : > { %v2005_v13 = vsel %vm1991_vm3, %v1962_v61, %v14143_v60  ;;  %v2006_v19 = vsel %vm1991_vm3, %v1960_v44, %v1962_v61  ;;  %v2007_v21 = vsel %vm1991_vm3, %v1990_v10, %v1960_v44  ;;  %v14280_v60 = vrot.slane %v14167_v29, %v13803_v4 }
 0x104   : > { %v2161_v25 = vand.u32 %v2121_v59, %v13835_v17  ;;  %v2093_v57 = vmul.f32 %v14239_v46, %v2006_v19  ;;  %v2094_v30 = vmul.f32 %v14243_v53, %v2005_v13  ;;  %v2108_v32 = vmul.f32 %v14248_v56, %v2007_v21 }
 0x105   : > { %11399 = vmatmul.mubr.msk.bf16.vlgmr.msra.gmra.mxu0 %vm1197_vm1, %v14035_v36  ;;  %16577 = vst [vmem:[#allocation41_spill] sm:$0xff] %v14280_v60 }
 0x106   : > { %v2111_v26 = vpack.c.bf16 %v2093_v57, %v2093_v57  ;;  %v2112_v35 = vpack.c.bf16 %v2094_v30, %v2094_v30  ;;  %v2126_v41 = vpack.c.bf16 %v2108_v32, %v2108_v32  ;;  %v1988_v6 = vpop.permute.xlu0 %1987  ;;  %v1970_v44 = vpop.permute.xlu1 %1969  ;;  %11407 = vmatmul.mubr.msk.bf16.vlgmr.msra.gmra.mxu1 %vm1197_vm1, %v14215_v0  ;;  %2210 = vmatprep.mubr.bf16.mxu0 %v16470_v1 }
 0x107   : > { %v1992_v27 = vsel %vm1991_vm3, %v1988_v6, %v1990_v10  ;;  %v2001_v36 = vsel %vm1991_vm3, %v1970_v44, %v14192_v16  ;;  %v2002_v54 = vsel %vm1991_vm3, %v14120_v47, %v1970_v44  ;;  %2398 = vmatpush1.bf16.msra.mxu1 %v2161_v25  ;;  %2415 = vmatprep.mubr.bf16.mxu1 %v16470_v1 }
 0x108   : > { %v2131_v58 = vand.u32 %v2111_v26, %v13835_v17  ;;  %v2107_v59 = vmul.f32 %v14270_v40, %v1992_v27  ;;  %v2097_v61 = vmul.f32 %v14255_v28, %v2002_v54  ;;  %v2098_v13 = vmul.f32 %v14259_v18, %v2001_v36 }
 0x109   : > { %v2134_v10 = vand.u32 %v2112_v35, %v13835_v17  ;;  %v2176_v19 = vand.u32 %v2126_v41, %v13835_v17  ;;  %v14302_v47 = vrot.slane %v14167_v29, %v13809_v8  ;;  %v14311_v35 = vrot.slane %v14167_v29, %v13829_v14 }
 0x10a   : > { %v2125_v16 = vpack.c.bf16 %v2107_v59, %v2107_v59  ;;  %v2115_v21 = vpack.c.bf16 %v2097_v61, %v2097_v61  ;;  %v2116_v57 = vpack.c.bf16 %v2098_v13, %v2098_v13  ;;  %v1978_v25 = vpop.permute.xlu0 %1977  ;;  %v1986_v30 = vpop.permute.xlu1 %1985 }
 0x10b   : > { %16578 = vst [vmem:[#allocation42_spill] sm:$0xff] %v14302_v47  ;;  %v1997_v32 = vsel %vm1991_vm3, %v1978_v25, %v1980_v43  ;;  %v1998_v26 = vsel %vm1991_vm3, %v14169_v34, %v1978_v25  ;;  %2192 = vmatprep.subr.bf16.mxu0 %v2134_v10  ;;  %16579 = vst [vmem:[#allocation43_spill] sm:$0xff] %v14311_v35  ;;  %v1993_v36 = vsel %vm1991_vm3, %v1986_v30, %v1988_v6 }
 0x10c   : > { %v2173_v41 = vand.u32 %v2125_v16, %v13835_v17  ;;  %v2143_v44 = vand.u32 %v2115_v21, %v13835_v17  ;;  %v2102_v27 = vmul.f32 %v14280_v60, %v1997_v32  ;;  %2193 = vmatpush1.bf16.msra.mxu0 %v2131_v58  ;;  %v2146_v43 = vand.u32 %v2116_v57, %v13835_v17 }
 0x10d   : > { %2479 = vmatprep.subr.bf16.mxu1 %v2176_v19  ;;  %v2101_v34 = vmul.f32 %v14302_v47, %v1998_v26  ;;  %v2106_v14 = vmul.f32 %v14311_v35, %v1993_v36  ;;  %v14330_v58 = vrot.slane %v14167_v29, %v13873_v31  ;;  %v1994_v61 = vsel %vm1991_vm3, %v14218_v24, %v1986_v30 }
 0x10e   : > { %v2120_v54 = vpack.c.bf16 %v2102_v27, %v2102_v27  ;;  %11409 = vmatmul.mubr.msk.bf16.vlgmr.msra.gmra.mxu1 %vm1197_vm1, %v14215_v0  ;;  %2274 = vmatprep.subr.bf16.mxu0 %v2146_v43 }
 0x10f   : > { %11404 = vmatmul.mubr.msk.bf16.vlgmr.msra.gmra.mxu0 %vm1197_vm1, %v14215_v0  ;;  %2480 = vmatpush1.bf16.msra.mxu1 %v2173_v41  ;;  %v2119_v6 = vpack.c.bf16 %v2101_v34, %v2101_v34  ;;  %16580 = vst [vmem:[#allocation44_spill] sm:$0xff] %v14330_v58  ;;  %v2124_v13 = vpack.c.bf16 %v2106_v14, %v2106_v14 }
 0x110   : > { %2275 = vmatpush1.bf16.msra.mxu0 %v2143_v44  ;;  %v2158_v59 = vand.u32 %v2120_v54, %v13835_v17  ;;  %2292 = vmatprep.mubr.bf16.mxu0 %v16470_v1  ;;  %v2105_v19 = vmul.f32 %v14330_v58, %v1994_v61 }
 0x111   : > { %2497 = vmatprep.mubr.bf16.mxu1 %v16470_v1  ;;  %v2155_v10 = vand.u32 %v2119_v6, %v13835_v17  ;;  %v2170_v16 = vand.u32 %v2124_v13, %v13835_v17 }
 0x112   : > { %2356 = vmatprep.subr.bf16.mxu0 %v2158_v59  ;;  %v2123_v31 = vpack.c.bf16 %v2105_v19, %v2105_v19 }
 0x114   : > { %v2167_v29 = vand.u32 %v2123_v31, %v13835_v17 }
 0x116   : > { %11411 = vmatmul.mubr.msk.bf16.vlgmr.msra.gmra.mxu1 %vm1197_vm1, %v14215_v0 }
 0x117   : > { %11406 = vmatmul.mubr.msk.bf16.vlgmr.msra.gmra.mxu0 %vm1197_vm1, %v14215_v0  ;;  %2785 = vmatprep.mubr.bf16.mxu1 %v16470_v1 }
 0x118   : > { %2357 = vmatpush1.bf16.msra.mxu0 %v2155_v10  ;;  %2374 = vmatprep.mubr.bf16.mxu0 %v16470_v1 }
 0x119   : > { %2438 = vmatprep.subr.bf16.mxu0 %v2170_v16 }
 0x11f   : > { %11408 = vmatmul.mubr.msk.bf16.vlgmr.msra.gmra.mxu0 %vm1197_vm1, %v14215_v0 }
 0x120   : > { %2439 = vmatpush1.bf16.msra.mxu0 %v2167_v29  ;;  %2456 = vmatprep.mubr.bf16.mxu0 %v16470_v1 }
 0x125   : > { %v14351_v24 = vpop.f32.mrf.mxu1 }
 0x127   : > { %11410 = vmatmul.mubr.msk.bf16.vlgmr.msra.gmra.mxu0 %vm1197_vm1, %v14215_v0  ;;  %v14353_v21 = vpop.f32.mrf.mxu1 }
 0x128   : > { %2744 = vmatprep.mubr.bf16.mxu0 %v16470_v1 }
 0x129   : > { %v1290_v57 = vpop.f32.mrf.mxu1  ;;  %v14355_v32 = vpop.f32.mrf.mxu0 }
 0x12b   : > { %v1291_v25 = vpop.f32.mrf.mxu1  ;;  %v14357_v26 = vpop.f32.mrf.mxu0 }
 0x12d   : > { %v1327_v30 = vpop.f32.mrf.mxu1  ;;  %v1454_v44 = vpop.f32.mrf.mxu0 }
 0x12f   : > { %v1329_v17 = vpop.f32.mrf.mxu1  ;;  %v1455_v36 = vpop.f32.mrf.mxu0 }
 0x131   : > { %v1331_v41 = vpop.f32.mrf.mxu1  ;;  %v14361_v0 = vpop.f32.mrf.mxu0 }
 0x133   : > { %v1332_v27 = vpop.f32.mrf.mxu1  ;;  %v14365_v54 = vpop.f32.mrf.mxu0 }
 0x135   : > { %v14359_v43 = vpop.f32.mrf.mxu1  ;;  %v1536_v59 = vpop.f32.mrf.mxu0 }
 0x137   : > { %v14363_v34 = vpop.f32.mrf.mxu1  ;;  %v1537_v61 = vpop.f32.mrf.mxu0 }
 0x139   : > { %v1372_v14 = vpop.f32.mrf.mxu1 }
 0x13b   : > { %v1373_v6 = vpop.f32.mrf.mxu1 }
 0x13d   : > { %v1409_v13 = vpop.f32.mrf.mxu1 }
 0x13f   : > { %v1411_v10 = vpop.f32.mrf.mxu1 }
 0x141   : > { %v1413_v19 = vpop.f32.mrf.mxu1 }
 0x143   : > { %v1414_v16 = vpop.f32.mrf.mxu1 }
 0x145   : > { %v14367_v31 = vpop.f32.mrf.mxu1 }
 0x147   : > { %v14369_v29 = vpop.f32.mrf.mxu1 }
 0x149   : > { %v1495_v57 = vpop.f32.mrf.mxu1 }
 0x14b   : > { %v1496_v25 = vpop.f32.mrf.mxu1 }
 0x14d   : > { %v14371_v41 = vpop.f32.mrf.mxu1 }
 0x14f   : > { %v14373_v44 = vpop.f32.mrf.mxu1 }
 0x151   : > { %v1577_v27 = vpop.f32.mrf.mxu1 }
 0x153   : > { %v1578_v36 = vpop.f32.mrf.mxu1 }
 0x19e   : > { %v1706_v14 = vpop.f32.mrf.mxu1 }
 0x19f   : > { %v1707_v48 = vadd.f32 %v1706_v14, %v1327_v30 }
 0x1a0   : > { %v1708_v59 = vpop.f32.mrf.mxu1 }
 0x1a2   : > { %v1710_v6 = vpop.f32.mrf.mxu1 }
 0x1a4   : > { %v1711_v61 = vpop.f32.mrf.mxu1 }
 0x1a6   : > { %v1788_v1 = vpop.f32.mrf.mxu1 }
 0x1a7   : > { %v1789_v14 = vadd.f32 %v1788_v1, %v1409_v13 }
 0x1a8   : > { %v1790_v5 = vpop.f32.mrf.mxu1 }
 0x1aa   : > { %v1792_v19 = vpop.f32.mrf.mxu1 }
 0x1ac   : > { %v1793_v16 = vpop.f32.mrf.mxu1 }
 0x1ad   : > { %v1665_v8 = vpop.f32.mrf.mxu0 }
 0x1ae   : > { %v1870_v3 = vpop.f32.mrf.mxu1 }
 0x1af   : > { %v14375_v4 = vpop.f32.mrf.mxu0 }
 0x1b0   : > { %v1872_v57 = vpop.f32.mrf.mxu1 }
 0x1b1   : > { %v1669_v25 = vpop.f32.mrf.mxu0 }
 0x1b2   : > { %v1874_v40 = vpop.f32.mrf.mxu1  ;;  %v14387_v25 = vpop.permute.xlu0 %2525 }
 0x1b3   : > { %v1670_v35 = vpop.f32.mrf.mxu0  ;;  %v1709_v40 = vadd.f32 %v1708_v59, %v1329_v17 }
 0x1b4   : > { %v1875_v56 = vpop.f32.mrf.mxu1 }
 0x1b5   : > { %v14377_v58 = vpop.f32.mrf.mxu0 }
 0x1b6   : > { %v14379_v27 = vpop.f32.mrf.mxu1 }
 0x1b7   : > { %v14381_v36 = vpop.f32.mrf.mxu0 }
 0x1b8   : > { %v14383_v6 = vpop.f32.mrf.mxu1 }
 0x1b9   : > { %v1751_v61 = vpop.f32.mrf.mxu0 }
 0x1ba   : > { %v1956_v19 = vpop.f32.mrf.mxu1 }
 0x1bb   : > { %v1752_v16 = vpop.f32.mrf.mxu0 }
 0x1bc   : > { %v1957_v20 = vpop.f32.mrf.mxu1 }
 0x1bd   : > { %v14385_v60 = vpop.f32.mrf.mxu0 }
 0x1be   : > { %v2253_v47 = vpop.f32.mrf.mxu1 }
 0x1bf   : > { %v2508_v56 = vadd.f32 %v2253_v47, %v1707_v48  ;;  %v14389_v35 = vpop.f32.mrf.mxu0 }
 0x1c0   : > { %v2255_v63 = vpop.f32.mrf.mxu1 }
 0x1c1   : > { %v2509_v37 = vadd.f32 %v2255_v63, %v1709_v40  ;;  %v1833_v18 = vpop.f32.mrf.mxu0  ;;  %v2530_v28 = vadd.f32 %v14387_v25, %v2508_v56  ;;  %v14409_v56 = vld [vmem:[%s16555_s17 + $0x2] sm:$0x3] }
 0x1c2   : > { %v2257_v7 = vpop.f32.mrf.mxu1  ;;  %v1791_v18 = vadd.f32 %v1790_v5, %v1411_v10 }
 0x1c3   : > { %v2531_v61 = vadd.f32 %v14387_v25, %v2509_v37  ;;  %v1834_v19 = vpop.f32.mrf.mxu0  ;;  %v14393_v20 = vmax.f32 %v2530_v28, 0.0 }
 0x1c4   : > { %v2258_v30 = vpop.f32.mrf.mxu1 }
 0x1c5   : > { %v14395_v16 = vmax.f32 %v2531_v61, 0.0  ;;  %v14397_v49 = vpop.f32.mrf.mxu0  ;;  %v2645_v48 = vpack.c.bf16 %v14393_v20, %v14393_v20  ;;  %v1871_v30 = vadd.f32 %v1870_v3, %v14367_v31  ;;  %v1668_v31 = vadd.f32 %v14375_v4, %v14353_v21 }
 0x1c6   : > { %v2335_v63 = vpop.f32.mrf.mxu1 }
 0x1c7   : > { %v2512_v47 = vadd.f32 %v2335_v63, %v1789_v14  ;;  %v14401_v7 = vpop.f32.mrf.mxu0  ;;  %v2646_v37 = vpack.c.bf16 %v14395_v16, %v14395_v16  ;;  %v2671_v59 = vsel %vm2663_vm4, %v2645_v48, 0  ;;  %v1666_v63 = vadd.f32 %v1665_v8, %v14351_v24 }
 0x1c8   : > { %v2337_v28 = vpop.f32.mrf.mxu1 }
 0x1c9   : > { %v2534_v1 = vadd.f32 %v14387_v25, %v2512_v47  ;;  %v2513_v17 = vadd.f32 %v2337_v28, %v1791_v18  ;;  %11415 = vmatprep.subr.msk.bf16.mxu1 %vm2663_vm4, %v2646_v37  ;;  %v1915_v13 = vpop.f32.mrf.mxu0  ;;  %v16581_v47 = vmov 0   ;;  %v1873_v37 = vadd.f32 %v1872_v57, %v14369_v29 }
 0x1ca   : > { %v2339_v40 = vpop.f32.mrf.mxu1  ;;  %2768 = vmatpush1.bf16.msra.mxu1 %v2671_v59 }
 0x1cb   : > { %v14411_v5 = vmax.f32 %v2534_v1, 0.0  ;;  %v2535_v10 = vadd.f32 %v14387_v25, %v2513_v17  ;;  %v1916_v61 = vpop.f32.mrf.mxu0 }
 0x1cc   : > { %v2340_v19 = vpop.f32.mrf.mxu1 }
 0x1cd   : > { %v14415_v14 = vmax.f32 %v2535_v10, 0.0  ;;  %11416 = vmatmul.mubr.msk.bf16.vlgmr.msra.gmra.mxu1 %vm2659_vm5, %v14409_v56  ;;  %v2649_v48 = vpack.c.bf16 %v14411_v5, %v14411_v5 }
 0x1ce   : > { %v2417_v18 = vpop.f32.mrf.mxu1  ;;  %2867 = vmatprep.mubr.bf16.mxu1 %v16581_v47 }
 0x1cf   : > { %v2212_v28 = vpop.f32.mrf.mxu0  ;;  %v2516_v1 = vadd.f32 %v2417_v18, %v1871_v30  ;;  %v2650_v3 = vpack.c.bf16 %v14415_v14, %v14415_v14  ;;  %v2683_v8 = vsel %vm2663_vm4, %v2649_v48, 0  ;;  %v1953_v18 = vadd.f32 %v14379_v27, %v14371_v41 }
 0x1d0   : > { %v2506_v17 = vadd.f32 %v2212_v28, %v1666_v63  ;;  %v2419_v13 = vpop.f32.mrf.mxu1  ;;  %v1748_v28 = vadd.f32 %v14377_v58, %v14359_v43  ;;  %v1955_v27 = vadd.f32 %v14383_v6, %v14373_v44  ;;  %v1750_v43 = vadd.f32 %v14381_v36, %v14363_v34 }
 0x1d1   : > { %v2538_v59 = vadd.f32 %v14387_v25, %v2516_v1  ;;  %v2214_v40 = vpop.f32.mrf.mxu0  ;;  %v2517_v10 = vadd.f32 %v2419_v13, %v1873_v37  ;;  %11419 = vmatprep.subr.msk.bf16.mxu1 %vm2663_vm4, %v2650_v3 }
 0x1d2   : > { %v2528_v24 = vadd.f32 %v14387_v25, %v2506_v17  ;;  %v2507_v29 = vadd.f32 %v2214_v40, %v1668_v31  ;;  %v2421_v57 = vpop.f32.mrf.mxu1  ;;  %2850 = vmatpush1.bf16.msra.mxu1 %v2683_v8 }
 0x1d3   : > { %v14432_v61 = vmax.f32 %v2538_v59, 0.0  ;;  %v2539_v19 = vadd.f32 %v14387_v25, %v2517_v10  ;;  %v2216_v4 = vpop.f32.mrf.mxu0 }
 0x1d4   : > { %v14435_v21 = vmax.f32 %v2528_v24, 0.0  ;;  %v2529_v30 = vadd.f32 %v14387_v25, %v2507_v29  ;;  %v2422_v63 = vpop.f32.mrf.mxu1 }
 0x1d5   : > { %v14440_v37 = vmax.f32 %v2539_v19, 0.0  ;;  %v2217_v48 = vpop.f32.mrf.mxu0  ;;  %11420 = vmatmul.mubr.msk.bf16.vlgmr.msra.gmra.mxu1 %vm2659_vm5, %v14409_v56  ;;  %v2653_v41 = vpack.c.bf16 %v14432_v61, %v14432_v61 }
 0x1d6   : > { %v14446_v1 = vmax.f32 %v2529_v30, 0.0  ;;  %2560 = vrot.lane.b32.xlu1 %v14435_v21, %s16512_s1  ;;  %v2499_v3 = vpop.f32.mrf.mxu1  ;;  %v2643_v31 = vpack.c.bf16 %v14435_v21, %v14435_v21  ;;  %2949 = vmatprep.mubr.bf16.mxu1 %v16581_v47 }
 0x1d7   : > { %v2294_v17 = vpop.f32.mrf.mxu0  ;;  %v2520_v13 = vadd.f32 %v2499_v3, %v1953_v18  ;;  %v2654_v58 = vpack.c.bf16 %v14440_v37, %v14440_v37  ;;  %v2695_v57 = vsel %vm2663_vm4, %v2653_v41, 0 }
 0x1d8   : > { %v2510_v59 = vadd.f32 %v2294_v17, %v1748_v28  ;;  %v2501_v40 = vpop.f32.mrf.mxu1  ;;  %v2644_v10 = vpack.c.bf16 %v14446_v1, %v14446_v1  ;;  %v2665_v36 = vsel %vm2663_vm4, %v2643_v31, 0  ;;  %v1830_v31 = vadd.f32 %v14385_v60, %v14355_v32 }
 0x1d9   : > { %v2542_v8 = vadd.f32 %v14387_v25, %v2520_v13  ;;  %v2296_v24 = vpop.f32.mrf.mxu0  ;;  %v2521_v29 = vadd.f32 %v2501_v40, %v1955_v27  ;;  %11423 = vmatprep.subr.msk.bf16.mxu1 %vm2663_vm4, %v2654_v58  ;;  %v1832_v32 = vadd.f32 %v14389_v35, %v14357_v26 }
 0x1da   : > { %v2532_v44 = vadd.f32 %v14387_v25, %v2510_v59  ;;  %v2511_v6 = vadd.f32 %v2296_v24, %v1750_v43  ;;  %2562 = vrot.lane.b32.xlu1 %v14446_v1, %s16512_s1  ;;  %11413 = vmatprep.subr.msk.bf16.mxu0 %vm2663_vm4, %v2644_v10  ;;  %v2503_v34 = vpop.f32.mrf.mxu1 }
 0x1db   : > { %v14471_v19 = vmax.f32 %v2542_v8, 0.0  ;;  %v2543_v4 = vadd.f32 %v14387_v25, %v2521_v29  ;;  %v2298_v30 = vpop.f32.mrf.mxu0  ;;  %2727 = vmatpush1.bf16.msra.mxu0 %v2665_v36  ;;  %2932 = vmatpush1.bf16.msra.mxu1 %v2695_v57 }
 0x1dc   : > { %v14474_v63 = vmax.f32 %v2532_v44, 0.0  ;;  %v2533_v18 = vadd.f32 %v14387_v25, %v2511_v6  ;;  %v2504_v48 = vpop.f32.mrf.mxu1  ;;  %v1912_v6 = vadd.f32 %v14397_v49, %v14361_v0 }
 0x1dd   : > { %v14477_v28 = vmax.f32 %v2543_v4, 0.0  ;;  %v2299_v3 = vpop.f32.mrf.mxu0  ;;  %v2657_v17 = vpack.c.bf16 %v14471_v19, %v14471_v19  ;;  %v1914_v4 = vadd.f32 %v14401_v7, %v14365_v54 }
 0x1de   : > { %v14481_v27 = vmax.f32 %v2533_v18, 0.0  ;;  %2564 = vrot.lane.b32.xlu1 %v14393_v20, %s16512_s1  ;;  %11414 = vmatmul.mubr.msk.bf16.vlgmr.msra.gmra.mxu0 %vm2659_vm5, %v14409_v56  ;;  %v2647_v41 = vpack.c.bf16 %v14474_v63, %v14474_v63 }
 0x1df   : > { %v2376_v13 = vpop.f32.mrf.mxu0  ;;  %2590 = vrot.lane.b32.xlu0 %v14477_v28, %s16512_s1  ;;  %v2658_v60 = vpack.c.bf16 %v14477_v28, %v14477_v28  ;;  %11424 = vmatmul.mubr.msk.bf16.vlgmr.msra.gmra.mxu1 %vm2659_vm5, %v14409_v56  ;;  %v2707_v35 = vsel %vm2663_vm4, %v2657_v17, 0 }
 0x1e0   : > { %v2514_v58 = vadd.f32 %v2376_v13, %v1830_v31  ;;  %v2648_v43 = vpack.c.bf16 %v14481_v27, %v14481_v27  ;;  %2826 = vmatprep.mubr.bf16.mxu0 %v16581_v47  ;;  %3031 = vmatprep.mubr.bf16.mxu1 %v16581_v47  ;;  %v2677_v26 = vsel %vm2663_vm4, %v2647_v41, 0 }
 0x1e1   : > { %v2378_v59 = vpop.f32.mrf.mxu0  ;;  %11427 = vmatprep.subr.msk.bf16.mxu1 %vm2663_vm4, %v2658_v60 }
 0x1e2   : > { %v2536_v40 = vadd.f32 %v14387_v25, %v2514_v58  ;;  %v2515_v10 = vadd.f32 %v2378_v59, %v1832_v32  ;;  %11417 = vmatprep.subr.msk.bf16.mxu0 %vm2663_vm4, %v2648_v43  ;;  %2568 = vrot.lane.b32.xlu1 %v14474_v63, %s16512_s1 }
 0x1e3   : > { %v2380_v8 = vpop.f32.mrf.mxu0  ;;  %2809 = vmatpush1.bf16.msra.mxu0 %v2677_v26  ;;  %3014 = vmatpush1.bf16.msra.mxu1 %v2707_v35 }
 0x1e4   : > { %v2552_v24 = vmax.f32 %v2536_v40, 0.0  ;;  %v2537_v29 = vadd.f32 %v14387_v25, %v2515_v10  ;;  %2566 = vrot.lane.b32.xlu0 %v14395_v16, %s16512_s1 }
 0x1e5   : > { %v2381_v44 = vpop.f32.mrf.mxu0 }
 0x1e6   : > { %v2553_v34 = vmax.f32 %v2537_v29, 0.0  ;;  %2572 = vrot.lane.b32.xlu1 %v14411_v5, %s16512_s1  ;;  %11418 = vmatmul.mubr.msk.bf16.vlgmr.msra.gmra.mxu0 %vm2659_vm5, %v14409_v56  ;;  %v2651_v36 = vpack.c.bf16 %v2552_v24, %v2552_v24 }
 0x1e7   : > { %v2458_v57 = vpop.f32.mrf.mxu0  ;;  %2908 = vmatprep.mubr.bf16.mxu0 %v16581_v47  ;;  %11428 = vmatmul.mubr.msk.bf16.vlgmr.msra.gmra.mxu1 %vm2659_vm5, %v14409_v56 }
 0x1e8   : > { %v2518_v30 = vadd.f32 %v2458_v57, %v1912_v6  ;;  %2570 = vrot.lane.b32.xlu0 %v14481_v27, %s16512_s1  ;;  %v2652_v49 = vpack.c.bf16 %v2553_v34, %v2553_v34  ;;  %3164 = vmatprep.mubr.bf16.mxu1 %v16581_v47  ;;  %v2689_v3 = vsel %vm2663_vm4, %v2651_v36, 0 }
 0x1e9   : > { %v2460_v0 = vpop.f32.mrf.mxu0 }
 0x1ea   : > { %v2540_v18 = vadd.f32 %v14387_v25, %v2518_v30  ;;  %v2519_v48 = vadd.f32 %v2460_v0, %v1914_v4  ;;  %11421 = vmatprep.subr.msk.bf16.mxu0 %vm2663_vm4, %v2652_v49  ;;  %2576 = vrot.lane.b32.xlu1 %v2552_v24, %s16512_s1 }
 0x1eb   : > { %2891 = vmatpush1.bf16.msra.mxu0 %v2689_v3  ;;  %v2462_v31 = vpop.f32.mrf.mxu0 }
 0x1ec   : > { %v2556_v54 = vmax.f32 %v2540_v18, 0.0  ;;  %v2541_v7 = vadd.f32 %v14387_v25, %v2519_v48  ;;  %2574 = vrot.lane.b32.xlu0 %v14415_v14, %s16512_s1 }
 0x1ed   : > { %v2463_v41 = vpop.f32.mrf.mxu0 }
 0x1ee   : > { %v2557_v17 = vmax.f32 %v2541_v7, 0.0  ;;  %2580 = vrot.lane.b32.xlu1 %v14432_v61, %s16512_s1  ;;  %11422 = vmatmul.mubr.msk.bf16.vlgmr.msra.gmra.mxu0 %vm2659_vm5, %v14409_v56  ;;  %v2655_v13 = vpack.c.bf16 %v2556_v54, %v2556_v54 }
 0x1ef   : > { %2990 = vmatprep.mubr.bf16.mxu0 %v16581_v47 }
 0x1f0   : > { %2578 = vrot.lane.b32.xlu0 %v2553_v34, %s16512_s1  ;;  %v2656_v60 = vpack.c.bf16 %v2557_v17, %v2557_v17  ;;  %v2701_v25 = vsel %vm2663_vm4, %v2655_v13, 0 }
 0x1f2   : > { %11425 = vmatprep.subr.msk.bf16.mxu0 %vm2663_vm4, %v2656_v60  ;;  %2584 = vrot.lane.b32.xlu1 %v2556_v54, %s16512_s1 }
 0x1f3   : > { %2973 = vmatpush1.bf16.msra.mxu0 %v2701_v25 }
 0x1f4   : > { %2582 = vrot.lane.b32.xlu0 %v14440_v37, %s16512_s1 }
 0x1f6   : > { %2588 = vrot.lane.b32.xlu1 %v14471_v19, %s16512_s1  ;;  %11426 = vmatmul.mubr.msk.bf16.vlgmr.msra.gmra.mxu0 %vm2659_vm5, %v14409_v56 }
 0x1f7   : > { %3123 = vmatprep.mubr.bf16.mxu0 %v16581_v47 }
 0x1f8   : > { %2586 = vrot.lane.b32.xlu0 %v2557_v17, %s16512_s1 }
 0x1fa   : > { %3421 = vrot.lane.b32.xlu1 %v14446_v1, %s16518_s11 }
 0x1fc   : > { %3419 = vrot.lane.b32.xlu0 %v14435_v21, %s16518_s11 }
 0x1fe   : > { %3425 = vrot.lane.b32.xlu1 %v14395_v16, %s16518_s11 }
 0x200   : > { %3423 = vrot.lane.b32.xlu0 %v14393_v20, %s16518_s11  ;;  %v3896_v20 = vld [vmem:[%s13613_s21] sm:$0xf] }
 0x202   : > { %3429 = vrot.lane.b32.xlu1 %v14481_v27, %s16518_s11 }
 0x204   : > { %3427 = vrot.lane.b32.xlu0 %v14474_v63, %s16518_s11 }
 0x206   : > { %3433 = vrot.lane.b32.xlu1 %v14415_v14, %s16518_s11 }
 0x208   : > { %3431 = vrot.lane.b32.xlu0 %v14411_v5, %s16518_s11 }
 0x20a   : > { %3437 = vrot.lane.b32.xlu1 %v2553_v34, %s16518_s11 }
 0x20c   : > { %3435 = vrot.lane.b32.xlu0 %v2552_v24, %s16518_s11 }
 0x20e   : > { %3441 = vrot.lane.b32.xlu1 %v14440_v37, %s16518_s11 }
 0x210   : > { %3439 = vrot.lane.b32.xlu0 %v14432_v61, %s16518_s11 }
 0x212   : > { %3445 = vrot.lane.b32.xlu1 %v2557_v17, %s16518_s11 }
 0x214   : > { %3443 = vrot.lane.b32.xlu0 %v2556_v54, %s16518_s11 }
 0x216   : > { %3449 = vrot.lane.b32.xlu1 %v14477_v28, %s16518_s11 }
 0x218   : > { %3447 = vrot.lane.b32.xlu0 %v14471_v19, %s16518_s11 }
 0x21c   : > { %3899 = vperm.xlu0 %12519, %v3896_v20  }
 0x248   : > { %v2561_v16 = vpop.permute.xlu1 %2560 }
 0x24c   : > { %v2563_v56 = vpop.permute.xlu1 %2562 }
 0x24d   : > { %v2606_v5 = vsel %vm1045_vm2, %v2561_v16, %v2563_v56 }
 0x24e   : > { %v2609_v14 = vmul.f32 %v2606_v5, %v14050_v45 }
 0x250   : > { %v2626_v61 = vpack.c.bf16 %v2609_v14, %v2609_v14  ;;  %v2565_v21 = vpop.permute.xlu1 %2564 }
 0x251   : > { %v2605_v37 = vsel %vm1045_vm2, %v2563_v56, %v2565_v21  ;;  %v14585_v1 = vpop.permute.xlu0 %2590 }
 0x252   : > { %11429 = vmatprep.subr.msk.bf16.mxu0 %vm2663_vm4, %v2626_v61  ;;  %v2607_v19 = vsel %vm1045_vm2, %v14585_v1, %v2561_v16  ;;  %v2610_v28 = vmul.f32 %v2605_v37, %v13993_v9 }
 0x253   : > { %v2608_v63 = vmul.f32 %v2607_v19, %v14064_v52  ;;  %v14601_v52 = vld [vmem:[%s16555_s17] sm:$0x3] }
 0x254   : > { %v2569_v27 = vpop.permute.xlu1 %2568  ;;  %v2627_v40 = vpack.c.bf16 %v2610_v28, %v2610_v28 }
 0x255   : > { %v2625_v45 = vpack.c.bf16 %v2608_v63, %v2608_v63 }
 0x256   : > { %v2567_v32 = vpop.permute.xlu0 %2566  ;;  %v3050_v34 = vsel %vm2663_vm4, %v2627_v40, 0 }
 0x257   : > { %v2603_v58 = vsel %vm1045_vm2, %v2567_v32, %v2569_v27  ;;  %v2604_v43 = vsel %vm1045_vm2, %v2565_v21, %v2567_v32  ;;  %v3044_v59 = vsel %vm2663_vm4, %v2625_v45, 0 }
 0x258   : > { %v2611_v10 = vmul.f32 %v2604_v43, %v13999_v15  ;;  %v2612_v26 = vmul.f32 %v2603_v58, %v14087_v11  ;;  %v2573_v35 = vpop.permute.xlu1 %2572  ;;  %3106 = vmatpush1.bf16.msra.mxu0 %v3044_v59 }
 0x25a   : > { %v2628_v9 = vpack.c.bf16 %v2611_v10, %v2611_v10  ;;  %v2571_v8 = vpop.permute.xlu0 %2570  ;;  %v2629_v44 = vpack.c.bf16 %v2612_v26, %v2612_v26 }
 0x25b   : > { %v2601_v24 = vsel %vm1045_vm2, %v2571_v8, %v2573_v35  ;;  %v2602_v29 = vsel %vm1045_vm2, %v2569_v27, %v2571_v8  ;;  %11430 = vmatmul.mubr.msk.bf16.vlgmr.msra.gmra.mxu0 %vm2659_vm5, %v14601_v52  ;;  %v16582_v8 = vld [vmem:[#allocation32_spill] sm:$0xff] }
 0x25c   : > { %v2613_v15 = vmul.f32 %v2602_v29, %v14091_v12  ;;  %v2614_v11 = vmul.f32 %v2601_v24, %v14017_v23  ;;  %v2577_v6 = vpop.permute.xlu1 %2576  ;;  %11431 = vmatprep.subr.msk.bf16.mxu1 %vm2663_vm4, %v2628_v9  ;;  %3205 = vmatprep.mubr.bf16.mxu0 %v16581_v47  ;;  %v3056_v18 = vsel %vm2663_vm4, %v2629_v44, 0 }
 0x25d   : > { %3147 = vmatpush1.bf16.msra.mxu1 %v3050_v34 }
 0x25e   : > { %v2630_v36 = vpack.c.bf16 %v2613_v15, %v2613_v15  ;;  %v2575_v57 = vpop.permute.xlu0 %2574  ;;  %v2631_v49 = vpack.c.bf16 %v2614_v11, %v2614_v11 }
 0x25f   : > { %v2599_v4 = vsel %vm1045_vm2, %v2575_v57, %v2577_v6  ;;  %v2600_v30 = vsel %vm1045_vm2, %v2573_v35, %v2575_v57  ;;  %v16584_v57 = vld [vmem:[#allocation38_spill] sm:$0xff] }
 0x260   : > { %v2615_v12 = vmul.f32 %v2600_v30, %v14013_v22  ;;  %v2616_v23 = vmul.f32 %v2599_v4, %v14131_v50  ;;  %11433 = vmatprep.subr.msk.bf16.mxu0 %vm2663_vm4, %v2630_v36  ;;  %v2581_v0 = vpop.permute.xlu1 %2580  ;;  %11432 = vmatmul.mubr.msk.bf16.vlgmr.msra.gmra.mxu1 %vm2659_vm5, %v14601_v52  ;;  %v3062_v17 = vsel %vm2663_vm4, %v2631_v49, 0  ;;  %v16583_v36 = vld [vmem:[#allocation31_spill] sm:$0xff] }
 0x261   : > { %3188 = vmatpush1.bf16.msra.mxu0 %v3056_v18  ;;  %3246 = vmatprep.mubr.bf16.mxu1 %v16581_v47 }
 0x262   : > { %v2632_v48 = vpack.c.bf16 %v2615_v12, %v2615_v12  ;;  %v2579_v3 = vpop.permute.xlu0 %2578  ;;  %v2633_v50 = vpack.c.bf16 %v2616_v23, %v2616_v23  ;;  %v14695_v12 = vld [vmem:[%s16555_s17 + $0x4] sm:$0x3] }
 0x263   : > { %v2597_v31 = vsel %vm1045_vm2, %v2579_v3, %v2581_v0  ;;  %v2598_v22 = vsel %vm1045_vm2, %v2577_v6, %v2579_v3 }
 0x264   : > { %v2617_v54 = vmul.f32 %v2598_v22, %v14135_v51  ;;  %v2618_v7 = vmul.f32 %v2597_v31, %v14044_v42  ;;  %11434 = vmatmul.mubr.msk.bf16.vlgmr.msra.gmra.mxu0 %vm2659_vm5, %v14601_v52  ;;  %v2585_v41 = vpop.permute.xlu1 %2584  ;;  %11435 = vmatprep.subr.msk.bf16.mxu1 %vm2663_vm4, %v2632_v48  ;;  %v3068_v5 = vsel %vm2663_vm4, %v2633_v50, 0  ;;  %v16585_v31 = vld [vmem:[#allocation39_spill] sm:$0xff]  ;;  %v16586_v50 = vld [vmem:[#allocation34_spill] sm:$0xff] }
 0x265   : > { %3229 = vmatpush1.bf16.msra.mxu1 %v3062_v17  ;;  %3287 = vmatprep.mubr.bf16.mxu0 %v16581_v47 }
 0x266   : > { %v2634_v13 = vpack.c.bf16 %v2617_v54, %v2617_v54  ;;  %v2583_v60 = vpop.permute.xlu0 %2582  ;;  %v2635_v42 = vpack.c.bf16 %v2618_v7, %v2618_v7 }
 0x267   : > { %v2595_v25 = vsel %vm1045_vm2, %v2583_v60, %v2585_v41  ;;  %v2596_v51 = vsel %vm1045_vm2, %v2581_v0, %v2583_v60 }
 0x268   : > { %v2619_v20 = vmul.f32 %v2596_v51, %v14030_v33  ;;  %v2620_v16 = vmul.f32 %v2595_v25, %v14180_v38  ;;  %11437 = vmatprep.subr.msk.bf16.mxu0 %vm2663_vm4, %v2634_v13  ;;  %v2589_v56 = vpop.permute.xlu1 %2588  ;;  %11436 = vmatmul.mubr.msk.bf16.vlgmr.msra.gmra.mxu1 %vm2659_vm5, %v14601_v52  ;;  %v16587_v51 = vld [vmem:[#allocation33_spill] sm:$0xff] }
 0x269   : > { %v2592_v14 = vsel %vm1045_vm2, %v2589_v56, %v14585_v1  ;;  %3270 = vmatpush1.bf16.msra.mxu0 %v3068_v5  ;;  %3328 = vmatprep.mubr.bf16.mxu1 %v16581_v47 }
 0x26a   : > { %v2636_v61 = vpack.c.bf16 %v2619_v20, %v2619_v20  ;;  %v2623_v33 = vmul.f32 %v2592_v14, %v14071_v55  ;;  %v2587_v21 = vpop.permute.xlu0 %2586  ;;  %v2637_v38 = vpack.c.bf16 %v2620_v16, %v2620_v16  ;;  %v3074_v55 = vsel %vm2663_vm4, %v2635_v42, 0  ;;  %v16588_v20 = vld [vmem:[#allocation42_spill] sm:$0xff] }
 0x26b   : > { %v2593_v37 = vsel %vm1045_vm2, %v2587_v21, %v2589_v56  ;;  %v2594_v19 = vsel %vm1045_vm2, %v2585_v41, %v2587_v21 }
 0x26c   : > { %v2640_v63 = vpack.c.bf16 %v2623_v33, %v2623_v33  ;;  %v2621_v28 = vmul.f32 %v2594_v19, %v14184_v39  ;;  %v2622_v27 = vmul.f32 %v2593_v37, %v14079_v62  ;;  %11438 = vmatmul.mubr.msk.bf16.vlgmr.msra.gmra.mxu0 %vm2659_vm5, %v14601_v52  ;;  %v3422_v1 = vpop.permute.xlu1 %3421  ;;  %11439 = vmatprep.subr.msk.bf16.mxu1 %vm2663_vm4, %v2636_v61  ;;  %v3080_v59 = vsel %vm2663_vm4, %v2637_v38, 0  ;;  %v16589_v37 = vld [vmem:[#allocation41_spill] sm:$0xff] }
 0x26d   : > { %3311 = vmatpush1.bf16.msra.mxu1 %v3074_v55  ;;  %3369 = vmatprep.mubr.bf16.mxu0 %v16581_v47 }
 0x26e   : > { %v2638_v45 = vpack.c.bf16 %v2621_v28, %v2621_v28  ;;  %v2639_v32 = vpack.c.bf16 %v2622_v27, %v2622_v27  ;;  %v14662_v58 = vpop.permute.xlu0 %3419  ;;  %11443 = vmatprep.subr.msk.bf16.mxu1 %vm2663_vm4, %v2640_v63  ;;  %v16590_v63 = vld [vmem:[#allocation36_spill] sm:$0xff] }
 0x26f   : > { %v3465_v62 = vsel %vm1991_vm3, %v14662_v58, %v3422_v1 }
 0x270   : > { %v3467_v39 = vmul.f32 %v3465_v62, %v14239_v46  ;;  %11441 = vmatprep.subr.msk.bf16.mxu0 %vm2663_vm4, %v2638_v45  ;;  %v3426_v43 = vpop.permute.xlu1 %3425  ;;  %11440 = vmatmul.mubr.msk.bf16.vlgmr.msra.gmra.mxu1 %vm2659_vm5, %v14601_v52  ;;  %v3086_v40 = vsel %vm2663_vm4, %v2639_v32, 0 }
 0x271   : > { %3352 = vmatpush1.bf16.msra.mxu0 %v3080_v59  ;;  %3393 = vmatpush1.bf16.msra.mxu1 %v3086_v40  ;;  %v16592_v40 = vld [vmem:[#allocation44_spill] sm:$0xff] }
 0x272   : > { %v3424_v10 = vpop.permute.xlu0 %3423  ;;  %3410 = vmatprep.mubr.bf16.mxu1 %v16581_v47  ;;  %v3485_v35 = vpack.c.bf16 %v3467_v39, %v3467_v39 }
 0x273   : > { %v3463_v26 = vsel %vm1991_vm3, %v3424_v10, %v3426_v43  ;;  %v3464_v46 = vsel %vm1991_vm3, %v3422_v1, %v3424_v10 }
 0x274   : > { %v3468_v9 = vmul.f32 %v3464_v46, %v14243_v53  ;;  %v3469_v24 = vmul.f32 %v3463_v26, %v16582_v8  ;;  %11442 = vmatmul.mubr.msk.bf16.vlgmr.msra.gmra.mxu0 %vm2659_vm5, %v14601_v52  ;;  %v3430_v29 = vpop.permute.xlu1 %3429  ;;  %v3505_v49 = vsel %vm2663_vm4, %v3485_v35, 0  ;;  %v16593_v8 = vld [vmem:[#allocation37_spill] sm:$0xff] }
 0x275   : > { %3584 = vmatprep.mubr.bf16.mxu0 %v16581_v47 }
 0x276   : > { %v3486_v44 = vpack.c.bf16 %v3468_v9, %v3468_v9  ;;  %v3428_v15 = vpop.permute.xlu0 %3427  ;;  %v3487_v34 = vpack.c.bf16 %v3469_v24, %v3469_v24 }
 0x277   : > { %v3461_v11 = vsel %vm1991_vm3, %v3428_v15, %v3430_v29  ;;  %v3462_v6 = vsel %vm1991_vm3, %v3426_v43, %v3428_v15  ;;  %v16591_v43 = vld [vmem:[#allocation35_spill] sm:$0xff] }
 0x278   : > { %v3470_v53 = vmul.f32 %v3462_v6, %v16583_v36  ;;  %v3471_v4 = vmul.f32 %v3461_v11, %v16584_v57  ;;  %11446 = vmatprep.subr.msk.bf16.mxu0 %vm2663_vm4, %v3486_v44  ;;  %v3434_v30 = vpop.permute.xlu1 %3433  ;;  %11444 = vmatmul.mubr.msk.bf16.vlgmr.msra.gmra.mxu1 %vm2659_vm5, %v14601_v52  ;;  %v3511_v7 = vsel %vm2663_vm4, %v3487_v34, 0  ;;  %v16594_v34 = vld [vmem:[#allocation43_spill] sm:$0xff] }
 0x279   : > { %3567 = vmatpush1.bf16.msra.mxu0 %v3505_v49  ;;  %3625 = vmatprep.mubr.bf16.mxu1 %v16581_v47 }
 0x27a   : > { %v3488_v23 = vpack.c.bf16 %v3470_v53, %v3470_v53  ;;  %v3432_v0 = vpop.permute.xlu0 %3431  ;;  %v3489_v3 = vpack.c.bf16 %v3471_v4, %v3471_v4  ;;  %v16595_v53 = vld [vmem:[#allocation40_spill] sm:$0xff] }
 0x27b   : > { %v3459_v18 = vsel %vm1991_vm3, %v3432_v0, %v3434_v30  ;;  %v3460_v48 = vsel %vm1991_vm3, %v3430_v29, %v3432_v0 }
 0x27c   : > { %v3472_v22 = vmul.f32 %v3460_v48, %v16585_v31  ;;  %v3473_v52 = vmul.f32 %v3459_v18, %v16586_v50  ;;  %11447 = vmatmul.mubr.msk.bf16.vlgmr.msra.gmra.mxu0 %vm2659_vm5, %v14695_v12  ;;  %v3438_v54 = vpop.permute.xlu1 %3437  ;;  %11448 = vmatprep.subr.msk.bf16.mxu1 %vm2663_vm4, %v3488_v23  ;;  %v3517_v5 = vsel %vm2663_vm4, %v3489_v3, 0 }
 0x27d   : > { %3608 = vmatpush1.bf16.msra.mxu1 %v3511_v7  ;;  %3666 = vmatprep.mubr.bf16.mxu0 %v16581_v47 }
 0x27e   : > { %v3490_v41 = vpack.c.bf16 %v3472_v22, %v3472_v22  ;;  %v3436_v17 = vpop.permute.xlu0 %3435  ;;  %v3491_v25 = vpack.c.bf16 %v3473_v52, %v3473_v52 }
 0x27f   : > { %v3457_v13 = vsel %vm1991_vm3, %v3436_v17, %v3438_v54  ;;  %v3458_v60 = vsel %vm1991_vm3, %v3434_v30, %v3436_v17 }
 0x280   : > { %v3474_v42 = vmul.f32 %v3458_v60, %v16587_v51  ;;  %v3475_v16 = vmul.f32 %v3457_v13, %v16588_v20  ;;  %11450 = vmatprep.subr.msk.bf16.mxu0 %vm2663_vm4, %v3490_v41  ;;  %v3442_v56 = vpop.permute.xlu1 %3441  ;;  %11449 = vmatmul.mubr.msk.bf16.vlgmr.msra.gmra.mxu1 %vm2659_vm5, %v14695_v12  ;;  %v3523_v1 = vsel %vm2663_vm4, %v3491_v25, 0 }
 0x281   : > { %3649 = vmatpush1.bf16.msra.mxu0 %v3517_v5  ;;  %3707 = vmatprep.mubr.bf16.mxu1 %v16581_v47 }
 0x282   : > { %v3492_v14 = vpack.c.bf16 %v3474_v42, %v3474_v42  ;;  %v3440_v61 = vpop.permute.xlu0 %3439  ;;  %v3493_v38 = vpack.c.bf16 %v3475_v16, %v3475_v16 }
 0x283   : > { %v3455_v33 = vsel %vm1991_vm3, %v3440_v61, %v3442_v56  ;;  %v3456_v21 = vsel %vm1991_vm3, %v3438_v54, %v3440_v61 }
 0x284   : > { %v3476_v19 = vmul.f32 %v3456_v21, %v16589_v37  ;;  %v3477_v28 = vmul.f32 %v3455_v33, %v16590_v63  ;;  %11451 = vmatmul.mubr.msk.bf16.vlgmr.msra.gmra.mxu0 %vm2659_vm5, %v14695_v12  ;;  %v3446_v27 = vpop.permute.xlu1 %3445  ;;  %11452 = vmatprep.subr.msk.bf16.mxu1 %vm2663_vm4, %v3492_v14  ;;  %v3529_v46 = vsel %vm2663_vm4, %v3493_v38, 0 }
 0x285   : > { %3690 = vmatpush1.bf16.msra.mxu1 %v3523_v1  ;;  %3748 = vmatprep.mubr.bf16.mxu0 %v16581_v47  ;;  %v12671_v1 = vld [vmem:[%s13623_s29 + $0xe0] ss:$16 sps:$4 sm:$0xff]  }
 0x286   : > { %v3494_v55 = vpack.c.bf16 %v3476_v19, %v3476_v19  ;;  %v3444_v45 = vpop.permute.xlu0 %3443  ;;  %v3495_v39 = vpack.c.bf16 %v3477_v28, %v3477_v28 }
 0x287   : > { %v3453_v32 = vsel %vm1991_vm3, %v3444_v45, %v3446_v27  ;;  %v3454_v62 = vsel %vm1991_vm3, %v3442_v56, %v3444_v45  ;;  %v12674_v45 = vld [vmem:[%s13623_s29 + $0x2e0] ss:$16 sps:$4 sm:$0xff]  }
 0x288   : > { %v3478_v59 = vmul.f32 %v3454_v62, %v16591_v43  ;;  %v3479_v10 = vmul.f32 %v3453_v32, %v16592_v40  ;;  %11454 = vmatprep.subr.msk.bf16.mxu0 %vm2663_vm4, %v3494_v55  ;;  %v3450_v26 = vpop.permute.xlu1 %3449  ;;  %11453 = vmatmul.mubr.msk.bf16.vlgmr.msra.gmra.mxu1 %vm2659_vm5, %v14695_v12  ;;  %v12673_v55 = vld [vmem:[%s13623_s29 + $0xe4] ss:$16 sps:$4 sm:$0xff]   ;;  %v12677_v43 = vld [vmem:[%s13623_s29 + $0xc0] ss:$16 sps:$4 sm:$0xff]  }
 0x289   : > { %v3466_v35 = vsel %vm1991_vm3, %v3450_v26, %v14662_v58  ;;  %3731 = vmatpush1.bf16.msra.mxu0 %v3529_v46  ;;  %3789 = vmatprep.mubr.bf16.mxu1 %v16581_v47  ;;  %v3535_v58 = vsel %vm2663_vm4, %v3495_v39, 0  ;;  %v12676_v32 = vld [vmem:[%s13623_s29 + $0x2e4] ss:$16 sps:$4 sm:$0xff]   ;;  %v12686_v46 = vld [vmem:[%s13623_s29 + $0x2a0] ss:$16 sps:$4 sm:$0xff]  }
 0x28a   : > { %v3496_v9 = vpack.c.bf16 %v3478_v59, %v3478_v59  ;;  %v3482_v24 = vmul.f32 %v3466_v35, %v16593_v8  ;;  %v3448_v29 = vpop.permute.xlu0 %3447  ;;  %v3497_v44 = vpack.c.bf16 %v3479_v10, %v3479_v10  ;;  %v12679_v62 = vld [vmem:[%s13623_s29 + $0xc4] ss:$16 sps:$4 sm:$0xff]   ;;  %v12680_v59 = vld [vmem:[%s13623_s29 + $0x2c0] ss:$16 sps:$4 sm:$0xff]  }
 0x28b   : > { %v3451_v15 = vsel %vm1991_vm3, %v3448_v29, %v3450_v26  ;;  %v3452_v11 = vsel %vm1991_vm3, %v3446_v27, %v3448_v29  ;;  %v12682_v39 = vld [vmem:[%s13623_s29 + $0x2c4] ss:$16 sps:$4 sm:$0xff]   ;;  %v12683_v26 = vld [vmem:[%s13623_s29 + $0xa0] ss:$16 sps:$4 sm:$0xff]  }
 0x28c   : > { %v3500_v6 = vpack.c.bf16 %v3482_v24, %v3482_v24  ;;  %v3480_v36 = vmul.f32 %v3452_v11, %v16594_v34  ;;  %v3481_v57 = vmul.f32 %v3451_v15, %v16595_v53  ;;  %11455 = vmatmul.mubr.msk.bf16.vlgmr.msra.gmra.mxu0 %vm2659_vm5, %v14695_v12  ;;  %11456 = vmatprep.subr.msk.bf16.mxu1 %vm2663_vm4, %v3496_v9  ;;  %v3541_v0 = vsel %vm2663_vm4, %v3497_v44, 0  ;;  %v12685_v40 = vld [vmem:[%s13623_s29 + $0xa4] ss:$16 sps:$4 sm:$0xff]   ;;  %v12689_v8 = vld [vmem:[%s13623_s29 + $0x80] ss:$16 sps:$4 sm:$0xff]  }
 0x28d   : > { %3772 = vmatpush1.bf16.msra.mxu1 %v3535_v58  ;;  %3830 = vmatprep.mubr.bf16.mxu0 %v16581_v47  ;;  %v14757_v4 = vpop.f32.mrf.mxu1  ;;  %v12688_v10 = vld [vmem:[%s13623_s29 + $0x2a4] ss:$16 sps:$4 sm:$0xff]   ;;  %v12692_v24 = vld [vmem:[%s13623_s29 + $0x280] ss:$16 sps:$4 sm:$0xff]  }
 0x28e   : > { %v3498_v30 = vpack.c.bf16 %v3480_v36, %v3480_v36  ;;  %v3499_v49 = vpack.c.bf16 %v3481_v57, %v3481_v57  ;;  %11460 = vmatprep.subr.msk.bf16.mxu1 %vm2663_vm4, %v3500_v6  ;;  %v12691_v35 = vld [vmem:[%s13623_s29 + $0x84] ss:$16 sps:$4 sm:$0xff]   ;;  %v12695_v15 = vld [vmem:[%s13623_s29 + $0x60] ss:$16 sps:$4 sm:$0xff]  }
 0x28f   : > { %v14760_v23 = vpop.f32.mrf.mxu1  ;;  %v12694_v9 = vld [vmem:[%s13623_s29 + $0x284] ss:$16 sps:$4 sm:$0xff]   ;;  %v12698_v11 = vld [vmem:[%s13623_s29 + $0x260] ss:$16 sps:$4 sm:$0xff]  }
 0x290   : > { %11457 = vmatmul.mubr.msk.bf16.vlgmr.msra.gmra.mxu1 %vm2659_vm5, %v14695_v12  ;;  %11458 = vmatprep.subr.msk.bf16.mxu0 %vm2663_vm4, %v3498_v30  ;;  %v3547_v18 = vsel %vm2663_vm4, %v3499_v49, 0  ;;  %v12697_v29 = vld [vmem:[%s13623_s29 + $0x64] ss:$16 sps:$4 sm:$0xff]   ;;  %v12701_v36 = vld [vmem:[%s13623_s29 + $0x40] ss:$16 sps:$4 sm:$0xff]  }
 0x291   : > { %3813 = vmatpush1.bf16.msra.mxu0 %v3541_v0  ;;  %3854 = vmatpush1.bf16.msra.mxu1 %v3547_v18  ;;  %v2791_v48 = vpop.f32.mrf.mxu1  ;;  %v12700_v44 = vld [vmem:[%s13623_s29 + $0x264] ss:$16 sps:$4 sm:$0xff]   ;;  %v12704_v53 = vld [vmem:[%s13623_s29 + $0x240] ss:$16 sps:$4 sm:$0xff]  }
 0x292   : > { %3871 = vmatprep.mubr.bf16.mxu1 %v16581_v47  ;;  %7216 = vmatprep.subr.bf16.mxu0 %v12673_v55  ;;  %v12703_v6 = vld [vmem:[%s13623_s29 + $0x44] ss:$16 sps:$4 sm:$0xff]   ;;  %v12707_v30 = vld [vmem:[%s13623_s29 + $0x20] ss:$16 sps:$4 sm:$0xff]  }
 0x293   : > { %v2792_v3 = vpop.f32.mrf.mxu1  ;;  %7257 = vmatprep.subr.bf16.mxu1 %v12676_v32  ;;  %v12706_v34 = vld [vmem:[%s13623_s29 + $0x244] ss:$16 sps:$4 sm:$0xff]   ;;  %v12710_v49 = vld [vmem:[%s13623_s29 + $0x220] ss:$16 sps:$4 sm:$0xff]  }
 0x294   : > { %11459 = vmatmul.mubr.msk.bf16.vlgmr.msra.gmra.mxu0 %vm2659_vm5, %v14695_v12  ;;  %v12709_v57 = vld [vmem:[%s13623_s29 + $0x24] ss:$16 sps:$4 sm:$0xff]   ;;  %v12713_v3 = vld [vmem:[%s13623_s29] ss:$16 sps:$4 sm:$0xff]  }
 0x295   : > { %v14770_v31 = vpop.f32.mrf.mxu1  ;;  %7217 = vmatpush1.bf16.msra.mxu0 %v12671_v1  ;;  %v12712_v58 = vld [vmem:[%s13623_s29 + $0x224] ss:$16 sps:$4 sm:$0xff]   ;;  %v12728_v55 = vld [vmem:[%s13623_s29 + $0x3c0] ss:$16 sps:$4 sm:$0xff]  }
 0x296   : > { %7218 = vmatprep.subr.bf16.mxu0 %v12679_v62  ;;  %v12715_v0 = vld [vmem:[%s13623_s29 + $0x4] ss:$16 sps:$4 sm:$0xff]  }
 0x297   : > { %v14772_v22 = vpop.f32.mrf.mxu1  ;;  %v12718_v18 = vld [vmem:[%s13623_s29 + $0x204] ss:$16 sps:$4 sm:$0xff]  }
 0x298   : > { %11461 = vmatmul.mubr.msk.bf16.vlgmr.msra.gmra.mxu1 %vm2659_vm5, %v14695_v12  ;;  %v12736_v32 = vld [vmem:[%s13623_s29 + $0x3a4] ss:$16 sps:$4 sm:$0xff]  }
 0x299   : > { %v2873_v50 = vpop.f32.mrf.mxu1  ;;  %7258 = vmatpush1.bf16.msra.mxu1 %v12674_v45  ;;  %7219 = vmatpush1.bf16.msra.mxu0 %v12677_v43  ;;  %v12733_v45 = vld [vmem:[%s13623_s29 + $0x1a4] ss:$16 sps:$4 sm:$0xff]   ;;  %v12731_v43 = vld [vmem:[%s13623_s29 + $0x1a0] ss:$16 sps:$4 sm:$0xff]  }
 0x29a   : > { %7259 = vmatprep.subr.bf16.mxu1 %v12682_v39  ;;  %7220 = vmatprep.subr.bf16.mxu0 %v12685_v40  ;;  %v12716_v50 = vld [vmem:[%s13623_s29 + $0x200] ss:$16 sps:$4 sm:$0xff]  }
 0x29b   : > { %v2874_v52 = vpop.f32.mrf.mxu1 }
 0x29c   : > { %v12721_v52 = vld [vmem:[%s13623_s29 + $0x1e4] ss:$16 sps:$4 sm:$0xff]  }
 0x29d   : > { %7260 = vmatpush1.bf16.msra.mxu1 %v12680_v59  ;;  %7221 = vmatpush1.bf16.msra.mxu0 %v12683_v26  ;;  %v12739_v26 = vld [vmem:[%s13623_s29 + $0x184] ss:$16 sps:$4 sm:$0xff]  }
 0x29e   : > { %v14776_v54 = vpop.f32.mrf.mxu0  ;;  %7261 = vmatprep.subr.bf16.mxu1 %v12688_v10  ;;  %7222 = vmatprep.subr.bf16.mxu0 %v12691_v35  ;;  %v12734_v10 = vld [vmem:[%s13623_s29 + $0x3a0] ss:$16 sps:$4 sm:$0xff]  }
 0x29f   : > { %v14778_v7 = vpop.f32.mrf.mxu1 }
 0x2a0   : > { %v14780_v41 = vpop.f32.mrf.mxu0 }
 0x2a1   : > { %v14782_v17 = vpop.f32.mrf.mxu1  ;;  %7262 = vmatpush1.bf16.msra.mxu1 %v12686_v46  ;;  %7223 = vmatpush1.bf16.msra.mxu0 %v12689_v8 }
 0x2a2   : > { %v2750_v13 = vpop.f32.mrf.mxu0  ;;  %7263 = vmatprep.subr.bf16.mxu1 %v12694_v9  ;;  %7224 = vmatprep.subr.bf16.mxu0 %v12697_v29  ;;  %v12737_v9 = vld [vmem:[%s13623_s29 + $0x180] ss:$16 sps:$4 sm:$0xff]  }
 0x2a3   : > { %v2955_v60 = vpop.f32.mrf.mxu1 }
 0x2a4   : > { %v2751_v25 = vpop.f32.mrf.mxu0  ;;  %v12724_v60 = vld [vmem:[%s13623_s29 + $0x3e4] ss:$16 sps:$4 sm:$0xff]  }
 0x2a5   : > { %v2956_v51 = vpop.f32.mrf.mxu1  ;;  %7264 = vmatpush1.bf16.msra.mxu1 %v12692_v24  ;;  %7225 = vmatpush1.bf16.msra.mxu0 %v12695_v15 }
 0x2a6   : > { %v14784_v42 = vpop.f32.mrf.mxu0  ;;  %7265 = vmatprep.subr.bf16.mxu1 %v12700_v44  ;;  %7226 = vmatprep.subr.bf16.mxu0 %v12703_v6  ;;  %v12719_v51 = vld [vmem:[%s13623_s29 + $0x1e0] ss:$16 sps:$4 sm:$0xff]  }
 0x2a7   : > { %v14786_v20 = vpop.f32.mrf.mxu1 }
 0x2a8   : > { %v14788_v12 = vpop.f32.mrf.mxu0 }
 0x2a9   : > { %v14790_v16 = vpop.f32.mrf.mxu1  ;;  %7266 = vmatpush1.bf16.msra.mxu1 %v12698_v11  ;;  %7227 = vmatpush1.bf16.msra.mxu0 %v12701_v36 }
 0x2aa   : > { %v2832_v56 = vpop.f32.mrf.mxu0  ;;  %7267 = vmatprep.subr.bf16.mxu1 %v12706_v34  ;;  %7228 = vmatprep.subr.bf16.mxu0 %v12709_v57 }
 0x2ab   : > { %v3037_v5 = vpop.f32.mrf.mxu1 }
 0x2ac   : > { %v2833_v14 = vpop.f32.mrf.mxu0  ;;  %v12722_v5 = vld [vmem:[%s13623_s29 + $0x3e0] ss:$16 sps:$4 sm:$0xff]  }
 0x2ad   : > { %v3038_v61 = vpop.f32.mrf.mxu1  ;;  %7268 = vmatpush1.bf16.msra.mxu1 %v12704_v53  ;;  %7229 = vmatpush1.bf16.msra.mxu0 %v12707_v30  ;;  %v12727_v14 = vld [vmem:[%s13623_s29 + $0x1c4] ss:$16 sps:$4 sm:$0xff]  }
 0x2ae   : > { %v14792_v33 = vpop.f32.mrf.mxu0  ;;  %7269 = vmatprep.subr.bf16.mxu1 %v12712_v58  ;;  %7230 = vmatprep.subr.bf16.mxu0 %v12715_v0 }
 0x2b0   : > { %v14794_v21 = vpop.f32.mrf.mxu0 }
 0x2b1   : > { %7270 = vmatpush1.bf16.msra.mxu1 %v12710_v49  ;;  %7231 = vmatpush1.bf16.msra.mxu0 %v12713_v3 }
 0x2b2   : > { %v2914_v38 = vpop.f32.mrf.mxu0  ;;  %7271 = vmatprep.subr.bf16.mxu1 %v12718_v18  ;;  %7232 = vmatprep.subr.bf16.mxu0 %v12721_v52 }
 0x2b3   : > { %v12730_v38 = vld [vmem:[%s13623_s29 + $0x3c4] ss:$16 sps:$4 sm:$0xff]  }
 0x2b4   : > { %v2915_v37 = vpop.f32.mrf.mxu0 }
 0x2b5   : > { %7272 = vmatpush1.bf16.msra.mxu1 %v12716_v50  ;;  %7233 = vmatpush2.bf16.msra.mxu0 %v12719_v51  ;;  %v12742_v51 = vld [vmem:[%s13623_s29 + $0x384] ss:$16 sps:$4 sm:$0xff]  }
 0x2b6   : > { %v14796_v19 = vpop.f32.mrf.mxu0  ;;  %7273 = vmatprep.subr.bf16.mxu1 %v12724_v60  ;;  %7234 = vmatprep.subr.bf16.mxu0 %v12727_v14 }
 0x2b8   : > { %v14798_v63 = vpop.f32.mrf.mxu0 }
 0x2b9   : > { %7274 = vmatpush2.bf16.msra.mxu1 %v12722_v5 }
 0x2ba   : > { %v2996_v28 = vpop.f32.mrf.mxu0  ;;  %7275 = vmatprep.subr.bf16.mxu1 %v12730_v38  ;;  %v12743_v38 = vld [vmem:[%s13623_s29 + $0x160] ss:$16 sps:$4 sm:$0xff]  }
 0x2bb   : > { %v12725_v28 = vld [vmem:[%s13623_s29 + $0x1c0] ss:$16 sps:$4 sm:$0xff]  }
 0x2bc   : > { %v2997_v27 = vpop.f32.mrf.mxu0  ;;  %7235 = vmatpush2.bf16.msra.mxu0 %v12725_v28  ;;  %v12745_v28 = vld [vmem:[%s13623_s29 + $0x164] ss:$16 sps:$4 sm:$0xff]  }
 0x2bd   : > { %7236 = vmatprep.subr.bf16.mxu0 %v12733_v45  ;;  %7276 = vmatpush2.bf16.msra.mxu1 %v12728_v55  ;;  %v14881_v45 = vpop.permute.xlu0 %3899 }
 0x2be   : > { %7277 = vmatprep.subr.bf16.mxu1 %v12736_v32 }
 0x2c0   : > { %7237 = vmatpush2.bf16.msra.mxu0 %v12731_v43 }
 0x2c1   : > { %7238 = vmatprep.subr.bf16.mxu0 %v12739_v26  ;;  %7278 = vmatpush2.bf16.msra.mxu1 %v12734_v10  ;;  %v12746_v26 = vld [vmem:[%s13623_s29 + $0x360] ss:$16 sps:$4 sm:$0xff]  }
 0x2c2   : > { %7279 = vmatprep.subr.bf16.mxu1 %v12742_v51 }
 0x2c4   : > { %7239 = vmatpush2.bf16.msra.mxu0 %v12737_v9 }
 0x2c5   : > { %7240 = vmatprep.subr.bf16.mxu0 %v12745_v28  ;;  %v12763_v28 = vld [vmem:[%s13623_s29 + $0x104] ss:$16 sps:$4 sm:$0xff]  }
 0x2c8   : > { %7241 = vmatpush2.bf16.msra.mxu0 %v12743_v38  ;;  %v12758_v38 = vld [vmem:[%s13623_s29 + $0x320] ss:$16 sps:$4 sm:$0xff]  }
 0x31b   : > { %v14830_v48 = vpop.f32.mrf.mxu0 }
 0x31c   : > { %v3126_v52 = vadd.f32 %v14830_v48, %v14776_v54 }
 0x31d   : > { %v14835_v13 = vpop.f32.mrf.mxu0 }
 0x31e   : > { %v3128_v54 = vadd.f32 %v14835_v13, %v14780_v41  ;;  %v12749_v13 = vld [vmem:[%s13623_s29 + $0x140] ss:$16 sps:$4 sm:$0xff]  }
 0x31f   : > { %v3129_v25 = vpop.f32.mrf.mxu0 }
 0x320   : > { %v3166_v56 = vpop.f32.mrf.mxu1 }
 0x321   : > { %v3130_v61 = vpop.f32.mrf.mxu0  ;;  %v3167_v5 = vadd.f32 %v3166_v56, %v14757_v4 }
 0x322   : > { %v3168_v37 = vpop.f32.mrf.mxu1  ;;  %v12740_v61 = vld [vmem:[%s13623_s29 + $0x380] ss:$16 sps:$4 sm:$0xff]  }
 0x323   : > { %v3169_v48 = vadd.f32 %v3168_v37, %v14760_v23  ;;  %7280 = vmatpush2.bf16.msra.mxu1 %v12740_v61 }
 0x324   : > { %v3170_v27 = vpop.f32.mrf.mxu1  ;;  %v14843_v1 = vpop.f32.mrf.mxu0 }
 0x326   : > { %v3171_v62 = vpop.f32.mrf.mxu1  ;;  %v14848_v39 = vpop.f32.mrf.mxu0 }
 0x327   : > { %v12748_v62 = vld [vmem:[%s13623_s29 + $0x364] ss:$16 sps:$4 sm:$0xff]  }
 0x328   : > { %v3211_v59 = vpop.f32.mrf.mxu0  ;;  %v14851_v40 = vpop.f32.mrf.mxu1  ;;  %7281 = vmatprep.subr.bf16.mxu1 %v12748_v62 }
 0x329   : > { %7282 = vmatpush2.bf16.msra.mxu1 %v12746_v26  ;;  %v12764_v26 = vld [vmem:[%s13623_s29 + $0x300] ss:$16 sps:$4 sm:$0xff]  }
 0x32a   : > { %v3212_v46 = vpop.f32.mrf.mxu0  ;;  %v14855_v35 = vpop.f32.mrf.mxu1 }
 0x32b   : > { %v12751_v46 = vld [vmem:[%s13623_s29 + $0x144] ss:$16 sps:$4 sm:$0xff]  }
 0x32c   : > { %v3252_v8 = vpop.f32.mrf.mxu1  ;;  %v14858_v24 = vpop.f32.mrf.mxu0  ;;  %7242 = vmatprep.subr.bf16.mxu0 %v12751_v46  ;;  %v12769_v46 = vld [vmem:[%s13623_s29 + $0x4e4] ss:$16 sps:$4 sm:$0xff]  }
 0x32d   : > { %7243 = vmatpush2.bf16.msra.mxu0 %v12749_v13 }
 0x32e   : > { %v3253_v29 = vpop.f32.mrf.mxu1  ;;  %v14860_v44 = vpop.f32.mrf.mxu0 }
 0x330   : > { %v3293_v15 = vpop.f32.mrf.mxu0  ;;  %v14862_v11 = vpop.f32.mrf.mxu1 }
 0x331   : > { %v12754_v15 = vld [vmem:[%s13623_s29 + $0x344] ss:$16 sps:$4 sm:$0xff]  }
 0x332   : > { %v3294_v6 = vpop.f32.mrf.mxu0  ;;  %v14864_v34 = vpop.f32.mrf.mxu1  ;;  %7283 = vmatprep.subr.bf16.mxu1 %v12754_v15 }
 0x334   : > { %v3334_v36 = vpop.f32.mrf.mxu1  ;;  %v14866_v53 = vpop.f32.mrf.mxu0 }
 0x336   : > { %v3335_v57 = vpop.f32.mrf.mxu1  ;;  %v14868_v58 = vpop.f32.mrf.mxu0 }
 0x338   : > { %v3375_v30 = vpop.f32.mrf.mxu0  ;;  %v14870_v49 = vpop.f32.mrf.mxu1 }
 0x339   : > { %v12752_v30 = vld [vmem:[%s13623_s29 + $0x340] ss:$16 sps:$4 sm:$0xff]  }
 0x33a   : > { %v3376_v0 = vpop.f32.mrf.mxu0  ;;  %v14872_v18 = vpop.f32.mrf.mxu1  ;;  %7284 = vmatpush2.bf16.msra.mxu1 %v12752_v30  ;;  %v12772_v30 = vld [vmem:[%s13623_s29 + $0x6e4] ss:$16 sps:$4 sm:$0xff]  }
 0x33b   : > { %v12755_v0 = vld [vmem:[%s13623_s29 + $0x120] ss:$16 sps:$4 sm:$0xff]  }
 0x33c   : > { %v3416_v3 = vpop.f32.mrf.mxu1  ;;  %v3586_v50 = vpop.f32.mrf.mxu0 }
 0x33d   : > { %v3880_v14 = vadd.f32 %v3586_v50, %v3126_v52  ;;  %v3208_v3 = vadd.f32 %v14843_v1, %v14784_v42  ;;  %v12760_v42 = vld [vmem:[%s13623_s29 + $0x324] ss:$16 sps:$4 sm:$0xff]  }
 0x33e   : > { %v3417_v60 = vpop.f32.mrf.mxu1  ;;  %v3588_v25 = vpop.f32.mrf.mxu0  ;;  %7285 = vmatprep.subr.bf16.mxu1 %v12760_v42 }
 0x33f   : > { %v14888_v43 = vadd.f32 %v14881_v45, %v3880_v14  ;;  %v3881_v59 = vadd.f32 %v3588_v25, %v3128_v54  ;;  %v12757_v60 = vld [vmem:[%s13623_s29 + $0x124] ss:$16 sps:$4 sm:$0xff]   ;;  %7286 = vmatpush2.bf16.msra.mxu1 %v12758_v38 }
 0x340   : > { %v3590_v27 = vpop.f32.mrf.mxu0  ;;  %v3627_v55 = vpop.f32.mrf.mxu1  ;;  %7244 = vmatprep.subr.bf16.mxu0 %v12757_v60 }
 0x341   : > { %v3882_v32 = vadd.f32 %v3627_v55, %v3167_v5  ;;  %v3918_v6 = vmax.f32 %v14888_v43, 0.0  ;;  %v14902_v36 = vadd.f32 %v14881_v45, %v3881_v59  ;;  %7245 = vmatpush2.bf16.msra.mxu0 %v12755_v0  ;;  %v3249_v27 = vadd.f32 %v14851_v40, %v14770_v31  ;;  %v12766_v59 = vld [vmem:[%s13623_s29 + $0x304] ss:$16 sps:$4 sm:$0xff]  }
 0x342   : > { %v3591_v4 = vpop.f32.mrf.mxu0  ;;  %v3629_v56 = vpop.f32.mrf.mxu1  ;;  %7246 = vmatprep.subr.bf16.mxu0 %v12763_v28  ;;  %7287 = vmatprep.subr.bf16.mxu1 %v12766_v59  ;;  %v3413_v59 = vadd.f32 %v14870_v49, %v14786_v20 }
 0x343   : > { %v3883_v10 = vadd.f32 %v3629_v56, %v3169_v48  ;;  %v14894_v37 = vadd.f32 %v14881_v45, %v3882_v32  ;;  %v3919_v1 = vmax.f32 %v14902_v36, 0.0  ;;  %v12761_v48 = vld [vmem:[%s13623_s29 + $0x100] ss:$16 sps:$4 sm:$0xff]   ;;  %v3210_v4 = vadd.f32 %v14848_v39, %v14788_v12  ;;  %7288 = vmatpush2.bf16.msra.mxu1 %v12764_v26 }
 0x344   : > { %v3631_v41 = vpop.f32.mrf.mxu1  ;;  %v3668_v23 = vpop.f32.mrf.mxu0  ;;  %v3251_v39 = vadd.f32 %v14855_v35, %v14772_v22  ;;  %7339 = vmatprep.subr.bf16.mxu1 %v12772_v30 }
 0x345   : > { %v14897_v9 = vadd.f32 %v14881_v45, %v3883_v10  ;;  %v3920_v25 = vmax.f32 %v14894_v37, 0.0  ;;  %v3884_v5 = vadd.f32 %v3668_v23, %v3208_v3  ;;  %v3290_v10 = vadd.f32 %v14858_v24, %v14792_v33  ;;  %7247 = vmatpush2.bf16.msra.mxu0 %v12761_v48 }
 0x346   : > { %v3632_v8 = vpop.f32.mrf.mxu1  ;;  %v3670_v29 = vpop.f32.mrf.mxu0  ;;  %7298 = vmatprep.subr.bf16.mxu0 %v12769_v46  ;;  %v3374_v46 = vadd.f32 %v14868_v58, %v14798_v63  ;;  %v3415_v58 = vadd.f32 %v14872_v18, %v14790_v16 }
 0x347   : > { %v3921_v57 = vmax.f32 %v14897_v9, 0.0  ;;  %v12530_v32 = vpack.i.bf16 %v3920_v25, %v3919_v1  ;;  %v3906_v31 = vadd.f32 %v14881_v45, %v3884_v5  ;;  %v3885_v41 = vadd.f32 %v3670_v29, %v3210_v4 }
 0x348   : > { %v3672_v50 = vpop.f32.mrf.mxu0  ;;  %v3709_v52 = vpop.f32.mrf.mxu1 }
 0x349   : > { %v12525_v51 = vpack.i.bf16 %v3921_v57, %v3918_v6  ;;  %v3886_v40 = vadd.f32 %v3709_v52, %v3249_v27  ;;  %v14940_v8 = vmax.f32 %v3906_v31, 0.0  ;;  %v14948_v0 = vadd.f32 %v14881_v45, %v3885_v41 }
 0x34a   : > { %v3673_v14 = vpop.f32.mrf.mxu0  ;;  %v3711_v61 = vpop.f32.mrf.mxu1  ;;  %v3292_v27 = vadd.f32 %v14860_v44, %v14794_v21  ;;  %v3333_v44 = vadd.f32 %v14864_v34, %v14782_v17 }
 0x34b   : > { %12526 = vrot.lane.b32.xlu1 %v12525_v51, %s16516_s23  ;;  %12521 = vrot.lane.b32.xlu0 %v12525_v51, %s16518_s11  ;;  %v14943_v33 = vadd.f32 %v14881_v45, %v3886_v40  ;;  %v3887_v29 = vadd.f32 %v3711_v61, %v3251_v39  ;;  %v3331_v14 = vadd.f32 %v14862_v11, %v14778_v7  ;;  %v3923_v61 = vmax.f32 %v14948_v0, 0.0  ;;  %v12779_v0 = vld [vmem:[%s13623_s29 + $0x4a0] ss:$16 sps:$4 sm:$0xff]  }
 0x34c   : > { %v3713_v55 = vpop.f32.mrf.mxu1  ;;  %v3750_v54 = vpop.f32.mrf.mxu0  ;;  %v3372_v7 = vadd.f32 %v14866_v53, %v14796_v19 }
 0x34d   : > { %v3888_v13 = vadd.f32 %v3750_v54, %v3290_v10  ;;  %v16497_v50 = vmax.f32 %v14943_v33, 0.0  ;;  %v14957_v5 = vadd.f32 %v14881_v45, %v3887_v29 }
 0x34e   : > { %v3714_v56 = vpop.f32.mrf.mxu1  ;;  %v3752_v62 = vpop.f32.mrf.mxu0 }
 0x34f   : > { %12531 = vrot.lane.b32.xlu1 %v12530_v32, %s16518_s11  ;;  %12536 = vrot.lane.b32.xlu0 %v12530_v32, %s16516_s23  ;;  %v14953_v3 = vadd.f32 %v14881_v45, %v3888_v13  ;;  %v12550_v48 = vpack.i.bf16 %v16497_v50, %v3923_v61  ;;  %v3925_v11 = vmax.f32 %v14957_v5, 0.0 }
 0x350   : > { %v3754_v23 = vpop.f32.mrf.mxu0  ;;  %v3791_v12 = vpop.f32.mrf.mxu1 }
 0x351   : > { %v3926_v28 = vmax.f32 %v14953_v3, 0.0  ;;  %v3890_v55 = vadd.f32 %v3791_v12, %v3331_v14  ;;  %v12794_v3 = vld [vmem:[%s13623_s29 + $0x660] ss:$16 sps:$4 sm:$0xff]  }
 0x352   : > { %v3755_v24 = vpop.f32.mrf.mxu0  ;;  %v3793_v15 = vpop.f32.mrf.mxu1 }
 0x353   : > { %12541 = vrot.lane.b32.xlu1 %v12530_v32, %s16514_s28  ;;  %4006 = vrot.lane.b32.xlu0 %v14940_v8, %s16516_s23  ;;  %v12565_v31 = vpack.i.bf16 %v3926_v28, %v3925_v11  ;;  %v14985_v19 = vadd.f32 %v14881_v45, %v3890_v55  ;;  %v3891_v40 = vadd.f32 %v3793_v15, %v3333_v44 }
 0x354   : > { %v3795_v22 = vpop.f32.mrf.mxu1  ;;  %v3832_v35 = vpop.f32.mrf.mxu0 }
 0x355   : > { %v3892_v4 = vadd.f32 %v3832_v35, %v3372_v7  ;;  %v3928_v34 = vmax.f32 %v14985_v19, 0.0 }
 0x356   : > { %v3796_v52 = vpop.f32.mrf.mxu1  ;;  %v3834_v60 = vpop.f32.mrf.mxu0 }
 0x357   : > { %3942 = vrot.lane.b32.xlu1 %v14940_v8, %s16518_s11  ;;  %12546 = vrot.lane.b32.xlu0 %v12525_v51, %s16514_s28  ;;  %v3889_v51 = vadd.f32 %v3752_v62, %v3292_v27  ;;  %v14993_v17 = vadd.f32 %v14881_v45, %v3892_v4  ;;  %v14997_v62 = vadd.f32 %v14881_v45, %v3891_v40 }
 0x358   : > { %v3873_v42 = vpop.f32.mrf.mxu1  ;;  %v3836_v38 = vpop.f32.mrf.mxu0  ;;  %v3893_v20 = vadd.f32 %v3834_v60, %v3374_v46 }
 0x359   : > { %v14989_v56 = vadd.f32 %v14881_v45, %v3889_v51  ;;  %v3930_v26 = vmax.f32 %v14993_v17, 0.0  ;;  %v3894_v41 = vadd.f32 %v3873_v42, %v3413_v59  ;;  %v16495_v12 = vmax.f32 %v14997_v62, 0.0 }
 0x35a   : > { %v3875_v54 = vpop.f32.mrf.mxu1  ;;  %v3837_v32 = vpop.f32.mrf.mxu0  ;;  %v15025_v39 = vadd.f32 %v14881_v45, %v3893_v20 }
 0x35b   : > { %4071 = vrot.lane.b32.xlu1 %v14940_v8, %s16514_s28  ;;  %12551 = vrot.lane.b32.xlu0 %v12550_v48, %s16518_s11  ;;  %v16499_v10 = vmax.f32 %v14989_v56, 0.0  ;;  %v12595_v49 = vpack.i.bf16 %v3930_v26, %v16495_v12  ;;  %v15019_v63 = vadd.f32 %v14881_v45, %v3894_v41  ;;  %v3895_v13 = vadd.f32 %v3875_v54, %v3415_v58 }
 0x35c   : > { %v3877_v21 = vpop.f32.mrf.mxu1  ;;  %v16494_v15 = vmax.f32 %v15025_v39, 0.0 }
 0x35d   : > { %v12580_v23 = vpack.i.bf16 %v3928_v34, %v16499_v10  ;;  %v3932_v24 = vmax.f32 %v15019_v63, 0.0  ;;  %v3917_v29 = vadd.f32 %v14881_v45, %v3895_v13  ;;  %v7872_v45 = vld [vmem:[%s16596_s3] sm:$0xf]  ;;  %s16624_s3 = smov 126  }
 0x35e   : > { %v3878_v53 = vpop.f32.mrf.mxu1 }
 0x35f   : > { %12566 = vrot.lane.b32.xlu1 %v12565_v31, %s16518_s11  ;;  %12556 = vrot.lane.b32.xlu0 %v12550_v48, %s16516_s23  ;;  %v12610_v16 = vpack.i.bf16 %v3932_v24, %v16494_v15  ;;  %v15039_v18 = vmax.f32 %v3917_v29, 0.0 }
 0x363   : > { %12571 = vrot.lane.b32.xlu1 %v12565_v31, %s16516_s23  ;;  %12561 = vrot.lane.b32.xlu0 %v12550_v48, %s16514_s28 }
 0x367   : > { %12576 = vrot.lane.b32.xlu1 %v12565_v31, %s16514_s28  ;;  %12581 = vrot.lane.b32.xlu0 %v12580_v23, %s16518_s11 }
 0x36b   : > { %12596 = vrot.lane.b32.xlu1 %v12595_v49, %s16518_s11  ;;  %12586 = vrot.lane.b32.xlu0 %v12580_v23, %s16516_s23 }
 0x36f   : > { %12601 = vrot.lane.b32.xlu1 %v12595_v49, %s16516_s23  ;;  %12591 = vrot.lane.b32.xlu0 %v12580_v23, %s16514_s28 }
 0x373   : > { %12606 = vrot.lane.b32.xlu1 %v12595_v49, %s16514_s28  ;;  %12611 = vrot.lane.b32.xlu0 %v12610_v16, %s16518_s11 }
 0x377   : > { %3964 = vrot.lane.b32.xlu1 %v15039_v18, %s16518_s11  ;;  %12616 = vrot.lane.b32.xlu0 %v12610_v16, %s16516_s23 }
 0x37b   : > { %4028 = vrot.lane.b32.xlu1 %v15039_v18, %s16516_s23  ;;  %12621 = vrot.lane.b32.xlu0 %v12610_v16, %s16514_s28  ;;  %s16623_s23 = sld [smem:[#allocation15_spill]] }
 0x37f   : > { %4093 = vrot.lane.b32.xlu1 %v15039_v18, %s16514_s28  ;;  %7875 = vperm.xlu0 %12519, %v7872_v45   ;;  %s16622_s28 = sld [smem:[#allocation16_spill]] }
 0x3bd   : > { %v15050_v30 = vpop.permute.xlu1 %12526  ;;  %v15052_v22 = vpop.permute.xlu0 %12521 }
 0x3be   : > { %v12524_v42 = vunpack.i.h.bf16 %v15052_v22  ;;  %v12523_v38 = vunpack.i.l.bf16 %v15052_v22  ;;  %v12529_v31 = vunpack.i.h.bf16 %v15050_v30  ;;  %v12817_v22 = vld [vmem:[%s13623_s29 + $0x5e4] ss:$16 sps:$4 sm:$0xff]  }
 0x3c1   : > { %v12532_v35 = vpop.permute.xlu1 %12531  ;;  %v12537_v52 = vpop.permute.xlu0 %12536 }
 0x3c2   : > { %v12534_v60 = vunpack.i.h.bf16 %v12532_v35  ;;  %v12533_v14 = vunpack.i.l.bf16 %v12532_v35  ;;  %v12539_v27 = vunpack.i.h.bf16 %v12537_v52  ;;  %v12538_v55 = vunpack.i.l.bf16 %v12537_v52 }
 0x3c4   : > { %v3979_v54 = vsel %vm1991_vm3, %v12533_v14, %v12534_v60  ;;  %v3978_v48 = vsel %vm1991_vm3, %v12534_v60, %v12524_v42  ;;  %v3980_v32 = vsel %vm1991_vm3, %v12523_v38, %v12533_v14  ;;  %v4044_v53 = vsel %vm4030_vm6, %v12538_v55, %v12539_v27 }
 0x3c5   : > { %v12542_v7 = vpop.permute.xlu1 %12541  ;;  %v3983_v51 = vmax.f32 %v3919_v1, %v3979_v54  ;;  %v15068_v21 = vpop.permute.xlu0 %4006  ;;  %v3984_v40 = vmax.f32 %v3920_v25, %v3978_v48  ;;  %v3982_v59 = vmax.f32 %v3918_v6, %v3980_v32  ;;  %v12528_v1 = vunpack.i.l.bf16 %v15050_v30  ;;  %v12767_v32 = vld [vmem:[%s13623_s29 + $0x4e0] ss:$16 sps:$4 sm:$0xff]   ;;  %v12823_v30 = vld [vmem:[%s13623_s29 + $0x5c4] ss:$16 sps:$4 sm:$0xff]  }
 0x3c6   : > { %v12544_v44 = vunpack.i.h.bf16 %v12542_v7  ;;  %v12543_v4 = vunpack.i.l.bf16 %v12542_v7  ;;  %v4043_v23 = vsel %vm4030_vm6, %v12539_v27, %v12529_v31  ;;  %v4042_v13 = vsel %vm4030_vm6, %v12529_v31, %v15068_v21  ;;  %v12770_v31 = vld [vmem:[%s13623_s29 + $0x6e0] ss:$16 sps:$4 sm:$0xff]  }
 0x3c7   : > { %v4048_v46 = vmax.f32 %v3983_v51, %v4044_v53  ;;  %v4045_v43 = vsel %vm4030_vm6, %v12528_v1, %v12538_v55  ;;  %v4049_v16 = vmax.f32 %v3984_v40, %v4043_v23  ;;  %v12775_v51 = vld [vmem:[%s13623_s29 + $0x4c4] ss:$16 sps:$4 sm:$0xff]  }
 0x3c8   : > { %v4109_v36 = vsel %vm4095_vm7, %v12543_v4, %v12544_v44  ;;  %v4047_v29 = vmax.f32 %v3982_v59, %v4045_v43  ;;  %v12773_v43 = vld [vmem:[%s13623_s29 + $0x4c0] ss:$16 sps:$4 sm:$0xff]  }
 0x3c9   : > { %v15080_v41 = vpop.permute.xlu1 %3942  ;;  %v15084_v20 = vpop.permute.xlu0 %12546  ;;  %v4113_v25 = vmax.f32 %v4048_v46, %v4109_v36  ;;  %v12778_v36 = vld [vmem:[%s13623_s29 + $0x6c4] ss:$16 sps:$4 sm:$0xff]  }
 0x3ca   : > { %v3977_v37 = vsel %vm1991_vm3, %v12524_v42, %v15080_v41  ;;  %v12549_v6 = vunpack.i.h.bf16 %v15084_v20  ;;  %v12548_v49 = vunpack.i.l.bf16 %v15084_v20  ;;  %v12824_v20 = vld [vmem:[%s13623_s29 + $0x7c0] ss:$16 sps:$4 sm:$0xff]  }
 0x3cb   : > { %v3985_v58 = vmax.f32 %v3921_v57, %v3977_v37  ;;  %v15100_v45 = vpack.c.bf16 %v4113_v25, %v4113_v25 }
 0x3cc   : > { %v4108_v35 = vsel %vm4095_vm7, %v12544_v44, %v12549_v6  ;;  %v4110_v52 = vsel %vm4095_vm7, %v12548_v49, %v12543_v4 }
 0x3cd   : > { %v4050_v9 = vmax.f32 %v3985_v58, %v4042_v13  ;;  %v15108_v57 = vpop.permute.xlu1 %4071  ;;  %v4112_v60 = vmax.f32 %v4047_v29, %v4110_v52  ;;  %v4114_v14 = vmax.f32 %v4049_v16, %v4108_v35  ;;  %v15110_v42 = vpop.permute.xlu0 %12551  ;;  %7248 = vmatprep.mubr.bf16.mxu0 %v15100_v45  ;;  %v12776_v29 = vld [vmem:[%s13623_s29 + $0x6c0] ss:$16 sps:$4 sm:$0xff]  }
 0x3ce   : > { %v4107_v27 = vsel %vm4095_vm7, %v12549_v6, %v15108_v57  ;;  %v12554_v55 = vunpack.i.h.bf16 %v15110_v42  ;;  %v12553_v54 = vunpack.i.l.bf16 %v15110_v42  ;;  %v12781_v6 = vld [vmem:[%s13623_s29 + $0x4a4] ss:$16 sps:$4 sm:$0xff]  }
 0x3cf   : > { %v4115_v48 = vmax.f32 %v4050_v9, %v4107_v27  ;;  %v15119_v7 = vpack.c.bf16 %v4112_v60, %v4112_v60  ;;  %v15132_v46 = vpack.c.bf16 %v4114_v14, %v4114_v14  ;;  %v12784_v14 = vld [vmem:[%s13623_s29 + $0x6a4] ss:$16 sps:$4 sm:$0xff]  }
 0x3d0   : > { %v3975_v23 = vsel %vm1991_vm3, %v12553_v54, %v12554_v55 }
 0x3d1   : > { %v15122_v44 = vpack.c.bf16 %v4115_v48, %v4115_v48  ;;  %v15124_v4 = vpop.permute.xlu1 %12566  ;;  %v15127_v53 = vpop.permute.xlu0 %12556  ;;  %7249 = vmatmul.mubr.bf16.vlgmr.msra.gmra.mxu0 %v15119_v7  ;;  %v3987_v16 = vmax.f32 %v3923_v61, %v3975_v23  ;;  %v12782_v23 = vld [vmem:[%s13623_s29 + $0x6a0] ss:$16 sps:$4 sm:$0xff]  }
 0x3d2   : > { %v12569_v40 = vunpack.i.h.bf16 %v15124_v4  ;;  %v12568_v59 = vunpack.i.l.bf16 %v15124_v4  ;;  %v16500_v37 = vunpack.i.h.bf16 %v15127_v53  ;;  %v12558_v25 = vunpack.i.l.bf16 %v15127_v53  ;;  %7299 = vmatpush1.bf16.msra.mxu0 %v12767_v32  ;;  %v12787_v32 = vld [vmem:[%s13623_s29 + $0x484] ss:$16 sps:$4 sm:$0xff]  }
 0x3d3   : > { %7289 = vmatprep.mubr.bf16.mxu1 %v15122_v44  ;;  %7300 = vmatprep.subr.bf16.mxu0 %v12775_v51 }
 0x3d4   : > { %7290 = vmatmul.mubr.bf16.vlgmr.msra.gmra.mxu1 %v15132_v46  ;;  %v4040_v58 = vsel %vm4030_vm6, %v12558_v25, %v16500_v37  ;;  %v3973_v35 = vsel %vm1991_vm3, %v12568_v59, %v12569_v40  ;;  %v12802_v37 = vld [vmem:[%s13623_s29 + $0x644] ss:$16 sps:$4 sm:$0xff]  }
 0x3d5   : > { %7340 = vmatpush1.bf16.msra.mxu1 %v12770_v31  ;;  %v15153_v13 = vpop.permute.xlu1 %12571  ;;  %v15162_v52 = vpop.permute.xlu0 %12561  ;;  %v4052_v51 = vmax.f32 %v3987_v16, %v4040_v58  ;;  %v3989_v31 = vmax.f32 %v3925_v11, %v3973_v35  ;;  %v12790_v58 = vld [vmem:[%s13623_s29 + $0x684] ss:$16 sps:$4 sm:$0xff]   ;;  %v12785_v16 = vld [vmem:[%s13623_s29 + $0x480] ss:$16 sps:$4 sm:$0xff]  }
 0x3d6   : > { %v12574_v9 = vunpack.i.h.bf16 %v15153_v13  ;;  %v16501_v60 = vunpack.i.l.bf16 %v15153_v13  ;;  %7341 = vmatprep.subr.bf16.mxu1 %v12778_v36  ;;  %v16496_v27 = vunpack.i.h.bf16 %v15162_v52  ;;  %v16502_v48 = vunpack.i.l.bf16 %v15162_v52  ;;  %7301 = vmatpush1.bf16.msra.mxu0 %v12773_v43 }
 0x3d7   : > { %7302 = vmatprep.subr.bf16.mxu0 %v12781_v6  ;;  %v16600_v4 = vunpack.i.l.bf16 %v15162_v52 }
 0x3d8   : > { %v4038_v61 = vsel %vm4030_vm6, %v16501_v60, %v12574_v9  ;;  %v4105_v43 = vsel %vm4095_vm7, %v16502_v48, %v16496_v27  ;;  %v12793_v27 = vld [vmem:[%s13623_s29 + $0x464] ss:$16 sps:$4 sm:$0xff]   ;;  %v12797_v60 = vld [vmem:[%s13623_s29 + $0x440] ss:$16 sps:$4 sm:$0xff]  }
 0x3d9   : > { %7342 = vmatpush1.bf16.msra.mxu1 %v12776_v29  ;;  %v15177_v36 = vpop.permute.xlu1 %12576  ;;  %v15186_v15 = vpop.permute.xlu0 %12581  ;;  %v4117_v11 = vmax.f32 %v4052_v51, %v4105_v43  ;;  %v4054_v35 = vmax.f32 %v3989_v31, %v4038_v61  ;;  %v12788_v61 = vld [vmem:[%s13623_s29 + $0x680] ss:$16 sps:$4 sm:$0xff]  }
 0x3da   : > { %v12579_v6 = vunpack.i.h.bf16 %v15177_v36  ;;  %v16498_v5 = vunpack.i.l.bf16 %v15177_v36  ;;  %7343 = vmatprep.subr.bf16.mxu1 %v12784_v14  ;;  %v12583_v29 = vunpack.i.l.bf16 %v15186_v15  ;;  %7303 = vmatpush1.bf16.msra.mxu0 %v12779_v0  ;;  %v12584_v51 = vunpack.i.h.bf16 %v15186_v15  ;;  %v12851_v15 = vld [vmem:[%s13623_s29 + $0x520] ss:$16 sps:$4 sm:$0xff]  }
 0x3db   : > { %7304 = vmatprep.subr.bf16.mxu0 %v12787_v32  ;;  %v15193_v12 = vpack.c.bf16 %v4117_v11, %v4117_v11  ;;  %v12796_v11 = vld [vmem:[%s13623_s29 + $0x664] ss:$16 sps:$4 sm:$0xff]  }
 0x3dc   : > { %v4103_v50 = vsel %vm4095_vm7, %v16498_v5, %v12579_v6  ;;  %v3972_v14 = vsel %vm1991_vm3, %v12569_v40, %v12583_v29  ;;  %v12791_v40 = vld [vmem:[%s13623_s29 + $0x460] ss:$16 sps:$4 sm:$0xff]  }
 0x3dd   : > { %7344 = vmatpush1.bf16.msra.mxu1 %v12782_v23  ;;  %v15204_v0 = vpop.permute.xlu1 %12596  ;;  %v4119_v32 = vmax.f32 %v4054_v35, %v4103_v50  ;;  %v15208_v31 = vpop.permute.xlu0 %12586  ;;  %7330 = vmatprep.mubr.bf16.mxu0 %v15193_v12  ;;  %v3990_v50 = vmax.f32 %v3926_v28, %v3972_v14 }
 0x3de   : > { %v16503_v43 = vunpack.i.l.bf16 %v15204_v0  ;;  %7345 = vmatprep.subr.bf16.mxu1 %v12790_v58  ;;  %v16505_v5 = vunpack.i.l.bf16 %v15208_v31  ;;  %7305 = vmatpush1.bf16.msra.mxu0 %v12785_v16  ;;  %v12799_v58 = vld [vmem:[%s13623_s29 + $0x444] ss:$16 sps:$4 sm:$0xff]   ;;  %v16507_v28 = vunpack.i.h.bf16 %v15208_v31 }
 0x3df   : > { %v15215_v23 = vpack.c.bf16 %v4119_v32, %v4119_v32  ;;  %7306 = vmatprep.subr.bf16.mxu0 %v12793_v27 }
 0x3e0   : > { %v3970_v35 = vsel %vm1991_vm3, %v12584_v51, %v16503_v43  ;;  %v4037_v16 = vsel %vm4030_vm6, %v12574_v9, %v16505_v5  ;;  %v12599_v5 = vunpack.i.h.bf16 %v15204_v0 }
 0x3e1   : > { %7346 = vmatpush1.bf16.msra.mxu1 %v12788_v61  ;;  %v15230_v32 = vpop.permute.xlu1 %12601  ;;  %v4055_v14 = vmax.f32 %v3990_v50, %v4037_v16  ;;  %v15234_v10 = vpop.permute.xlu0 %12591  ;;  %7371 = vmatprep.mubr.bf16.mxu1 %v15215_v23  ;;  %v3992_v9 = vmax.f32 %v3928_v34, %v3970_v35  ;;  %v12805_v16 = vld [vmem:[%s13623_s29 + $0x424] ss:$16 sps:$4 sm:$0xff]  }
 0x3e2   : > { %v16504_v27 = vunpack.i.l.bf16 %v15230_v32  ;;  %7347 = vmatprep.subr.bf16.mxu1 %v12796_v11  ;;  %v16506_v61 = vunpack.i.l.bf16 %v15234_v10  ;;  %7307 = vmatpush1.bf16.msra.mxu0 %v12791_v40  ;;  %v12800_v40 = vld [vmem:[%s13623_s29 + $0x640] ss:$16 sps:$4 sm:$0xff]   ;;  %v16510_v35 = vunpack.i.h.bf16 %v15234_v10 }
 0x3e3   : > { %7308 = vmatprep.subr.bf16.mxu0 %v12799_v58 }
 0x3e4   : > { %v4035_v50 = vsel %vm4030_vm6, %v16507_v28, %v16504_v27  ;;  %v4102_v19 = vsel %vm4095_vm7, %v12579_v6, %v16506_v61  ;;  %v12808_v27 = vld [vmem:[%s13623_s29 + $0x624] ss:$16 sps:$4 sm:$0xff]   ;;  %v12806_v61 = vld [vmem:[%s13623_s29 + $0x620] ss:$16 sps:$4 sm:$0xff]  }
 0x3e5   : > { %v4057_v34 = vmax.f32 %v3992_v9, %v4035_v50  ;;  %7348 = vmatpush1.bf16.msra.mxu1 %v12794_v3  ;;  %v15254_v11 = vpop.permute.xlu1 %12606  ;;  %v15258_v48 = vmax.f32 %v4055_v14, %v4102_v19  ;;  %v15260_v43 = vpop.permute.xlu0 %12611  ;;  %v12803_v3 = vld [vmem:[%s13623_s29 + $0x420] ss:$16 sps:$4 sm:$0xff]  }
 0x3e6   : > { %v16508_v58 = vunpack.i.l.bf16 %v15254_v11  ;;  %7349 = vmatprep.subr.bf16.mxu1 %v12802_v37  ;;  %v16509_v6 = vunpack.i.l.bf16 %v15260_v43  ;;  %7309 = vmatpush1.bf16.msra.mxu0 %v12797_v60  ;;  %v16511_v9 = vunpack.i.h.bf16 %v15260_v43  ;;  %v12811_v37 = vld [vmem:[%s13623_s29 + $0x404] ss:$16 sps:$4 sm:$0xff]  }
 0x3e7   : > { %7310 = vmatprep.subr.bf16.mxu0 %v12805_v16 }
 0x3e8   : > { %v4100_v14 = vsel %vm4095_vm7, %v16510_v35, %v16508_v58  ;;  %v3968_v60 = vsel %vm1991_vm3, %v12599_v5, %v16509_v6  ;;  %v12809_v6 = vld [vmem:[%s13623_s29 + $0x400] ss:$16 sps:$4 sm:$0xff]  }
 0x3e9   : > { %v15281_v50 = vmax.f32 %v4057_v34, %v4100_v14  ;;  %7350 = vmatpush1.bf16.msra.mxu1 %v12800_v40  ;;  %v3965_v19 = vpop.permute.xlu1 %3964  ;;  %v15284_v28 = vpop.permute.xlu0 %12616  ;;  %v12814_v34 = vld [vmem:[%s13623_s29 + $0x604] ss:$16 sps:$4 sm:$0xff]   ;;  %v12604_v14 = vunpack.i.h.bf16 %v15230_v32  ;;  %v3994_v35 = vmax.f32 %v3930_v26, %v3968_v60  ;;  %v12812_v26 = vld [vmem:[%s13623_s29 + $0x600] ss:$16 sps:$4 sm:$0xff]  }
 0x3ea   : > { %v3966_v16 = vsel %vm1991_vm3, %v16511_v9, %v3965_v19  ;;  %v3981_v58 = vsel %vm1991_vm3, %v3965_v19, %v12523_v38  ;;  %7351 = vmatprep.subr.bf16.mxu1 %v12808_v27  ;;  %v12618_v40 = vunpack.i.l.bf16 %v15284_v28  ;;  %7311 = vmatpush1.bf16.msra.mxu0 %v12803_v3  ;;  %v12619_v9 = vunpack.i.h.bf16 %v15284_v28 }
 0x3eb   : > { %7312 = vmatprep.subr.bf16.mxu0 %v12811_v37  ;;  %v3996_v27 = vmax.f32 %v3932_v24, %v3966_v16  ;;  %v3997_v3 = vmax.f32 %v15039_v18, %v3981_v58  ;;  %v12820_v24 = vld [vmem:[%s13623_s29 + $0x7e4] ss:$16 sps:$4 sm:$0xff]   ;;  %v12609_v18 = vunpack.i.h.bf16 %v15254_v11  ;;  %v12815_v16 = vld [vmem:[%s13623_s29 + $0x5e0] ss:$16 sps:$4 sm:$0xff]  }
 0x3ec   : > { %v4033_v38 = vsel %vm4030_vm6, %v12604_v14, %v12618_v40 }
 0x3ed   : > { %7352 = vmatpush1.bf16.msra.mxu1 %v12806_v61  ;;  %v4029_v17 = vpop.permute.xlu1 %4028  ;;  %v4059_v60 = vmax.f32 %v3994_v35, %v4033_v38  ;;  %v15312_v37 = vpop.permute.xlu0 %12621 }
 0x3ee   : > { %v4031_v19 = vsel %vm4030_vm6, %v12619_v9, %v4029_v17  ;;  %v4046_v63 = vsel %vm4030_vm6, %v4029_v17, %v12528_v1  ;;  %7353 = vmatprep.subr.bf16.mxu1 %v12814_v34  ;;  %v12623_v61 = vunpack.i.l.bf16 %v15312_v37  ;;  %7313 = vmatpush1.bf16.msra.mxu0 %v12809_v6  ;;  %v12624_v38 = vunpack.i.h.bf16 %v15312_v37  ;;  %v12826_v17 = vld [vmem:[%s13623_s29 + $0x7c4] ss:$16 sps:$4 sm:$0xff]  }
 0x3ef   : > { %v4061_v35 = vmax.f32 %v3996_v27, %v4031_v19  ;;  %v4062_v58 = vmax.f32 %v3997_v3, %v4046_v63  ;;  %7314 = vmatprep.subr.bf16.mxu0 %v12817_v22  ;;  %v12818_v27 = vld [vmem:[%s13623_s29 + $0x7e0] ss:$16 sps:$4 sm:$0xff]   ;;  %v12829_v63 = vld [vmem:[%s13623_s29 + $0x5a4] ss:$16 sps:$4 sm:$0xff]   ;;  %v15553_v37 = vpack.c.bf16 %v15258_v48, %v15258_v48 }
 0x3f0   : > { %v4098_v1 = vsel %vm4095_vm7, %v12609_v18, %v12623_v61  ;;  %v4097_v28 = vsel %vm4095_vm7, %v12623_v61, %v12624_v38  ;;  %v12967_v61 = vld [vmem:[%s13623_s29 + $0xcc4] ss:$16 sps:$4 sm:$0xff]  }
 0x3f1   : > { %7354 = vmatpush1.bf16.msra.mxu1 %v12812_v26  ;;  %v4094_v34 = vpop.permute.xlu1 %4093  ;;  %v15335_v6 = vmax.f32 %v4059_v60, %v4098_v1  ;;  %v12821_v60 = vld [vmem:[%s13623_s29 + $0x5c0] ss:$16 sps:$4 sm:$0xff]   ;;  %v12841_v1 = vld [vmem:[%s13623_s29 + $0x564] ss:$16 sps:$4 sm:$0xff]  }
 0x3f2   : > { %v4096_v22 = vsel %vm4095_vm7, %v12624_v38, %v4094_v34  ;;  %v4111_v3 = vsel %vm4095_vm7, %v4094_v34, %v12548_v49  ;;  %7355 = vmatprep.subr.bf16.mxu1 %v12820_v24  ;;  %7315 = vmatpush2.bf16.msra.mxu0 %v12815_v16  ;;  %v12832_v49 = vld [vmem:[%s13623_s29 + $0x7a4] ss:$16 sps:$4 sm:$0xff]   ;;  %v12827_v24 = vld [vmem:[%s13623_s29 + $0x5a0] ss:$16 sps:$4 sm:$0xff]  }
 0x3f3   : > { %v15346_v26 = vmax.f32 %v4061_v35, %v4096_v22  ;;  %v15348_v19 = vmax.f32 %v4062_v58, %v4111_v3  ;;  %7316 = vmatprep.subr.bf16.mxu0 %v12823_v30  ;;  %v12835_v35 = vld [vmem:[%s13623_s29 + $0x584] ss:$16 sps:$4 sm:$0xff]   ;;  %v12830_v58 = vld [vmem:[%s13623_s29 + $0x7a0] ss:$16 sps:$4 sm:$0xff]  }
 0x3f4   : > { %v12838_v16 = vld [vmem:[%s13623_s29 + $0x784] ss:$16 sps:$4 sm:$0xff]   ;;  %v12833_v30 = vld [vmem:[%s13623_s29 + $0x580] ss:$16 sps:$4 sm:$0xff]  }
 0x3f5   : > { %7356 = vmatpush2.bf16.msra.mxu1 %v12818_v27  ;;  %v12836_v34 = vld [vmem:[%s13623_s29 + $0x780] ss:$16 sps:$4 sm:$0xff]   ;;  %v12844_v27 = vld [vmem:[%s13623_s29 + $0x764] ss:$16 sps:$4 sm:$0xff]   ;;  %v15567_v48 = vpack.c.bf16 %v15348_v19, %v15348_v19 }
 0x3f6   : > { %7357 = vmatprep.subr.bf16.mxu1 %v12826_v17  ;;  %7317 = vmatpush2.bf16.msra.mxu0 %v12821_v60  ;;  %v12839_v22 = vld [vmem:[%s13623_s29 + $0x560] ss:$16 sps:$4 sm:$0xff]   ;;  %v12847_v3 = vld [vmem:[%s13623_s29 + $0x544] ss:$16 sps:$4 sm:$0xff]  }
 0x3f7   : > { %7318 = vmatprep.subr.bf16.mxu0 %v12829_v63  ;;  %v12842_v17 = vld [vmem:[%s13623_s29 + $0x760] ss:$16 sps:$4 sm:$0xff]   ;;  %v12850_v60 = vld [vmem:[%s13623_s29 + $0x744] ss:$16 sps:$4 sm:$0xff]  }
 0x3f8   : > { %v12845_v63 = vld [vmem:[%s13623_s29 + $0x540] ss:$16 sps:$4 sm:$0xff]   ;;  %v12976_v19 = vld [vmem:[%s13623_s29 + $0xea4] ss:$16 sps:$4 sm:$0xff]  }
 0x3f9   : > { %7358 = vmatpush2.bf16.msra.mxu1 %v12824_v20  ;;  %v12853_v20 = vld [vmem:[%s13623_s29 + $0x524] ss:$16 sps:$4 sm:$0xff]  }
 0x3fa   : > { %7359 = vmatprep.subr.bf16.mxu1 %v12832_v49  ;;  %7319 = vmatpush2.bf16.msra.mxu0 %v12827_v24  ;;  %v3976_v49 = vsel %vm1991_vm3, %v15080_v41, %v12553_v54  ;;  %v12848_v24 = vld [vmem:[%s13623_s29 + $0x740] ss:$16 sps:$4 sm:$0xff]   ;;  %v3974_v41 = vsel %vm1991_vm3, %v12554_v55, %v12568_v59  ;;  %v12859_v55 = vld [vmem:[%s13623_s29 + $0x504] ss:$16 sps:$4 sm:$0xff]   ;;  %v16601_v59 = vunpack.i.l.bf16 %v15153_v13 }
 0x3fb   : > { %7320 = vmatprep.subr.bf16.mxu0 %v12835_v35  ;;  %v3971_v35 = vsel %vm1991_vm3, %v12583_v29, %v12584_v51  ;;  %v3986_v54 = vmax.f32 %v14940_v8, %v3976_v49  ;;  %v16597_v29 = vunpack.i.h.bf16 %v15208_v31  ;;  %v16598_v51 = vunpack.i.l.bf16 %v15208_v31  ;;  %v12862_v13 = vld [vmem:[%s13623_s29 + $0x704] ss:$16 sps:$4 sm:$0xff]  }
 0x3fc   : > { %v4106_v8 = vsel %vm4095_vm7, %v15108_v57, %v16600_v4  ;;  %v16605_v57 = vunpack.i.l.bf16 %v15230_v32 }
 0x3fd   : > { %7360 = vmatpush2.bf16.msra.mxu1 %v12830_v58  ;;  %v12856_v58 = vld [vmem:[%s13623_s29 + $0x724] ss:$16 sps:$4 sm:$0xff]  }
 0x3fe   : > { %7361 = vmatprep.subr.bf16.mxu1 %v12838_v16  ;;  %7321 = vmatpush2.bf16.msra.mxu0 %v12833_v30  ;;  %v4041_v16 = vsel %vm4030_vm6, %v15068_v21, %v12558_v25  ;;  %v4036_v30 = vsel %vm4030_vm6, %v16598_v51, %v16597_v29  ;;  %v16599_v21 = vunpack.i.l.bf16 %v15204_v0  ;;  %v16602_v25 = vunpack.i.h.bf16 %v15127_v53 }
 0x3ff   : > { %7322 = vmatprep.subr.bf16.mxu0 %v12841_v1  ;;  %v16603_v0 = vmax.f32 %v14989_v56, 0.0  ;;  %v4034_v53 = vsel %vm4030_vm6, %v16605_v57, %v12604_v14  ;;  %v16606_v56 = vunpack.i.h.bf16 %v15234_v10  ;;  %v12892_v57 = vld [vmem:[%s13623_s29 + $0xa64] ss:$16 sps:$4 sm:$0xff]  }
 0x400   : > { %v3969_v42 = vsel %vm1991_vm3, %v16599_v21, %v12599_v5  ;;  %v4039_v31 = vsel %vm4030_vm6, %v16602_v25, %v16601_v59  ;;  %v12854_v5 = vld [vmem:[%s13623_s29 + $0x720] ss:$16 sps:$4 sm:$0xff]   ;;  %v12880_v25 = vld [vmem:[%s13623_s29 + $0xaa4] ss:$16 sps:$4 sm:$0xff]  }
 0x401   : > { %7362 = vmatpush2.bf16.msra.mxu1 %v12836_v34  ;;  %v3991_v1 = vmax.f32 %v16603_v0, %v3971_v35  ;;  %v4051_v34 = vmax.f32 %v3986_v54, %v4041_v16  ;;  %v12865_v35 = vld [vmem:[%s13623_s29 + $0x8e4] ss:$16 sps:$4 sm:$0xff]   ;;  %v12863_v54 = vld [vmem:[%s13623_s29 + $0x8e0] ss:$16 sps:$4 sm:$0xff]  }
 0x402   : > { %7363 = vmatprep.subr.bf16.mxu1 %v12844_v27  ;;  %7323 = vmatpush2.bf16.msra.mxu0 %v12839_v22  ;;  %v16604_v27 = vmax.f32 %v14943_v33, 0.0  ;;  %v16608_v33 = vunpack.i.l.bf16 %v15177_v36  ;;  %v12872_v59 = vld [vmem:[%s13623_s29 + $0xac0] ss:$16 sps:$4 sm:$0xff]   ;;  %v12883_v0 = vld [vmem:[%s13623_s29 + $0x884] ss:$16 sps:$4 sm:$0xff]  }
 0x403   : > { %7324 = vmatprep.subr.bf16.mxu0 %v12847_v3  ;;  %v16607_v3 = vunpack.i.l.bf16 %v15234_v10  ;;  %v4056_v49 = vmax.f32 %v3991_v1, %v4036_v30  ;;  %v12866_v30 = vld [vmem:[%s13623_s29 + $0xae0] ss:$16 sps:$4 sm:$0xff]  }
 0x404   : > { %v3988_v22 = vmax.f32 %v16604_v27, %v3974_v41  ;;  %v12878_v1 = vld [vmem:[%s13623_s29 + $0xaa0] ss:$16 sps:$4 sm:$0xff]   ;;  %v12889_v27 = vld [vmem:[%s13623_s29 + $0x864] ss:$16 sps:$4 sm:$0xff]  }
 0x405   : > { %7364 = vmatpush2.bf16.msra.mxu1 %v12842_v17  ;;  %v4101_v17 = vsel %vm4095_vm7, %v16607_v3, %v16606_v56  ;;  %v12890_v56 = vld [vmem:[%s13623_s29 + $0xa60] ss:$16 sps:$4 sm:$0xff]   ;;  %v12898_v3 = vld [vmem:[%s13623_s29 + $0xa44] ss:$16 sps:$4 sm:$0xff]  }
 0x406   : > { %7365 = vmatprep.subr.bf16.mxu1 %v12850_v60  ;;  %7325 = vmatpush2.bf16.msra.mxu0 %v12845_v63  ;;  %v16609_v60 = vunpack.i.h.bf16 %v15162_v52  ;;  %v16610_v63 = vmax.f32 %v14997_v62, 0.0  ;;  %v4053_v10 = vmax.f32 %v3988_v22, %v4039_v31  ;;  %v16611_v52 = vunpack.i.l.bf16 %v15254_v11  ;;  %v12860_v62 = vld [vmem:[%s13623_s29 + $0x700] ss:$16 sps:$4 sm:$0xff]   ;;  %v12871_v11 = vld [vmem:[%s13623_s29 + $0x8c4] ss:$16 sps:$4 sm:$0xff]  }
 0x407   : > { %7326 = vmatprep.subr.bf16.mxu0 %v12853_v20  ;;  %v12857_v20 = vld [vmem:[%s13623_s29 + $0x500] ss:$16 sps:$4 sm:$0xff]  }
 0x408   : > { %v4104_v32 = vsel %vm4095_vm7, %v16609_v60, %v16608_v33  ;;  %v3993_v14 = vmax.f32 %v16610_v63, %v3969_v42  ;;  %v4099_v36 = vsel %vm4095_vm7, %v16611_v52, %v12609_v18  ;;  %v12874_v42 = vld [vmem:[%s13623_s29 + $0xac4] ss:$16 sps:$4 sm:$0xff]   ;;  %v12875_v31 = vld [vmem:[%s13623_s29 + $0x8a0] ss:$16 sps:$4 sm:$0xff]  }
 0x409   : > { %7366 = vmatpush2.bf16.msra.mxu1 %v12848_v24  ;;  %v4116_v24 = vmax.f32 %v4051_v34, %v4106_v8  ;;  %v4118_v41 = vmax.f32 %v4053_v10, %v4104_v32  ;;  %v12877_v8 = vld [vmem:[%s13623_s29 + $0x8a4] ss:$16 sps:$4 sm:$0xff]   ;;  %v12881_v34 = vld [vmem:[%s13623_s29 + $0x880] ss:$16 sps:$4 sm:$0xff]  }
 0x40a   : > { %7367 = vmatprep.subr.bf16.mxu1 %v12856_v58  ;;  %7327 = vmatpush2.bf16.msra.mxu0 %v12851_v15  ;;  %v4121_v58 = vmax.f32 %v4056_v49, %v4101_v17  ;;  %v4058_v16 = vmax.f32 %v3993_v14, %v4034_v53  ;;  %v12868_v15 = vld [vmem:[%s13623_s29 + $0xae4] ss:$16 sps:$4 sm:$0xff]   ;;  %v12884_v22 = vld [vmem:[%s13623_s29 + $0xa80] ss:$16 sps:$4 sm:$0xff]  }
 0x40b   : > { %7328 = vmatprep.subr.bf16.mxu0 %v12859_v55  ;;  %v15455_v51 = vpack.c.bf16 %v4116_v24, %v4116_v24  ;;  %v15462_v21 = vpack.c.bf16 %v4118_v41, %v4118_v41  ;;  %v12869_v55 = vld [vmem:[%s13623_s29 + $0x8c0] ss:$16 sps:$4 sm:$0xff]   ;;  %v12901_v33 = vld [vmem:[%s13623_s29 + $0x824] ss:$16 sps:$4 sm:$0xff]  }
 0x40c   : > { %v4123_v29 = vmax.f32 %v4058_v16, %v4099_v36  ;;  %v15458_v18 = vpack.c.bf16 %v4121_v58, %v4121_v58  ;;  %v12887_v53 = vld [vmem:[%s13623_s29 + $0x860] ss:$16 sps:$4 sm:$0xff]   ;;  %v12904_v32 = vld [vmem:[%s13623_s29 + $0xa24] ss:$16 sps:$4 sm:$0xff]  }
 0x40d   : > { %7368 = vmatpush2.bf16.msra.mxu1 %v12854_v5  ;;  %v12886_v5 = vld [vmem:[%s13623_s29 + $0xa84] ss:$16 sps:$4 sm:$0xff]   ;;  %v12893_v17 = vld [vmem:[%s13623_s29 + $0x840] ss:$16 sps:$4 sm:$0xff]  }
 0x40e   : > { %7369 = vmatprep.subr.bf16.mxu1 %v12862_v13  ;;  %7329 = vmatpush2.bf16.msra.mxu0 %v12857_v20  ;;  %v15467_v4 = vpack.c.bf16 %v4123_v29, %v4123_v29  ;;  %v12895_v13 = vld [vmem:[%s13623_s29 + $0x844] ss:$16 sps:$4 sm:$0xff]   ;;  %v12896_v60 = vld [vmem:[%s13623_s29 + $0xa40] ss:$16 sps:$4 sm:$0xff]  }
 0x40f   : > { %7380 = vmatprep.subr.bf16.mxu0 %v12865_v35  ;;  %v12899_v63 = vld [vmem:[%s13623_s29 + $0x820] ss:$16 sps:$4 sm:$0xff]   ;;  %v12907_v14 = vld [vmem:[%s13623_s29 + $0x804] ss:$16 sps:$4 sm:$0xff]  }
 0x410   : > { %v12902_v20 = vld [vmem:[%s13623_s29 + $0xa20] ss:$16 sps:$4 sm:$0xff]   ;;  %v12910_v49 = vld [vmem:[%s13623_s29 + $0xa04] ss:$16 sps:$4 sm:$0xff]  }
 0x411   : > { %7370 = vmatpush2.bf16.msra.mxu1 %v12860_v62  ;;  %7331 = vmatmul.mubr.bf16.vlgmr.msra.gmra.mxu0 %v15455_v51  ;;  %v12905_v24 = vld [vmem:[%s13623_s29 + $0x800] ss:$16 sps:$4 sm:$0xff]   ;;  %v12913_v10 = vld [vmem:[%s13623_s29 + $0x9e4] ss:$16 sps:$4 sm:$0xff]  }
 0x412   : > { %7421 = vmatprep.subr.bf16.mxu1 %v12868_v15  ;;  %7381 = vmatpush1.bf16.msra.mxu0 %v12863_v54  ;;  %v12908_v35 = vld [vmem:[%s13623_s29 + $0xa00] ss:$16 sps:$4 sm:$0xff]   ;;  %v12916_v52 = vld [vmem:[%s13623_s29 + $0xbe4] ss:$16 sps:$4 sm:$0xff]  }
 0x413   : > { %7412 = vmatprep.mubr.bf16.mxu0 %v15458_v18  ;;  %7382 = vmatprep.subr.bf16.mxu0 %v12871_v11  ;;  %v12911_v36 = vld [vmem:[%s13623_s29 + $0x9e0] ss:$16 sps:$4 sm:$0xff]   ;;  %v12919_v62 = vld [vmem:[%s13623_s29 + $0x9c4] ss:$16 sps:$4 sm:$0xff]  }
 0x414   : > { %7372 = vmatmul.mubr.bf16.vlgmr.msra.gmra.mxu1 %v15462_v21  ;;  %v12914_v58 = vld [vmem:[%s13623_s29 + $0xbe0] ss:$16 sps:$4 sm:$0xff]   ;;  %v12922_v16 = vld [vmem:[%s13623_s29 + $0xbc4] ss:$16 sps:$4 sm:$0xff]  }
 0x415   : > { %7422 = vmatpush1.bf16.msra.mxu1 %v12866_v30  ;;  %7453 = vmatprep.mubr.bf16.mxu1 %v15467_v4  ;;  %v12917_v41 = vld [vmem:[%s13623_s29 + $0x9c0] ss:$16 sps:$4 sm:$0xff]   ;;  %v12925_v15 = vld [vmem:[%s13623_s29 + $0x9a4] ss:$16 sps:$4 sm:$0xff]  }
 0x416   : > { %7423 = vmatprep.subr.bf16.mxu1 %v12874_v42  ;;  %7383 = vmatpush1.bf16.msra.mxu0 %v12869_v55  ;;  %v12920_v54 = vld [vmem:[%s13623_s29 + $0xbc0] ss:$16 sps:$4 sm:$0xff]   ;;  %v12928_v29 = vld [vmem:[%s13623_s29 + $0xba4] ss:$16 sps:$4 sm:$0xff]  }
 0x417   : > { %7384 = vmatprep.subr.bf16.mxu0 %v12877_v8  ;;  %v12923_v11 = vld [vmem:[%s13623_s29 + $0x9a0] ss:$16 sps:$4 sm:$0xff]   ;;  %v12931_v30 = vld [vmem:[%s13623_s29 + $0x984] ss:$16 sps:$4 sm:$0xff]  }
 0x418   : > { %v12926_v42 = vld [vmem:[%s13623_s29 + $0xba0] ss:$16 sps:$4 sm:$0xff]   ;;  %v12934_v55 = vld [vmem:[%s13623_s29 + $0xb84] ss:$16 sps:$4 sm:$0xff]  }
 0x419   : > { %7424 = vmatpush1.bf16.msra.mxu1 %v12872_v59  ;;  %v12929_v8 = vld [vmem:[%s13623_s29 + $0x980] ss:$16 sps:$4 sm:$0xff]   ;;  %v12937_v59 = vld [vmem:[%s13623_s29 + $0x964] ss:$16 sps:$4 sm:$0xff]  }
 0x41a   : > { %7425 = vmatprep.subr.bf16.mxu1 %v12880_v25  ;;  %7385 = vmatpush1.bf16.msra.mxu0 %v12875_v31  ;;  %v12932_v25 = vld [vmem:[%s13623_s29 + $0xb80] ss:$16 sps:$4 sm:$0xff]   ;;  %v12940_v31 = vld [vmem:[%s13623_s29 + $0xb64] ss:$16 sps:$4 sm:$0xff]  }
 0x41b   : > { %7386 = vmatprep.subr.bf16.mxu0 %v12883_v0  ;;  %v12935_v0 = vld [vmem:[%s13623_s29 + $0x960] ss:$16 sps:$4 sm:$0xff]  }
 0x41d   : > { %7426 = vmatpush1.bf16.msra.mxu1 %v12878_v1  ;;  %v12943_v1 = vld [vmem:[%s13623_s29 + $0x944] ss:$16 sps:$4 sm:$0xff]  }
 0x41e   : > { %7427 = vmatprep.subr.bf16.mxu1 %v12886_v5  ;;  %7387 = vmatpush1.bf16.msra.mxu0 %v12881_v34  ;;  %v12938_v5 = vld [vmem:[%s13623_s29 + $0xb60] ss:$16 sps:$4 sm:$0xff]   ;;  %v12946_v34 = vld [vmem:[%s13623_s29 + $0xb44] ss:$16 sps:$4 sm:$0xff]  }
 0x41f   : > { %7388 = vmatprep.subr.bf16.mxu0 %v12889_v27  ;;  %v12941_v27 = vld [vmem:[%s13623_s29 + $0x940] ss:$16 sps:$4 sm:$0xff]  }
 0x421   : > { %7428 = vmatpush1.bf16.msra.mxu1 %v12884_v22  ;;  %v12949_v22 = vld [vmem:[%s13623_s29 + $0x924] ss:$16 sps:$4 sm:$0xff]  }
 0x422   : > { %7429 = vmatprep.subr.bf16.mxu1 %v12892_v57  ;;  %7389 = vmatpush1.bf16.msra.mxu0 %v12887_v53  ;;  %v12944_v57 = vld [vmem:[%s13623_s29 + $0xb40] ss:$16 sps:$4 sm:$0xff]   ;;  %v16612_v53 = vunpack.i.h.bf16 %v15260_v43 }
 0x423   : > { %7390 = vmatprep.subr.bf16.mxu0 %v12895_v13  ;;  %v16613_v13 = vunpack.i.l.bf16 %v15260_v43  ;;  %v16614_v43 = vmax.f32 %v15025_v39, 0.0  ;;  %v12961_v39 = vld [vmem:[%s13623_s29 + $0xce4] ss:$16 sps:$4 sm:$0xff]  }
 0x425   : > { %7430 = vmatpush1.bf16.msra.mxu1 %v12890_v56  ;;  %v3967_v56 = vsel %vm1991_vm3, %v16613_v13, %v16612_v53  ;;  %v13006_v53 = vld [vmem:[%s13623_s29 + $0xe04] ss:$16 sps:$4 sm:$0xff]   ;;  %v13001_v13 = vld [vmem:[%s13623_s29 + $0xc00] ss:$16 sps:$4 sm:$0xff]  }
 0x426   : > { %7431 = vmatprep.subr.bf16.mxu1 %v12898_v3  ;;  %7391 = vmatpush1.bf16.msra.mxu0 %v12893_v17  ;;  %v12952_v3 = vld [vmem:[%s13623_s29 + $0xb24] ss:$16 sps:$4 sm:$0xff]   ;;  %v12947_v17 = vld [vmem:[%s13623_s29 + $0x920] ss:$16 sps:$4 sm:$0xff]  }
 0x427   : > { %7392 = vmatprep.subr.bf16.mxu0 %v12901_v33  ;;  %v4032_v33 = vsel %vm4030_vm6, %v12618_v40, %v12619_v9  ;;  %v12953_v9 = vld [vmem:[%s13623_s29 + $0x900] ss:$16 sps:$4 sm:$0xff]  }
 0x429   : > { %7432 = vmatpush1.bf16.msra.mxu1 %v12896_v60  ;;  %v12955_v60 = vld [vmem:[%s13623_s29 + $0x904] ss:$16 sps:$4 sm:$0xff]  }
 0x42a   : > { %7433 = vmatprep.subr.bf16.mxu1 %v12904_v32  ;;  %7393 = vmatpush1.bf16.msra.mxu0 %v12899_v63  ;;  %v3995_v32 = vmax.f32 %v16614_v43, %v3967_v56  ;;  %v12950_v63 = vld [vmem:[%s13623_s29 + $0xb20] ss:$16 sps:$4 sm:$0xff]   ;;  %v13009_v56 = vld [vmem:[%s13623_s29 + $0xde4] ss:$16 sps:$4 sm:$0xff]  }
 0x42b   : > { %7394 = vmatprep.subr.bf16.mxu0 %v12907_v14  ;;  %v12958_v14 = vld [vmem:[%s13623_s29 + $0xb04] ss:$16 sps:$4 sm:$0xff]   ;;  %v13010_v43 = vld [vmem:[%s13623_s29 + $0xfe0] ss:$16 sps:$4 sm:$0xff]  }
 0x42c   : > { %v4060_v40 = vmax.f32 %v3995_v32, %v4032_v33  ;;  %v13007_v33 = vld [vmem:[%s13623_s29 + $0xde0] ss:$16 sps:$4 sm:$0xff]   ;;  %v13018_v32 = vld [vmem:[%s13623_s29 + $0xfc4] ss:$16 sps:$4 sm:$0xff]  }
 0x42d   : > { %7434 = vmatpush1.bf16.msra.mxu1 %v12902_v20  ;;  %v12956_v20 = vld [vmem:[%s13623_s29 + $0xb00] ss:$16 sps:$4 sm:$0xff]  }
 0x42e   : > { %7435 = vmatprep.subr.bf16.mxu1 %v12910_v49  ;;  %7395 = vmatpush1.bf16.msra.mxu0 %v12905_v24  ;;  %v4125_v49 = vmax.f32 %v4060_v40, %v4097_v28  ;;  %v12964_v24 = vld [vmem:[%s13623_s29 + $0xee4] ss:$16 sps:$4 sm:$0xff]   ;;  %v13016_v28 = vld [vmem:[%s13623_s29 + $0xfc0] ss:$16 sps:$4 sm:$0xff]  }
 0x42f   : > { %7396 = vmatprep.subr.bf16.mxu0 %v12913_v10  ;;  %v12959_v10 = vld [vmem:[%s13623_s29 + $0xce0] ss:$16 sps:$4 sm:$0xff]  }
 0x430   : > { %v15556_v38 = vpack.c.bf16 %v4125_v49, %v4125_v49  ;;  %v13019_v40 = vld [vmem:[%s13623_s29 + $0xda0] ss:$16 sps:$4 sm:$0xff]   ;;  %v13030_v49 = vld [vmem:[%s13623_s29 + $0xf84] ss:$16 sps:$4 sm:$0xff]  }
 0x431   : > { %7436 = vmatpush1.bf16.msra.mxu1 %v12908_v35  ;;  %v12962_v35 = vld [vmem:[%s13623_s29 + $0xee0] ss:$16 sps:$4 sm:$0xff]  }
 0x432   : > { %7437 = vmatprep.subr.bf16.mxu1 %v12916_v52  ;;  %7397 = vmatpush2.bf16.msra.mxu0 %v12911_v36  ;;  %v15561_v52 = vpack.c.bf16 %v15281_v50, %v15281_v50  ;;  %v12970_v36 = vld [vmem:[%s13623_s29 + $0xec4] ss:$16 sps:$4 sm:$0xff]  }
 0x433   : > { %7398 = vmatprep.subr.bf16.mxu0 %v12919_v62  ;;  %v12965_v62 = vld [vmem:[%s13623_s29 + $0xcc0] ss:$16 sps:$4 sm:$0xff]   ;;  %v12973_v50 = vld [vmem:[%s13623_s29 + $0xca4] ss:$16 sps:$4 sm:$0xff]  }
 0x435   : > { %7438 = vmatpush2.bf16.msra.mxu1 %v12914_v58  ;;  %v12968_v58 = vld [vmem:[%s13623_s29 + $0xec0] ss:$16 sps:$4 sm:$0xff]  }
 0x436   : > { %7439 = vmatprep.subr.bf16.mxu1 %v12922_v16  ;;  %7399 = vmatpush2.bf16.msra.mxu0 %v12917_v41  ;;  %v12971_v16 = vld [vmem:[%s13623_s29 + $0xca0] ss:$16 sps:$4 sm:$0xff]   ;;  %v12979_v41 = vld [vmem:[%s13623_s29 + $0xc84] ss:$16 sps:$4 sm:$0xff]  }
 0x437   : > { %7400 = vmatprep.subr.bf16.mxu0 %v12925_v15  ;;  %v12974_v15 = vld [vmem:[%s13623_s29 + $0xea0] ss:$16 sps:$4 sm:$0xff]  }
 0x439   : > { %7440 = vmatpush2.bf16.msra.mxu1 %v12920_v54  ;;  %v12982_v54 = vld [vmem:[%s13623_s29 + $0xe84] ss:$16 sps:$4 sm:$0xff]  }
 0x43a   : > { %7441 = vmatprep.subr.bf16.mxu1 %v12928_v29  ;;  %7401 = vmatpush2.bf16.msra.mxu0 %v12923_v11  ;;  %v12977_v29 = vld [vmem:[%s13623_s29 + $0xc80] ss:$16 sps:$4 sm:$0xff]  }
 0x43b   : > { %7402 = vmatprep.subr.bf16.mxu0 %v12931_v30  ;;  %v7882_v11 = vld [vmem:[%s16615_s8] sm:$0xf]  ;;  %v12985_v30 = vld [vmem:[%s13623_s29 + $0xc64] ss:$16 sps:$4 sm:$0xff]   ;;  %s16631_s8 = sld [smem:[#allocation20_spill]] }
 0x43c   : > { %7885 = vperm.xlu1 %12625, %v7882_v11   ;;  %v13046_v11 = vld [vmem:[%s13623_s29 + $0xf20] ss:$16 sps:$4 sm:$0xff]  }
 0x43d   : > { %7442 = vmatpush2.bf16.msra.mxu1 %v12926_v42  ;;  %v12980_v42 = vld [vmem:[%s13623_s29 + $0xe80] ss:$16 sps:$4 sm:$0xff]  }
 0x43e   : > { %7443 = vmatprep.subr.bf16.mxu1 %v12934_v55  ;;  %7403 = vmatpush2.bf16.msra.mxu0 %v12929_v8  ;;  %v12988_v55 = vld [vmem:[%s13623_s29 + $0xe64] ss:$16 sps:$4 sm:$0xff]   ;;  %v12983_v8 = vld [vmem:[%s13623_s29 + $0xc60] ss:$16 sps:$4 sm:$0xff]  }
 0x43f   : > { %7404 = vmatprep.subr.bf16.mxu0 %v12937_v59  ;;  %v12991_v59 = vld [vmem:[%s13623_s29 + $0xc44] ss:$16 sps:$4 sm:$0xff]  }
 0x441   : > { %7444 = vmatpush2.bf16.msra.mxu1 %v12932_v25  ;;  %v12986_v25 = vld [vmem:[%s13623_s29 + $0xe60] ss:$16 sps:$4 sm:$0xff]  }
 0x442   : > { %7445 = vmatprep.subr.bf16.mxu1 %v12940_v31  ;;  %7405 = vmatpush2.bf16.msra.mxu0 %v12935_v0  ;;  %v12994_v31 = vld [vmem:[%s13623_s29 + $0xe44] ss:$16 sps:$4 sm:$0xff]   ;;  %v12989_v0 = vld [vmem:[%s13623_s29 + $0xc40] ss:$16 sps:$4 sm:$0xff]  }
 0x443   : > { %7406 = vmatprep.subr.bf16.mxu0 %v12943_v1  ;;  %v12997_v1 = vld [vmem:[%s13623_s29 + $0xc24] ss:$16 sps:$4 sm:$0xff]  }
 0x445   : > { %7446 = vmatpush2.bf16.msra.mxu1 %v12938_v5  ;;  %v12992_v5 = vld [vmem:[%s13623_s29 + $0xe40] ss:$16 sps:$4 sm:$0xff]  }
 0x446   : > { %7447 = vmatprep.subr.bf16.mxu1 %v12946_v34  ;;  %7407 = vmatpush2.bf16.msra.mxu0 %v12941_v27  ;;  %v13000_v34 = vld [vmem:[%s13623_s29 + $0xe24] ss:$16 sps:$4 sm:$0xff]   ;;  %v12995_v27 = vld [vmem:[%s13623_s29 + $0xc20] ss:$16 sps:$4 sm:$0xff]  }
 0x447   : > { %7408 = vmatprep.subr.bf16.mxu0 %v12949_v22  ;;  %v13003_v22 = vld [vmem:[%s13623_s29 + $0xc04] ss:$16 sps:$4 sm:$0xff]  }
 0x449   : > { %7448 = vmatpush2.bf16.msra.mxu1 %v12944_v57  ;;  %v12998_v57 = vld [vmem:[%s13623_s29 + $0xe20] ss:$16 sps:$4 sm:$0xff]  }
 0x44a   : > { %7449 = vmatprep.subr.bf16.mxu1 %v12952_v3  ;;  %7409 = vmatpush2.bf16.msra.mxu0 %v12947_v17  ;;  %v13004_v3 = vld [vmem:[%s13623_s29 + $0xe00] ss:$16 sps:$4 sm:$0xff]   ;;  %v13012_v17 = vld [vmem:[%s13623_s29 + $0xfe4] ss:$16 sps:$4 sm:$0xff]  }
 0x44b   : > { %7410 = vmatprep.subr.bf16.mxu0 %v12955_v60  ;;  %v13015_v60 = vld [vmem:[%s13623_s29 + $0xdc4] ss:$16 sps:$4 sm:$0xff]  }
 0x44d   : > { %7450 = vmatpush2.bf16.msra.mxu1 %v12950_v63  ;;  %v13013_v63 = vld [vmem:[%s13623_s29 + $0xdc0] ss:$16 sps:$4 sm:$0xff]  }
 0x44e   : > { %7451 = vmatprep.subr.bf16.mxu1 %v12958_v14  ;;  %7411 = vmatpush2.bf16.msra.mxu0 %v12953_v9  ;;  %v13021_v14 = vld [vmem:[%s13623_s29 + $0xda4] ss:$16 sps:$4 sm:$0xff]  }
 0x44f   : > { %7462 = vmatprep.subr.bf16.mxu0 %v12961_v39  ;;  %v13024_v9 = vld [vmem:[%s13623_s29 + $0xfa4] ss:$16 sps:$4 sm:$0xff]  }
 0x450   : > { %v13027_v39 = vld [vmem:[%s13623_s29 + $0xd84] ss:$16 sps:$4 sm:$0xff]  }
 0x451   : > { %7452 = vmatpush2.bf16.msra.mxu1 %v12956_v20  ;;  %7413 = vmatmul.mubr.bf16.vlgmr.msra.gmra.mxu0 %v15553_v37  ;;  %v13022_v20 = vld [vmem:[%s13623_s29 + $0xfa0] ss:$16 sps:$4 sm:$0xff]  }
 0x452   : > { %7503 = vmatprep.subr.bf16.mxu1 %v12964_v24  ;;  %7463 = vmatpush1.bf16.msra.mxu0 %v12959_v10  ;;  %v13025_v24 = vld [vmem:[%s13623_s29 + $0xd80] ss:$16 sps:$4 sm:$0xff]   ;;  %v13033_v10 = vld [vmem:[%s13623_s29 + $0xd64] ss:$16 sps:$4 sm:$0xff]  }
 0x453   : > { %7494 = vmatprep.mubr.bf16.mxu0 %v15556_v38  ;;  %7464 = vmatprep.subr.bf16.mxu0 %v12967_v61  ;;  %v13028_v61 = vld [vmem:[%s13623_s29 + $0xf80] ss:$16 sps:$4 sm:$0xff]  }
 0x454   : > { %7454 = vmatmul.mubr.bf16.vlgmr.msra.gmra.mxu1 %v15561_v52 }
 0x455   : > { %7504 = vmatpush1.bf16.msra.mxu1 %v12962_v35  ;;  %7535 = vmatprep.mubr.bf16.mxu1 %v15567_v48  ;;  %v13036_v35 = vld [vmem:[%s13623_s29 + $0xf64] ss:$16 sps:$4 sm:$0xff]  }
 0x456   : > { %7505 = vmatprep.subr.bf16.mxu1 %v12970_v36  ;;  %7465 = vmatpush1.bf16.msra.mxu0 %v12965_v62  ;;  %v13031_v36 = vld [vmem:[%s13623_s29 + $0xd60] ss:$16 sps:$4 sm:$0xff]   ;;  %v13039_v62 = vld [vmem:[%s13623_s29 + $0xd44] ss:$16 sps:$4 sm:$0xff]  }
 0x457   : > { %7466 = vmatprep.subr.bf16.mxu0 %v12973_v50  ;;  %v13034_v50 = vld [vmem:[%s13623_s29 + $0xf60] ss:$16 sps:$4 sm:$0xff]  }
 0x459   : > { %7506 = vmatpush1.bf16.msra.mxu1 %v12968_v58  ;;  %v13042_v58 = vld [vmem:[%s13623_s29 + $0xf44] ss:$16 sps:$4 sm:$0xff]  }
 0x45a   : > { %7507 = vmatprep.subr.bf16.mxu1 %v12976_v19  ;;  %7467 = vmatpush1.bf16.msra.mxu0 %v12971_v16  ;;  %v13037_v19 = vld [vmem:[%s13623_s29 + $0xd40] ss:$16 sps:$4 sm:$0xff]   ;;  %v13045_v16 = vld [vmem:[%s13623_s29 + $0xd24] ss:$16 sps:$4 sm:$0xff]  }
 0x45b   : > { %7468 = vmatprep.subr.bf16.mxu0 %v12979_v41  ;;  %v13040_v41 = vld [vmem:[%s13623_s29 + $0xf40] ss:$16 sps:$4 sm:$0xff]  }
 0x45d   : > { %7508 = vmatpush1.bf16.msra.mxu1 %v12974_v15  ;;  %v13048_v15 = vld [vmem:[%s13623_s29 + $0xf24] ss:$16 sps:$4 sm:$0xff]  }
 0x45e   : > { %7509 = vmatprep.subr.bf16.mxu1 %v12982_v54  ;;  %7469 = vmatpush1.bf16.msra.mxu0 %v12977_v29  ;;  %v13043_v54 = vld [vmem:[%s13623_s29 + $0xd20] ss:$16 sps:$4 sm:$0xff]   ;;  %v13051_v29 = vld [vmem:[%s13623_s29 + $0xd04] ss:$16 sps:$4 sm:$0xff]  }
 0x45f   : > { %7470 = vmatprep.subr.bf16.mxu0 %v12985_v30  ;;  %v13054_v30 = vld [vmem:[%s13623_s29 + $0xf04] ss:$16 sps:$4 sm:$0xff]  }
 0x461   : > { %7510 = vmatpush1.bf16.msra.mxu1 %v12980_v42  ;;  %v13049_v42 = vld [vmem:[%s13623_s29 + $0xd00] ss:$16 sps:$4 sm:$0xff]  }
 0x462   : > { %7511 = vmatprep.subr.bf16.mxu1 %v12988_v55  ;;  %7471 = vmatpush1.bf16.msra.mxu0 %v12983_v8  ;;  %v13057_v55 = vld [vmem:[%s13623_s29 + $0xec] ss:$16 sps:$4 sm:$0xff]   ;;  %v13052_v8 = vld [vmem:[%s13623_s29 + $0xf00] ss:$16 sps:$4 sm:$0xff]  }
 0x463   : > { %7472 = vmatprep.subr.bf16.mxu0 %v12991_v59  ;;  %v13060_v59 = vld [vmem:[%s13623_s29 + $0x2ec] ss:$16 sps:$4 sm:$0xff]  }
 0x465   : > { %7512 = vmatpush1.bf16.msra.mxu1 %v12986_v25  ;;  %v13055_v25 = vld [vmem:[%s13623_s29 + $0xe8] ss:$16 sps:$4 sm:$0xff]  }
 0x466   : > { %7513 = vmatprep.subr.bf16.mxu1 %v12994_v31  ;;  %7473 = vmatpush1.bf16.msra.mxu0 %v12989_v0  ;;  %v15636_v31 = vpack.c.bf16 %v15335_v6, %v15335_v6  ;;  %v13063_v0 = vld [vmem:[%s13623_s29 + $0xcc] ss:$16 sps:$4 sm:$0xff]   ;;  %v13061_v6 = vld [vmem:[%s13623_s29 + $0xc8] ss:$16 sps:$4 sm:$0xff]  }
 0x467   : > { %7474 = vmatprep.subr.bf16.mxu0 %v12997_v1  ;;  %v13058_v1 = vld [vmem:[%s13623_s29 + $0x2e8] ss:$16 sps:$4 sm:$0xff]  }
 0x469   : > { %7514 = vmatpush1.bf16.msra.mxu1 %v12992_v5  ;;  %v15642_v5 = vpack.c.bf16 %v15346_v26, %v15346_v26  ;;  %v13069_v26 = vld [vmem:[%s13623_s29 + $0xac] ss:$16 sps:$4 sm:$0xff]  }
 0x46a   : > { %7515 = vmatprep.subr.bf16.mxu1 %v13000_v34  ;;  %7475 = vmatpush1.bf16.msra.mxu0 %v12995_v27  ;;  %v13066_v27 = vld [vmem:[%s13623_s29 + $0x2cc] ss:$16 sps:$4 sm:$0xff]  }
 0x46b   : > { %7476 = vmatprep.subr.bf16.mxu0 %v13003_v22 }
 0x46d   : > { %7516 = vmatpush1.bf16.msra.mxu1 %v12998_v57 }
 0x46e   : > { %7517 = vmatprep.subr.bf16.mxu1 %v13006_v53  ;;  %7477 = vmatpush1.bf16.msra.mxu0 %v13001_v13  ;;  %v13064_v13 = vld [vmem:[%s13623_s29 + $0x2c8] ss:$16 sps:$4 sm:$0xff]  }
 0x46f   : > { %7478 = vmatprep.subr.bf16.mxu0 %v13009_v56 }
 0x471   : > { %7518 = vmatpush1.bf16.msra.mxu1 %v13004_v3 }
 0x472   : > { %7519 = vmatprep.subr.bf16.mxu1 %v13012_v17  ;;  %7479 = vmatpush2.bf16.msra.mxu0 %v13007_v33  ;;  %v13067_v33 = vld [vmem:[%s13623_s29 + $0xa8] ss:$16 sps:$4 sm:$0xff]  }
 0x473   : > { %7480 = vmatprep.subr.bf16.mxu0 %v13015_v60 }
 0x475   : > { %7520 = vmatpush2.bf16.msra.mxu1 %v13010_v43 }
 0x476   : > { %7521 = vmatprep.subr.bf16.mxu1 %v13018_v32  ;;  %7481 = vmatpush2.bf16.msra.mxu0 %v13013_v63  ;;  %v13075_v32 = vld [vmem:[%s13623_s29 + $0x8c] ss:$16 sps:$4 sm:$0xff]  }
 0x477   : > { %7482 = vmatprep.subr.bf16.mxu0 %v13021_v14  ;;  %v13078_v14 = vld [vmem:[%s13623_s29 + $0x28c] ss:$16 sps:$4 sm:$0xff]  }
 0x479   : > { %7522 = vmatpush2.bf16.msra.mxu1 %v13016_v28  ;;  %v13073_v28 = vld [vmem:[%s13623_s29 + $0x88] ss:$16 sps:$4 sm:$0xff]  }
 0x47a   : > { %7523 = vmatprep.subr.bf16.mxu1 %v13024_v9  ;;  %7483 = vmatpush2.bf16.msra.mxu0 %v13019_v40  ;;  %v13081_v9 = vld [vmem:[%s13623_s29 + $0x6c] ss:$16 sps:$4 sm:$0xff]   ;;  %v13076_v40 = vld [vmem:[%s13623_s29 + $0x288] ss:$16 sps:$4 sm:$0xff]  }
 0x47b   : > { %7484 = vmatprep.subr.bf16.mxu0 %v13027_v39  ;;  %v13084_v39 = vld [vmem:[%s13623_s29 + $0x26c] ss:$16 sps:$4 sm:$0xff]  }
 0x47d   : > { %7524 = vmatpush2.bf16.msra.mxu1 %v13022_v20  ;;  %v13079_v20 = vld [vmem:[%s13623_s29 + $0x68] ss:$16 sps:$4 sm:$0xff]  }
 0x47e   : > { %7525 = vmatprep.subr.bf16.mxu1 %v13030_v49  ;;  %7485 = vmatpush2.bf16.msra.mxu0 %v13025_v24  ;;  %v13087_v49 = vld [vmem:[%s13623_s29 + $0x4c] ss:$16 sps:$4 sm:$0xff]   ;;  %v13082_v24 = vld [vmem:[%s13623_s29 + $0x268] ss:$16 sps:$4 sm:$0xff]  }
 0x47f   : > { %7486 = vmatprep.subr.bf16.mxu0 %v13033_v10  ;;  %v13090_v10 = vld [vmem:[%s13623_s29 + $0x24c] ss:$16 sps:$4 sm:$0xff]  }
 0x481   : > { %7526 = vmatpush2.bf16.msra.mxu1 %v13028_v61  ;;  %v13085_v61 = vld [vmem:[%s13623_s29 + $0x48] ss:$16 sps:$4 sm:$0xff]  }
 0x482   : > { %7527 = vmatprep.subr.bf16.mxu1 %v13036_v35  ;;  %7487 = vmatpush2.bf16.msra.mxu0 %v13031_v36  ;;  %v13093_v35 = vld [vmem:[%s13623_s29 + $0x2c] ss:$16 sps:$4 sm:$0xff]   ;;  %v13088_v36 = vld [vmem:[%s13623_s29 + $0x248] ss:$16 sps:$4 sm:$0xff]  }
 0x483   : > { %7488 = vmatprep.subr.bf16.mxu0 %v13039_v62  ;;  %v13096_v62 = vld [vmem:[%s13623_s29 + $0x22c] ss:$16 sps:$4 sm:$0xff]  }
 0x485   : > { %7528 = vmatpush2.bf16.msra.mxu1 %v13034_v50  ;;  %v13091_v50 = vld [vmem:[%s13623_s29 + $0x28] ss:$16 sps:$4 sm:$0xff]  }
 0x486   : > { %7529 = vmatprep.subr.bf16.mxu1 %v13042_v58  ;;  %7489 = vmatpush2.bf16.msra.mxu0 %v13037_v19  ;;  %v13099_v58 = vld [vmem:[%s13623_s29 + $0xc] ss:$16 sps:$4 sm:$0xff]   ;;  %v13094_v19 = vld [vmem:[%s13623_s29 + $0x228] ss:$16 sps:$4 sm:$0xff]  }
 0x487   : > { %7490 = vmatprep.subr.bf16.mxu0 %v13045_v16  ;;  %v13102_v16 = vld [vmem:[%s13623_s29 + $0x20c] ss:$16 sps:$4 sm:$0xff]  }
 0x489   : > { %7530 = vmatpush2.bf16.msra.mxu1 %v13040_v41  ;;  %v13097_v41 = vld [vmem:[%s13623_s29 + $0x8] ss:$16 sps:$4 sm:$0xff]  }
 0x48a   : > { %7531 = vmatprep.subr.bf16.mxu1 %v13048_v15  ;;  %7491 = vmatpush2.bf16.msra.mxu0 %v13043_v54  ;;  %v13105_v15 = vld [vmem:[%s13623_s29 + $0x1ec] ss:$16 sps:$4 sm:$0xff]   ;;  %v13100_v54 = vld [vmem:[%s13623_s29 + $0x208] ss:$16 sps:$4 sm:$0xff]  }
 0x48b   : > { %7492 = vmatprep.subr.bf16.mxu0 %v13051_v29  ;;  %v13108_v29 = vld [vmem:[%s13623_s29 + $0x3ec] ss:$16 sps:$4 sm:$0xff]  }
 0x48d   : > { %7532 = vmatpush2.bf16.msra.mxu1 %v13046_v11  ;;  %v13103_v11 = vld [vmem:[%s13623_s29 + $0x1e8] ss:$16 sps:$4 sm:$0xff]  }
 0x48e   : > { %7533 = vmatprep.subr.bf16.mxu1 %v13054_v30  ;;  %7493 = vmatpush2.bf16.msra.mxu0 %v13049_v42  ;;  %v13111_v30 = vld [vmem:[%s13623_s29 + $0x1cc] ss:$16 sps:$4 sm:$0xff]   ;;  %v13106_v42 = vld [vmem:[%s13623_s29 + $0x3e8] ss:$16 sps:$4 sm:$0xff]  }
 0x48f   : > { %7544 = vmatprep.subr.bf16.mxu0 %v13057_v55  ;;  %v13114_v55 = vld [vmem:[%s13623_s29 + $0x3cc] ss:$16 sps:$4 sm:$0xff]  }
 0x491   : > { %7534 = vmatpush2.bf16.msra.mxu1 %v13052_v8  ;;  %7495 = vmatmul.mubr.bf16.vlgmr.msra.gmra.mxu0 %v15636_v31  ;;  %v7250_v34 = vpop.f32.mrf.mxu0  ;;  %v13109_v8 = vld [vmem:[%s13623_s29 + $0x1c8] ss:$16 sps:$4 sm:$0xff]  }
 0x492   : > { %7585 = vmatprep.subr.bf16.mxu1 %v13060_v59  ;;  %7545 = vmatpush1.bf16.msra.mxu0 %v13055_v25  ;;  %v13117_v59 = vld [vmem:[%s13623_s29 + $0x1ac] ss:$16 sps:$4 sm:$0xff]   ;;  %v13112_v25 = vld [vmem:[%s13623_s29 + $0x3c8] ss:$16 sps:$4 sm:$0xff]  }
 0x493   : > { %7576 = vmatprep.mubr.bf16.mxu0 %v15100_v45  ;;  %v7252_v22 = vpop.f32.mrf.mxu0  ;;  %7546 = vmatprep.subr.bf16.mxu0 %v13063_v0  ;;  %v13072_v45 = vld [vmem:[%s13623_s29 + $0x2ac] ss:$16 sps:$4 sm:$0xff]  }
 0x494   : > { %7536 = vmatmul.mubr.bf16.vlgmr.msra.gmra.mxu1 %v15642_v5  ;;  %v7291_v57 = vpop.f32.mrf.mxu1  ;;  %v13120_v0 = vld [vmem:[%s13623_s29 + $0x3ac] ss:$16 sps:$4 sm:$0xff]  }
 0x495   : > { %v15650_v53 = vadd.f32 %v7291_v57, %v7250_v34  ;;  %7586 = vmatpush1.bf16.msra.mxu1 %v13058_v1  ;;  %7617 = vmatprep.mubr.bf16.mxu1 %v15122_v44  ;;  %v7254_v56 = vpop.f32.mrf.mxu0  ;;  %v13070_v44 = vld [vmem:[%s13623_s29 + $0x2a8] ss:$16 sps:$4 sm:$0xff]   ;;  %v13123_v34 = vld [vmem:[%s13623_s29 + $0x18c] ss:$16 sps:$4 sm:$0xff]  }
 0x496   : > { %v7293_v3 = vpop.f32.mrf.mxu1  ;;  %7587 = vmatprep.subr.bf16.mxu1 %v13066_v27  ;;  %7547 = vmatpush1.bf16.msra.mxu0 %v13061_v6  ;;  %v13115_v1 = vld [vmem:[%s13623_s29 + $0x1a8] ss:$16 sps:$4 sm:$0xff]   ;;  %v13126_v6 = vld [vmem:[%s13623_s29 + $0x38c] ss:$16 sps:$4 sm:$0xff]  }
 0x497   : > { %v15655_v17 = vadd.f32 %v7293_v3, %v7252_v22  ;;  %v7255_v60 = vpop.f32.mrf.mxu0  ;;  %7548 = vmatprep.subr.bf16.mxu0 %v13069_v26  ;;  %v13118_v27 = vld [vmem:[%s13623_s29 + $0x3a8] ss:$16 sps:$4 sm:$0xff]   ;;  %v13129_v57 = vld [vmem:[%s13623_s29 + $0x16c] ss:$16 sps:$4 sm:$0xff]  }
 0x498   : > { %v7295_v43 = vpop.f32.mrf.mxu1  ;;  %v13121_v22 = vld [vmem:[%s13623_s29 + $0x188] ss:$16 sps:$4 sm:$0xff]   ;;  %v13135_v3 = vld [vmem:[%s13623_s29 + $0x14c] ss:$16 sps:$4 sm:$0xff]  }
 0x499   : > { %7588 = vmatpush1.bf16.msra.mxu1 %v13064_v13  ;;  %v13124_v26 = vld [vmem:[%s13623_s29 + $0x388] ss:$16 sps:$4 sm:$0xff]   ;;  %v13132_v13 = vld [vmem:[%s13623_s29 + $0x36c] ss:$16 sps:$4 sm:$0xff]  }
 0x49a   : > { %v7296_v63 = vpop.f32.mrf.mxu1  ;;  %7589 = vmatprep.subr.bf16.mxu1 %v13072_v45  ;;  %7549 = vmatpush1.bf16.msra.mxu0 %v13067_v33  ;;  %v13127_v56 = vld [vmem:[%s13623_s29 + $0x168] ss:$16 sps:$4 sm:$0xff]   ;;  %v13138_v33 = vld [vmem:[%s13623_s29 + $0x34c] ss:$16 sps:$4 sm:$0xff]  }
 0x49b   : > { %7550 = vmatprep.subr.bf16.mxu0 %v13075_v32  ;;  %v13130_v45 = vld [vmem:[%s13623_s29 + $0x368] ss:$16 sps:$4 sm:$0xff]   ;;  %v13141_v43 = vld [vmem:[%s13623_s29 + $0x12c] ss:$16 sps:$4 sm:$0xff]  }
 0x49c   : > { %v13133_v60 = vld [vmem:[%s13623_s29 + $0x148] ss:$16 sps:$4 sm:$0xff]  }
 0x49d   : > { %7590 = vmatpush1.bf16.msra.mxu1 %v13070_v44  ;;  %v13136_v32 = vld [vmem:[%s13623_s29 + $0x348] ss:$16 sps:$4 sm:$0xff]   ;;  %v13144_v44 = vld [vmem:[%s13623_s29 + $0x32c] ss:$16 sps:$4 sm:$0xff]  }
 0x49e   : > { %7591 = vmatprep.subr.bf16.mxu1 %v13078_v14  ;;  %7551 = vmatpush1.bf16.msra.mxu0 %v13073_v28  ;;  %v13139_v63 = vld [vmem:[%s13623_s29 + $0x128] ss:$16 sps:$4 sm:$0xff]   ;;  %v13147_v14 = vld [vmem:[%s13623_s29 + $0x10c] ss:$16 sps:$4 sm:$0xff]  }
 0x49f   : > { %7552 = vmatprep.subr.bf16.mxu0 %v13081_v9  ;;  %v13142_v28 = vld [vmem:[%s13623_s29 + $0x328] ss:$16 sps:$4 sm:$0xff]   ;;  %v13150_v9 = vld [vmem:[%s13623_s29 + $0x30c] ss:$16 sps:$4 sm:$0xff]  }
 0x4a1   : > { %7592 = vmatpush1.bf16.msra.mxu1 %v13076_v40  ;;  %v13145_v40 = vld [vmem:[%s13623_s29 + $0x108] ss:$16 sps:$4 sm:$0xff]  }
 0x4a2   : > { %7593 = vmatprep.subr.bf16.mxu1 %v13084_v39  ;;  %7553 = vmatpush1.bf16.msra.mxu0 %v13079_v20  ;;  %v13153_v39 = vld [vmem:[%s13623_s29 + $0x4ec] ss:$16 sps:$4 sm:$0xff]   ;;  %v13148_v20 = vld [vmem:[%s13623_s29 + $0x308] ss:$16 sps:$4 sm:$0xff]  }
 0x4a3   : > { %7554 = vmatprep.subr.bf16.mxu0 %v13087_v49  ;;  %v13156_v49 = vld [vmem:[%s13623_s29 + $0x6ec] ss:$16 sps:$4 sm:$0xff]  }
 0x4a5   : > { %7594 = vmatpush1.bf16.msra.mxu1 %v13082_v24  ;;  %v13151_v24 = vld [vmem:[%s13623_s29 + $0x4e8] ss:$16 sps:$4 sm:$0xff]  }
 0x4a6   : > { %7595 = vmatprep.subr.bf16.mxu1 %v13090_v10  ;;  %7555 = vmatpush1.bf16.msra.mxu0 %v13085_v61  ;;  %v13159_v10 = vld [vmem:[%s13623_s29 + $0x4cc] ss:$16 sps:$4 sm:$0xff]   ;;  %v13154_v61 = vld [vmem:[%s13623_s29 + $0x6e8] ss:$16 sps:$4 sm:$0xff]  }
 0x4a7   : > { %7556 = vmatprep.subr.bf16.mxu0 %v13093_v35 }
 0x4a9   : > { %7596 = vmatpush1.bf16.msra.mxu1 %v13088_v36  ;;  %v13162_v36 = vld [vmem:[%s13623_s29 + $0x6cc] ss:$16 sps:$4 sm:$0xff]  }
 0x4aa   : > { %7597 = vmatprep.subr.bf16.mxu1 %v13096_v62  ;;  %7557 = vmatpush1.bf16.msra.mxu0 %v13091_v50  ;;  %v13157_v50 = vld [vmem:[%s13623_s29 + $0x4c8] ss:$16 sps:$4 sm:$0xff]  }
 0x4ab   : > { %7558 = vmatprep.subr.bf16.mxu0 %v13099_v58 }
 0x4ad   : > { %7598 = vmatpush1.bf16.msra.mxu1 %v13094_v19 }
 0x4ae   : > { %7599 = vmatprep.subr.bf16.mxu1 %v13102_v16  ;;  %7559 = vmatpush1.bf16.msra.mxu0 %v13097_v41  ;;  %v13165_v16 = vld [vmem:[%s13623_s29 + $0x4ac] ss:$16 sps:$4 sm:$0xff]  }
 0x4af   : > { %7560 = vmatprep.subr.bf16.mxu0 %v13105_v15 }
 0x4b1   : > { %7600 = vmatpush1.bf16.msra.mxu1 %v13100_v54  ;;  %v13168_v54 = vld [vmem:[%s13623_s29 + $0x6ac] ss:$16 sps:$4 sm:$0xff]  }
 0x4b2   : > { %7601 = vmatprep.subr.bf16.mxu1 %v13108_v29  ;;  %7561 = vmatpush2.bf16.msra.mxu0 %v13103_v11  ;;  %v13163_v29 = vld [vmem:[%s13623_s29 + $0x4a8] ss:$16 sps:$4 sm:$0xff]  }
 0x4b3   : > { %7562 = vmatprep.subr.bf16.mxu0 %v13111_v30  ;;  %v13171_v30 = vld [vmem:[%s13623_s29 + $0x48c] ss:$16 sps:$4 sm:$0xff]  }
 0x4b5   : > { %7602 = vmatpush2.bf16.msra.mxu1 %v13106_v42 }
 0x4b6   : > { %7603 = vmatprep.subr.bf16.mxu1 %v13114_v55  ;;  %7563 = vmatpush2.bf16.msra.mxu0 %v13109_v8  ;;  %v13174_v55 = vld [vmem:[%s13623_s29 + $0x68c] ss:$16 sps:$4 sm:$0xff]   ;;  %v13169_v8 = vld [vmem:[%s13623_s29 + $0x488] ss:$16 sps:$4 sm:$0xff]  }
 0x4b7   : > { %7564 = vmatprep.subr.bf16.mxu0 %v13117_v59  ;;  %v13177_v59 = vld [vmem:[%s13623_s29 + $0x46c] ss:$16 sps:$4 sm:$0xff]  }
 0x4b9   : > { %7604 = vmatpush2.bf16.msra.mxu1 %v13112_v25  ;;  %v13172_v25 = vld [vmem:[%s13623_s29 + $0x688] ss:$16 sps:$4 sm:$0xff]  }
 0x4ba   : > { %7605 = vmatprep.subr.bf16.mxu1 %v13120_v0  ;;  %7565 = vmatpush2.bf16.msra.mxu0 %v13115_v1  ;;  %v13180_v0 = vld [vmem:[%s13623_s29 + $0x66c] ss:$16 sps:$4 sm:$0xff]   ;;  %v13175_v1 = vld [vmem:[%s13623_s29 + $0x468] ss:$16 sps:$4 sm:$0xff]  }
 0x4bb   : > { %7566 = vmatprep.subr.bf16.mxu0 %v13123_v34  ;;  %v13183_v34 = vld [vmem:[%s13623_s29 + $0x44c] ss:$16 sps:$4 sm:$0xff]  }
 0x4bd   : > { %7606 = vmatpush2.bf16.msra.mxu1 %v13118_v27  ;;  %v13178_v27 = vld [vmem:[%s13623_s29 + $0x668] ss:$16 sps:$4 sm:$0xff]  }
 0x4be   : > { %7607 = vmatprep.subr.bf16.mxu1 %v13126_v6  ;;  %7567 = vmatpush2.bf16.msra.mxu0 %v13121_v22  ;;  %v13186_v6 = vld [vmem:[%s13623_s29 + $0x64c] ss:$16 sps:$4 sm:$0xff]   ;;  %v13181_v22 = vld [vmem:[%s13623_s29 + $0x448] ss:$16 sps:$4 sm:$0xff]  }
 0x4bf   : > { %7568 = vmatprep.subr.bf16.mxu0 %v13129_v57  ;;  %v13189_v57 = vld [vmem:[%s13623_s29 + $0x42c] ss:$16 sps:$4 sm:$0xff]  }
 0x4c1   : > { %7608 = vmatpush2.bf16.msra.mxu1 %v13124_v26  ;;  %v13184_v26 = vld [vmem:[%s13623_s29 + $0x648] ss:$16 sps:$4 sm:$0xff]  }
 0x4c2   : > { %7609 = vmatprep.subr.bf16.mxu1 %v13132_v13  ;;  %7569 = vmatpush2.bf16.msra.mxu0 %v13127_v56  ;;  %v13192_v13 = vld [vmem:[%s13623_s29 + $0x62c] ss:$16 sps:$4 sm:$0xff]   ;;  %v13187_v56 = vld [vmem:[%s13623_s29 + $0x428] ss:$16 sps:$4 sm:$0xff]  }
 0x4c3   : > { %7570 = vmatprep.subr.bf16.mxu0 %v13135_v3  ;;  %v13195_v3 = vld [vmem:[%s13623_s29 + $0x40c] ss:$16 sps:$4 sm:$0xff]  }
 0x4c5   : > { %7610 = vmatpush2.bf16.msra.mxu1 %v13130_v45  ;;  %v13190_v45 = vld [vmem:[%s13623_s29 + $0x628] ss:$16 sps:$4 sm:$0xff]  }
 0x4c6   : > { %7611 = vmatprep.subr.bf16.mxu1 %v13138_v33  ;;  %7571 = vmatpush2.bf16.msra.mxu0 %v13133_v60  ;;  %v13198_v33 = vld [vmem:[%s13623_s29 + $0x60c] ss:$16 sps:$4 sm:$0xff]   ;;  %v13193_v60 = vld [vmem:[%s13623_s29 + $0x408] ss:$16 sps:$4 sm:$0xff]  }
 0x4c7   : > { %7572 = vmatprep.subr.bf16.mxu0 %v13141_v43  ;;  %v13201_v43 = vld [vmem:[%s13623_s29 + $0x5ec] ss:$16 sps:$4 sm:$0xff]  }
 0x4c9   : > { %7612 = vmatpush2.bf16.msra.mxu1 %v13136_v32  ;;  %v13196_v32 = vld [vmem:[%s13623_s29 + $0x608] ss:$16 sps:$4 sm:$0xff]  }
 0x4ca   : > { %7613 = vmatprep.subr.bf16.mxu1 %v13144_v44  ;;  %7573 = vmatpush2.bf16.msra.mxu0 %v13139_v63  ;;  %v13204_v44 = vld [vmem:[%s13623_s29 + $0x7ec] ss:$16 sps:$4 sm:$0xff]   ;;  %v13199_v63 = vld [vmem:[%s13623_s29 + $0x5e8] ss:$16 sps:$4 sm:$0xff]  }
 0x4cb   : > { %7574 = vmatprep.subr.bf16.mxu0 %v13147_v14  ;;  %v13207_v14 = vld [vmem:[%s13623_s29 + $0x5cc] ss:$16 sps:$4 sm:$0xff]  }
 0x4cd   : > { %7614 = vmatpush2.bf16.msra.mxu1 %v13142_v28  ;;  %v13202_v28 = vld [vmem:[%s13623_s29 + $0x7e8] ss:$16 sps:$4 sm:$0xff]  }
 0x4ce   : > { %7615 = vmatprep.subr.bf16.mxu1 %v13150_v9  ;;  %7575 = vmatpush2.bf16.msra.mxu0 %v13145_v40  ;;  %v13210_v9 = vld [vmem:[%s13623_s29 + $0x7cc] ss:$16 sps:$4 sm:$0xff]   ;;  %v13205_v40 = vld [vmem:[%s13623_s29 + $0x5c8] ss:$16 sps:$4 sm:$0xff]  }
 0x4cf   : > { %7626 = vmatprep.subr.bf16.mxu0 %v13153_v39  ;;  %v13213_v39 = vld [vmem:[%s13623_s29 + $0x5ac] ss:$16 sps:$4 sm:$0xff]  }
 0x4d1   : > { %7616 = vmatpush2.bf16.msra.mxu1 %v13148_v20  ;;  %v7332_v35 = vpop.f32.mrf.mxu0  ;;  %7577 = vmatmul.mubr.bf16.vlgmr.msra.gmra.mxu0 %v15119_v7  ;;  %v13208_v20 = vld [vmem:[%s13623_s29 + $0x7c8] ss:$16 sps:$4 sm:$0xff]  }
 0x4d2   : > { %7667 = vmatprep.subr.bf16.mxu1 %v13156_v49  ;;  %v7333_v62 = vadd.f32 %v7332_v35, %v15650_v53  ;;  %7627 = vmatpush1.bf16.msra.mxu0 %v13151_v24  ;;  %v13160_v53 = vld [vmem:[%s13623_s29 + $0x6c8] ss:$16 sps:$4 sm:$0xff]   ;;  %v13216_v49 = vld [vmem:[%s13623_s29 + $0x7ac] ss:$16 sps:$4 sm:$0xff]  }
 0x4d3   : > { %7658 = vmatprep.mubr.bf16.mxu0 %v15193_v12  ;;  %v7334_v58 = vpop.f32.mrf.mxu0  ;;  %7628 = vmatprep.subr.bf16.mxu0 %v13159_v10  ;;  %v13211_v24 = vld [vmem:[%s13623_s29 + $0x5a8] ss:$16 sps:$4 sm:$0xff]   ;;  %v13219_v10 = vld [vmem:[%s13623_s29 + $0x58c] ss:$16 sps:$4 sm:$0xff]  }
 0x4d4   : > { %v7373_v19 = vpop.f32.mrf.mxu1  ;;  %7618 = vmatmul.mubr.bf16.vlgmr.msra.gmra.mxu1 %v15132_v46  ;;  %v7335_v7 = vadd.f32 %v7334_v58, %v15655_v17  ;;  %v13222_v35 = vld [vmem:[%s13623_s29 + $0x78c] ss:$16 sps:$4 sm:$0xff]  }
 0x4d5   : > { %v15724_v41 = vadd.f32 %v7373_v19, %v7333_v62  ;;  %7668 = vmatpush1.bf16.msra.mxu1 %v13154_v61  ;;  %7699 = vmatprep.mubr.bf16.mxu1 %v15215_v23  ;;  %v7336_v12 = vpop.f32.mrf.mxu0  ;;  %v13166_v23 = vld [vmem:[%s13623_s29 + $0x6a8] ss:$16 sps:$4 sm:$0xff]   ;;  %v13225_v62 = vld [vmem:[%s13623_s29 + $0x56c] ss:$16 sps:$4 sm:$0xff]  }
 0x4d6   : > { %v7375_v15 = vpop.f32.mrf.mxu1  ;;  %7669 = vmatprep.subr.bf16.mxu1 %v13162_v36  ;;  %7629 = vmatpush1.bf16.msra.mxu0 %v13157_v50  ;;  %v13214_v61 = vld [vmem:[%s13623_s29 + $0x7a8] ss:$16 sps:$4 sm:$0xff]   ;;  %v13228_v58 = vld [vmem:[%s13623_s29 + $0x76c] ss:$16 sps:$4 sm:$0xff]  }
 0x4d7   : > { %v15729_v46 = vadd.f32 %v7375_v15, %v7335_v7  ;;  %v7337_v17 = vpop.f32.mrf.mxu0  ;;  %7630 = vmatprep.subr.bf16.mxu0 %v13165_v16  ;;  %v13217_v36 = vld [vmem:[%s13623_s29 + $0x588] ss:$16 sps:$4 sm:$0xff]   ;;  %v13231_v16 = vld [vmem:[%s13623_s29 + $0x54c] ss:$16 sps:$4 sm:$0xff]  }
 0x4d8   : > { %v7377_v11 = vpop.f32.mrf.mxu1  ;;  %v13220_v50 = vld [vmem:[%s13623_s29 + $0x788] ss:$16 sps:$4 sm:$0xff]   ;;  %v13237_v15 = vld [vmem:[%s13623_s29 + $0x52c] ss:$16 sps:$4 sm:$0xff]  }
 0x4d9   : > { %7670 = vmatpush1.bf16.msra.mxu1 %v13160_v53  ;;  %v13223_v19 = vld [vmem:[%s13623_s29 + $0x568] ss:$16 sps:$4 sm:$0xff]   ;;  %v13234_v53 = vld [vmem:[%s13623_s29 + $0x74c] ss:$16 sps:$4 sm:$0xff]  }
 0x4da   : > { %v7378_v42 = vpop.f32.mrf.mxu1  ;;  %7671 = vmatprep.subr.bf16.mxu1 %v13168_v54  ;;  %7631 = vmatpush1.bf16.msra.mxu0 %v13163_v29  ;;  %v13226_v7 = vld [vmem:[%s13623_s29 + $0x768] ss:$16 sps:$4 sm:$0xff]   ;;  %v13240_v29 = vld [vmem:[%s13623_s29 + $0x72c] ss:$16 sps:$4 sm:$0xff]  }
 0x4db   : > { %7632 = vmatprep.subr.bf16.mxu0 %v13171_v30  ;;  %v13229_v12 = vld [vmem:[%s13623_s29 + $0x548] ss:$16 sps:$4 sm:$0xff]   ;;  %v13243_v11 = vld [vmem:[%s13623_s29 + $0x50c] ss:$16 sps:$4 sm:$0xff]  }
 0x4dc   : > { %v13232_v54 = vld [vmem:[%s13623_s29 + $0x748] ss:$16 sps:$4 sm:$0xff]  }
 0x4dd   : > { %7672 = vmatpush1.bf16.msra.mxu1 %v13166_v23  ;;  %v13235_v17 = vld [vmem:[%s13623_s29 + $0x528] ss:$16 sps:$4 sm:$0xff]   ;;  %v13246_v23 = vld [vmem:[%s13623_s29 + $0x70c] ss:$16 sps:$4 sm:$0xff]  }
 0x4de   : > { %7673 = vmatprep.subr.bf16.mxu1 %v13174_v55  ;;  %7633 = vmatpush1.bf16.msra.mxu0 %v13169_v8  ;;  %v13238_v30 = vld [vmem:[%s13623_s29 + $0x728] ss:$16 sps:$4 sm:$0xff]   ;;  %v13249_v55 = vld [vmem:[%s13623_s29 + $0x8ec] ss:$16 sps:$4 sm:$0xff]  }
 0x4df   : > { %7634 = vmatprep.subr.bf16.mxu0 %v13177_v59  ;;  %v13241_v42 = vld [vmem:[%s13623_s29 + $0x508] ss:$16 sps:$4 sm:$0xff]   ;;  %v13252_v59 = vld [vmem:[%s13623_s29 + $0xaec] ss:$16 sps:$4 sm:$0xff]  }
 0x4e0   : > { %v13244_v8 = vld [vmem:[%s13623_s29 + $0x708] ss:$16 sps:$4 sm:$0xff]  }
 0x4e1   : > { %7674 = vmatpush1.bf16.msra.mxu1 %v13172_v25  ;;  %v13247_v25 = vld [vmem:[%s13623_s29 + $0x8e8] ss:$16 sps:$4 sm:$0xff]  }
 0x4e2   : > { %7675 = vmatprep.subr.bf16.mxu1 %v13180_v0  ;;  %7635 = vmatpush1.bf16.msra.mxu0 %v13175_v1  ;;  %v13255_v0 = vld [vmem:[%s13623_s29 + $0x8cc] ss:$16 sps:$4 sm:$0xff]   ;;  %v13250_v1 = vld [vmem:[%s13623_s29 + $0xae8] ss:$16 sps:$4 sm:$0xff]  }
 0x4e3   : > { %7636 = vmatprep.subr.bf16.mxu0 %v13183_v34 }
 0x4e5   : > { %7676 = vmatpush1.bf16.msra.mxu1 %v13178_v27  ;;  %v13258_v27 = vld [vmem:[%s13623_s29 + $0xacc] ss:$16 sps:$4 sm:$0xff]  }
 0x4e6   : > { %7677 = vmatprep.subr.bf16.mxu1 %v13186_v6  ;;  %7637 = vmatpush1.bf16.msra.mxu0 %v13181_v22  ;;  %v13253_v6 = vld [vmem:[%s13623_s29 + $0x8c8] ss:$16 sps:$4 sm:$0xff]  }
 0x4e7   : > { %7638 = vmatprep.subr.bf16.mxu0 %v13189_v57 }
 0x4e9   : > { %7678 = vmatpush1.bf16.msra.mxu1 %v13184_v26  ;;  %v13261_v26 = vld [vmem:[%s13623_s29 + $0x8ac] ss:$16 sps:$4 sm:$0xff]  }
 0x4ea   : > { %7679 = vmatprep.subr.bf16.mxu1 %v13192_v13  ;;  %7639 = vmatpush1.bf16.msra.mxu0 %v13187_v56 }
 0x4eb   : > { %7640 = vmatprep.subr.bf16.mxu0 %v13195_v3  ;;  %v13259_v3 = vld [vmem:[%s13623_s29 + $0x8a8] ss:$16 sps:$4 sm:$0xff]  }
 0x4ed   : > { %7680 = vmatpush1.bf16.msra.mxu1 %v13190_v45 }
 0x4ee   : > { %7681 = vmatprep.subr.bf16.mxu1 %v13198_v33  ;;  %7641 = vmatpush1.bf16.msra.mxu0 %v13193_v60  ;;  %v13267_v33 = vld [vmem:[%s13623_s29 + $0x88c] ss:$16 sps:$4 sm:$0xff]  }
 0x4ef   : > { %7642 = vmatprep.subr.bf16.mxu0 %v13201_v43  ;;  %v13270_v43 = vld [vmem:[%s13623_s29 + $0xa8c] ss:$16 sps:$4 sm:$0xff]  }
 0x4f1   : > { %7682 = vmatpush1.bf16.msra.mxu1 %v13196_v32  ;;  %v13265_v32 = vld [vmem:[%s13623_s29 + $0x888] ss:$16 sps:$4 sm:$0xff]  }
 0x4f2   : > { %7683 = vmatprep.subr.bf16.mxu1 %v13204_v44  ;;  %7643 = vmatpush2.bf16.msra.mxu0 %v13199_v63  ;;  %v13273_v44 = vld [vmem:[%s13623_s29 + $0x86c] ss:$16 sps:$4 sm:$0xff]   ;;  %v13268_v63 = vld [vmem:[%s13623_s29 + $0xa88] ss:$16 sps:$4 sm:$0xff]  }
 0x4f3   : > { %7644 = vmatprep.subr.bf16.mxu0 %v13207_v14  ;;  %v13276_v14 = vld [vmem:[%s13623_s29 + $0xa6c] ss:$16 sps:$4 sm:$0xff]  }
 0x4f5   : > { %7684 = vmatpush2.bf16.msra.mxu1 %v13202_v28  ;;  %v13271_v28 = vld [vmem:[%s13623_s29 + $0x868] ss:$16 sps:$4 sm:$0xff]  }
 0x4f6   : > { %7685 = vmatprep.subr.bf16.mxu1 %v13210_v9  ;;  %7645 = vmatpush2.bf16.msra.mxu0 %v13205_v40  ;;  %v13279_v9 = vld [vmem:[%s13623_s29 + $0x84c] ss:$16 sps:$4 sm:$0xff]   ;;  %v13274_v40 = vld [vmem:[%s13623_s29 + $0xa68] ss:$16 sps:$4 sm:$0xff]  }
 0x4f7   : > { %7646 = vmatprep.subr.bf16.mxu0 %v13213_v39  ;;  %v13282_v39 = vld [vmem:[%s13623_s29 + $0xa4c] ss:$16 sps:$4 sm:$0xff]  }
 0x4f9   : > { %7686 = vmatpush2.bf16.msra.mxu1 %v13208_v20  ;;  %v13277_v20 = vld [vmem:[%s13623_s29 + $0x848] ss:$16 sps:$4 sm:$0xff]  }
 0x4fa   : > { %7687 = vmatprep.subr.bf16.mxu1 %v13216_v49  ;;  %7647 = vmatpush2.bf16.msra.mxu0 %v13211_v24  ;;  %v13285_v49 = vld [vmem:[%s13623_s29 + $0x82c] ss:$16 sps:$4 sm:$0xff]   ;;  %v13280_v24 = vld [vmem:[%s13623_s29 + $0xa48] ss:$16 sps:$4 sm:$0xff]  }
 0x4fb   : > { %7648 = vmatprep.subr.bf16.mxu0 %v13219_v10  ;;  %v13288_v10 = vld [vmem:[%s13623_s29 + $0xa2c] ss:$16 sps:$4 sm:$0xff]  }
 0x4fd   : > { %7688 = vmatpush2.bf16.msra.mxu1 %v13214_v61  ;;  %v13283_v61 = vld [vmem:[%s13623_s29 + $0x828] ss:$16 sps:$4 sm:$0xff]  }
 0x4fe   : > { %7689 = vmatprep.subr.bf16.mxu1 %v13222_v35  ;;  %7649 = vmatpush2.bf16.msra.mxu0 %v13217_v36  ;;  %v13291_v35 = vld [vmem:[%s13623_s29 + $0x80c] ss:$16 sps:$4 sm:$0xff]   ;;  %v13286_v36 = vld [vmem:[%s13623_s29 + $0xa28] ss:$16 sps:$4 sm:$0xff]  }
 0x4ff   : > { %7650 = vmatprep.subr.bf16.mxu0 %v13225_v62  ;;  %v13294_v62 = vld [vmem:[%s13623_s29 + $0xa0c] ss:$16 sps:$4 sm:$0xff]  }
 0x501   : > { %7690 = vmatpush2.bf16.msra.mxu1 %v13220_v50  ;;  %v13289_v50 = vld [vmem:[%s13623_s29 + $0x808] ss:$16 sps:$4 sm:$0xff]  }
 0x502   : > { %7691 = vmatprep.subr.bf16.mxu1 %v13228_v58  ;;  %7651 = vmatpush2.bf16.msra.mxu0 %v13223_v19  ;;  %v13297_v58 = vld [vmem:[%s13623_s29 + $0x9ec] ss:$16 sps:$4 sm:$0xff]   ;;  %v13292_v19 = vld [vmem:[%s13623_s29 + $0xa08] ss:$16 sps:$4 sm:$0xff]  }
 0x503   : > { %7652 = vmatprep.subr.bf16.mxu0 %v13231_v16  ;;  %v13300_v16 = vld [vmem:[%s13623_s29 + $0xbec] ss:$16 sps:$4 sm:$0xff]  }
 0x505   : > { %7692 = vmatpush2.bf16.msra.mxu1 %v13226_v7  ;;  %v13295_v7 = vld [vmem:[%s13623_s29 + $0x9e8] ss:$16 sps:$4 sm:$0xff]  }
 0x506   : > { %7693 = vmatprep.subr.bf16.mxu1 %v13234_v53  ;;  %7653 = vmatpush2.bf16.msra.mxu0 %v13229_v12  ;;  %v13303_v53 = vld [vmem:[%s13623_s29 + $0x9cc] ss:$16 sps:$4 sm:$0xff]   ;;  %v13298_v12 = vld [vmem:[%s13623_s29 + $0xbe8] ss:$16 sps:$4 sm:$0xff]  }
 0x507   : > { %7654 = vmatprep.subr.bf16.mxu0 %v13237_v15  ;;  %v13306_v15 = vld [vmem:[%s13623_s29 + $0xbcc] ss:$16 sps:$4 sm:$0xff]  }
 0x509   : > { %7694 = vmatpush2.bf16.msra.mxu1 %v13232_v54  ;;  %v13301_v54 = vld [vmem:[%s13623_s29 + $0x9c8] ss:$16 sps:$4 sm:$0xff]  }
 0x50a   : > { %7695 = vmatprep.subr.bf16.mxu1 %v13240_v29  ;;  %7655 = vmatpush2.bf16.msra.mxu0 %v13235_v17  ;;  %v13309_v29 = vld [vmem:[%s13623_s29 + $0x9ac] ss:$16 sps:$4 sm:$0xff]   ;;  %v13304_v17 = vld [vmem:[%s13623_s29 + $0xbc8] ss:$16 sps:$4 sm:$0xff]  }
 0x50b   : > { %7656 = vmatprep.subr.bf16.mxu0 %v13243_v11  ;;  %v13312_v11 = vld [vmem:[%s13623_s29 + $0xbac] ss:$16 sps:$4 sm:$0xff]  }
 0x50d   : > { %7696 = vmatpush2.bf16.msra.mxu1 %v13238_v30  ;;  %v13307_v30 = vld [vmem:[%s13623_s29 + $0x9a8] ss:$16 sps:$4 sm:$0xff]  }
 0x50e   : > { %7697 = vmatprep.subr.bf16.mxu1 %v13246_v23  ;;  %7657 = vmatpush2.bf16.msra.mxu0 %v13241_v42  ;;  %v13315_v23 = vld [vmem:[%s13623_s29 + $0x98c] ss:$16 sps:$4 sm:$0xff]   ;;  %v13310_v42 = vld [vmem:[%s13623_s29 + $0xba8] ss:$16 sps:$4 sm:$0xff]  }
 0x50f   : > { %7708 = vmatprep.subr.bf16.mxu0 %v13249_v55  ;;  %v13318_v55 = vld [vmem:[%s13623_s29 + $0xb8c] ss:$16 sps:$4 sm:$0xff]  }
 0x511   : > { %7698 = vmatpush2.bf16.msra.mxu1 %v13244_v8  ;;  %v15790_v34 = vpop.f32.mrf.mxu0  ;;  %7659 = vmatmul.mubr.bf16.vlgmr.msra.gmra.mxu0 %v15455_v51  ;;  %v13256_v51 = vld [vmem:[%s13623_s29 + $0xac8] ss:$16 sps:$4 sm:$0xff]  }
 0x512   : > { %7749 = vmatprep.subr.bf16.mxu1 %v13252_v59  ;;  %7709 = vmatpush1.bf16.msra.mxu0 %v13247_v25  ;;  %v13313_v8 = vld [vmem:[%s13623_s29 + $0x988] ss:$16 sps:$4 sm:$0xff]   ;;  %v13321_v59 = vld [vmem:[%s13623_s29 + $0x96c] ss:$16 sps:$4 sm:$0xff]  }
 0x513   : > { %7740 = vmatprep.mubr.bf16.mxu0 %v15458_v18  ;;  %v15796_v22 = vpop.f32.mrf.mxu0  ;;  %7710 = vmatprep.subr.bf16.mxu0 %v13255_v0  ;;  %v13264_v18 = vld [vmem:[%s13623_s29 + $0xaac] ss:$16 sps:$4 sm:$0xff]   ;;  %v13316_v25 = vld [vmem:[%s13623_s29 + $0xb88] ss:$16 sps:$4 sm:$0xff]  }
 0x514   : > { %v15798_v57 = vpop.f32.mrf.mxu1  ;;  %7700 = vmatmul.mubr.bf16.vlgmr.msra.gmra.mxu1 %v15462_v21  ;;  %v13324_v0 = vld [vmem:[%s13623_s29 + $0xb6c] ss:$16 sps:$4 sm:$0xff]  }
 0x515   : > { %7750 = vmatpush1.bf16.msra.mxu1 %v13250_v1  ;;  %7781 = vmatprep.mubr.bf16.mxu1 %v15467_v4  ;;  %v7418_v13 = vpop.f32.mrf.mxu0  ;;  %v13262_v4 = vld [vmem:[%s13623_s29 + $0xaa8] ss:$16 sps:$4 sm:$0xff]  }
 0x516   : > { %v15804_v56 = vpop.f32.mrf.mxu1  ;;  %7751 = vmatprep.subr.bf16.mxu1 %v13258_v27  ;;  %7711 = vmatpush1.bf16.msra.mxu0 %v13253_v6  ;;  %v13319_v1 = vld [vmem:[%s13623_s29 + $0x968] ss:$16 sps:$4 sm:$0xff]   ;;  %v13327_v27 = vld [vmem:[%s13623_s29 + $0x94c] ss:$16 sps:$4 sm:$0xff]  }
 0x517   : > { %v7419_v45 = vpop.f32.mrf.mxu0  ;;  %7712 = vmatprep.subr.bf16.mxu0 %v13261_v26  ;;  %v13322_v6 = vld [vmem:[%s13623_s29 + $0xb68] ss:$16 sps:$4 sm:$0xff]   ;;  %v13330_v26 = vld [vmem:[%s13623_s29 + $0xb4c] ss:$16 sps:$4 sm:$0xff]  }
 0x518   : > { %v7459_v21 = vpop.f32.mrf.mxu1  ;;  %v13333_v13 = vld [vmem:[%s13623_s29 + $0x92c] ss:$16 sps:$4 sm:$0xff]   ;;  %v13331_v45 = vld [vmem:[%s13623_s29 + $0x928] ss:$16 sps:$4 sm:$0xff]  }
 0x519   : > { %7752 = vmatpush1.bf16.msra.mxu1 %v13256_v51  ;;  %v13325_v51 = vld [vmem:[%s13623_s29 + $0x948] ss:$16 sps:$4 sm:$0xff]   ;;  %v13339_v21 = vld [vmem:[%s13623_s29 + $0x90c] ss:$16 sps:$4 sm:$0xff]  }
 0x51a   : > { %v7460_v60 = vpop.f32.mrf.mxu1  ;;  %7753 = vmatprep.subr.bf16.mxu1 %v13264_v18  ;;  %7713 = vmatpush1.bf16.msra.mxu0 %v13259_v3  ;;  %v13328_v18 = vld [vmem:[%s13623_s29 + $0xb48] ss:$16 sps:$4 sm:$0xff]   ;;  %v13336_v3 = vld [vmem:[%s13623_s29 + $0xb2c] ss:$16 sps:$4 sm:$0xff]  }
 0x51b   : > { %7714 = vmatprep.subr.bf16.mxu0 %v13267_v33  ;;  %v13334_v33 = vld [vmem:[%s13623_s29 + $0xb28] ss:$16 sps:$4 sm:$0xff]  }
 0x51c   : > { %v13337_v60 = vld [vmem:[%s13623_s29 + $0x908] ss:$16 sps:$4 sm:$0xff]  }
 0x51d   : > { %7754 = vmatpush1.bf16.msra.mxu1 %v13262_v4  ;;  %v13342_v4 = vld [vmem:[%s13623_s29 + $0xb0c] ss:$16 sps:$4 sm:$0xff]  }
 0x51e   : > { %7755 = vmatprep.subr.bf16.mxu1 %v13270_v43  ;;  %7715 = vmatpush1.bf16.msra.mxu0 %v13265_v32  ;;  %v13345_v43 = vld [vmem:[%s13623_s29 + $0xcec] ss:$16 sps:$4 sm:$0xff]   ;;  %v7415_v32 = vadd.f32 %v15790_v34, %v15724_v41 }
 0x51f   : > { %7716 = vmatprep.subr.bf16.mxu0 %v13273_v44  ;;  %v13340_v44 = vld [vmem:[%s13623_s29 + $0xb08] ss:$16 sps:$4 sm:$0xff]   ;;  %v13354_v41 = vld [vmem:[%s13623_s29 + $0xecc] ss:$16 sps:$4 sm:$0xff]  }
 0x521   : > { %7756 = vmatpush1.bf16.msra.mxu1 %v13268_v63  ;;  %v13348_v63 = vld [vmem:[%s13623_s29 + $0xeec] ss:$16 sps:$4 sm:$0xff]  }
 0x522   : > { %7757 = vmatprep.subr.bf16.mxu1 %v13276_v14  ;;  %7717 = vmatpush1.bf16.msra.mxu0 %v13271_v28  ;;  %v7417_v14 = vadd.f32 %v15796_v22, %v15729_v46  ;;  %v13343_v28 = vld [vmem:[%s13623_s29 + $0xce8] ss:$16 sps:$4 sm:$0xff]  }
 0x523   : > { %7718 = vmatprep.subr.bf16.mxu0 %v13279_v9  ;;  %v13351_v9 = vld [vmem:[%s13623_s29 + $0xccc] ss:$16 sps:$4 sm:$0xff]   ;;  %v13349_v46 = vld [vmem:[%s13623_s29 + $0xcc8] ss:$16 sps:$4 sm:$0xff]  }
 0x524   : > { %v7458_v34 = vadd.f32 %v15804_v56, %v7417_v14  ;;  %v15881_v56 = vpop.permute.xlu1 %7885  ;;  %v13408_v14 = vld [vmem:[%s13623_s29 + $0xfac] ss:$16 sps:$4 sm:$0xff]  }
 0x525   : > { %7758 = vmatpush1.bf16.msra.mxu1 %v13274_v40  ;;  %v7456_v40 = vadd.f32 %v15798_v57, %v7415_v32  ;;  %v13357_v57 = vld [vmem:[%s13623_s29 + $0xcac] ss:$16 sps:$4 sm:$0xff]   ;;  %v13397_v32 = vld [vmem:[%s13623_s29 + $0xdc8] ss:$16 sps:$4 sm:$0xff]  }
 0x526   : > { %7759 = vmatprep.subr.bf16.mxu1 %v13282_v39  ;;  %7719 = vmatpush1.bf16.msra.mxu0 %v13277_v20  ;;  %v13346_v39 = vld [vmem:[%s13623_s29 + $0xee8] ss:$16 sps:$4 sm:$0xff]  }
 0x527   : > { %7720 = vmatprep.subr.bf16.mxu0 %v13285_v49 }
 0x529   : > { %7760 = vmatpush1.bf16.msra.mxu1 %v13280_v24 }
 0x52a   : > { %7761 = vmatprep.subr.bf16.mxu1 %v13288_v10  ;;  %7721 = vmatpush1.bf16.msra.mxu0 %v13283_v61  ;;  %v15878_v10 = vpop.permute.xlu0 %7875 }
 0x52b   : > { %7722 = vmatprep.subr.bf16.mxu0 %v13291_v35 }
 0x52d   : > { %7762 = vmatpush1.bf16.msra.mxu1 %v13286_v36 }
 0x52e   : > { %7763 = vmatprep.subr.bf16.mxu1 %v13294_v62  ;;  %7723 = vmatpush1.bf16.msra.mxu0 %v13289_v50 }
 0x52f   : > { %7724 = vmatprep.subr.bf16.mxu0 %v13297_v58  ;;  %v13355_v58 = vld [vmem:[%s13623_s29 + $0xca8] ss:$16 sps:$4 sm:$0xff]  }
 0x531   : > { %7764 = vmatpush1.bf16.msra.mxu1 %v13292_v19 }
 0x532   : > { %7765 = vmatprep.subr.bf16.mxu1 %v13300_v16  ;;  %7725 = vmatpush2.bf16.msra.mxu0 %v13295_v7 }
 0x533   : > { %7726 = vmatprep.subr.bf16.mxu0 %v13303_v53 }
 0x535   : > { %7766 = vmatpush2.bf16.msra.mxu1 %v13298_v12  ;;  %v13358_v12 = vld [vmem:[%s13623_s29 + $0xea8] ss:$16 sps:$4 sm:$0xff]  }
 0x536   : > { %7767 = vmatprep.subr.bf16.mxu1 %v13306_v15  ;;  %7727 = vmatpush2.bf16.msra.mxu0 %v13301_v54  ;;  %v13366_v54 = vld [vmem:[%s13623_s29 + $0xe8c] ss:$16 sps:$4 sm:$0xff]  }
 0x537   : > { %7728 = vmatprep.subr.bf16.mxu0 %v13309_v29  ;;  %v13361_v29 = vld [vmem:[%s13623_s29 + $0xc88] ss:$16 sps:$4 sm:$0xff]  }
 0x539   : > { %7768 = vmatpush2.bf16.msra.mxu1 %v13304_v17 }
 0x53a   : > { %7769 = vmatprep.subr.bf16.mxu1 %v13312_v11  ;;  %7729 = vmatpush2.bf16.msra.mxu0 %v13307_v30  ;;  %v13369_v11 = vld [vmem:[%s13623_s29 + $0xc6c] ss:$16 sps:$4 sm:$0xff]   ;;  %v13364_v30 = vld [vmem:[%s13623_s29 + $0xe88] ss:$16 sps:$4 sm:$0xff]  }
 0x53b   : > { %7730 = vmatprep.subr.bf16.mxu0 %v13315_v23  ;;  %v13372_v23 = vld [vmem:[%s13623_s29 + $0xe6c] ss:$16 sps:$4 sm:$0xff]  }
 0x53d   : > { %7770 = vmatpush2.bf16.msra.mxu1 %v13310_v42  ;;  %v13367_v42 = vld [vmem:[%s13623_s29 + $0xc68] ss:$16 sps:$4 sm:$0xff]  }
 0x53e   : > { %7771 = vmatprep.subr.bf16.mxu1 %v13318_v55  ;;  %7731 = vmatpush2.bf16.msra.mxu0 %v13313_v8  ;;  %v13375_v55 = vld [vmem:[%s13623_s29 + $0xc4c] ss:$16 sps:$4 sm:$0xff]   ;;  %v13370_v8 = vld [vmem:[%s13623_s29 + $0xe68] ss:$16 sps:$4 sm:$0xff]  }
 0x53f   : > { %7732 = vmatprep.subr.bf16.mxu0 %v13321_v59  ;;  %v13378_v59 = vld [vmem:[%s13623_s29 + $0xe4c] ss:$16 sps:$4 sm:$0xff]  }
 0x541   : > { %7772 = vmatpush2.bf16.msra.mxu1 %v13316_v25  ;;  %v13373_v25 = vld [vmem:[%s13623_s29 + $0xc48] ss:$16 sps:$4 sm:$0xff]  }
 0x542   : > { %7773 = vmatprep.subr.bf16.mxu1 %v13324_v0  ;;  %7733 = vmatpush2.bf16.msra.mxu0 %v13319_v1  ;;  %v13381_v0 = vld [vmem:[%s13623_s29 + $0xc2c] ss:$16 sps:$4 sm:$0xff]   ;;  %v13376_v1 = vld [vmem:[%s13623_s29 + $0xe48] ss:$16 sps:$4 sm:$0xff]  }
 0x543   : > { %7734 = vmatprep.subr.bf16.mxu0 %v13327_v27  ;;  %v13384_v27 = vld [vmem:[%s13623_s29 + $0xe2c] ss:$16 sps:$4 sm:$0xff]  }
 0x545   : > { %7774 = vmatpush2.bf16.msra.mxu1 %v13322_v6  ;;  %v13379_v6 = vld [vmem:[%s13623_s29 + $0xc28] ss:$16 sps:$4 sm:$0xff]  }
 0x546   : > { %7775 = vmatprep.subr.bf16.mxu1 %v13330_v26  ;;  %7735 = vmatpush2.bf16.msra.mxu0 %v13325_v51  ;;  %v13387_v26 = vld [vmem:[%s13623_s29 + $0xc0c] ss:$16 sps:$4 sm:$0xff]   ;;  %v13382_v51 = vld [vmem:[%s13623_s29 + $0xe28] ss:$16 sps:$4 sm:$0xff]  }
 0x547   : > { %7736 = vmatprep.subr.bf16.mxu0 %v13333_v13  ;;  %v13390_v13 = vld [vmem:[%s13623_s29 + $0xe0c] ss:$16 sps:$4 sm:$0xff]  }
 0x549   : > { %7776 = vmatpush2.bf16.msra.mxu1 %v13328_v18  ;;  %v13385_v18 = vld [vmem:[%s13623_s29 + $0xc08] ss:$16 sps:$4 sm:$0xff]  }
 0x54a   : > { %7777 = vmatprep.subr.bf16.mxu1 %v13336_v3  ;;  %7737 = vmatpush2.bf16.msra.mxu0 %v13331_v45  ;;  %v13393_v3 = vld [vmem:[%s13623_s29 + $0xdec] ss:$16 sps:$4 sm:$0xff]   ;;  %v13388_v45 = vld [vmem:[%s13623_s29 + $0xe08] ss:$16 sps:$4 sm:$0xff]  }
 0x54b   : > { %7738 = vmatprep.subr.bf16.mxu0 %v13339_v21  ;;  %v13396_v21 = vld [vmem:[%s13623_s29 + $0xfec] ss:$16 sps:$4 sm:$0xff]  }
 0x54d   : > { %7778 = vmatpush2.bf16.msra.mxu1 %v13334_v33  ;;  %v13391_v33 = vld [vmem:[%s13623_s29 + $0xde8] ss:$16 sps:$4 sm:$0xff]  }
 0x54e   : > { %7779 = vmatprep.subr.bf16.mxu1 %v13342_v4  ;;  %7739 = vmatpush2.bf16.msra.mxu0 %v13337_v60  ;;  %v13399_v4 = vld [vmem:[%s13623_s29 + $0xdcc] ss:$16 sps:$4 sm:$0xff]   ;;  %v13394_v60 = vld [vmem:[%s13623_s29 + $0xfe8] ss:$16 sps:$4 sm:$0xff]  }
 0x54f   : > { %7790 = vmatprep.subr.bf16.mxu0 %v13345_v43  ;;  %v13402_v43 = vld [vmem:[%s13623_s29 + $0xfcc] ss:$16 sps:$4 sm:$0xff]  }
 0x551   : > { %7780 = vmatpush2.bf16.msra.mxu1 %v13340_v44  ;;  %v7496_v20 = vpop.f32.mrf.mxu0  ;;  %7741 = vmatmul.mubr.bf16.vlgmr.msra.gmra.mxu0 %v15553_v37  ;;  %v13405_v44 = vld [vmem:[%s13623_s29 + $0xdac] ss:$16 sps:$4 sm:$0xff]  }
 0x552   : > { %7831 = vmatprep.subr.bf16.mxu1 %v13348_v63  ;;  %v7497_v49 = vadd.f32 %v7496_v20, %v7456_v40  ;;  %7791 = vmatpush1.bf16.msra.mxu0 %v13343_v28  ;;  %v13400_v63 = vld [vmem:[%s13623_s29 + $0xfc8] ss:$16 sps:$4 sm:$0xff]  }
 0x553   : > { %7822 = vmatprep.mubr.bf16.mxu0 %v15556_v38  ;;  %v7498_v22 = vpop.f32.mrf.mxu0  ;;  %7792 = vmatprep.subr.bf16.mxu0 %v13351_v9  ;;  %v13352_v38 = vld [vmem:[%s13623_s29 + $0xec8] ss:$16 sps:$4 sm:$0xff]   ;;  %v13411_v9 = vld [vmem:[%s13623_s29 + $0xd8c] ss:$16 sps:$4 sm:$0xff]  }
 0x554   : > { %v7537_v24 = vpop.f32.mrf.mxu1  ;;  %7782 = vmatmul.mubr.bf16.vlgmr.msra.gmra.mxu1 %v15561_v52  ;;  %v7499_v37 = vadd.f32 %v7498_v22, %v7458_v34  ;;  %v13360_v52 = vld [vmem:[%s13623_s29 + $0xeac] ss:$16 sps:$4 sm:$0xff]   ;;  %v13403_v28 = vld [vmem:[%s13623_s29 + $0xda8] ss:$16 sps:$4 sm:$0xff]  }
 0x555   : > { %v7538_v61 = vadd.f32 %v7537_v24, %v7497_v49  ;;  %7832 = vmatpush1.bf16.msra.mxu1 %v13346_v39  ;;  %7863 = vmatprep.mubr.bf16.mxu1 %v15567_v48  ;;  %v7500_v35 = vpop.f32.mrf.mxu0  ;;  %v13363_v48 = vld [vmem:[%s13623_s29 + $0xc8c] ss:$16 sps:$4 sm:$0xff]   ;;  %v13406_v40 = vld [vmem:[%s13623_s29 + $0xfa8] ss:$16 sps:$4 sm:$0xff]  }
 0x556   : > { %v7539_v36 = vpop.f32.mrf.mxu1  ;;  %7833 = vmatprep.subr.bf16.mxu1 %v13354_v41  ;;  %7793 = vmatpush1.bf16.msra.mxu0 %v13349_v46  ;;  %v13414_v39 = vld [vmem:[%s13623_s29 + $0xf8c] ss:$16 sps:$4 sm:$0xff]   ;;  %v13409_v20 = vld [vmem:[%s13623_s29 + $0xd88] ss:$16 sps:$4 sm:$0xff]  }
 0x557   : > { %v7878_v62 = vmul.f32 %v15878_v10, %v7538_v61  ;;  %v7540_v50 = vadd.f32 %v7539_v36, %v7499_v37  ;;  %v7501_v19 = vpop.f32.mrf.mxu0  ;;  %7794 = vmatprep.subr.bf16.mxu0 %v13357_v57  ;;  %v13417_v41 = vld [vmem:[%s13623_s29 + $0xd6c] ss:$16 sps:$4 sm:$0xff]   ;;  %v13412_v34 = vld [vmem:[%s13623_s29 + $0xf88] ss:$16 sps:$4 sm:$0xff]  }
 0x558   : > { %v7541_v16 = vpop.f32.mrf.mxu1  ;;  %v13420_v49 = vld [vmem:[%s13623_s29 + $0xf6c] ss:$16 sps:$4 sm:$0xff]   ;;  %v13415_v46 = vld [vmem:[%s13623_s29 + $0xd68] ss:$16 sps:$4 sm:$0xff]  }
 0x559   : > { %v7879_v7 = vmul.f32 %v15878_v10, %v7540_v50  ;;  %7834 = vmatpush1.bf16.msra.mxu1 %v13352_v38  ;;  %v15890_v53 = vadd.f32 %v15881_v56, %v7878_v62  ;;  %v13423_v22 = vld [vmem:[%s13623_s29 + $0xd4c] ss:$16 sps:$4 sm:$0xff]   ;;  %v13418_v24 = vld [vmem:[%s13623_s29 + $0xf68] ss:$16 sps:$4 sm:$0xff]  }
 0x55a   : > { %v7542_v15 = vpop.f32.mrf.mxu1  ;;  %7835 = vmatprep.subr.bf16.mxu1 %v13360_v52  ;;  %7795 = vmatpush1.bf16.msra.mxu0 %v13355_v58  ;;  %v13426_v57 = vld [vmem:[%s13623_s29 + $0xf4c] ss:$16 sps:$4 sm:$0xff]   ;;  %v13421_v37 = vld [vmem:[%s13623_s29 + $0xd48] ss:$16 sps:$4 sm:$0xff]  }
 0x55b   : > { %7892 = vrot.lane.b32.xlu0 %v15890_v53, %s16512_s1  ;;  %v15898_v17 = vadd.f32 %v15881_v56, %v7879_v7  ;;  %7796 = vmatprep.subr.bf16.mxu0 %v13363_v48  ;;  %v13429_v61 = vld [vmem:[%s13623_s29 + $0xd2c] ss:$16 sps:$4 sm:$0xff]   ;;  %v13424_v38 = vld [vmem:[%s13623_s29 + $0xf48] ss:$16 sps:$4 sm:$0xff]   ;;  %v7937_v48 = vpack.c.bf16 %v15890_v53, %v15890_v53 }
 0x55c   : > { %v13432_v35 = vld [vmem:[%s13623_s29 + $0xf2c] ss:$16 sps:$4 sm:$0xff]   ;;  %v13427_v36 = vld [vmem:[%s13623_s29 + $0xd28] ss:$16 sps:$4 sm:$0xff]  }
 0x55d   : > { %7836 = vmatpush1.bf16.msra.mxu1 %v13358_v12  ;;  %7894 = vrot.lane.b32.xlu1 %v15898_v17, %s16512_s1  ;;  %v13435_v52 = vld [vmem:[%s13623_s29 + $0xd0c] ss:$16 sps:$4 sm:$0xff]   ;;  %v13430_v62 = vld [vmem:[%s13623_s29 + $0xf28] ss:$16 sps:$4 sm:$0xff]   ;;  %v7938_v16 = vpack.c.bf16 %v15898_v17, %v15898_v17  ;;  %v7945_v12 = vsel %vm2663_vm4, %v7937_v48, 0 }
 0x55e   : > { %7837 = vmatprep.subr.bf16.mxu1 %v13366_v54  ;;  %7797 = vmatpush1.bf16.msra.mxu0 %v13361_v29  ;;  %v13438_v50 = vld [vmem:[%s13623_s29 + $0xf0c] ss:$16 sps:$4 sm:$0xff]   ;;  %v13433_v58 = vld [vmem:[%s13623_s29 + $0xd08] ss:$16 sps:$4 sm:$0xff]  }
 0x55f   : > { %7798 = vmatprep.subr.bf16.mxu0 %v13369_v11  ;;  %v13436_v19 = vld [vmem:[%s13623_s29 + $0xf08] ss:$16 sps:$4 sm:$0xff]  }
 0x561   : > { %7838 = vmatpush1.bf16.msra.mxu1 %v13364_v30 }
 0x562   : > { %7839 = vmatprep.subr.bf16.mxu1 %v13372_v23  ;;  %7799 = vmatpush1.bf16.msra.mxu0 %v13367_v42 }
 0x563   : > { %7800 = vmatprep.subr.bf16.mxu0 %v13375_v55 }
 0x565   : > { %7840 = vmatpush1.bf16.msra.mxu1 %v13370_v8 }
 0x566   : > { %7841 = vmatprep.subr.bf16.mxu1 %v13378_v59  ;;  %7801 = vmatpush1.bf16.msra.mxu0 %v13373_v25  ;;  %v15962_v59 = vld [vmem:[%s16558_s6] sm:$0xf] }
 0x567   : > { %7802 = vmatprep.subr.bf16.mxu0 %v13381_v0 }
 0x569   : > { %7842 = vmatpush1.bf16.msra.mxu1 %v13376_v1 }
 0x56a   : > { %7843 = vmatprep.subr.bf16.mxu1 %v13384_v27  ;;  %7803 = vmatpush1.bf16.msra.mxu0 %v13379_v6 }
 0x56b   : > { %7804 = vmatprep.subr.bf16.mxu0 %v13387_v26 }
 0x56d   : > { %7844 = vmatpush1.bf16.msra.mxu1 %v13382_v51 }
 0x56e   : > { %7845 = vmatprep.subr.bf16.mxu1 %v13390_v13  ;;  %7805 = vmatpush1.bf16.msra.mxu0 %v13385_v18 }
 0x56f   : > { %7806 = vmatprep.subr.bf16.mxu0 %v13393_v3 }
 0x571   : > { %7846 = vmatpush1.bf16.msra.mxu1 %v13388_v45 }
 0x572   : > { %7847 = vmatprep.subr.bf16.mxu1 %v13396_v21  ;;  %7807 = vmatpush2.bf16.msra.mxu0 %v13391_v33 }
 0x573   : > { %7808 = vmatprep.subr.bf16.mxu0 %v13399_v4 }
 0x575   : > { %7848 = vmatpush2.bf16.msra.mxu1 %v13394_v60 }
 0x576   : > { %7849 = vmatprep.subr.bf16.mxu1 %v13402_v43  ;;  %7809 = vmatpush2.bf16.msra.mxu0 %v13397_v32 }
 0x577   : > { %7810 = vmatprep.subr.bf16.mxu0 %v13405_v44  ;;  %v11974_v44 = vld [vmem:[%s16556_s14 + $0x4] sm:$0xf] }
 0x579   : > { %7850 = vmatpush2.bf16.msra.mxu1 %v13400_v63 }
 0x57a   : > { %7851 = vmatprep.subr.bf16.mxu1 %v13408_v14  ;;  %7811 = vmatpush2.bf16.msra.mxu0 %v13403_v28 }
 0x57b   : > { %7812 = vmatprep.subr.bf16.mxu0 %v13411_v9 }
 0x57d   : > { %7852 = vmatpush2.bf16.msra.mxu1 %v13406_v40 }
 0x57e   : > { %7853 = vmatprep.subr.bf16.mxu1 %v13414_v39  ;;  %7813 = vmatpush2.bf16.msra.mxu0 %v13409_v20 }
 0x57f   : > { %7814 = vmatprep.subr.bf16.mxu0 %v13417_v41 }
 0x581   : > { %7854 = vmatpush2.bf16.msra.mxu1 %v13412_v34 }
 0x582   : > { %7855 = vmatprep.subr.bf16.mxu1 %v13420_v49  ;;  %7815 = vmatpush2.bf16.msra.mxu0 %v13415_v46 }
 0x583   : > { %7816 = vmatprep.subr.bf16.mxu0 %v13423_v22 }
 0x585   : > { %7856 = vmatpush2.bf16.msra.mxu1 %v13418_v24 }
 0x586   : > { %7857 = vmatprep.subr.bf16.mxu1 %v13426_v57  ;;  %7817 = vmatpush2.bf16.msra.mxu0 %v13421_v37 }
 0x587   : > { %7818 = vmatprep.subr.bf16.mxu0 %v13429_v61 }
 0x589   : > { %7858 = vmatpush2.bf16.msra.mxu1 %v13424_v38 }
 0x58a   : > { %7859 = vmatprep.subr.bf16.mxu1 %v13432_v35  ;;  %7819 = vmatpush2.bf16.msra.mxu0 %v13427_v36 }
 0x58b   : > { %7820 = vmatprep.subr.bf16.mxu0 %v13435_v52 }
 0x58d   : > { %7860 = vmatpush2.bf16.msra.mxu1 %v13430_v62 }
 0x58e   : > { %7861 = vmatprep.subr.bf16.mxu1 %v13438_v50  ;;  %7821 = vmatpush2.bf16.msra.mxu0 %v13433_v58 }
 0x58f   : > { %11975 = vmatprep.subr.msk.bf16.mxu0 %vm2663_vm4, %v7938_v16 }
 0x591   : > { %7862 = vmatpush2.bf16.msra.mxu1 %v13436_v19  ;;  %v7578_v7 = vpop.f32.mrf.mxu0  ;;  %7823 = vmatmul.mubr.bf16.vlgmr.msra.gmra.mxu0 %v15636_v31  ;;  %v16616_v31 = vld [vmem:[#allocation28_spill] sm:$0xff] }
 0x592   : > { %7971 = vmatpush1.bf16.msra.mxu0 %v7945_v12  ;;  %7988 = vmatprep.mubr.bf16.mxu0 %v16581_v47  ;;  %v15966_v25 = vrot.slane %v15962_v59, %v16616_v31 }
 0x593   : > { %v7580_v15 = vpop.f32.mrf.mxu0 }
 0x594   : > { %v7619_v54 = vpop.f32.mrf.mxu1  ;;  %7864 = vmatmul.mubr.bf16.vlgmr.msra.gmra.mxu1 %v15642_v5 }
 0x595   : > { %v7620_v29 = vadd.f32 %v7619_v54, %v7578_v7  ;;  %8029 = vmatprep.mubr.bf16.mxu1 %v16581_v47  ;;  %v7582_v11 = vpop.f32.mrf.mxu0 }
 0x596   : > { %v7621_v30 = vpop.f32.mrf.mxu1 }
 0x597   : > { %v7622_v23 = vadd.f32 %v7621_v30, %v7580_v15  ;;  %v7583_v42 = vpop.f32.mrf.mxu0 }
 0x598   : > { %v7623_v55 = vpop.f32.mrf.mxu1 }
 0x599   : > { %11976 = vmatmul.mubr.msk.bf16.vlgmr.msra.gmra.mxu0 %vm2659_vm5, %v11974_v44  ;;  %v16619_v55 = vld [vmem:[#allocation30_spill] sm:$0xff] }
 0x59a   : > { %v7624_v8 = vpop.f32.mrf.mxu1  ;;  %8085 = vmatprep.mubr.bf16.mxu0 %v16581_v47 }
 0x59b   : > { %v16008_v8 = vrot.slane %v15962_v59, %v16619_v55 }
 0x5cd   : > { %v15968_v0 = vpop.permute.xlu0 %7892 }
 0x5cf   : > { %v15970_v1 = vpop.permute.xlu1 %7894 }
 0x5d0   : > { %v7902_v5 = vsel %vm1045_vm2, %v15968_v0, %v15970_v1 }
 0x5d1   : > { %v7927_v27 = vmul.f32 %v15966_v25, %v7902_v5  ;;  %v7660_v6 = vpop.f32.mrf.mxu0  ;;  %v16620_v5 = vld [vmem:[#allocation29_spill] sm:$0xff] }
 0x5d2   : > { %v7661_v51 = vadd.f32 %v7660_v6, %v7620_v29 }
 0x5d3   : > { %v7932_v26 = vpack.c.bf16 %v7927_v27, %v7927_v27  ;;  %v7662_v13 = vpop.f32.mrf.mxu0  ;;  %v16012_v27 = vrot.slane %v15962_v59, %v16620_v5 }
 0x5d4   : > { %v7701_v18 = vpop.f32.mrf.mxu1  ;;  %v7663_v3 = vadd.f32 %v7662_v13, %v7622_v23  ;;  %v16618_v23 = vld [vmem:[#allocation27_spill] sm:$0xff] }
 0x5d5   : > { %v7702_v45 = vadd.f32 %v7701_v18, %v7661_v51  ;;  %11979 = vmatprep.subr.msk.bf16.mxu0 %vm2663_vm4, %v7932_v26  ;;  %v7664_v21 = vpop.f32.mrf.mxu0  ;;  %v11983_v26 = vld [vmem:[%s16558_s6 + $0x8] sm:$0xf]  ;;  %s16630_s6 = smov 1  }
 0x5d6   : > { %v7703_v33 = vpop.f32.mrf.mxu1 }
 0x5d7   : > { %v7704_v4 = vadd.f32 %v7703_v33, %v7663_v3  ;;  %v7665_v60 = vpop.f32.mrf.mxu0 }
 0x5d8   : > { %v7705_v43 = vpop.f32.mrf.mxu1 }
 0x5da   : > { %v7706_v32 = vpop.f32.mrf.mxu1 }
 0x5db   : > { %v16030_v32 = vrot.slane %v11983_v26, %v16616_v31 }
 0x611   : > { %v7742_v63 = vpop.f32.mrf.mxu0 }
 0x612   : > { %v7743_v34 = vadd.f32 %v7742_v63, %v7702_v45 }
 0x613   : > { %v7744_v14 = vpop.f32.mrf.mxu0 }
 0x614   : > { %v7783_v28 = vpop.f32.mrf.mxu1  ;;  %v7745_v49 = vadd.f32 %v7744_v14, %v7704_v4  ;;  %v16027_v4 = vrot.slane %v11983_v26, %v16619_v55 }
 0x615   : > { %v7746_v9 = vpop.f32.mrf.mxu0  ;;  %v7784_v46 = vadd.f32 %v7783_v28, %v7743_v34 }
 0x616   : > { %v7785_v40 = vpop.f32.mrf.mxu1 }
 0x617   : > { %v7747_v39 = vpop.f32.mrf.mxu0  ;;  %v7786_v24 = vadd.f32 %v7785_v40, %v7745_v49  ;;  %v16042_v40 = vrot.slane %v11983_v26, %v16620_v5 }
 0x618   : > { %v7787_v20 = vpop.f32.mrf.mxu1 }
 0x619   : > { %v7930_v20 = vld [vmem:[%s16556_s14] sm:$0xf] }
 0x61a   : > { %v7788_v41 = vpop.f32.mrf.mxu1 }
 0x651   : > { %v7824_v22 = vpop.f32.mrf.mxu0 }
 0x652   : > { %v7825_v57 = vadd.f32 %v7824_v22, %v7784_v46 }
 0x653   : > { %v7826_v37 = vpop.f32.mrf.mxu0 }
 0x654   : > { %v7865_v61 = vpop.f32.mrf.mxu1  ;;  %v7827_v38 = vadd.f32 %v7826_v37, %v7786_v24 }
 0x655   : > { %v7866_v35 = vadd.f32 %v7865_v61, %v7825_v57  ;;  %v7828_v36 = vpop.f32.mrf.mxu0 }
 0x656   : > { %v7867_v52 = vpop.f32.mrf.mxu1 }
 0x657   : > { %v7880_v62 = vmul.f32 %v15878_v10, %v7866_v35  ;;  %v7868_v50 = vadd.f32 %v7867_v52, %v7827_v38  ;;  %v7829_v58 = vpop.f32.mrf.mxu0  ;;  %v11984_v52 = vld [vmem:[%s16556_s14 + $0x8] sm:$0xf]  ;;  %s13584_s14 = smov [#allocation2]  }
 0x658   : > { %v7869_v19 = vpop.f32.mrf.mxu1  ;;  %s13489_s17 = sshll.u32 %s13584_s14, 4  ;;  %s13490_s17 = int_to_ptr.vmem [resolvable:$false] %s13489_s17 }
 0x659   : > { %v7881_v16 = vmul.f32 %v15878_v10, %v7868_v50  ;;  %v7890_v48 = vadd.f32 %v15881_v56, %v7880_v62  ;;  %v8281_v10 = vld [vmem:[%s16617_s19] sm:$0xff]  ;;  %s13491_s19 = scalar_lea.vmem %s13490_s17, 128 }
 0x65a   : > { %v7870_v7 = vpop.f32.mrf.mxu1 }
 0x65b   : > { %v7891_v12 = vadd.f32 %v15881_v56, %v7881_v16  ;;  %7896 = vrot.lane.b32.xlu0 %v7890_v48, %s16512_s1  ;;  %v7939_v15 = vpack.c.bf16 %v7890_v48, %v7890_v48  ;;  %v15998_v56 = vpop.f32.mrf.mxu0 }
 0x65d   : > { %7898 = vrot.lane.b32.xlu1 %v7891_v12, %s16512_s1  ;;  %v7940_v54 = vpack.c.bf16 %v7891_v12, %v7891_v12  ;;  %v7951_v29 = vsel %vm2663_vm4, %v7939_v15, 0 }
 0x65f   : > { %11977 = vmatprep.subr.msk.bf16.mxu1 %vm2663_vm4, %v7940_v54  ;;  %8135 = vrot.lane.b32.xlu0 %v15890_v53, %s16518_s11  ;;  %v16000_v53 = vpop.f32.mrf.mxu0 }
 0x660   : > { %8012 = vmatpush1.bf16.msra.mxu1 %v7951_v29 }
 0x661   : > { %8137 = vrot.lane.b32.xlu1 %v15898_v17, %s16518_s11  ;;  %v7994_v11 = vpop.f32.mrf.mxu0  ;;  %v16004_v17 = vrot.slane %v15962_v59, %v16618_v23 }
 0x663   : > { %8139 = vrot.lane.b32.xlu0 %v7890_v48, %s16518_s11  ;;  %11978 = vmatmul.mubr.msk.bf16.vlgmr.msra.gmra.mxu1 %vm2659_vm5, %v11974_v44  ;;  %v7995_v30 = vpop.f32.mrf.mxu0 }
 0x664   : > { %8126 = vmatprep.mubr.bf16.mxu1 %v16581_v47 }
 0x665   : > { %8141 = vrot.lane.b32.xlu1 %v7891_v12, %s16518_s11 }
 0x667   : > { %8284 = vperm.xlu0 %12519, %v8281_v10  }
 0x6cd   : > { %v7897_v42 = vpop.permute.xlu0 %7896 }
 0x6ce   : > { %v7901_v6 = vsel %vm1045_vm2, %v15970_v1, %v7897_v42 }
 0x6cf   : > { %v7928_v51 = vmul.f32 %v16004_v17, %v7901_v6  ;;  %v7899_v13 = vpop.permute.xlu1 %7898 }
 0x6d0   : > { %v7900_v18 = vsel %vm1045_vm2, %v7897_v42, %v7899_v13  ;;  %v7903_v3 = vsel %vm1045_vm2, %v7899_v13, %v15968_v0  ;;  %v16035_v0 = vrot.slane %v11983_v26, %v16618_v23 }
 0x6d1   : > { %v7933_v45 = vpack.c.bf16 %v7928_v51, %v7928_v51  ;;  %v7926_v21 = vmul.f32 %v16008_v8, %v7903_v3  ;;  %v7929_v59 = vmul.f32 %v16012_v27, %v7900_v18  ;;  %v8136_v33 = vpop.permute.xlu0 %8135 }
 0x6d3   : > { %v7931_v1 = vpack.c.bf16 %v7926_v21, %v7926_v21  ;;  %v7934_v60 = vpack.c.bf16 %v7929_v59, %v7929_v59  ;;  %v8138_v43 = vpop.permute.xlu1 %8137  ;;  %v8048_v9 = vsel %vm2663_vm4, %v7933_v45, 0 }
 0x6d4   : > { %v8145_v44 = vsel %vm1991_vm3, %v8136_v33, %v8138_v43 }
 0x6d5   : > { %v8170_v63 = vmul.f32 %v16027_v4, %v8145_v44  ;;  %11981 = vmatprep.subr.msk.bf16.mxu1 %vm2663_vm4, %v7934_v60  ;;  %v8140_v14 = vpop.permute.xlu0 %8139  ;;  %v8042_v28 = vsel %vm2663_vm4, %v7931_v1, 0 }
 0x6d6   : > { %v8144_v39 = vsel %vm1991_vm3, %v8138_v43, %v8140_v14  ;;  %8068 = vmatpush1.bf16.msra.mxu0 %v8042_v28  ;;  %8109 = vmatpush1.bf16.msra.mxu1 %v8048_v9 }
 0x6d7   : > { %v8176_v41 = vpack.c.bf16 %v8170_v63, %v8170_v63  ;;  %v8171_v34 = vmul.f32 %v16030_v32, %v8144_v39  ;;  %v8142_v49 = vpop.permute.xlu1 %8141 }
 0x6d8   : > { %v8143_v46 = vsel %vm1991_vm3, %v8140_v14, %v8142_v49  ;;  %v8146_v22 = vsel %vm1991_vm3, %v8142_v49, %v8136_v33 }
 0x6d9   : > { %v8177_v24 = vpack.c.bf16 %v8171_v34, %v8171_v34  ;;  %v8172_v57 = vmul.f32 %v16035_v0, %v8143_v46  ;;  %v8173_v37 = vmul.f32 %v16042_v40, %v8146_v22  ;;  %11980 = vmatmul.mubr.msk.bf16.vlgmr.msra.gmra.mxu0 %vm2659_vm5, %v7930_v20  ;;  %11982 = vmatmul.mubr.msk.bf16.vlgmr.msra.gmra.mxu1 %vm2659_vm5, %v7930_v20  ;;  %v8184_v35 = vsel %vm2663_vm4, %v8176_v41, 0  ;;  %v11989_v22 = vld [vmem:[%s13648_s24 + $0x4] sm:$0xf] }
 0x6da   : > { %8227 = vmatprep.mubr.bf16.mxu0 %v16581_v47  ;;  %8268 = vmatprep.mubr.bf16.mxu1 %v16581_v47 }
 0x6db   : > { %v8178_v61 = vpack.c.bf16 %v8172_v57, %v8172_v57  ;;  %v8179_v38 = vpack.c.bf16 %v8173_v37, %v8173_v37  ;;  %11985 = vmatprep.subr.msk.bf16.mxu0 %vm2663_vm4, %v8177_v24  ;;  %v8641_v24 = vld [vmem:[%s13653_s30] sm:$0xff] }
 0x6dc   : > { %8210 = vmatpush1.bf16.msra.mxu0 %v8184_v35 }
 0x6dd   : > { %11987 = vmatprep.subr.msk.bf16.mxu1 %vm2663_vm4, %v8179_v38  ;;  %v8190_v36 = vsel %vm2663_vm4, %v8178_v61, 0 }
 0x6de   : > { %8251 = vmatpush1.bf16.msra.mxu1 %v8190_v36 }
 0x6e1   : > { %11986 = vmatmul.mubr.msk.bf16.vlgmr.msra.gmra.mxu0 %vm2659_vm5, %v11984_v52  ;;  %11988 = vmatmul.mubr.msk.bf16.vlgmr.msra.gmra.mxu1 %vm2659_vm5, %v11984_v52 }
 0x6e2   : > { %8371 = vmatprep.mubr.bf16.mxu0 %v16581_v47  ;;  %8412 = vmatprep.mubr.bf16.mxu1 %v16581_v47  ;;  %v8285_v5 = vpop.permute.xlu0 %8284 }
 0x723   : > { %v8031_v62 = vpop.f32.mrf.mxu1 }
 0x725   : > { %v8033_v50 = vpop.f32.mrf.mxu1 }
 0x727   : > { %v8035_v58 = vpop.f32.mrf.mxu1 }
 0x729   : > { %v8036_v19 = vpop.f32.mrf.mxu1 }
 0x799   : > { %v8087_v16 = vpop.f32.mrf.mxu0  ;;  %v8128_v48 = vpop.f32.mrf.mxu1 }
 0x79a   : > { %v8088_v11 = vadd.f32 %v8087_v16, %v15998_v56  ;;  %v8129_v30 = vadd.f32 %v8128_v48, %v8031_v62 }
 0x79b   : > { %v8089_v7 = vpop.f32.mrf.mxu0  ;;  %v8130_v12 = vpop.f32.mrf.mxu1 }
 0x79c   : > { %v8090_v6 = vadd.f32 %v8089_v7, %v16000_v53  ;;  %v8131_v26 = vadd.f32 %v8130_v12, %v8033_v50 }
 0x79d   : > { %v8091_v15 = vpop.f32.mrf.mxu0  ;;  %v8132_v54 = vpop.f32.mrf.mxu1 }
 0x79f   : > { %v8092_v29 = vpop.f32.mrf.mxu0  ;;  %v8133_v10 = vpop.f32.mrf.mxu1 }
 0x7a1   : > { %v8229_v23 = vpop.f32.mrf.mxu0  ;;  %v8270_v42 = vpop.f32.mrf.mxu1 }
 0x7a2   : > { %v8277_v51 = vadd.f32 %v8229_v23, %v8088_v11  ;;  %v8279_v13 = vadd.f32 %v8270_v42, %v8129_v30 }
 0x7a3   : > { %v8231_v18 = vpop.f32.mrf.mxu0  ;;  %v8272_v3 = vpop.f32.mrf.mxu1 }
 0x7a4   : > { %v8287_v45 = vadd.f32 %v8285_v5, %v8277_v51  ;;  %v8289_v21 = vadd.f32 %v8285_v5, %v8279_v13  ;;  %v8278_v59 = vadd.f32 %v8231_v18, %v8090_v6  ;;  %v8280_v33 = vadd.f32 %v8272_v3, %v8131_v26 }
 0x7a5   : > { %v8233_v1 = vpop.f32.mrf.mxu0  ;;  %v8274_v60 = vpop.f32.mrf.mxu1 }
 0x7a6   : > { %v8291_v43 = vmax.f32 %v8287_v45, 0.0  ;;  %v8293_v44 = vmax.f32 %v8289_v21, 0.0  ;;  %v8288_v56 = vadd.f32 %v8285_v5, %v8278_v59  ;;  %v8290_v63 = vadd.f32 %v8285_v5, %v8280_v33 }
 0x7a7   : > { %v8234_v14 = vpop.f32.mrf.mxu0  ;;  %v8275_v28 = vpop.f32.mrf.mxu1 }
 0x7a8   : > { %v8292_v9 = vmax.f32 %v8288_v56, 0.0  ;;  %v8294_v53 = vmax.f32 %v8290_v63, 0.0  ;;  %8295 = vrot.lane.b32.xlu1 %v8291_v43, %s16512_s1  ;;  %v8318_v39 = vpack.c.bf16 %v8291_v43, %v8291_v43  ;;  %v8320_v20 = vpack.c.bf16 %v8293_v44, %v8293_v44 }
 0x7aa   : > { %8297 = vrot.lane.b32.xlu0 %v8292_v9, %s16512_s1  ;;  %v8319_v41 = vpack.c.bf16 %v8292_v9, %v8292_v9  ;;  %v8321_v34 = vpack.c.bf16 %v8294_v53, %v8294_v53  ;;  %v8328_v49 = vsel %vm8326_vm8, %v8318_v39, 0  ;;  %v8334_v46 = vsel %vm8326_vm8, %v8320_v20, 0 }
 0x7ac   : > { %11990 = vmatprep.subr.msk.bf16.mxu0 %vm8326_vm8, %v8319_v41  ;;  %11992 = vmatprep.subr.msk.bf16.mxu1 %vm8326_vm8, %v8321_v34 }
 0x7ad   : > { %8299 = vrot.lane.b32.xlu1 %v8293_v44, %s16512_s1  ;;  %8354 = vmatpush1.bf16.msra.mxu0 %v8328_v49 }
 0x7ae   : > { %8395 = vmatpush1.bf16.msra.mxu1 %v8334_v46  ;;  %8301 = vrot.lane.b32.xlu0 %v8294_v53, %s16512_s1  ;;  %s16621_s1 = sld [smem:[#allocation14_spill]] }
 0x7b0   : > { %11991 = vmatmul.mubr.msk.bf16.vlgmr.msra.gmra.mxu0 %vm8322_vm9, %v11989_v22 }
 0x7b1   : > { %8518 = vrot.lane.b32.xlu1 %v8291_v43, %s16518_s11  ;;  %11993 = vmatmul.mubr.msk.bf16.vlgmr.msra.gmra.mxu1 %vm8322_vm9, %v11989_v22 }
 0x7b2   : > { %8520 = vrot.lane.b32.xlu0 %v8292_v9, %s16518_s11  ;;  %8468 = vmatprep.mubr.bf16.mxu0 %v16581_v47 }
 0x7b3   : > { %8509 = vmatprep.mubr.bf16.mxu1 %v16581_v47 }
 0x7b4   : > { %v13440_v56 = vld [vmem:[%s16621_s1 + $0xf8] sm:$0xff]   ;;  %v13443_v28 = vld [vmem:[%s16621_s1 + $0x70] sm:$0xff]   ;;  %v13447_v20 = vld [vmem:[%s16621_s1 + $0x68] sm:$0xff]  }
 0x7b5   : > { %8522 = vrot.lane.b32.xlu1 %v8293_v44, %s16518_s11  ;;  %v13439_v44 = vld [vmem:[%s16621_s1 + $0x78] sm:$0xff]   ;;  %v13444_v9 = vld [vmem:[%s16621_s1 + $0xf0] sm:$0xff]   ;;  %v13448_v41 = vld [vmem:[%s16621_s1 + $0xe8] sm:$0xff]  }
 0x7b6   : > { %8524 = vrot.lane.b32.xlu0 %v8294_v53, %s16518_s11  ;;  %v13441_v63 = vld [vmem:[%s16621_s1 + $0x38] sm:$0xff]   ;;  %v13445_v53 = vld [vmem:[%s16621_s1 + $0x30] sm:$0xff]   ;;  %v13449_v34 = vld [vmem:[%s16621_s1 + $0x28] sm:$0xff]  }
 0x7b7   : > { %v13442_v14 = vld [vmem:[%s16621_s1 + $0xb8] sm:$0xff]   ;;  %v13446_v39 = vld [vmem:[%s16621_s1 + $0xb0] sm:$0xff]   ;;  %v13450_v49 = vld [vmem:[%s16621_s1 + $0xa8] sm:$0xff]  }
 0x7b8   : > { %v13451_v46 = vld [vmem:[%s16621_s1 + $0x60] sm:$0xff]  }
 0x7b9   : > { %8644 = vperm.xlu1 %12625, %v8641_v24   ;;  %v13452_v22 = vld [vmem:[%s16621_s1 + $0xe0] sm:$0xff]  }
 0x7ba   : > { %v13453_v24 = vld [vmem:[%s16621_s1 + $0x20] sm:$0xff]  }
 0x81a   : > { %v8296_v57 = vpop.permute.xlu1 %8295 }
 0x81c   : > { %v8298_v37 = vpop.permute.xlu0 %8297 }
 0x81d   : > { %v8305_v61 = vsel %vm1045_vm2, %v8296_v57, %v8298_v37 }
 0x81e   : > { %v8308_v38 = vmul.f32 %v8305_v61, %v15966_v25 }
 0x81f   : > { %v8300_v35 = vpop.permute.xlu1 %8299 }
 0x820   : > { %v8313_v36 = vpack.c.bf16 %v8308_v38, %v8308_v38  ;;  %v8304_v52 = vsel %vm1045_vm2, %v8298_v37, %v8300_v35  ;;  %v8302_v62 = vpop.permute.xlu0 %8301 }
 0x821   : > { %v8309_v50 = vmul.f32 %v8304_v52, %v16004_v17  ;;  %v8303_v58 = vsel %vm1045_vm2, %v8300_v35, %v8302_v62  ;;  %v8306_v19 = vsel %vm1045_vm2, %v8302_v62, %v8296_v57  ;;  %v13454_v57 = vld [vmem:[%s16621_s1 + $0xa0] sm:$0xff]   ;;  %v13455_v62 = vld [vmem:[%s16621_s1 + $0x58] sm:$0xff]  }
 0x822   : > { %v8307_v16 = vmul.f32 %v8306_v19, %v16008_v8  ;;  %v8310_v48 = vmul.f32 %v8303_v58, %v16012_v27  ;;  %11994 = vmatprep.subr.msk.bf16.mxu0 %vm8326_vm8, %v8313_v36  ;;  %v8311_v27 = vld [vmem:[%s13648_s24] sm:$0xf] }
 0x823   : > { %v8314_v25 = vpack.c.bf16 %v8309_v50, %v8309_v50  ;;  %v8519_v7 = vpop.permute.xlu1 %8518  ;;  %v13456_v50 = vld [vmem:[%s16621_s1 + $0xd8] sm:$0xff]  }
 0x824   : > { %v8312_v12 = vpack.c.bf16 %v8307_v16, %v8307_v16  ;;  %v8315_v15 = vpack.c.bf16 %v8310_v48, %v8310_v48  ;;  %v8521_v54 = vpop.permute.xlu0 %8520  ;;  %v13457_v16 = vld [vmem:[%s16621_s1 + $0x18] sm:$0xff]  }
 0x825   : > { %v8528_v17 = vsel %vm1991_vm3, %v8519_v7, %v8521_v54  ;;  %v8431_v8 = vsel %vm8326_vm8, %v8314_v25, 0  ;;  %v13458_v48 = vld [vmem:[%s16621_s1 + $0x98] sm:$0xff]  }
 0x826   : > { %v8530_v29 = vmul.f32 %v8528_v17, %v16027_v4  ;;  %11996 = vmatprep.subr.msk.bf16.mxu1 %vm8326_vm8, %v8315_v15  ;;  %v8425_v10 = vsel %vm8326_vm8, %v8312_v12, 0 }
 0x827   : > { %v8523_v11 = vpop.permute.xlu1 %8522  ;;  %8451 = vmatpush1.bf16.msra.mxu0 %v8425_v10  ;;  %8492 = vmatpush1.bf16.msra.mxu1 %v8431_v8 }
 0x828   : > { %v8527_v30 = vsel %vm1991_vm3, %v8521_v54, %v8523_v11  ;;  %v8525_v23 = vpop.permute.xlu0 %8524  ;;  %v8536_v42 = vpack.c.bf16 %v8530_v29, %v8530_v29 }
 0x829   : > { %v8531_v5 = vmul.f32 %v8527_v30, %v16030_v32  ;;  %v8526_v4 = vsel %vm1991_vm3, %v8523_v11, %v8525_v23  ;;  %v8529_v6 = vsel %vm1991_vm3, %v8525_v23, %v8519_v7  ;;  %v13459_v11 = vld [vmem:[%s16621_s1 + $0x50] sm:$0xff]  }
 0x82a   : > { %v8532_v26 = vmul.f32 %v8526_v4, %v16035_v0  ;;  %v8533_v51 = vmul.f32 %v8529_v6, %v16042_v40  ;;  %11995 = vmatmul.mubr.msk.bf16.vlgmr.msra.gmra.mxu0 %vm8322_vm9, %v8311_v27  ;;  %11997 = vmatmul.mubr.msk.bf16.vlgmr.msra.gmra.mxu1 %vm8322_vm9, %v8311_v27  ;;  %v8544_v3 = vsel %vm8326_vm8, %v8536_v42, 0  ;;  %v11998_v40 = vld [vmem:[%s13648_s24 + $0x8] sm:$0xf]  ;;  %v13460_v27 = vld [vmem:[%s16621_s1 + $0xd0] sm:$0xff]  }
 0x82b   : > { %v8537_v13 = vpack.c.bf16 %v8531_v5, %v8531_v5  ;;  %8587 = vmatprep.mubr.bf16.mxu0 %v16581_v47  ;;  %8628 = vmatprep.mubr.bf16.mxu1 %v16581_v47  ;;  %v13461_v42 = vld [vmem:[%s16621_s1 + $0x10] sm:$0xff]  }
 0x82c   : > { %v8538_v32 = vpack.c.bf16 %v8532_v26, %v8532_v26  ;;  %v8539_v18 = vpack.c.bf16 %v8533_v51, %v8533_v51  ;;  %v13462_v5 = vld [vmem:[%s16621_s1 + $0x90] sm:$0xff]  }
 0x82d   : > { %11999 = vmatprep.subr.msk.bf16.mxu0 %vm8326_vm8, %v8537_v13 }
 0x82e   : > { %8570 = vmatpush1.bf16.msra.mxu0 %v8544_v3  ;;  %12001 = vmatprep.subr.msk.bf16.mxu1 %vm8326_vm8, %v8539_v18  ;;  %v8550_v0 = vsel %vm8326_vm8, %v8538_v32, 0 }
 0x82f   : > { %8611 = vmatpush1.bf16.msra.mxu1 %v8550_v0  ;;  %12151 = vmatprep.subr.bf16.mxu0 %v13439_v44  ;;  %v13463_v0 = vld [vmem:[%s16621_s1 + $0x48] sm:$0xff]  }
 0x830   : > { %12173 = vmatprep.subr.bf16.mxu1 %v13440_v56 }
 0x832   : > { %12000 = vmatmul.mubr.msk.bf16.vlgmr.msra.gmra.mxu0 %vm8322_vm9, %v11998_v40  ;;  %12002 = vmatmul.mubr.msk.bf16.vlgmr.msra.gmra.mxu1 %vm8322_vm9, %v11998_v40  ;;  %v13464_v40 = vld [vmem:[%s16621_s1 + $0xc8] sm:$0xff]  }
 0x833   : > { %12152 = vmatpush3.bf16.msra.mxu0 %v13441_v63  ;;  %12174 = vmatpush3.bf16.msra.mxu1 %v13442_v14  ;;  %v13467_v63 = vld [vmem:[%s16621_s1 + $0x40] sm:$0xff]  }
 0x834   : > { %12153 = vmatprep.subr.bf16.mxu0 %v13443_v28  ;;  %12175 = vmatprep.subr.bf16.mxu1 %v13444_v9  ;;  %v8645_v54 = vpop.permute.xlu1 %8644  ;;  %v13468_v14 = vld [vmem:[%s16621_s1 + $0xc0] sm:$0xff]  }
 0x835   : > { %v13469_v28 = vld [vmem:[%s16621_s1] sm:$0xff]  }
 0x836   : > { %v13470_v9 = vld [vmem:[%s16621_s1 + $0x80] sm:$0xff]  }
 0x837   : > { %12154 = vmatpush3.bf16.msra.mxu0 %v13445_v53  ;;  %12176 = vmatpush3.bf16.msra.mxu1 %v13446_v39  ;;  %v9050_v53 = vld [vmem:[%s16622_s28] sm:$0xff]  ;;  %s16627_s28 = sld [smem:[#allocation17_spill]] }
 0x838   : > { %12155 = vmatprep.subr.bf16.mxu0 %v13447_v20  ;;  %12177 = vmatprep.subr.bf16.mxu1 %v13448_v41  ;;  %v9043_v39 = vld [vmem:[%s16623_s23] sm:$0xff]  ;;  %s16626_s23 = sld [smem:[#allocation18_spill]] }
 0x83b   : > { %12156 = vmatpush3.bf16.msra.mxu0 %v13449_v34  ;;  %12178 = vmatpush3.bf16.msra.mxu1 %v13450_v49 }
 0x83c   : > { %12157 = vmatprep.subr.bf16.mxu0 %v13451_v46  ;;  %12179 = vmatprep.subr.bf16.mxu1 %v13452_v22 }
 0x83f   : > { %12158 = vmatpush3.bf16.msra.mxu0 %v13453_v24  ;;  %12180 = vmatpush3.bf16.msra.mxu1 %v13454_v57 }
 0x840   : > { %12159 = vmatprep.subr.bf16.mxu0 %v13455_v62  ;;  %12181 = vmatprep.subr.bf16.mxu1 %v13456_v50 }
 0x843   : > { %12160 = vmatpush3.bf16.msra.mxu0 %v13457_v16  ;;  %12182 = vmatpush3.bf16.msra.mxu1 %v13458_v48 }
 0x844   : > { %12161 = vmatprep.subr.bf16.mxu0 %v13459_v11  ;;  %12183 = vmatprep.subr.bf16.mxu1 %v13460_v27 }
 0x847   : > { %12162 = vmatpush3.bf16.msra.mxu0 %v13461_v42  ;;  %12184 = vmatpush3.bf16.msra.mxu1 %v13462_v5 }
 0x848   : > { %12163 = vmatprep.subr.bf16.mxu0 %v13463_v0  ;;  %12185 = vmatprep.subr.bf16.mxu1 %v13464_v40 }
 0x870   : > { %v8373_v47 = vpop.f32.mrf.mxu0 }
 0x871   : > { %v8414_v45 = vpop.f32.mrf.mxu1 }
 0x872   : > { %v8375_v21 = vpop.f32.mrf.mxu0 }
 0x873   : > { %v8416_v59 = vpop.f32.mrf.mxu1 }
 0x874   : > { %v8377_v33 = vpop.f32.mrf.mxu0 }
 0x875   : > { %v8418_v1 = vpop.f32.mrf.mxu1 }
 0x876   : > { %v8378_v60 = vpop.f32.mrf.mxu0 }
 0x877   : > { %v8419_v43 = vpop.f32.mrf.mxu1 }
 0x8ea   : > { %v8470_v37 = vpop.f32.mrf.mxu0  ;;  %v8511_v61 = vpop.f32.mrf.mxu1 }
 0x8eb   : > { %v8471_v25 = vadd.f32 %v8470_v37, %v8373_v47  ;;  %v8512_v7 = vadd.f32 %v8511_v61, %v8414_v45 }
 0x8ec   : > { %v8472_v38 = vpop.f32.mrf.mxu0  ;;  %v8513_v35 = vpop.f32.mrf.mxu1 }
 0x8ed   : > { %v8473_v17 = vadd.f32 %v8472_v38, %v8375_v21  ;;  %v8514_v29 = vadd.f32 %v8513_v35, %v8416_v59  ;;  %v13465_v21 = vld [vmem:[%s16621_s1 + $0x8] sm:$0xff]  }
 0x8ee   : > { %v8474_v36 = vpop.f32.mrf.mxu0  ;;  %v8515_v52 = vpop.f32.mrf.mxu1  ;;  %v13466_v59 = vld [vmem:[%s16621_s1 + $0x88] sm:$0xff]   ;;  %12164 = vmatpush3.bf16.msra.mxu0 %v13465_v21  ;;  %s16629_s1 = smov 127  }
 0x8ef   : > { %12186 = vmatpush3.bf16.msra.mxu1 %v13466_v59  ;;  %12165 = vmatprep.subr.bf16.mxu0 %v13467_v63 }
 0x8f0   : > { %v8475_v58 = vpop.f32.mrf.mxu0  ;;  %v8516_v19 = vpop.f32.mrf.mxu1  ;;  %12187 = vmatprep.subr.bf16.mxu1 %v13468_v14 }
 0x8f2   : > { %v8589_v12 = vpop.f32.mrf.mxu0  ;;  %v8630_v15 = vpop.f32.mrf.mxu1  ;;  %12166 = vmatpush3.bf16.msra.mxu0 %v13469_v28 }
 0x8f3   : > { %v8637_v10 = vadd.f32 %v8589_v12, %v8471_v25  ;;  %v8639_v8 = vadd.f32 %v8630_v15, %v8512_v7  ;;  %12188 = vmatpush3.bf16.msra.mxu1 %v13470_v9 }
 0x8f4   : > { %v8591_v30 = vpop.f32.mrf.mxu0  ;;  %v8632_v23 = vpop.f32.mrf.mxu1 }
 0x8f5   : > { %v16151_v4 = vadd.f32 %v8645_v54, %v8637_v10  ;;  %v16153_v6 = vadd.f32 %v8645_v54, %v8639_v8  ;;  %v8638_v26 = vadd.f32 %v8591_v30, %v8473_v17  ;;  %v8640_v51 = vadd.f32 %v8632_v23, %v8514_v29 }
 0x8f6   : > { %v8593_v13 = vpop.f32.mrf.mxu0  ;;  %v8634_v32 = vpop.f32.mrf.mxu1 }
 0x8f7   : > { %v8648_v18 = vadd.f32 %v8645_v54, %v8638_v26  ;;  %v8650_v3 = vadd.f32 %v8645_v54, %v8640_v51  ;;  %v8651_v33 = vmax.f32 %v16151_v4, 0.0  ;;  %v8653_v1 = vmax.f32 %v16153_v6, 0.0 }
 0x8f8   : > { %v8594_v47 = vpop.f32.mrf.mxu0  ;;  %v8635_v45 = vpop.f32.mrf.mxu1 }
 0x8f9   : > { %v8652_v60 = vmax.f32 %v8648_v18, 0.0  ;;  %v8654_v43 = vmax.f32 %v8650_v3, 0.0  ;;  %v13582_v45 = vmov 0.0  }
 0x8fa   : > { %12299 = vmatprep.subr.bf16.mxu0 %v13582_v45  ;;  %12305 = vmatprep.subr.bf16.mxu1 %v13582_v45 }
 0x8fb   : > { %v12631_v44 = vpack.i.bf16 %v8654_v43, %v8653_v1  ;;  %v12626_v56 = vpack.i.bf16 %v8652_v60, %v8651_v33 }
 0x8fd   : > { %12632 = vrot.lane.b32.xlu1 %v12631_v44, %s16518_s11  ;;  %12627 = vrot.lane.b32.xlu0 %v12626_v56, %s16518_s11  ;;  %s16628_s11 = sld [smem:[#allocation21_spill]] }
 0x901   : > { %12642 = vrot.lane.b32.xlu1 %v12631_v44, %s16624_s3  ;;  %12637 = vrot.lane.b32.xlu0 %v12626_v56, %s16624_s3 }
 0x905   : > { %12652 = vrot.lane.b32.xlu1 %v12631_v44, %s16625_s5  ;;  %12647 = vrot.lane.b32.xlu0 %v12626_v56, %s16625_s5 }
 0x909   : > { %9053 = vperm.xlu1 %12625, %v9050_v53   ;;  %9046 = vperm.xlu0 %12519, %v9043_v39  }
 0x96f   : > { %v12633_v20 = vpop.permute.xlu1 %12632  ;;  %v12628_v41 = vpop.permute.xlu0 %12627 }
 0x970   : > { %v12635_v34 = vunpack.i.h.bf16 %v12633_v20  ;;  %v12634_v49 = vunpack.i.l.bf16 %v12633_v20  ;;  %v12630_v46 = vunpack.i.h.bf16 %v12628_v41  ;;  %v12629_v22 = vunpack.i.l.bf16 %v12628_v41  ;;  %v9248_v41 = vld [vmem:[%s16626_s23 + $0x8] sm:$0xff] }
 0x972   : > { %v8663_v24 = vsel %vm1991_vm3, %v12634_v49, %v12635_v34  ;;  %v8664_v57 = vsel %vm1991_vm3, %v12630_v46, %v12634_v49  ;;  %v8665_v37 = vsel %vm1991_vm3, %v12629_v22, %v12630_v46  ;;  %v8666_v61 = vsel %vm1991_vm3, %v12635_v34, %v12629_v22  ;;  %v9247_v34 = vld [vmem:[%s16626_s23] sm:$0xff]  ;;  %v13471_v46 = vld [vmem:[%s16627_s28 + $0x8] sm:$0xff]  }
 0x973   : > { %v12643_v38 = vpop.permute.xlu1 %12642  ;;  %v12638_v35 = vpop.permute.xlu0 %12637  ;;  %v8669_v25 = vmax.f32 %v8653_v1, %v8663_v24  ;;  %v8668_v7 = vmax.f32 %v8652_v60, %v8664_v57  ;;  %v8667_v12 = vmax.f32 %v8651_v33, %v8665_v37  ;;  %v8670_v15 = vmax.f32 %v8654_v43, %v8666_v61  ;;  %v16214_v22 = vld [vmem:[%s16628_s11 + $0x2] ss:$0 sm:$0xff]  ;;  %v12035_v24 = vld [vmem:[%s16628_s11] ss:$0 sm:$0xff] }
 0x974   : > { %v12645_v36 = vunpack.i.h.bf16 %v12643_v38  ;;  %v12644_v52 = vunpack.i.l.bf16 %v12643_v38  ;;  %v12640_v62 = vunpack.i.h.bf16 %v12638_v35  ;;  %v12639_v50 = vunpack.i.l.bf16 %v12638_v35 }
 0x976   : > { %v8679_v58 = vsel %vm4030_vm6, %v12644_v52, %v12645_v36  ;;  %v8680_v19 = vsel %vm4030_vm6, %v12640_v62, %v12644_v52  ;;  %v8681_v16 = vsel %vm4030_vm6, %v12639_v50, %v12640_v62  ;;  %v8682_v48 = vsel %vm4030_vm6, %v12645_v36, %v12639_v50  ;;  %v13472_v50 = vld [vmem:[%s16627_s28] sm:$0xff]  }
 0x977   : > { %v12653_v54 = vpop.permute.xlu1 %12652  ;;  %v12648_v17 = vpop.permute.xlu0 %12647  ;;  %v8685_v27 = vmax.f32 %v8669_v25, %v8679_v58  ;;  %v8683_v30 = vmax.f32 %v8667_v12, %v8681_v16  ;;  %v8684_v23 = vmax.f32 %v8668_v7, %v8680_v19  ;;  %v8686_v42 = vmax.f32 %v8670_v15, %v8682_v48  ;;  %v13473_v58 = vld [vmem:[%s16627_s28 + $0x10] sm:$0xff]  }
 0x978   : > { %v12655_v29 = vunpack.i.h.bf16 %v12653_v54  ;;  %v12654_v10 = vunpack.i.l.bf16 %v12653_v54  ;;  %v12650_v8 = vunpack.i.h.bf16 %v12648_v17  ;;  %v12649_v11 = vunpack.i.l.bf16 %v12648_v17 }
 0x97a   : > { %v8695_v5 = vsel %vm4095_vm7, %v12654_v10, %v12655_v29  ;;  %v8697_v4 = vsel %vm4095_vm7, %v12649_v11, %v12650_v8  ;;  %v8696_v6 = vsel %vm4095_vm7, %v12650_v8, %v12654_v10  ;;  %v8698_v26 = vsel %vm4095_vm7, %v12655_v29, %v12649_v11 }
 0x97b   : > { %v8701_v51 = vmax.f32 %v8685_v27, %v8695_v5  ;;  %v8699_v13 = vmax.f32 %v8683_v30, %v8697_v4  ;;  %v8700_v32 = vmax.f32 %v8684_v23, %v8696_v6  ;;  %v8702_v18 = vmax.f32 %v8686_v42, %v8698_v26 }
 0x97d   : > { %v8705_v3 = vpack.c.bf16 %v8701_v51, %v8701_v51  ;;  %v8703_v0 = vpack.c.bf16 %v8699_v13, %v8699_v13  ;;  %v8704_v40 = vpack.c.bf16 %v8700_v32, %v8700_v32  ;;  %v8706_v47 = vpack.c.bf16 %v8702_v18, %v8702_v18  ;;  %v9436_v32 = vld [vmem:[%s16631_s8] sm:$0xff]  ;;  %v13474_v18 = vld [vmem:[%s16632_s9 + $0x8] sm:$0xff]  }
 0x97f   : > { %8995 = vmatprep.mubr.bf16.mxu0 %v8704_v40  ;;  %9035 = vmatprep.mubr.bf16.mxu1 %v8706_v47 }
 0x980   : > { %8996 = vmatmul.mubr.bf16.vlgmr.msra.gmra.mxu0 %v8703_v0  ;;  %9036 = vmatmul.mubr.bf16.vlgmr.msra.gmra.mxu1 %v8705_v3  ;;  %v9437_v3 = vld [vmem:[%s16631_s8 + $0x8] sm:$0xff]  ;;  %s16634_s8 = sld [smem:[#allocation23_spill]] }
 0x981   : > { %12301 = vmatprep.mubr.msk.bf16.mxu0 %vm13583_vm10, %v13582_v45  ;;  %12307 = vmatprep.mubr.msk.bf16.mxu1 %vm13583_vm10, %v13582_v45 }
 0x984   : > { %v9047_v56 = vpop.permute.xlu0 %9046  ;;  %v9054_v53 = vpop.permute.xlu1 %9053 }
 0xa40   : > { %v12167_v2 = vpop.f32.mrf.mxu0  ;;  %v12189_v21 = vpop.f32.mrf.mxu1 }
 0xa42   : > { %v12168_v59 = vpop.f32.mrf.mxu0  ;;  %v12190_v33 = vpop.f32.mrf.mxu1 }
 0xa43   : > { %v12169_v1 = vadd.f32 %v12168_v59, %v12167_v2  ;;  %v12191_v60 = vadd.f32 %v12190_v33, %v12189_v21 }
 0xa44   : > { %v12170_v43 = vpop.f32.mrf.mxu0  ;;  %v12192_v44 = vpop.f32.mrf.mxu1 }
 0xa45   : > { %v9038_v63 = vadd.f32 %v12191_v60, %v12169_v1  ;;  %v13475_v1 = vld [vmem:[%s16632_s9] sm:$0xff]  }
 0xa46   : > { %v12171_v14 = vpop.f32.mrf.mxu0  ;;  %v12193_v28 = vpop.f32.mrf.mxu1 }
 0xa47   : > { %v9049_v9 = vmul.f32 %v9047_v56, %v9038_v63  ;;  %v13476_v56 = vld [vmem:[%s16632_s9 + $0x10] sm:$0xff]   ;;  %s16635_s9 = sld [smem:[#allocation24_spill]] }
 0xa49   : > { %v9056_v39 = vadd.f32 %v9054_v53, %v9049_v9 }
 0xa4b   : > { %9178 = vrot.lane.b32.xlu1 %v9056_v39, %s16629_s1  ;;  %9057 = vrot.lane.b32.xlu0 %v9056_v39, %s16630_s6  ;;  %v9073_v20 = vpack.c.bf16 %v9056_v39, %v9056_v39 }
 0xa4d   : > { %v9083_v49 = vsel %vm8326_vm8, %v9073_v20, 0 }
 0xa4e   : > { %12300 = vmatpush3.bf16.msra.mxu0 %v9083_v49 }
 0xa4f   : > { %9256 = vperm.xlu1 %12625, %v9248_v41   ;;  %9251 = vperm.xlu0 %12519, %v9247_v34  }
 0xa50   : > { %12311 = vmatprep.subr.bf16.mxu0 %v13582_v45 }
 0xa51   : > { %12302 = vmatmul.mubr.msk.bf16.vlgmr.msra.gmra.mxu0 %vm8322_vm9, %v13471_v46 }
 0xa52   : > { %12313 = vmatprep.mubr.msk.bf16.mxu0 %vm13583_vm10, %v13582_v45 }
 0xabd   : > { %v9179_v57 = vpop.permute.xlu1 %9178  ;;  %v9058_v37 = vpop.permute.xlu0 %9057 }
 0xabe   : > { %v9188_v61 = vmul.f32 %v16214_v22, %v9179_v57  ;;  %v9066_v38 = vmul.f32 %v12035_v24, %v9058_v37 }
 0xac0   : > { %v9192_v35 = vpack.c.bf16 %v9188_v61, %v9188_v61  ;;  %v9069_v36 = vpack.c.bf16 %v9066_v38, %v9066_v38 }
 0xac2   : > { %v9202_v52 = vsel %vm8326_vm8, %v9192_v35, 0  ;;  %v9135_v62 = vsel %vm8326_vm8, %v9069_v36, 0 }
 0xac3   : > { %12306 = vmatpush3.bf16.msra.mxu1 %v9135_v62  ;;  %12312 = vmatpush3.bf16.msra.mxu0 %v9202_v52 }
 0xac4   : > { %12317 = vmatprep.subr.bf16.mxu1 %v13582_v45  ;;  %12323 = vmatprep.subr.bf16.mxu0 %v13582_v45 }
 0xac6   : > { %12308 = vmatmul.mubr.msk.bf16.vlgmr.msra.gmra.mxu1 %vm8322_vm9, %v13472_v50  ;;  %12314 = vmatmul.mubr.msk.bf16.vlgmr.msra.gmra.mxu0 %vm8322_vm9, %v13473_v58 }
 0xac7   : > { %12319 = vmatprep.mubr.msk.bf16.mxu1 %vm13583_vm10, %v13582_v45  ;;  %12325 = vmatprep.mubr.msk.bf16.mxu0 %vm13583_vm10, %v13582_v45 }
 0xaca   : > { %v9252_v29 = vpop.permute.xlu0 %9251  ;;  %v9257_v6 = vpop.permute.xlu1 %9256 }
 0xb11   : > { %v9119_v19 = vpop.f32.mrf.mxu0 }
 0xb13   : > { %v12303_v16 = vpop.f32.mrf.mxu0 }
 0xb15   : > { %v9122_v48 = vpop.f32.mrf.mxu0 }
 0xb17   : > { %v12304_v25 = vpop.f32.mrf.mxu0 }
 0xb86   : > { %v9171_v7 = vpop.f32.mrf.mxu1  ;;  %v9238_v12 = vpop.f32.mrf.mxu0 }
 0xb87   : > { %v9172_v15 = vadd.f32 %v9171_v7, %v9119_v19 }
 0xb88   : > { %v12309_v54 = vpop.f32.mrf.mxu1  ;;  %v12315_v17 = vpop.f32.mrf.mxu0 }
 0xb89   : > { %v9245_v10 = vadd.f32 %v9238_v12, %v9172_v15  ;;  %v9576_v17 = vld [vmem:[%s16634_s8] sm:$0xff] }
 0xb8a   : > { %v9174_v8 = vpop.f32.mrf.mxu1  ;;  %v9241_v11 = vpop.f32.mrf.mxu0 }
 0xb8b   : > { %v9259_v27 = vadd.f32 %v9252_v29, %v9245_v10  ;;  %v9175_v30 = vadd.f32 %v9174_v8, %v9122_v48  ;;  %v9590_v29 = vld [vmem:[%s16635_s9] sm:$0xff]  ;;  %v9577_v10 = vld [vmem:[%s16634_s8 + $0x8] sm:$0xff] }
 0xb8c   : > { %v12310_v23 = vpop.f32.mrf.mxu1  ;;  %v12316_v42 = vpop.f32.mrf.mxu0  ;;  %v9591_v8 = vld [vmem:[%s16635_s9 + $0x8] sm:$0xff] }
 0xb8d   : > { %v9261_v5 = vmax.f32 %v9259_v27, 0.0  ;;  %v9246_v4 = vadd.f32 %v9241_v11, %v9175_v30 }
 0xb8f   : > { %v9260_v26 = vadd.f32 %v9257_v6, %v9246_v4  ;;  %9263 = vrot.lane.b32.xlu0 %v9261_v5, %s16630_s6 }
 0xb91   : > { %v9262_v51 = vmax.f32 %v9260_v26, 0.0 }
 0xb93   : > { %9375 = vrot.lane.b32.xlu0 %v9261_v5, %s16629_s1  ;;  %9265 = vrot.lane.b32.xlu1 %v9262_v51, %s16630_s6  ;;  %v9275_v13 = vpack.c.bf16 %v9262_v51, %v9261_v5  ;;  %s16633_s6 = sld [smem:[#allocation22_spill]] }
 0xb95   : > { %12318 = vmatpush3.bf16.msra.mxu1 %v9275_v13 }
 0xb96   : > { %12329 = vmatprep.subr.bf16.mxu1 %v13582_v45 }
 0xb97   : > { %9440 = vperm.xlu0 %12519, %v9436_v32   ;;  %9377 = vrot.lane.b32.xlu1 %v9262_v51, %s16629_s1 }
 0xb98   : > { %12320 = vmatmul.mubr.msk.bf16.vlgmr.msra.gmra.mxu1 %vm9281_vm11, %v13474_v18 }
 0xb99   : > { %12331 = vmatprep.mubr.msk.bf16.mxu1 %vm13583_vm10, %v13582_v45  ;;  %v13477_v53 = vld [vmem:[%s16633_s6 + $0x38] sm:$0xff]   ;;  %v13478_v39 = vld [vmem:[%s16633_s6 + $0x30] sm:$0xff]   ;;  %v13479_v20 = vld [vmem:[%s16633_s6 + $0x28] sm:$0xff]  }
 0xb9a   : > { %v13480_v41 = vld [vmem:[%s16633_s6 + $0x20] sm:$0xff]   ;;  %v13481_v34 = vld [vmem:[%s16633_s6 + $0x18] sm:$0xff]   ;;  %v13482_v49 = vld [vmem:[%s16633_s6 + $0x10] sm:$0xff]  }
 0xb9b   : > { %9445 = vperm.xlu1 %12625, %v9437_v3   ;;  %v13483_v36 = vld [vmem:[%s16633_s6 + $0x8] sm:$0xff]   ;;  %v13484_v25 = vld [vmem:[%s16633_s6] sm:$0xff]   ;;  %s16636_s6 = sld [smem:[#allocation25_spill]] }
 0xc01   : > { %v9264_v0 = vpop.permute.xlu0 %9263 }
 0xc02   : > { %v9267_v47 = vmul.f32 %v12035_v24, %v9264_v0 }
 0xc05   : > { %v9266_v40 = vpop.permute.xlu1 %9265  ;;  %v9376_v21 = vpop.permute.xlu0 %9375 }
 0xc06   : > { %v9268_v2 = vmul.f32 %v12035_v24, %v9266_v40  ;;  %v9379_v60 = vmul.f32 %v16214_v22, %v9376_v21  ;;  %v9606_v21 = vld [vmem:[%s16636_s6 + $0x10] sm:$0xff] }
 0xc08   : > { %v9271_v59 = vpack.c.bf16 %v9268_v2, %v9267_v47  ;;  %v9607_v47 = vld [vmem:[%s16636_s6 + $0x18] sm:$0xff] }
 0xc09   : > { %v9378_v33 = vpop.permute.xlu1 %9377  ;;  %v12094_v2 = vld [vmem:[%s16636_s6 + $0x78] sm:$0xff] }
 0xc0a   : > { %v9380_v43 = vmul.f32 %v16214_v22, %v9378_v33  ;;  %12324 = vmatpush3.bf16.msra.mxu0 %v9271_v59  ;;  %v12093_v59 = vld [vmem:[%s16636_s6 + $0x70] sm:$0xff]  ;;  %v9605_v33 = vld [vmem:[%s16636_s6 + $0x8] sm:$0xff] }
 0xc0b   : > { %12335 = vmatprep.subr.bf16.mxu0 %v13582_v45 }
 0xc0c   : > { %v9384_v44 = vpack.c.bf16 %v9380_v43, %v9379_v60  ;;  %v9604_v60 = vld [vmem:[%s16636_s6] sm:$0xff] }
 0xc0d   : > { %12326 = vmatmul.mubr.msk.bf16.vlgmr.msra.gmra.mxu0 %vm9281_vm11, %v13475_v1  ;;  %v12092_v1 = vld [vmem:[%s16636_s6 + $0x68] sm:$0xff]  ;;  %v12091_v43 = vld [vmem:[%s16636_s6 + $0x60] sm:$0xff] }
 0xc0e   : > { %12330 = vmatpush3.bf16.msra.mxu1 %v9384_v44  ;;  %12351 = vmatprep.mubr.msk.bf16.mxu0 %vm13583_vm10, %v13582_v45  ;;  %v12071_v44 = vld [vmem:[%s16636_s6 + $0x38] sm:$0xff] }
 0xc0f   : > { %12336 = vmatpush3.bf16.msra.mxu0 %v13477_v53  ;;  %12355 = vmatprep.subr.mxu1 %v9607_v47 }
 0xc10   : > { %12337 = vmatprep.subr.bf16.mxu0 %v13582_v45 }
 0xc11   : > { %12332 = vmatmul.mubr.msk.bf16.vlgmr.msra.gmra.mxu1 %vm9281_vm11, %v13476_v56  ;;  %v12105_v56 = vld [vmem:[%s16636_s6 + $0x98] sm:$0xff] }
 0xc12   : > { %v9441_v62 = vpop.permute.xlu0 %9440  ;;  %12356 = vmatpush3.msra.mxu1 %v9607_v47 }
 0xc13   : > { %12338 = vmatpush3.bf16.msra.mxu0 %v13478_v39  ;;  %12357 = vmatprep.subr.mxu1 %v9606_v21 }
 0xc14   : > { %12339 = vmatprep.subr.bf16.mxu0 %v13582_v45  ;;  %12358 = vmatpush3.msra.mxu1 %v9606_v21 }
 0xc15   : > { %12359 = vmatprep.subr.mxu1 %v9605_v33 }
 0xc16   : > { %v9446_v16 = vpop.permute.xlu1 %9445  ;;  %12360 = vmatpush3.msra.mxu1 %v9605_v33 }
 0xc17   : > { %12340 = vmatpush3.bf16.msra.mxu0 %v13479_v20  ;;  %12361 = vmatprep.subr.mxu1 %v9604_v60 }
 0xc18   : > { %12341 = vmatprep.subr.bf16.mxu0 %v13582_v45  ;;  %12362 = vmatpush3.msra.mxu1 %v9604_v60 }
 0xc19   : > { %12366 = vmatprep.subr.mxu1 %v12071_v44 }
 0xc1b   : > { %12342 = vmatpush3.bf16.msra.mxu0 %v13480_v41 }
 0xc1c   : > { %12343 = vmatprep.subr.bf16.mxu0 %v13582_v45 }
 0xc1f   : > { %12344 = vmatpush3.bf16.msra.mxu0 %v13481_v34 }
 0xc20   : > { %12345 = vmatprep.subr.bf16.mxu0 %v13582_v45 }
 0xc23   : > { %12346 = vmatpush3.bf16.msra.mxu0 %v13482_v49 }
 0xc24   : > { %12347 = vmatprep.subr.bf16.mxu0 %v13582_v45 }
 0xc27   : > { %12348 = vmatpush3.bf16.msra.mxu0 %v13483_v36 }
 0xc28   : > { %12349 = vmatprep.subr.bf16.mxu0 %v13582_v45 }
 0xc2b   : > { %12350 = vmatpush3.bf16.msra.mxu0 %v13484_v25 }
 0xc2c   : > { %12388 = vmatprep.subr.mxu0 %v12094_v2 }
 0xc58   : > { %v9319_v63 = vpop.f32.mrf.mxu1 }
 0xc5a   : > { %v12321_v14 = vpop.f32.mrf.mxu1 }
 0xc5c   : > { %v9322_v28 = vpop.f32.mrf.mxu1 }
 0xc5e   : > { %v12322_v9 = vpop.f32.mrf.mxu1 }
 0xccd   : > { %v9368_v46 = vpop.f32.mrf.mxu0 }
 0xcce   : > { %v9369_v24 = vadd.f32 %v9368_v46, %v9319_v63 }
 0xccf   : > { %v12327_v22 = vpop.f32.mrf.mxu0 }
 0xcd1   : > { %v9371_v57 = vpop.f32.mrf.mxu0  ;;  %v9427_v37 = vpop.f32.mrf.mxu1 }
 0xcd2   : > { %v9434_v61 = vadd.f32 %v9427_v37, %v9369_v24  ;;  %v9372_v52 = vadd.f32 %v9371_v57, %v9322_v28  ;;  %v12070_v24 = vld [vmem:[%s16636_s6 + $0x30] sm:$0xff]  ;;  %v12069_v37 = vld [vmem:[%s16636_s6 + $0x28] sm:$0xff] }
 0xcd3   : > { %v12333_v38 = vpop.f32.mrf.mxu1  ;;  %v12328_v35 = vpop.f32.mrf.mxu0  ;;  %v12104_v57 = vld [vmem:[%s16636_s6 + $0x90] sm:$0xff] }
 0xcd4   : > { %v9448_v58 = vadd.f32 %v9441_v62, %v9434_v61  ;;  %v12103_v61 = vld [vmem:[%s16636_s6 + $0x88] sm:$0xff]  ;;  %v12068_v38 = vld [vmem:[%s16636_s6 + $0x20] sm:$0xff] }
 0xcd5   : > { %v9430_v50 = vpop.f32.mrf.mxu1  ;;  %v12102_v35 = vld [vmem:[%s16636_s6 + $0x80] sm:$0xff] }
 0xcd6   : > { %v9435_v19 = vadd.f32 %v9430_v50, %v9372_v52  ;;  %v9450_v12 = vmax.f32 %v9448_v58, 0.0 }
 0xcd7   : > { %v12334_v48 = vpop.f32.mrf.mxu1 }
 0xcd8   : > { %v9449_v7 = vadd.f32 %v9446_v16, %v9435_v19 }
 0xcda   : > { %v9451_v15 = vmax.f32 %v9449_v7, 0.0 }
 0xcdc   : > { %v12661_v54 = vpack.i.bf16 %v9451_v15, %v9450_v12 }
 0xcde   : > { %12662 = vrot.lane.b32.xlu1 %v12661_v54, %s16624_s3  ;;  %12657 = vrot.lane.b32.xlu0 %v12661_v54, %s16629_s1  ;;  %s919_s3 = sand.u32 1, %s13537_s16  }
 0xcdf   : > { %s11382_s1 = sshll.u32 %s919_s3, 2  ;;  %s11276_s11 = scalar_lea.sflag [#allocation3], %s919_s3 }
 0xce2   : > { %9580 = vperm.xlu1 %12625, %v9576_v17   ;;  %12667 = vrot.lane.b32.xlu0 %v12661_v54, %s16625_s5  ;;  %s16637_s5 = sld [smem:[#allocation26_spill]] }
 0xce6   : > { %9594 = vperm.xlu1 %12625, %v9590_v29   ;;  %9585 = vperm.xlu0 %12519, %v9577_v10  }
 0xce8   : > { %v12077_v36 = vld [vmem:[%s16637_s5 + $0x38] sm:$0xff]  ;;  %v12076_v52 = vld [vmem:[%s16637_s5 + $0x30] sm:$0xff]  ;;  %v12075_v62 = vld [vmem:[%s16637_s5 + $0x28] sm:$0xff] }
 0xce9   : > { %v12074_v50 = vld [vmem:[%s16637_s5 + $0x20] sm:$0xff]  ;;  %v9693_v58 = vld [vmem:[%s16637_s5 + $0x18] sm:$0xff]  ;;  %v9691_v17 = vld [vmem:[%s16637_s5 + $0x8] sm:$0xff] }
 0xcea   : > { %9599 = vperm.xlu0 %12519, %v9591_v8   ;;  %v9690_v29 = vld [vmem:[%s16637_s5] sm:$0xff]  ;;  %v12083_v8 = vld [vmem:[%s16636_s6 + $0x58] sm:$0xff]  ;;  %v12099_v21 = vld [vmem:[%s16637_s5 + $0x70] sm:$0xff] }
 0xceb   : > { %v12098_v33 = vld [vmem:[%s16637_s5 + $0x68] sm:$0xff]  ;;  %v12111_v60 = vld [vmem:[%s16637_s5 + $0x98] sm:$0xff] }
 0xd50   : > { %v12663_v11 = vpop.permute.xlu1 %12662  ;;  %v12658_v27 = vpop.permute.xlu0 %12657 }
 0xd51   : > { %v12660_v30 = vunpack.i.h.bf16 %v12658_v27  ;;  %v12659_v23 = vunpack.i.l.bf16 %v12658_v27  ;;  %v12665_v42 = vunpack.i.h.bf16 %v12663_v11  ;;  %v12664_v5 = vunpack.i.l.bf16 %v12663_v11  ;;  %v12082_v11 = vld [vmem:[%s16636_s6 + $0x50] sm:$0xff]  ;;  %v12081_v27 = vld [vmem:[%s16636_s6 + $0x48] sm:$0xff] }
 0xd53   : > { %v9457_v4 = vmax.f32 %v9451_v15, %v12660_v30  ;;  %v9456_v6 = vmax.f32 %v9450_v12, %v12659_v23  ;;  %v9692_v15 = vld [vmem:[%s16637_s5 + $0x10] sm:$0xff]  ;;  %v12080_v30 = vld [vmem:[%s16636_s6 + $0x40] sm:$0xff]  ;;  %v12089_v23 = vld [vmem:[%s16637_s5 + $0x58] sm:$0xff] }
 0xd54   : > { %v12668_v26 = vpop.permute.xlu0 %12667 }
 0xd55   : > { %v12670_v51 = vunpack.i.h.bf16 %v12668_v26  ;;  %v12669_v13 = vunpack.i.l.bf16 %v12668_v26  ;;  %v9462_v32 = vmax.f32 %v9456_v6, %v12664_v5  ;;  %v9463_v18 = vmax.f32 %v9457_v4, %v12665_v42  ;;  %v12088_v42 = vld [vmem:[%s16637_s5 + $0x50] sm:$0xff]  ;;  %v12087_v5 = vld [vmem:[%s16637_s5 + $0x48] sm:$0xff]  ;;  %v12086_v4 = vld [vmem:[%s16637_s5 + $0x40] sm:$0xff] }
 0xd56   : > { %v12100_v6 = vld [vmem:[%s16637_s5 + $0x78] sm:$0xff] }
 0xd57   : > { %v9468_v3 = vmax.f32 %v9462_v32, %v12669_v13  ;;  %v9469_v0 = vmax.f32 %v9463_v18, %v12670_v51 }
 0xd59   : > { %v9470_v40 = vpack.c.bf16 %v9469_v0, %v9468_v3 }
 0xd5b   : > { %12352 = vmatmul.mubr.bf16.vlgmr.msra.gmra.mxu0 %v9470_v40 }
 0xd5c   : > { %12389 = vmatpush3.msra.mxu0 %v12094_v2 }
 0xd5d   : > { %12390 = vmatprep.subr.mxu0 %v12093_v59  ;;  %v9581_v63 = vpop.permute.xlu1 %9580 }
 0xd5e   : > { %12391 = vmatpush3.msra.mxu0 %v12093_v59 }
 0xd5f   : > { %12392 = vmatprep.subr.mxu0 %v12092_v1 }
 0xd60   : > { %12393 = vmatpush3.msra.mxu0 %v12092_v1  ;;  %v12097_v1 = vld [vmem:[%s16637_s5 + $0x60] sm:$0xff] }
 0xd61   : > { %12394 = vmatprep.subr.mxu0 %v12091_v43  ;;  %v9586_v14 = vpop.permute.xlu0 %9585  ;;  %v9595_v53 = vpop.permute.xlu1 %9594 }
 0xd62   : > { %12395 = vmatpush3.msra.mxu0 %v12091_v43 }
 0xd63   : > { %12399 = vmatprep.subr.mxu0 %v12105_v56 }
 0xd65   : > { %v9600_v49 = vpop.permute.xlu0 %9599 }
 0xe1b   : > { %v9569_v28 = vpop.f32.mrf.mxu0 }
 0xe1c   : > { %v9588_v9 = vmul.f32 %v9581_v63, %v9569_v28  ;;  %v12108_v63 = vld [vmem:[%s16637_s5 + $0x80] sm:$0xff] }
 0xe1d   : > { %v12353_v39 = vpop.f32.mrf.mxu0 }
 0xe1e   : > { %v16282_v20 = vadd.f32 %v9595_v53, %v9588_v9  ;;  %v12115_v9 = vld [vmem:[%s16636_s6 + $0xb0] sm:$0xff]  ;;  %v12114_v53 = vld [vmem:[%s16636_s6 + $0xa8] sm:$0xff]  ;;  %v12113_v39 = vld [vmem:[%s16636_s6 + $0xa0] sm:$0xff] }
 0xe1f   : > { %v9572_v41 = vpop.f32.mrf.mxu0 }
 0xe20   : > { %v9589_v34 = vmul.f32 %v9586_v14, %v9572_v41  ;;  %12363 = vmatprep.mubr.msk.f32.mxu1 %vm9608_vm12, %v16282_v20  ;;  %12396 = vmatprep.mubr.msk.f32.mxu0 %vm9608_vm12, %v16282_v20  ;;  %v12116_v14 = vld [vmem:[%s16636_s6 + $0xb8] sm:$0xff] }
 0xe21   : > { %v12354_v46 = vpop.f32.mrf.mxu0  ;;  %v12122_v41 = vld [vmem:[%s16637_s5 + $0xb8] sm:$0xff] }
 0xe22   : > { %v16288_v22 = vadd.f32 %v9600_v49, %v9589_v34  ;;  %v12121_v34 = vld [vmem:[%s16637_s5 + $0xb0] sm:$0xff]  ;;  %v12120_v49 = vld [vmem:[%s16637_s5 + $0xa8] sm:$0xff]  ;;  %v12119_v46 = vld [vmem:[%s16637_s5 + $0xa0] sm:$0xff] }
 0xe24   : > { %12364 = vmatmul.mubr.msk.f32.vlgmr.msra.gmra.mxu1 %vm9608_vm12, %v16288_v22  ;;  %12397 = vmatmul.mubr.msk.f32.vlgmr.msra.gmra.mxu0 %vm9608_vm12, %v16288_v22 }
 0xe25   : > { %12367 = vmatpush3.msra.mxu1 %v12071_v44  ;;  %12400 = vmatpush3.msra.mxu0 %v12105_v56  ;;  %v12110_v44 = vld [vmem:[%s16637_s5 + $0x90] sm:$0xff]  ;;  %v12109_v56 = vld [vmem:[%s16637_s5 + $0x88] sm:$0xff] }
 0xe26   : > { %12368 = vmatprep.subr.mxu1 %v12070_v24  ;;  %12374 = vmatprep.mubr.msk.f32.mxu1 %vm9608_vm12, %v16282_v20 }
 0xe27   : > { %12401 = vmatprep.subr.mxu0 %v12104_v57  ;;  %12407 = vmatprep.mubr.msk.f32.mxu0 %vm9608_vm12, %v16282_v20 }
 0xe28   : > { %12369 = vmatpush3.msra.mxu1 %v12070_v24  ;;  %12402 = vmatpush3.msra.mxu0 %v12104_v57  ;;  %v12127_v24 = vld [vmem:[%s16636_s6 + $0xd8] sm:$0xff] }
 0xe29   : > { %12370 = vmatprep.subr.mxu1 %v12069_v37  ;;  %12403 = vmatprep.subr.mxu0 %v12103_v61 }
 0xe2a   : > { %12371 = vmatpush3.msra.mxu1 %v12069_v37  ;;  %12404 = vmatpush3.msra.mxu0 %v12103_v61 }
 0xe2b   : > { %12372 = vmatprep.subr.mxu1 %v12068_v38  ;;  %12405 = vmatprep.subr.mxu0 %v12102_v35 }
 0xe2c   : > { %12373 = vmatpush3.msra.mxu1 %v12068_v38  ;;  %12406 = vmatpush3.msra.mxu0 %v12102_v35 }
 0xe2d   : > { %12375 = vmatmul.mubr.msk.f32.vlgmr.msra.gmra.mxu1 %vm9608_vm12, %v16288_v22  ;;  %12408 = vmatmul.mubr.msk.f32.vlgmr.msra.gmra.mxu0 %vm9608_vm12, %v16288_v22 }
 0xe2e   : > { %9878 = vmatprep.mubr.f32.mxu1 %v13582_v45  ;;  %10754 = vmatprep.mubr.f32.mxu0 %v13582_v45 }
 0xe2f   : > { %9842 = vmatprep.subr.mxu1 %v12077_v36  ;;  %10718 = vmatprep.subr.mxu0 %v12122_v41  ;;  %v11174_v41 = vld [vmem:[%s13733_s27 + $0x48] sm:$0xff] }
 0xe30   : > { %9843 = vmatpush1.msra.mxu1 %v12076_v52  ;;  %10719 = vmatpush1.msra.mxu0 %v12121_v34  ;;  %v11189_v34 = vld [vmem:[%s13733_s27 + $0xc0] sm:$0xff] }
 0xe31   : > { %9844 = vmatprep.subr.mxu1 %v12075_v62  ;;  %10720 = vmatprep.subr.mxu0 %v12120_v49  ;;  %v11173_v49 = vld [vmem:[%s13733_s27 + $0x40] sm:$0xff] }
 0xe32   : > { %9845 = vmatpush1.msra.mxu1 %v12074_v50  ;;  %10721 = vmatpush1.msra.mxu0 %v12119_v46  ;;  %v11188_v46 = vld [vmem:[%s13733_s27 + $0xb8] sm:$0xff] }
 0xe33   : > { %9948 = vmatprep.subr.mxu1 %v9693_v58  ;;  %12421 = vmatprep.subr.mxu0 %v12127_v24 }
 0xee4   : > { %v12365_v19 = vpop.f32.mrf.mxu1  ;;  %v12398_v7 = vpop.f32.mrf.mxu0 }
 0xee6   : > { %v9681_v16 = vpop.f32.mrf.mxu1  ;;  %v10255_v12 = vpop.f32.mrf.mxu0 }
 0xee7   : > { %9885 = vxpose.xlu0.b32.start [1/2] (short) (narrow) %v9681_v16, 8 }
 0xeeb   : > { %9886 = vxpose.xlu0.b32.end [2/2] (short) (narrow) %v12365_v19, 8 }
 0xeed   : > { %v12376_v48 = vpop.f32.mrf.mxu1  ;;  %v12409_v47 = vpop.f32.mrf.mxu0 }
 0xeef   : > { %v9765_v25 = vpop.f32.mrf.mxu1  ;;  %v10448_v2 = vpop.f32.mrf.mxu0 }
 0xef0   : > { %9779 = vxpose.xlu1.b32.start [1/2] (short) (narrow) %v9765_v25, 8 }
 0xef4   : > { %9780 = vxpose.xlu1.b32.end [2/2] (short) (narrow) %v12376_v48, 8 }
 0xef8   : > { %10269 = vxpose.xlu1.b32.start [1/2] (short) (narrow) %v10255_v12, 8  ;;  %v12126_v12 = vld [vmem:[%s16636_s6 + $0xd0] sm:$0xff] }
 0xefc   : > { %10270 = vxpose.xlu1.b32.end [2/2] (short) (narrow) %v12398_v7, 8 }
 0xf63   : > { %v9901_v10 = vpop.trf.xlu0 }
 0xf6c   : > { %v9795_v54 = vpop.trf.xlu1 }
 0xf6d   : > { %12078 = vmatmul.mubr.msk.f32.vlgmr.msra.gmra.mxu1 %vm9281_vm11, %v9795_v54  ;;  %v12124_v54 = vld [vmem:[%s16636_s6 + $0xc0] sm:$0xff] }
 0xf6e   : > { %9949 = vmatpush1.msra.mxu1 %v9692_v15  ;;  %9984 = vmatprep.mubr.f32.mxu1 %v13582_v45  ;;  %v12125_v15 = vld [vmem:[%s16636_s6 + $0xc8] sm:$0xff] }
 0xf6f   : > { %9950 = vmatprep.subr.mxu1 %v9691_v17  ;;  %v12133_v17 = vld [vmem:[%s16637_s5 + $0xd8] sm:$0xff] }
 0xf70   : > { %9951 = vmatpush1.msra.mxu1 %v9690_v29  ;;  %v12132_v29 = vld [vmem:[%s16637_s5 + $0xd0] sm:$0xff] }
 0xf71   : > { %12377 = vmatprep.subr.mxu1 %v12083_v8  ;;  %12079 = vmatmul.mubr.msk.f32.vlgmr.msra.gmra.mxu1 %vm9281_vm11, %v9901_v10  ;;  %v12131_v10 = vld [vmem:[%s16637_s5 + $0xc8] sm:$0xff] }
 0xf72   : > { %12378 = vmatpush3.msra.mxu1 %v12083_v8  ;;  %12385 = vmatprep.mubr.msk.f32.mxu1 %vm9608_vm12, %v16282_v20  ;;  %v12130_v8 = vld [vmem:[%s16637_s5 + $0xc0] sm:$0xff] }
 0xf73   : > { %12379 = vmatprep.subr.mxu1 %v12082_v11 }
 0xf74   : > { %12380 = vmatpush3.msra.mxu1 %v12082_v11  ;;  %v10285_v43 = vpop.trf.xlu1  ;;  %v12138_v11 = vld [vmem:[%s16636_s6 + $0xf8] sm:$0xff] }
 0xf75   : > { %12381 = vmatprep.subr.mxu1 %v12081_v27 }
 0xf76   : > { %12382 = vmatpush3.msra.mxu1 %v12081_v27 }
 0xf77   : > { %12383 = vmatprep.subr.mxu1 %v12080_v30 }
 0xf78   : > { %12384 = vmatpush3.msra.mxu1 %v12080_v30 }
 0xf79   : > { %12386 = vmatmul.mubr.msk.f32.vlgmr.msra.gmra.mxu1 %vm9608_vm12, %v16288_v22  ;;  %10139 = vmatprep.subr.mxu1 %v12089_v23 }
 0xf7a   : > { %10175 = vmatprep.mubr.f32.mxu1 %v13582_v45  ;;  %10140 = vmatpush1.msra.mxu1 %v12088_v42 }
 0xf7b   : > { %10141 = vmatprep.subr.mxu1 %v12087_v5 }
 0xf7c   : > { %10142 = vmatpush1.msra.mxu1 %v12086_v4 }
 0xf7d   : > { %10332 = vmatprep.subr.mxu1 %v12100_v6  ;;  %v12137_v6 = vld [vmem:[%s16636_s6 + $0xf0] sm:$0xff] }
0x102d   : > { %v9880_v26 = vpop.f32.mrf.mxu1 }
0x102f   : > { %v9882_v51 = vpop.f32.mrf.mxu1 }
0x1031   : > { %v9986_v13 = vpop.f32.mrf.mxu1 }
0x1032   : > { %v9987_v32 = vadd.f32 %v9986_v13, %v9880_v26  ;;  %v12136_v26 = vld [vmem:[%s16636_s6 + $0xe8] sm:$0xff]  ;;  %v12144_v13 = vld [vmem:[%s16637_s5 + $0xf8] sm:$0xff] }
0x1033   : > { %v9988_v18 = vpop.f32.mrf.mxu1 }
0x1034   : > { %v9989_v3 = vadd.f32 %v9988_v18, %v9882_v51  ;;  %v12135_v51 = vld [vmem:[%s16636_s6 + $0xe0] sm:$0xff]  ;;  %v12142_v18 = vld [vmem:[%s16637_s5 + $0xe8] sm:$0xff]  ;;  %s921_s6 = scalar_lea.vmem [#allocation2], %s11382_s1 }
0x1035   : > { %s11289_s8 = sshll.u32 %s921_s6, 4  ;;  %s11290_s8 = int_to_ptr.vmem [resolvable:$true] %s11289_s8 }
0x1036   : > { %s13485_s13 = scalar_lea.vmem %s11290_s8, 64  ;;  %p13492_p0 = scmp.lt.s32.totalorder %s11290_s8, %s13490_s17 }
0x1037   : > { %p13486_p11 = scmp.ne.s32.totalorder %s11290_s8, %s13485_s13  ;;  %p13493_p1 = scmp.lt.s32.totalorder %s13491_s19, %s13485_s13 }
0x1039   : > { %v12387_v0 = vpop.f32.mrf.mxu1  ;;  %p13487_p12 = pnand %p13486_p11, %p13783_p5  ;;  %p13494_p2 = por %p13493_p1, %p13492_p0 }
0x103b   : > { %v10062_v40 = vpop.f32.mrf.mxu1  ;;  %p13488_p13 = pneg %p13487_p12 }
0x103c   : > { %10076 = vxpose.xlu0.b32.start [1/2] (short) (narrow) %v10062_v40, 8 }
0x103d   : > { %p13495_p3 = pnand %p13494_p2, %p13488_p13 }
0x1040   : > { %10077 = vxpose.xlu0.b32.end [2/2] (short) (narrow) %v12387_v0, 8 }
0x1044   : > { %10462 = vxpose.xlu0.b32.start [1/2] (short) (narrow) %v10448_v2, 8  ;;  %v11196_v2 = vld [vmem:[%s13733_s27 + $0xf8] sm:$0xff] }
0x1048   : > { %10463 = vxpose.xlu0.b32.end [2/2] (short) (narrow) %v12409_v47, 8 }
0x10b8   : > { %v10092_v59 = vpop.trf.xlu0 }
0x10b9   : > { %12090 = vmatmul.mubr.msk.f32.vlgmr.msra.gmra.mxu1 %vm9281_vm11, %v10092_v59  ;;  %v11180_v59 = vld [vmem:[%s13733_s27 + $0x78] sm:$0xff] }
0x10ba   : > { %10333 = vmatpush1.msra.mxu1 %v12099_v21  ;;  %10368 = vmatprep.mubr.f32.mxu1 %v13582_v45 }
0x10bb   : > { %10334 = vmatprep.subr.mxu1 %v12098_v33 }
0x10bc   : > { %10335 = vmatpush1.msra.mxu1 %v12097_v1  ;;  %v11195_v1 = vld [vmem:[%s13733_s27 + $0xf0] sm:$0xff] }
0x10bd   : > { %10525 = vmatprep.subr.mxu1 %v12111_v60  ;;  %12101 = vmatmul.mubr.msk.f32.vlgmr.msra.gmra.mxu1 %vm9281_vm11, %v10285_v43  ;;  %v11179_v60 = vld [vmem:[%s13733_s27 + $0x70] sm:$0xff]  ;;  %v11194_v43 = vld [vmem:[%s13733_s27 + $0xe8] sm:$0xff] }
0x10be   : > { %10526 = vmatpush1.msra.mxu1 %v12110_v44  ;;  %10561 = vmatprep.mubr.f32.mxu1 %v13582_v45  ;;  %v11178_v44 = vld [vmem:[%s13733_s27 + $0x68] sm:$0xff] }
0x10bf   : > { %10527 = vmatprep.subr.mxu1 %v12109_v56  ;;  %v11193_v56 = vld [vmem:[%s13733_s27 + $0xe0] sm:$0xff] }
0x10c0   : > { %10528 = vmatpush1.msra.mxu1 %v12108_v63  ;;  %v10478_v28 = vpop.trf.xlu0  ;;  %v11177_v63 = vld [vmem:[%s13733_s27 + $0x60] sm:$0xff] }
0x10c1   : > { %12410 = vmatprep.subr.mxu1 %v12116_v14  ;;  %12112 = vmatmul.mubr.msk.f32.vlgmr.msra.gmra.mxu1 %vm9281_vm11, %v10478_v28  ;;  %v11176_v28 = vld [vmem:[%s13733_s27 + $0x58] sm:$0xff] }
0x10c2   : > { %12411 = vmatpush3.msra.mxu1 %v12116_v14  ;;  %12418 = vmatprep.mubr.msk.f32.mxu1 %vm9608_vm12, %v16282_v20  ;;  %v11192_v14 = vld [vmem:[%s13733_s27 + $0xd8] sm:$0xff] }
0x10c3   : > { %12412 = vmatprep.subr.mxu1 %v12115_v9 }
0x10c4   : > { %12413 = vmatpush3.msra.mxu1 %v12115_v9  ;;  %v11191_v9 = vld [vmem:[%s13733_s27 + $0xd0] sm:$0xff] }
0x10c5   : > { %12414 = vmatprep.subr.mxu1 %v12114_v53 }
0x10c6   : > { %12415 = vmatpush3.msra.mxu1 %v12114_v53  ;;  %v11175_v53 = vld [vmem:[%s13733_s27 + $0x50] sm:$0xff] }
0x10c7   : > { %12416 = vmatprep.subr.mxu1 %v12113_v39 }
0x10c8   : > { %12417 = vmatpush3.msra.mxu1 %v12113_v39  ;;  %v11190_v39 = vld [vmem:[%s13733_s27 + $0xc8] sm:$0xff] }
0x10c9   : > { %12419 = vmatmul.mubr.msk.f32.vlgmr.msra.gmra.mxu1 %vm9608_vm12, %v16288_v22  ;;  %10911 = vmatprep.subr.mxu1 %v12133_v17 }
0x10ca   : > { %10947 = vmatprep.mubr.f32.mxu1 %v13582_v45  ;;  %10912 = vmatpush1.msra.mxu1 %v12132_v29 }
0x10cb   : > { %10913 = vmatprep.subr.mxu1 %v12131_v10 }
0x10cc   : > { %10914 = vmatpush1.msra.mxu1 %v12130_v8 }
0x10cd   : > { %12432 = vmatprep.subr.mxu1 %v12138_v11 }
0x1179   : > { %v10177_v57 = vpop.f32.mrf.mxu1 }
0x117a   : > { %v10182_v37 = vadd.f32 %v10177_v57, %v9987_v32  ;;  %v12143_v32 = vld [vmem:[%s16637_s5 + $0xf0] sm:$0xff] }
0x117b   : > { %v10179_v61 = vpop.f32.mrf.mxu1  ;;  %v11187_v57 = vld [vmem:[%s13733_s27 + $0xb0] sm:$0xff] }
0x117c   : > { %v10183_v38 = vadd.f32 %v10179_v61, %v9989_v3  ;;  %v12141_v3 = vld [vmem:[%s16637_s5 + $0xe0] sm:$0xff]  ;;  %v11186_v61 = vld [vmem:[%s13733_s27 + $0xa8] sm:$0xff]  ;;  %s12148_s5 = sshll.u32 %s13766_s0, 6 }
0x117d   : > { %v10370_v35 = vpop.f32.mrf.mxu1  ;;  %s11287_s9 = scalar_lea.hbm %s13743_s12, %s12148_s5 }
0x117e   : > { %v10375_v36 = vadd.f32 %v10370_v35, %v10182_v37  ;;  %v11171_v37 = vld [vmem:[%s13733_s27 + $0x30] sm:$0xff]  ;;  %v11185_v35 = vld [vmem:[%s13733_s27 + $0xa0] sm:$0xff] }
0x117f   : > { %v10372_v52 = vpop.f32.mrf.mxu1 }
0x1180   : > { %v10376_v62 = vadd.f32 %v10372_v52, %v10183_v38  ;;  %v11170_v38 = vld [vmem:[%s13733_s27 + $0x28] sm:$0xff]  ;;  %v11184_v52 = vld [vmem:[%s13733_s27 + $0x98] sm:$0xff] }
0x1181   : > { %v10563_v50 = vpop.f32.mrf.mxu1 }
0x1182   : > { %v10568_v58 = vadd.f32 %v10563_v50, %v10375_v36  ;;  %v11169_v36 = vld [vmem:[%s13733_s27 + $0x20] sm:$0xff]  ;;  %v11183_v50 = vld [vmem:[%s13733_s27 + $0x90] sm:$0xff] }
0x1183   : > { %v10565_v19 = vpop.f32.mrf.mxu1 }
0x1184   : > { %v10569_v16 = vadd.f32 %v10565_v19, %v10376_v62  ;;  %v11168_v62 = vld [vmem:[%s13733_s27 + $0x18] sm:$0xff]  ;;  %v11182_v19 = vld [vmem:[%s13733_s27 + $0x88] sm:$0xff] }
0x1189   : > { %v12420_v48 = vpop.f32.mrf.mxu1 }
0x118b   : > { %v10641_v25 = vpop.f32.mrf.mxu1 }
0x118c   : > { %10655 = vxpose.xlu1.b32.start [1/2] (short) (narrow) %v10641_v25, 8  ;;  %v11165_v25 = vld [vmem:[%s13733_s27] sm:$0xff] }
0x1190   : > { %10656 = vxpose.xlu1.b32.end [2/2] (short) (narrow) %v12420_v48, 8  ;;  %v11181_v48 = vld [vmem:[%s13733_s27 + $0x80] sm:$0xff] }
0x1208   : > { %v10671_v7 = vpop.trf.xlu1 }
0x1209   : > { %12123 = vmatmul.mubr.msk.f32.vlgmr.msra.gmra.mxu0 %vm9281_vm11, %v10671_v7  ;;  %v11149_v7 = vld [vmem:[%s13728_s20] sm:$0x3] }
0x120a   : > { %12422 = vmatpush3.msra.mxu0 %v12127_v24  ;;  %12429 = vmatprep.mubr.msk.f32.mxu0 %vm9608_vm12, %v16282_v20  ;;  %v11172_v24 = vld [vmem:[%s13733_s27 + $0x38] sm:$0xff]  ;;  %v11158_v17 = vrot.slane %v11149_v7, %v16616_v31 }
0x120b   : > { %12423 = vmatprep.subr.mxu0 %v12126_v12 }
0x120c   : > { %12424 = vmatpush3.msra.mxu0 %v12126_v12 }
0x120d   : > { %12425 = vmatprep.subr.mxu0 %v12125_v15 }
0x120e   : > { %12426 = vmatpush3.msra.mxu0 %v12125_v15  ;;  %v11154_v15 = vrot.slane %v11149_v7, %v16619_v55  ;;  %v12146_v55 = vld [vmem:[%s13738_s4] ss:$0 sm:$0xff] }
0x120f   : > { %12427 = vmatprep.subr.mxu0 %v12124_v54 }
0x1210   : > { %12428 = vmatpush3.msra.mxu0 %v12124_v54 }
0x1211   : > { %12430 = vmatmul.mubr.msk.f32.vlgmr.msra.gmra.mxu0 %vm9608_vm12, %v16288_v22  ;;  %11104 = vmatprep.subr.mxu0 %v12144_v13 }
0x1212   : > { %11140 = vmatprep.mubr.f32.mxu0 %v13582_v45  ;;  %11105 = vmatpush1.msra.mxu0 %v12143_v32 }
0x1213   : > { %11106 = vmatprep.subr.mxu0 %v12142_v18 }
0x1214   : > { %11107 = vmatpush1.msra.mxu0 %v12141_v3 }
0x1215   : > { %12264 = vmatprep.subr.mxu0 %v11196_v2 }
0x12c9   : > { %v10756_v27 = vpop.f32.mrf.mxu0 }
0x12ca   : > { %v10761_v30 = vadd.f32 %v10756_v27, %v10568_v58  ;;  %v11167_v58 = vld [vmem:[%s13733_s27 + $0x10] sm:$0xff] }
0x12cb   : > { %v10758_v23 = vpop.f32.mrf.mxu0 }
0x12cc   : > { %v10762_v42 = vadd.f32 %v10758_v23, %v10569_v16  ;;  %v11166_v16 = vld [vmem:[%s13733_s27 + $0x8] sm:$0xff] }
0x12d1   : > { %v12431_v5 = vpop.f32.mrf.mxu0 }
0x12d3   : > { %v10834_v4 = vpop.f32.mrf.mxu0 }
0x12d4   : > { %10848 = vxpose.xlu0.b32.start [1/2] (short) (narrow) %v10834_v4, 8 }
0x12d8   : > { %10849 = vxpose.xlu0.b32.end [2/2] (short) (narrow) %v12431_v5, 8 }
0x1350   : > { %v10864_v45 = vpop.trf.xlu0 }
0x1351   : > { %12134 = vmatmul.mubr.msk.f32.vlgmr.msra.gmra.mxu1 %vm9281_vm11, %v10864_v45 }
0x1352   : > { %12433 = vmatpush3.msra.mxu1 %v12138_v11  ;;  %12440 = vmatprep.mubr.msk.f32.mxu1 %vm9608_vm12, %v16282_v20 }
0x1353   : > { %12434 = vmatprep.subr.mxu1 %v12137_v6 }
0x1354   : > { %12435 = vmatpush3.msra.mxu1 %v12137_v6 }
0x1355   : > { %12436 = vmatprep.subr.mxu1 %v12136_v26 }
0x1356   : > { %12437 = vmatpush3.msra.mxu1 %v12136_v26 }
0x1357   : > { %12438 = vmatprep.subr.mxu1 %v12135_v51 }
0x1358   : > { %12439 = vmatpush3.msra.mxu1 %v12135_v51 }
0x1359   : > { %12441 = vmatmul.mubr.msk.f32.vlgmr.msra.gmra.mxu1 %vm9608_vm12, %v16288_v22 }
0x1411   : > { %v10949_v20 = vpop.f32.mrf.mxu1 }
0x1412   : > { %v16387_v0 = vadd.f32 %v10949_v20, %v10761_v30 }
0x1413   : > { %v10951_v40 = vpop.f32.mrf.mxu1 }
0x1414   : > { %v16389_v47 = vadd.f32 %v10951_v40, %v10762_v42 }
0x1419   : > { %v12442_v22 = vpop.f32.mrf.mxu1 }
0x141b   : > { %v11027_v21 = vpop.f32.mrf.mxu1 }
0x141c   : > { %11041 = vxpose.xlu1.b32.start [1/2] (short) (narrow) %v11027_v21, 8 }
0x1420   : > { %11042 = vxpose.xlu1.b32.end [2/2] (short) (narrow) %v12442_v22, 8 }
0x1498   : > { %v11057_v33 = vpop.trf.xlu1 }
0x1499   : > { %12145 = vmatmul.mubr.msk.f32.vlgmr.msra.gmra.mxu0 %vm9281_vm11, %v11057_v33 }
0x149a   : > { %12265 = vmatpush3.msra.mxu0 %v11180_v59 }
0x149b   : > { %12266 = vmatprep.subr.mxu0 %v11195_v1 }
0x149c   : > { %12267 = vmatpush3.msra.mxu0 %v11179_v60 }
0x149d   : > { %12268 = vmatprep.subr.mxu0 %v11194_v43 }
0x149e   : > { %12269 = vmatpush3.msra.mxu0 %v11178_v44 }
0x149f   : > { %12270 = vmatprep.subr.mxu0 %v11193_v56 }
0x14a0   : > { %12271 = vmatpush3.msra.mxu0 %v11177_v63 }
0x14a1   : > { %12272 = vmatprep.subr.mxu0 %v11192_v14 }
0x14a2   : > { %12273 = vmatpush3.msra.mxu0 %v11176_v28 }
0x14a3   : > { %12274 = vmatprep.subr.mxu0 %v11191_v9 }
0x14a4   : > { %12275 = vmatpush3.msra.mxu0 %v11175_v53 }
0x14a5   : > { %12276 = vmatprep.subr.mxu0 %v11190_v39 }
0x14a6   : > { %12277 = vmatpush3.msra.mxu0 %v11174_v41 }
0x14a7   : > { %12278 = vmatprep.subr.mxu0 %v11189_v34 }
0x14a8   : > { %12279 = vmatpush3.msra.mxu0 %v11173_v49 }
0x14a9   : > { %12280 = vmatprep.subr.mxu0 %v11188_v46 }
0x14aa   : > { %12281 = vmatpush3.msra.mxu0 %v11172_v24 }
0x14ab   : > { %12282 = vmatprep.subr.mxu0 %v11187_v57 }
0x14ac   : > { %12283 = vmatpush3.msra.mxu0 %v11171_v37 }
0x14ad   : > { %12284 = vmatprep.subr.mxu0 %v11186_v61 }
0x14ae   : > { %12285 = vmatpush3.msra.mxu0 %v11170_v38 }
0x14af   : > { %12286 = vmatprep.subr.mxu0 %v11185_v35 }
0x14b0   : > { %12287 = vmatpush3.msra.mxu0 %v11169_v36 }
0x14b1   : > { %12288 = vmatprep.subr.mxu0 %v11184_v52 }
0x14b2   : > { %12289 = vmatpush3.msra.mxu0 %v11168_v62 }
0x14b3   : > { %12290 = vmatprep.subr.mxu0 %v11183_v50 }
0x14b4   : > { %12291 = vmatpush3.msra.mxu0 %v11167_v58 }
0x14b5   : > { %12292 = vmatprep.subr.mxu0 %v11182_v19 }
0x14b6   : > { %12293 = vmatpush3.msra.mxu0 %v11166_v16 }
0x14b7   : > { %12294 = vmatprep.subr.mxu0 %v11181_v48 }
0x14b8   : > { %12295 = vmatpush3.msra.mxu0 %v11165_v25 }
0x1559   : > { %v11142_v12 = vpop.f32.mrf.mxu0 }
0x155a   : > { %v11147_v54 = vadd.f32 %v11142_v12, %v16387_v0 }
0x155b   : > { %v11144_v29 = vpop.f32.mrf.mxu0 }
0x155c   : > { %v11148_v10 = vadd.f32 %v11144_v29, %v16389_v47  ;;  %v11161_v8 = vadd.f32 %v11154_v15, %v11147_v54 }
0x155e   : > { %v11162_v11 = vadd.f32 %v11158_v17, %v11148_v10  ;;  %v11163_v30 = vmax.f32 %v11161_v8, 0.0 }
0x1560   : > { %v11164_v27 = vmax.f32 %v11162_v11, 0.0 }
0x1562   : > { %11268 = vmatprep.mubr.f32.mxu0 %v11164_v27 }
0x1563   : > { %11269 = vmatmul.mubr.f32.vlgmr.msra.gmra.mxu0 %v11163_v30 }
0x1623   : > { %v12296_v23 = vpop.f32.mrf.mxu0 }
0x1625   : > { %v12297_v42 = vpop.f32.mrf.mxu0 }
0x1626   : > { %v12298_v31 = vadd.f32 %v12297_v42, %v12296_v23 }
0x1628   : > { %v11271_v5 = vadd.f32 %v12298_v31, %v12146_v55 }
0x162a   : > { %11274 = vst [vmem:[%s921_s6] sm:$0xf] %v11271_v5 }
0x162b   : > { %13498 = shalt.err (!%p13495_p3)
}
0x162c   : > { %s13499_s0 = scalar_lea.hbm %s11287_s9, 64  ;;  %s13503_s6 = scalar_lea.hbm %s13743_s12, 128 }
0x162d   : > { %p13500_p4 = scmp.ne.s32.totalorder %s11287_s9, %s13499_s0  ;;  %p13504_p9 = scmp.lt.s32.totalorder %s11287_s9, %s13743_s12 }
0x162e   : > { %p13505_p10 = scmp.lt.s32.totalorder %s13503_s6, %s13499_s0 }
0x162f   : > { %p13501_p7 = pnand %p13500_p4, %p13783_p5 }
0x1630   : > { %p13506_p11 = por %p13505_p10, %p13504_p9 }
0x1631   : > { %p13502_p8 = pneg %p13501_p7 }
0x1633   : > { %p13507_p12 = pnand %p13506_p11, %p13502_p8 }
0x1635   : > { %13510 = shalt.err (!%p13507_p12)
}
0x1636   : > { %12443 = dma.vmem_to_hbm [thread:$0]  (%p13783_p5), %s11290_s8, 64, %s11287_s9, %s11276_s11  }
0x1637 PF: > { %p12449_p13 = scmp.ge.s32.totalorder %s13545_s22, 2  ;;  %s11301_s13 = sand.u32 1, %s13533_s15  }
0x1638   : > { %s11302_s17 = scalar_lea.sflag [#allocation3], %s11301_s13 }
0x1639   : > { %p12446_p0 = pnand %p12449_p13, %p13787_p6 }
0x163b   : > { %p12447_p1 = pneg %p12446_p0 }
0x163d   : > { %13528 = dma.done.wait (%p12447_p1), %s11302_s17, 64  }
0x163e   : > { %13530 = vsyncadd (%p12447_p1), %s11302_s17, 4294967232  ;;  %p71_p2 = scmp.ge.s32.totalorder %s13770_s26, 4   ;;  %s16638_s15 = smov %s13537_s16 }
0x163f   : > { %s16639_s16 = smov %s13541_s18  ;;  %s16640_s18 = smov %s13781_s2 }
0x1640   : > { %s16641_s22 = smov %s13770_s26  ;;  %73 = sbr.rel (!%p71_p2) target bundleno = 64 (0x40), region = 234 }
0x1645   :  { %11307 = vsyncpa [#allocation3], 1 }
0x1646   :  { %11309 = vsyncpa [#allocation3 + $0x1], 1 }

</bundles_post_ra>
